<compile_context>
chip_gen: v7x
topology: tpu7x:2x2x1
jax: 0.10.0
libtpu: 0.0.40
codegen_flags: <defaults>
</compile_context>

<pallas_src>
import functools
import math

import jax
import jax.numpy as jnp
from jax.experimental import pallas as pl
from jax.experimental.pallas import tpu as pltpu


# ----------------------------------------------------------------------------
# Fused forward kernel (one grid step == TILE_B batch elements, end to end)
# ----------------------------------------------------------------------------
def _layernorm(x, w, b, eps=1e-5):
    mu = jnp.mean(x, axis=-1, keepdims=True)
    var = jnp.mean(jnp.square(x - mu), axis=-1, keepdims=True)
    return (x - mu) * jax.lax.rsqrt(var + eps) * w + b        # rsqrt -> EUP


def _fused_forward_kernel(img_ref, pred_ref, z_ref, pe_ref,
                          enc_w_ref, enc_b_ref, lin_w_ref, lin_b_ref,
                          wqkv_ref, bqkv_ref, wo_ref, bo_ref,
                          ln1w_ref, ln1b_ref,
                          w1_ref, b1_ref, w2_ref, b2_ref,
                          ln2w_ref, ln2b_ref,
                          dec_w_ref, dec_b_ref, out_ref,
                          *, depth, heads, dim_img, z_rep):
    f32 = jnp.float32
    bf16 = jnp.bfloat16

    tb, s_in, c, wh = img_ref.shape
    n = s_in + 1
    d = dim_img
    hd = d // heads
    scale = 1.0 / math.sqrt(hd)

    # ---- encoder stand-in: spatial mean pool -> linear/ReLU -> linear ----
    # TODO(synk): timm resnet18 backbone replaced by mean-pool + two linears.
    img = img_ref[...].reshape(tb * s_in, c, wh)
    pooled = jnp.mean(img, axis=-1)                              # [TB*S_in, C]
    feat = jnp.dot(pooled, enc_w_ref[...], preferred_element_type=f32) + enc_b_ref[...]
    feat = jnp.maximum(feat, 0.0)
    feat = jnp.dot(feat.astype(bf16), lin_w_ref[...],
                   preferred_element_type=f32) + lin_b_ref[...]  # [TB*S_in, D]
    feat = feat.reshape(tb, s_in, d)

    # ---- prepend pred token, add z + positional encoding ('add' fusion) ----
    pred = jnp.broadcast_to(pred_ref[...], (tb, 1, d))
    x3 = jnp.concatenate([pred, feat], axis=1)                   # [TB, N, D]
    z_t = jnp.concatenate([z_ref[...]] * z_rep, axis=-1)         # [TB, 1, D]
    x3 = x3 + z_t + pe_ref[...]
    # dropout_emb / dropout_trf: identity in eval mode.
    x = x3.reshape(tb * n, d)                                    # flat rows

    for l in range(depth):                                       # static unroll
        # -- multi-head self-attention: one fused lane-dense QKV matmul,
        #    tiny per-head [N,N] score/softmax, fused concat + out-proj --
        qkv = jnp.dot(x, wqkv_ref[l], preferred_element_type=f32) + bqkv_ref[l]
        qkv3 = qkv.reshape(tb, n, 3 * d)
        heads_out = []
        for h in range(heads):                                   # static, tiny
            qh = qkv3[:, :, h * hd:(h + 1) * hd]
            kh = qkv3[:, :, d + h * hd:d + (h + 1) * hd]
            vh = qkv3[:, :, 2 * d + h * hd:2 * d + (h + 1) * hd]
            s = jnp.einsum('bqf,bkf->bqk', qh, kh,
                           preferred_element_type=f32) * scale
            s = s - jnp.max(s, axis=-1, keepdims=True)
            p = jnp.exp(s)
            p = p * pl.reciprocal(jnp.sum(p, axis=-1, keepdims=True), approx=True)
            heads_out.append(jnp.einsum('bqk,bkf->bqf', p, vh,
                                        preferred_element_type=f32))
        o = jnp.concatenate(heads_out, axis=-1).reshape(tb * n, d)
        attn = jnp.dot(o, wo_ref[l], preferred_element_type=f32) + bo_ref[l]
        x = _layernorm(x + attn, ln1w_ref[l], ln1b_ref[l])       # post-norm

        # -- feed-forward (bf16 MXU operands, f32 accumulate; tanh GELU -> EUP) --
        h1 = jnp.dot(x.astype(bf16), w1_ref[l], preferred_element_type=f32) + b1_ref[l]
        h1 = jax.nn.gelu(h1, approximate=True)
        h2 = jnp.dot(h1.astype(bf16), w2_ref[l], preferred_element_type=f32) + b2_ref[l]
        x = _layernorm(x + h2, ln2w_ref[l], ln2b_ref[l])

    # ---- prd_token_type == 'mean' (includes pred token), crop, decode ----
    seq = jnp.mean(x.reshape(tb, n, d), axis=1)                  # [TB, D]
    seq = seq[:, :dim_img]                                       # no-op: dim == dim_img
    # TODO(synk): GiraffeGen conv decoder replaced by linear + tanh projection.
    y = jnp.dot(seq.astype(bf16), dec_w_ref[...],
                preferred_element_type=f32) + dec_b_ref[...]     # [TB, C*W*H]
    out_ref[...] = jnp.tanh(y).astype(out_ref.dtype)             # lane-dense block store


# ----------------------------------------------------------------------------
# Parameters / positional encoding (host-side prep, done once)
# ----------------------------------------------------------------------------
def make_pe_table(d_model, max_len):
    pos = jnp.arange(max_len, dtype=jnp.float32)[:, None]
    div = jnp.exp(jnp.arange(0, d_model, 2, dtype=jnp.float32)
                  * (-math.log(10000.0) / d_model))
    pe = jnp.zeros((max_len, d_model), jnp.float32)
    pe = pe.at[:, 0::2].set(jnp.sin(pos * div))
    pe = pe.at[:, 1::2].set(jnp.cos(pos * div))
    return pe


def init_params(key, cfg, C, W, H):
    D, Dimg, F = cfg["dim"], cfg["dim_img"], cfg["dim_ff"]
    L = cfg["depth"]
    keys = jax.random.split(key, 12)
    it = iter(keys)
    bf16 = jnp.bfloat16

    def nrm(shape, scale=0.02, dtype=jnp.float32):
        return (scale * jax.random.normal(next(it), shape, jnp.float32)).astype(dtype)

    def z32(shape):
        return jnp.zeros(shape, jnp.float32)

    p = {"cfg": cfg}
    # encoder stand-in (resnet18 -> 512 features).  TODO(synk): not real resnet18.
    p["enc_w"] = nrm((C, 512))
    p["enc_b"] = z32((1, 512))
    p["lin_enc_w"] = nrm((512, Dimg), dtype=bf16)     # bf16 MXU operand
    p["lin_enc_b"] = z32((1, Dimg))
    p["pred_token"] = nrm((1, Dimg), 1.0)             # reference parameter [1,1,dim_img]
    p["pe_table"] = make_pe_table(cfg["dim_pe"], cfg["pe_max_len"])
    # transformer weights, stacked over depth.  Fused QKV projection
    # [L, D, 3D] (head-major output columns) and fused output projection
    # [L, D, D] -> lane-dense matmuls, no per-head weight tiles.
    p["wqkv"] = nrm((L, D, 3 * D))
    p["bqkv"] = z32((L, 1, 3 * D))
    p["wo"] = nrm((L, D, D))
    p["bo"] = z32((L, 1, D))
    p["ln1w"] = jnp.ones((L, 1, D), jnp.float32); p["ln1b"] = z32((L, 1, D))
    p["w1"] = nrm((L, D, F), dtype=bf16); p["b1"] = z32((L, 1, F))
    p["w2"] = nrm((L, F, D), dtype=bf16); p["b2"] = z32((L, 1, D))
    p["ln2w"] = jnp.ones((L, 1, D), jnp.float32); p["ln2b"] = z32((L, 1, D))
    # decoder stand-in (GiraffeGen).  TODO(synk): not the real Giraffe conv decoder.
    p["dec_w"] = nrm((Dimg, C * W * H), dtype=bf16)
    p["dec_b"] = z32((1, C * W * H))
    return p


# ----------------------------------------------------------------------------
# Batch-tile selection
# ----------------------------------------------------------------------------
def _pick_tile_b(B):
    """Largest divisor of B that is a multiple of 8 (exact f32 sublane tiles,
    legal / unmasked [TILE_B, C*W*H] output blocks) while leaving >= 2 grid
    steps so v7x's two TensorCores both get work.  Falls back to the whole
    batch in one step (block == full array -> still a legal block shape)."""
    best = None
    for t in range(8, B // 2 + 1, 8):
        if B % t == 0:
            best = t
    return best if best is not None else B


# ----------------------------------------------------------------------------
# Forward pass: one fused pallas_call (+ tiny JAX glue for reshape / PE gather)
# ----------------------------------------------------------------------------
def transgrow_forward(params, img_in, timedelta_in, timedelta_target,
                      z=None, key=None):
    cfg = params["cfg"]
    B, S_in, C, W, H = img_in.shape
    D, Dimg, Dpe, Dz = cfg["dim"], cfg["dim_img"], cfg["dim_pe"], cfg["dim_z"]
    L, Hh = cfg["depth"], cfg["heads"]
    N = 1 + S_in
    CWH = C * W * H
    assert D == Dimg == Dpe, "pe_fusion_type == 'add' requires dim == dim_img == dim_pe"
    assert Dimg % Dz == 0 and D % Hh == 0

    tile_b = _pick_tile_b(B)
    assert B % tile_b == 0

    img = img_in.reshape(B, S_in, C, W * H)

    # z noise: [B, 1, dim_z]; tiled to [*, N, dim_img] inside the kernel
    # (matches the reference z.repeat(1, N, dim_img // dim_z)).
    if z is None:
        assert key is not None
        z = jax.random.normal(key, (B, 1, Dz), jnp.float32)
    else:
        z = jnp.broadcast_to(z, (B, 1, Dz)).astype(jnp.float32)

    # positional encoding: ONE gather for all rows (target first, then inputs).
    idx = jnp.concatenate([timedelta_target[:, None], timedelta_in], axis=1)  # [B, N]
    pe_comb = jnp.take(params["pe_table"], idx, axis=0)                       # [B, N, Dpe]

    def batch_spec(shape):
        nd = len(shape)
        return pl.BlockSpec((tile_b,) + tuple(shape[1:]),
                            lambda g, _nd=nd: (g,) + (0,) * (_nd - 1))

    def const_spec(arr):
        nd = arr.ndim
        return pl.BlockSpec(tuple(arr.shape), lambda g, _nd=nd: (0,) * _nd)

    in_specs = [
        batch_spec((B, S_in, C, W * H)),              # img
        const_spec(params["pred_token"]),             # pred token
        batch_spec((B, 1, Dz)),                       # z (tiled in-kernel)
        batch_spec((B, N, Dpe)),                      # positional encoding rows
        const_spec(params["enc_w"]), const_spec(params["enc_b"]),
        const_spec(params["lin_enc_w"]), const_spec(params["lin_enc_b"]),
        const_spec(params["wqkv"]), const_spec(params["bqkv"]),
        const_spec(params["wo"]), const_spec(params["bo"]),
        const_spec(params["ln1w"]), const_spec(params["ln1b"]),
        const_spec(params["w1"]), const_spec(params["b1"]),
        const_spec(params["w2"]), const_spec(params["b2"]),
        const_spec(params["ln2w"]), const_spec(params["ln2b"]),
        const_spec(params["dec_w"]), const_spec(params["dec_b"]),
    ]

    kernel = functools.partial(_fused_forward_kernel,
                               depth=L, heads=Hh, dim_img=Dimg,
                               z_rep=Dimg // Dz)

    out = pl.pallas_call(
        kernel,
        grid=(B // tile_b,),
        in_specs=in_specs,
        out_specs=pl.BlockSpec((tile_b, CWH), lambda g: (g, 0)),
        out_shape=jax.ShapeDtypeStruct((B, CWH), jnp.float32),
        compiler_params=pltpu.CompilerParams(
            # parallel batch axis -> megacore sharding on v7x; harmless elsewhere.
            dimension_semantics=("parallel",),
            # Explicit headroom; resident weights are ~0.7 MiB (bf16 FFN),
            # double-buffered well under every generation's scoped default.
            # If dim / dim_ff / depth are scaled up, block the FFN weights per
            # layer (extra 'arbitrary' grid axis) before hitting v7x's 64 MiB.
            vmem_limit_bytes=32 * 1024 * 1024,
        ),
    )(img, params["pred_token"], z, pe_comb,
      params["enc_w"], params["enc_b"], params["lin_enc_w"], params["lin_enc_b"],
      params["wqkv"], params["bqkv"], params["wo"], params["bo"],
      params["ln1w"], params["ln1b"],
      params["w1"], params["b1"], params["w2"], params["b2"],
      params["ln2w"], params["ln2b"],
      params["dec_w"], params["dec_b"])

    return out.reshape(B, C, W, H)


# ----------------------------------------------------------------------------
if __name__ == "__main__":
    key = jax.random.PRNGKey(0)
    k_param, k_img, k_z, k_td = jax.random.split(key, 4)

    B = 16                     # tile_b = 8 -> grid (2,), both v7x TCs busy
    S = 4                      # data_shape[0]; model consumes S_in = S - 1 frames
    S_in = S - 1
    C, W, H = 3, 16, 16
    cfg = dict(dim_img=32, dim_pe=32, dim_z=8, dim=32, depth=2, heads=4,
               dim_ff=2048, pe_max_len=64)

    params = init_params(k_param, cfg, C, W, H)

    img_in = jax.random.normal(k_img, (B, S_in, C, W, H), jnp.float32)
    timedelta_in = jax.random.randint(k_td, (B, S_in), 1, cfg["pe_max_len"]).astype(jnp.int32)
    timedelta_target = jax.random.randint(jax.random.fold_in(k_td, 1), (B,),
                                          1, cfg["pe_max_len"]).astype(jnp.int32)

    out = transgrow_forward(params, img_in, timedelta_in, timedelta_target,
                            z=None, key=k_z)
    out = jax.block_until_ready(out)
    assert out.shape == (B, C, W, H) and out.dtype == jnp.float32
    assert bool(jnp.all(jnp.isfinite(out)))
    print("KERNEL_OK")
</pallas_src>

<mosaic_0001>
module attributes {stable_mosaic.version = 11 : i64} {
  func.func @_fused_forward_kernel(%arg0: i32, %arg1: memref<8x3x3x256xf32, #tpu.memory_space<vmem>>, %arg2: memref<1x32xf32, #tpu.memory_space<vmem>>, %arg3: memref<8x1x8xf32, #tpu.memory_space<vmem>>, %arg4: memref<8x4x32xf32, #tpu.memory_space<vmem>>, %arg5: memref<3x512xf32, #tpu.memory_space<vmem>>, %arg6: memref<1x512xf32, #tpu.memory_space<vmem>>, %arg7: memref<512x32xbf16, #tpu.memory_space<vmem>>, %arg8: memref<1x32xf32, #tpu.memory_space<vmem>>, %arg9: memref<2x32x96xf32, #tpu.memory_space<vmem>>, %arg10: memref<2x1x96xf32, #tpu.memory_space<vmem>>, %arg11: memref<2x32x32xf32, #tpu.memory_space<vmem>>, %arg12: memref<2x1x32xf32, #tpu.memory_space<vmem>>, %arg13: memref<2x1x32xf32, #tpu.memory_space<vmem>>, %arg14: memref<2x1x32xf32, #tpu.memory_space<vmem>>, %arg15: memref<2x32x2048xbf16, #tpu.memory_space<vmem>>, %arg16: memref<2x1x2048xf32, #tpu.memory_space<vmem>>, %arg17: memref<2x2048x32xbf16, #tpu.memory_space<vmem>>, %arg18: memref<2x1x32xf32, #tpu.memory_space<vmem>>, %arg19: memref<2x1x32xf32, #tpu.memory_space<vmem>>, %arg20: memref<2x1x32xf32, #tpu.memory_space<vmem>>, %arg21: memref<32x768xbf16, #tpu.memory_space<vmem>>, %arg22: memref<1x768xf32, #tpu.memory_space<vmem>>, %arg23: memref<8x768xf32, #tpu.memory_space<vmem>>) attributes {dimension_semantics = [#tpu.dimension_semantics<parallel>], iteration_bounds = array<i64: 2>, scalar_prefetch = 0 : i64, scratch_operands = 0 : i64, tpu.core_type = #tpu.core_type<tc>, window_params = [{transform_indices = @transform_0, window_bounds = array<i64: 8, 3, 3, 256>}, {pipeline_mode = #tpu.pipeline_mode<synchronous>, transform_indices = @transform_1, window_bounds = array<i64: 1, 32>}, {transform_indices = @transform_2, window_bounds = array<i64: 8, 1, 8>}, {transform_indices = @transform_3, window_bounds = array<i64: 8, 4, 32>}, {pipeline_mode = #tpu.pipeline_mode<synchronous>, transform_indices = @transform_4, window_bounds = array<i64: 3, 512>}, {pipeline_mode = #tpu.pipeline_mode<synchronous>, transform_indices = @transform_5, window_bounds = array<i64: 1, 512>}, {pipeline_mode = #tpu.pipeline_mode<synchronous>, transform_indices = @transform_6, window_bounds = array<i64: 512, 32>}, {pipeline_mode = #tpu.pipeline_mode<synchronous>, transform_indices = @transform_7, window_bounds = array<i64: 1, 32>}, {pipeline_mode = #tpu.pipeline_mode<synchronous>, transform_indices = @transform_8, window_bounds = array<i64: 2, 32, 96>}, {pipeline_mode = #tpu.pipeline_mode<synchronous>, transform_indices = @transform_9, window_bounds = array<i64: 2, 1, 96>}, {pipeline_mode = #tpu.pipeline_mode<synchronous>, transform_indices = @transform_10, window_bounds = array<i64: 2, 32, 32>}, {pipeline_mode = #tpu.pipeline_mode<synchronous>, transform_indices = @transform_11, window_bounds = array<i64: 2, 1, 32>}, {pipeline_mode = #tpu.pipeline_mode<synchronous>, transform_indices = @transform_12, window_bounds = array<i64: 2, 1, 32>}, {pipeline_mode = #tpu.pipeline_mode<synchronous>, transform_indices = @transform_13, window_bounds = array<i64: 2, 1, 32>}, {pipeline_mode = #tpu.pipeline_mode<synchronous>, transform_indices = @transform_14, window_bounds = array<i64: 2, 32, 2048>}, {pipeline_mode = #tpu.pipeline_mode<synchronous>, transform_indices = @transform_15, window_bounds = array<i64: 2, 1, 2048>}, {pipeline_mode = #tpu.pipeline_mode<synchronous>, transform_indices = @transform_16, window_bounds = array<i64: 2, 2048, 32>}, {pipeline_mode = #tpu.pipeline_mode<synchronous>, transform_indices = @transform_17, window_bounds = array<i64: 2, 1, 32>}, {pipeline_mode = #tpu.pipeline_mode<synchronous>, transform_indices = @transform_18, window_bounds = array<i64: 2, 1, 32>}, {pipeline_mode = #tpu.pipeline_mode<synchronous>, transform_indices = @transform_19, window_bounds = array<i64: 2, 1, 32>}, {pipeline_mode = #tpu.pipeline_mode<synchronous>, transform_indices = @transform_20, window_bounds = array<i64: 32, 768>}, {pipeline_mode = #tpu.pipeline_mode<synchronous>, transform_indices = @transform_21, window_bounds = array<i64: 1, 768>}, {transform_indices = @transform_22, window_bounds = array<i64: 8, 768>}]} {
    %c0 = arith.constant 0 : index
    %c0_0 = arith.constant 0 : index
    %c0_1 = arith.constant 0 : index
    %c0_2 = arith.constant 0 : index
    %0 = vector.load %arg1[%c0, %c0_0, %c0_1, %c0_2] : memref<8x3x3x256xf32, #tpu.memory_space<vmem>>, vector<8x3x3x256xf32>
    %1 = vector.shape_cast %0 : vector<8x3x3x256xf32> to vector<24x3x256xf32>
    %cst = arith.constant dense<0.000000e+00> : vector<24x3xf32>
    %2 = vector.multi_reduction <add>, %1, %cst [2] : vector<24x3x256xf32> to vector<24x3xf32>
    %cst_3 = arith.constant 2.560000e+02 : f32
    %3 = vector.broadcast %cst_3 : f32 to vector<24x3xf32>
    %4 = arith.divf %2, %3 : vector<24x3xf32>
    %c0_4 = arith.constant 0 : index
    %c0_5 = arith.constant 0 : index
    %5 = vector.load %arg5[%c0_4, %c0_5] : memref<3x512xf32, #tpu.memory_space<vmem>>, vector<3x512xf32>
    %cst_6 = arith.constant dense<0.000000e+00> : vector<24x512xf32>
    %6 = tpu.matmul %4, %5, %cst_6 {dimension_numbers = #tpu.dot_dimension_numbers<[1], [0], [0], [1], [0, 0, 1, 1], [], []>} : vector<24x3xf32>, vector<3x512xf32>, vector<24x512xf32> -> vector<24x512xf32>
    %c0_7 = arith.constant 0 : index
    %c0_8 = arith.constant 0 : index
    %7 = vector.load %arg6[%c0_7, %c0_8] : memref<1x512xf32, #tpu.memory_space<vmem>>, vector<1x512xf32>
    %8 = vector.broadcast %7 : vector<1x512xf32> to vector<24x512xf32>
    %9 = arith.addf %6, %8 : vector<24x512xf32>
    %cst_9 = arith.constant 0.000000e+00 : f32
    %10 = vector.broadcast %cst_9 : f32 to vector<24x512xf32>
    %11 = arith.maximumf %9, %10 : vector<24x512xf32>
    %12 = arith.truncf %11 : vector<24x512xf32> to vector<24x512xbf16>
    %c0_10 = arith.constant 0 : index
    %c0_11 = arith.constant 0 : index
    %13 = vector.load %arg7[%c0_10, %c0_11] : memref<512x32xbf16, #tpu.memory_space<vmem>>, vector<512x32xbf16>
    %cst_12 = arith.constant dense<0.000000e+00> : vector<24x32xf32>
    %14 = tpu.matmul %12, %13, %cst_12 {dimension_numbers = #tpu.dot_dimension_numbers<[1], [0], [0], [1], [0, 0, 1, 1], [], []>} : vector<24x512xbf16>, vector<512x32xbf16>, vector<24x32xf32> -> vector<24x32xf32>
    %c0_13 = arith.constant 0 : index
    %c0_14 = arith.constant 0 : index
    %15 = vector.load %arg8[%c0_13, %c0_14] : memref<1x32xf32, #tpu.memory_space<vmem>>, vector<1x32xf32>
    %16 = vector.broadcast %15 : vector<1x32xf32> to vector<24x32xf32>
    %17 = arith.addf %14, %16 : vector<24x32xf32>
    %18 = vector.shape_cast %17 : vector<24x32xf32> to vector<8x3x32xf32>
    %c0_15 = arith.constant 0 : index
    %c0_16 = arith.constant 0 : index
    %19 = vector.load %arg2[%c0_15, %c0_16] : memref<1x32xf32, #tpu.memory_space<vmem>>, vector<1x32xf32>
    %20 = vector.shape_cast %19 : vector<1x32xf32> to vector<1x1x32xf32>
    %21 = vector.broadcast %20 : vector<1x1x32xf32> to vector<8x1x32xf32>
    %22 = tpu.concatenate %21, %18 in 1 : vector<8x1x32xf32>, vector<8x3x32xf32> -> vector<8x4x32xf32>
    %c0_17 = arith.constant 0 : index
    %c0_18 = arith.constant 0 : index
    %c0_19 = arith.constant 0 : index
    %23 = vector.load %arg3[%c0_17, %c0_18, %c0_19] : memref<8x1x8xf32, #tpu.memory_space<vmem>>, vector<8x1x8xf32>
    %24 = tpu.concatenate %23, %23, %23, %23 in 2 : vector<8x1x8xf32>, vector<8x1x8xf32>, vector<8x1x8xf32>, vector<8x1x8xf32> -> vector<8x1x32xf32>
    %25 = vector.broadcast %24 : vector<8x1x32xf32> to vector<8x4x32xf32>
    %26 = arith.addf %22, %25 : vector<8x4x32xf32>
    %c0_20 = arith.constant 0 : index
    %c0_21 = arith.constant 0 : index
    %c0_22 = arith.constant 0 : index
    %27 = vector.load %arg4[%c0_20, %c0_21, %c0_22] : memref<8x4x32xf32, #tpu.memory_space<vmem>>, vector<8x4x32xf32>
    %28 = arith.addf %26, %27 : vector<8x4x32xf32>
    %29 = vector.shape_cast %28 : vector<8x4x32xf32> to vector<32x32xf32>
    %c0_23 = arith.constant 0 : index
    %c0_24 = arith.constant 0 : index
    %c0_25 = arith.constant 0 : index
    %30 = vector.load %arg9[%c0_23, %c0_24, %c0_25] : memref<2x32x96xf32, #tpu.memory_space<vmem>>, vector<1x32x96xf32>
    %31 = vector.shape_cast %30 : vector<1x32x96xf32> to vector<32x96xf32>
    %cst_26 = arith.constant dense<0.000000e+00> : vector<32x96xf32>
    %32 = tpu.matmul %29, %31, %cst_26 {dimension_numbers = #tpu.dot_dimension_numbers<[1], [0], [0], [1], [0, 0, 1, 1], [], []>} : vector<32x32xf32>, vector<32x96xf32>, vector<32x96xf32> -> vector<32x96xf32>
    %c0_27 = arith.constant 0 : index
    %c0_28 = arith.constant 0 : index
    %c0_29 = arith.constant 0 : index
    %33 = vector.load %arg10[%c0_27, %c0_28, %c0_29] : memref<2x1x96xf32, #tpu.memory_space<vmem>>, vector<1x1x96xf32>
    %34 = vector.shape_cast %33 : vector<1x1x96xf32> to vector<1x96xf32>
    %35 = vector.broadcast %34 : vector<1x96xf32> to vector<32x96xf32>
    %36 = arith.addf %32, %35 : vector<32x96xf32>
    %37 = vector.shape_cast %36 : vector<32x96xf32> to vector<8x4x96xf32>
    %38 = vector.extract_strided_slice %37 {offsets = [0, 0, 0], sizes = [8, 4, 8], strides = [1, 1, 1]} : vector<8x4x96xf32> to vector<8x4x8xf32>
    %39 = vector.extract_strided_slice %37 {offsets = [0, 0, 32], sizes = [8, 4, 8], strides = [1, 1, 1]} : vector<8x4x96xf32> to vector<8x4x8xf32>
    %40 = vector.extract_strided_slice %37 {offsets = [0, 0, 64], sizes = [8, 4, 8], strides = [1, 1, 1]} : vector<8x4x96xf32> to vector<8x4x8xf32>
    "tpu.trace_start"() <{level = 10 : i32, message = "bqf,bkf->bqk"}> : () -> ()
    %cst_30 = arith.constant dense<0.000000e+00> : vector<8x4x4xf32>
    %41 = tpu.matmul %38, %39, %cst_30 {dimension_numbers = #tpu.dot_dimension_numbers<[2], [2], [1], [1], [0, 0, 0, 1, 1, 1], [0], [0]>} : vector<8x4x8xf32>, vector<8x4x8xf32>, vector<8x4x4xf32> -> vector<8x4x4xf32>
    "tpu.trace_stop"() : () -> ()
    %cst_31 = arith.constant 0.353553385 : f32
    %42 = vector.broadcast %cst_31 : f32 to vector<8x4x4xf32>
    %43 = arith.mulf %41, %42 : vector<8x4x4xf32>
    %cst_32 = arith.constant dense<0xFF800000> : vector<8x4xf32>
    %44 = vector.multi_reduction <maximumf>, %43, %cst_32 [2] : vector<8x4x4xf32> to vector<8x4xf32>
    %45 = vector.shape_cast %44 : vector<8x4xf32> to vector<8x4x1xf32>
    %46 = vector.broadcast %45 : vector<8x4x1xf32> to vector<8x4x4xf32>
    %47 = arith.subf %43, %46 : vector<8x4x4xf32>
    %48 = math.exp %47 : vector<8x4x4xf32>
    %cst_33 = arith.constant dense<0.000000e+00> : vector<8x4xf32>
    %49 = vector.multi_reduction <add>, %48, %cst_33 [2] : vector<8x4x4xf32> to vector<8x4xf32>
    %50 = vector.shape_cast %49 : vector<8x4xf32> to vector<8x4x1xf32>
    %51 = tpu.reciprocal %50 {approx = true} : vector<8x4x1xf32> -> vector<8x4x1xf32>
    %52 = vector.broadcast %51 : vector<8x4x1xf32> to vector<8x4x4xf32>
    %53 = arith.mulf %48, %52 : vector<8x4x4xf32>
    "tpu.trace_start"() <{level = 10 : i32, message = "bqk,bkf->bqf"}> : () -> ()
    %cst_34 = arith.constant dense<0.000000e+00> : vector<8x4x8xf32>
    %54 = tpu.matmul %53, %40, %cst_34 {dimension_numbers = #tpu.dot_dimension_numbers<[2], [1], [1], [2], [0, 0, 0, 1, 1, 2], [0], [0]>} : vector<8x4x4xf32>, vector<8x4x8xf32>, vector<8x4x8xf32> -> vector<8x4x8xf32>
    "tpu.trace_stop"() : () -> ()
    %55 = vector.extract_strided_slice %37 {offsets = [0, 0, 8], sizes = [8, 4, 8], strides = [1, 1, 1]} : vector<8x4x96xf32> to vector<8x4x8xf32>
    %56 = vector.extract_strided_slice %37 {offsets = [0, 0, 40], sizes = [8, 4, 8], strides = [1, 1, 1]} : vector<8x4x96xf32> to vector<8x4x8xf32>
    %57 = vector.extract_strided_slice %37 {offsets = [0, 0, 72], sizes = [8, 4, 8], strides = [1, 1, 1]} : vector<8x4x96xf32> to vector<8x4x8xf32>
    "tpu.trace_start"() <{level = 10 : i32, message = "bqf,bkf->bqk"}> : () -> ()
    %cst_35 = arith.constant dense<0.000000e+00> : vector<8x4x4xf32>
    %58 = tpu.matmul %55, %56, %cst_35 {dimension_numbers = #tpu.dot_dimension_numbers<[2], [2], [1], [1], [0, 0, 0, 1, 1, 1], [0], [0]>} : vector<8x4x8xf32>, vector<8x4x8xf32>, vector<8x4x4xf32> -> vector<8x4x4xf32>
    "tpu.trace_stop"() : () -> ()
    %cst_36 = arith.constant 0.353553385 : f32
    %59 = vector.broadcast %cst_36 : f32 to vector<8x4x4xf32>
    %60 = arith.mulf %58, %59 : vector<8x4x4xf32>
    %cst_37 = arith.constant dense<0xFF800000> : vector<8x4xf32>
    %61 = vector.multi_reduction <maximumf>, %60, %cst_37 [2] : vector<8x4x4xf32> to vector<8x4xf32>
    %62 = vector.shape_cast %61 : vector<8x4xf32> to vector<8x4x1xf32>
    %63 = vector.broadcast %62 : vector<8x4x1xf32> to vector<8x4x4xf32>
    %64 = arith.subf %60, %63 : vector<8x4x4xf32>
    %65 = math.exp %64 : vector<8x4x4xf32>
    %cst_38 = arith.constant dense<0.000000e+00> : vector<8x4xf32>
    %66 = vector.multi_reduction <add>, %65, %cst_38 [2] : vector<8x4x4xf32> to vector<8x4xf32>
    %67 = vector.shape_cast %66 : vector<8x4xf32> to vector<8x4x1xf32>
    %68 = tpu.reciprocal %67 {approx = true} : vector<8x4x1xf32> -> vector<8x4x1xf32>
    %69 = vector.broadcast %68 : vector<8x4x1xf32> to vector<8x4x4xf32>
    %70 = arith.mulf %65, %69 : vector<8x4x4xf32>
    "tpu.trace_start"() <{level = 10 : i32, message = "bqk,bkf->bqf"}> : () -> ()
    %cst_39 = arith.constant dense<0.000000e+00> : vector<8x4x8xf32>
    %71 = tpu.matmul %70, %57, %cst_39 {dimension_numbers = #tpu.dot_dimension_numbers<[2], [1], [1], [2], [0, 0, 0, 1, 1, 2], [0], [0]>} : vector<8x4x4xf32>, vector<8x4x8xf32>, vector<8x4x8xf32> -> vector<8x4x8xf32>
    "tpu.trace_stop"() : () -> ()
    %72 = vector.extract_strided_slice %37 {offsets = [0, 0, 16], sizes = [8, 4, 8], strides = [1, 1, 1]} : vector<8x4x96xf32> to vector<8x4x8xf32>
    %73 = vector.extract_strided_slice %37 {offsets = [0, 0, 48], sizes = [8, 4, 8], strides = [1, 1, 1]} : vector<8x4x96xf32> to vector<8x4x8xf32>
    %74 = vector.extract_strided_slice %37 {offsets = [0, 0, 80], sizes = [8, 4, 8], strides = [1, 1, 1]} : vector<8x4x96xf32> to vector<8x4x8xf32>
    "tpu.trace_start"() <{level = 10 : i32, message = "bqf,bkf->bqk"}> : () -> ()
    %cst_40 = arith.constant dense<0.000000e+00> : vector<8x4x4xf32>
    %75 = tpu.matmul %72, %73, %cst_40 {dimension_numbers = #tpu.dot_dimension_numbers<[2], [2], [1], [1], [0, 0, 0, 1, 1, 1], [0], [0]>} : vector<8x4x8xf32>, vector<8x4x8xf32>, vector<8x4x4xf32> -> vector<8x4x4xf32>
    "tpu.trace_stop"() : () -> ()
    %cst_41 = arith.constant 0.353553385 : f32
    %76 = vector.broadcast %cst_41 : f32 to vector<8x4x4xf32>
    %77 = arith.mulf %75, %76 : vector<8x4x4xf32>
    %cst_42 = arith.constant dense<0xFF800000> : vector<8x4xf32>
    %78 = vector.multi_reduction <maximumf>, %77, %cst_42 [2] : vector<8x4x4xf32> to vector<8x4xf32>
    %79 = vector.shape_cast %78 : vector<8x4xf32> to vector<8x4x1xf32>
    %80 = vector.broadcast %79 : vector<8x4x1xf32> to vector<8x4x4xf32>
    %81 = arith.subf %77, %80 : vector<8x4x4xf32>
    %82 = math.exp %81 : vector<8x4x4xf32>
    %cst_43 = arith.constant dense<0.000000e+00> : vector<8x4xf32>
    %83 = vector.multi_reduction <add>, %82, %cst_43 [2] : vector<8x4x4xf32> to vector<8x4xf32>
    %84 = vector.shape_cast %83 : vector<8x4xf32> to vector<8x4x1xf32>
    %85 = tpu.reciprocal %84 {approx = true} : vector<8x4x1xf32> -> vector<8x4x1xf32>
    %86 = vector.broadcast %85 : vector<8x4x1xf32> to vector<8x4x4xf32>
    %87 = arith.mulf %82, %86 : vector<8x4x4xf32>
    "tpu.trace_start"() <{level = 10 : i32, message = "bqk,bkf->bqf"}> : () -> ()
    %cst_44 = arith.constant dense<0.000000e+00> : vector<8x4x8xf32>
    %88 = tpu.matmul %87, %74, %cst_44 {dimension_numbers = #tpu.dot_dimension_numbers<[2], [1], [1], [2], [0, 0, 0, 1, 1, 2], [0], [0]>} : vector<8x4x4xf32>, vector<8x4x8xf32>, vector<8x4x8xf32> -> vector<8x4x8xf32>
    "tpu.trace_stop"() : () -> ()
    %89 = vector.extract_strided_slice %37 {offsets = [0, 0, 24], sizes = [8, 4, 8], strides = [1, 1, 1]} : vector<8x4x96xf32> to vector<8x4x8xf32>
    %90 = vector.extract_strided_slice %37 {offsets = [0, 0, 56], sizes = [8, 4, 8], strides = [1, 1, 1]} : vector<8x4x96xf32> to vector<8x4x8xf32>
    %91 = vector.extract_strided_slice %37 {offsets = [0, 0, 88], sizes = [8, 4, 8], strides = [1, 1, 1]} : vector<8x4x96xf32> to vector<8x4x8xf32>
    "tpu.trace_start"() <{level = 10 : i32, message = "bqf,bkf->bqk"}> : () -> ()
    %cst_45 = arith.constant dense<0.000000e+00> : vector<8x4x4xf32>
    %92 = tpu.matmul %89, %90, %cst_45 {dimension_numbers = #tpu.dot_dimension_numbers<[2], [2], [1], [1], [0, 0, 0, 1, 1, 1], [0], [0]>} : vector<8x4x8xf32>, vector<8x4x8xf32>, vector<8x4x4xf32> -> vector<8x4x4xf32>
    "tpu.trace_stop"() : () -> ()
    %cst_46 = arith.constant 0.353553385 : f32
    %93 = vector.broadcast %cst_46 : f32 to vector<8x4x4xf32>
    %94 = arith.mulf %92, %93 : vector<8x4x4xf32>
    %cst_47 = arith.constant dense<0xFF800000> : vector<8x4xf32>
    %95 = vector.multi_reduction <maximumf>, %94, %cst_47 [2] : vector<8x4x4xf32> to vector<8x4xf32>
    %96 = vector.shape_cast %95 : vector<8x4xf32> to vector<8x4x1xf32>
    %97 = vector.broadcast %96 : vector<8x4x1xf32> to vector<8x4x4xf32>
    %98 = arith.subf %94, %97 : vector<8x4x4xf32>
    %99 = math.exp %98 : vector<8x4x4xf32>
    %cst_48 = arith.constant dense<0.000000e+00> : vector<8x4xf32>
    %100 = vector.multi_reduction <add>, %99, %cst_48 [2] : vector<8x4x4xf32> to vector<8x4xf32>
    %101 = vector.shape_cast %100 : vector<8x4xf32> to vector<8x4x1xf32>
    %102 = tpu.reciprocal %101 {approx = true} : vector<8x4x1xf32> -> vector<8x4x1xf32>
    %103 = vector.broadcast %102 : vector<8x4x1xf32> to vector<8x4x4xf32>
    %104 = arith.mulf %99, %103 : vector<8x4x4xf32>
    "tpu.trace_start"() <{level = 10 : i32, message = "bqk,bkf->bqf"}> : () -> ()
    %cst_49 = arith.constant dense<0.000000e+00> : vector<8x4x8xf32>
    %105 = tpu.matmul %104, %91, %cst_49 {dimension_numbers = #tpu.dot_dimension_numbers<[2], [1], [1], [2], [0, 0, 0, 1, 1, 2], [0], [0]>} : vector<8x4x4xf32>, vector<8x4x8xf32>, vector<8x4x8xf32> -> vector<8x4x8xf32>
    "tpu.trace_stop"() : () -> ()
    %106 = tpu.concatenate %54, %71, %88, %105 in 2 : vector<8x4x8xf32>, vector<8x4x8xf32>, vector<8x4x8xf32>, vector<8x4x8xf32> -> vector<8x4x32xf32>
    %107 = vector.shape_cast %106 : vector<8x4x32xf32> to vector<32x32xf32>
    %c0_50 = arith.constant 0 : index
    %c0_51 = arith.constant 0 : index
    %c0_52 = arith.constant 0 : index
    %108 = vector.load %arg11[%c0_50, %c0_51, %c0_52] : memref<2x32x32xf32, #tpu.memory_space<vmem>>, vector<1x32x32xf32>
    %109 = vector.shape_cast %108 : vector<1x32x32xf32> to vector<32x32xf32>
    %cst_53 = arith.constant dense<0.000000e+00> : vector<32x32xf32>
    %110 = tpu.matmul %107, %109, %cst_53 {dimension_numbers = #tpu.dot_dimension_numbers<[1], [0], [0], [1], [0, 0, 1, 1], [], []>} : vector<32x32xf32>, vector<32x32xf32>, vector<32x32xf32> -> vector<32x32xf32>
    %c0_54 = arith.constant 0 : index
    %c0_55 = arith.constant 0 : index
    %c0_56 = arith.constant 0 : index
    %111 = vector.load %arg12[%c0_54, %c0_55, %c0_56] : memref<2x1x32xf32, #tpu.memory_space<vmem>>, vector<1x1x32xf32>
    %112 = vector.shape_cast %111 : vector<1x1x32xf32> to vector<1x32xf32>
    %113 = vector.broadcast %112 : vector<1x32xf32> to vector<32x32xf32>
    %114 = arith.addf %110, %113 : vector<32x32xf32>
    %115 = arith.addf %29, %114 : vector<32x32xf32>
    %c0_57 = arith.constant 0 : index
    %c0_58 = arith.constant 0 : index
    %c0_59 = arith.constant 0 : index
    %116 = vector.load %arg13[%c0_57, %c0_58, %c0_59] : memref<2x1x32xf32, #tpu.memory_space<vmem>>, vector<1x1x32xf32>
    %117 = vector.shape_cast %116 : vector<1x1x32xf32> to vector<1x32xf32>
    %c0_60 = arith.constant 0 : index
    %c0_61 = arith.constant 0 : index
    %c0_62 = arith.constant 0 : index
    %118 = vector.load %arg14[%c0_60, %c0_61, %c0_62] : memref<2x1x32xf32, #tpu.memory_space<vmem>>, vector<1x1x32xf32>
    %119 = vector.shape_cast %118 : vector<1x1x32xf32> to vector<1x32xf32>
    %cst_63 = arith.constant dense<0.000000e+00> : vector<32xf32>
    %120 = vector.multi_reduction <add>, %115, %cst_63 [1] : vector<32x32xf32> to vector<32xf32>
    %121 = vector.shape_cast %120 : vector<32xf32> to vector<32x1xf32>
    %cst_64 = arith.constant 3.200000e+01 : f32
    %122 = vector.broadcast %cst_64 : f32 to vector<32x1xf32>
    %123 = arith.divf %121, %122 : vector<32x1xf32>
    %124 = vector.broadcast %123 : vector<32x1xf32> to vector<32x32xf32>
    %125 = arith.subf %115, %124 : vector<32x32xf32>
    %126 = arith.mulf %125, %125 : vector<32x32xf32>
    %cst_65 = arith.constant dense<0.000000e+00> : vector<32xf32>
    %127 = vector.multi_reduction <add>, %126, %cst_65 [1] : vector<32x32xf32> to vector<32xf32>
    %128 = vector.shape_cast %127 : vector<32xf32> to vector<32x1xf32>
    %cst_66 = arith.constant 3.200000e+01 : f32
    %129 = vector.broadcast %cst_66 : f32 to vector<32x1xf32>
    %130 = arith.divf %128, %129 : vector<32x1xf32>
    %131 = vector.broadcast %123 : vector<32x1xf32> to vector<32x32xf32>
    %132 = arith.subf %115, %131 : vector<32x32xf32>
    %cst_67 = arith.constant 9.99999974E-6 : f32
    %133 = vector.broadcast %cst_67 : f32 to vector<32x1xf32>
    %134 = arith.addf %130, %133 : vector<32x1xf32>
    %135 = math.rsqrt %134 : vector<32x1xf32>
    %136 = vector.broadcast %135 : vector<32x1xf32> to vector<32x32xf32>
    %137 = arith.mulf %132, %136 : vector<32x32xf32>
    %138 = vector.broadcast %117 : vector<1x32xf32> to vector<32x32xf32>
    %139 = arith.mulf %137, %138 : vector<32x32xf32>
    %140 = vector.broadcast %119 : vector<1x32xf32> to vector<32x32xf32>
    %141 = arith.addf %139, %140 : vector<32x32xf32>
    %142 = arith.truncf %141 : vector<32x32xf32> to vector<32x32xbf16>
    %c0_68 = arith.constant 0 : index
    %c0_69 = arith.constant 0 : index
    %c0_70 = arith.constant 0 : index
    %143 = vector.load %arg15[%c0_68, %c0_69, %c0_70] : memref<2x32x2048xbf16, #tpu.memory_space<vmem>>, vector<1x32x2048xbf16>
    %144 = vector.shape_cast %143 : vector<1x32x2048xbf16> to vector<32x2048xbf16>
    %cst_71 = arith.constant dense<0.000000e+00> : vector<32x2048xf32>
    %145 = tpu.matmul %142, %144, %cst_71 {dimension_numbers = #tpu.dot_dimension_numbers<[1], [0], [0], [1], [0, 0, 1, 1], [], []>} : vector<32x32xbf16>, vector<32x2048xbf16>, vector<32x2048xf32> -> vector<32x2048xf32>
    %c0_72 = arith.constant 0 : index
    %c0_73 = arith.constant 0 : index
    %c0_74 = arith.constant 0 : index
    %146 = vector.load %arg16[%c0_72, %c0_73, %c0_74] : memref<2x1x2048xf32, #tpu.memory_space<vmem>>, vector<1x1x2048xf32>
    %147 = vector.shape_cast %146 : vector<1x1x2048xf32> to vector<1x2048xf32>
    %148 = vector.broadcast %147 : vector<1x2048xf32> to vector<32x2048xf32>
    %149 = arith.addf %145, %148 : vector<32x2048xf32>
    %150 = arith.mulf %149, %149 : vector<32x2048xf32>
    %151 = arith.mulf %149, %150 : vector<32x2048xf32>
    %cst_75 = arith.constant 4.471500e-02 : f32
    %152 = vector.broadcast %cst_75 : f32 to vector<32x2048xf32>
    %153 = arith.mulf %152, %151 : vector<32x2048xf32>
    %154 = arith.addf %149, %153 : vector<32x2048xf32>
    %cst_76 = arith.constant 0.797884583 : f32
    %155 = vector.broadcast %cst_76 : f32 to vector<32x2048xf32>
    %156 = arith.mulf %155, %154 : vector<32x2048xf32>
    %157 = math.tanh %156 : vector<32x2048xf32>
    %cst_77 = arith.constant 1.000000e+00 : f32
    %158 = vector.broadcast %cst_77 : f32 to vector<32x2048xf32>
    %159 = arith.addf %158, %157 : vector<32x2048xf32>
    %cst_78 = arith.constant 5.000000e-01 : f32
    %160 = vector.broadcast %cst_78 : f32 to vector<32x2048xf32>
    %161 = arith.mulf %160, %159 : vector<32x2048xf32>
    %162 = arith.mulf %149, %161 : vector<32x2048xf32>
    %163 = arith.truncf %162 : vector<32x2048xf32> to vector<32x2048xbf16>
    %c0_79 = arith.constant 0 : index
    %c0_80 = arith.constant 0 : index
    %c0_81 = arith.constant 0 : index
    %164 = vector.load %arg17[%c0_79, %c0_80, %c0_81] : memref<2x2048x32xbf16, #tpu.memory_space<vmem>>, vector<1x2048x32xbf16>
    %165 = vector.shape_cast %164 : vector<1x2048x32xbf16> to vector<2048x32xbf16>
    %cst_82 = arith.constant dense<0.000000e+00> : vector<32x32xf32>
    %166 = tpu.matmul %163, %165, %cst_82 {dimension_numbers = #tpu.dot_dimension_numbers<[1], [0], [0], [1], [0, 0, 1, 1], [], []>} : vector<32x2048xbf16>, vector<2048x32xbf16>, vector<32x32xf32> -> vector<32x32xf32>
    %c0_83 = arith.constant 0 : index
    %c0_84 = arith.constant 0 : index
    %c0_85 = arith.constant 0 : index
    %167 = vector.load %arg18[%c0_83, %c0_84, %c0_85] : memref<2x1x32xf32, #tpu.memory_space<vmem>>, vector<1x1x32xf32>
    %168 = vector.shape_cast %167 : vector<1x1x32xf32> to vector<1x32xf32>
    %169 = vector.broadcast %168 : vector<1x32xf32> to vector<32x32xf32>
    %170 = arith.addf %166, %169 : vector<32x32xf32>
    %171 = arith.addf %141, %170 : vector<32x32xf32>
    %c0_86 = arith.constant 0 : index
    %c0_87 = arith.constant 0 : index
    %c0_88 = arith.constant 0 : index
    %172 = vector.load %arg19[%c0_86, %c0_87, %c0_88] : memref<2x1x32xf32, #tpu.memory_space<vmem>>, vector<1x1x32xf32>
    %173 = vector.shape_cast %172 : vector<1x1x32xf32> to vector<1x32xf32>
    %c0_89 = arith.constant 0 : index
    %c0_90 = arith.constant 0 : index
    %c0_91 = arith.constant 0 : index
    %174 = vector.load %arg20[%c0_89, %c0_90, %c0_91] : memref<2x1x32xf32, #tpu.memory_space<vmem>>, vector<1x1x32xf32>
    %175 = vector.shape_cast %174 : vector<1x1x32xf32> to vector<1x32xf32>
    %cst_92 = arith.constant dense<0.000000e+00> : vector<32xf32>
    %176 = vector.multi_reduction <add>, %171, %cst_92 [1] : vector<32x32xf32> to vector<32xf32>
    %177 = vector.shape_cast %176 : vector<32xf32> to vector<32x1xf32>
    %cst_93 = arith.constant 3.200000e+01 : f32
    %178 = vector.broadcast %cst_93 : f32 to vector<32x1xf32>
    %179 = arith.divf %177, %178 : vector<32x1xf32>
    %180 = vector.broadcast %179 : vector<32x1xf32> to vector<32x32xf32>
    %181 = arith.subf %171, %180 : vector<32x32xf32>
    %182 = arith.mulf %181, %181 : vector<32x32xf32>
    %cst_94 = arith.constant dense<0.000000e+00> : vector<32xf32>
    %183 = vector.multi_reduction <add>, %182, %cst_94 [1] : vector<32x32xf32> to vector<32xf32>
    %184 = vector.shape_cast %183 : vector<32xf32> to vector<32x1xf32>
    %cst_95 = arith.constant 3.200000e+01 : f32
    %185 = vector.broadcast %cst_95 : f32 to vector<32x1xf32>
    %186 = arith.divf %184, %185 : vector<32x1xf32>
    %187 = vector.broadcast %179 : vector<32x1xf32> to vector<32x32xf32>
    %188 = arith.subf %171, %187 : vector<32x32xf32>
    %cst_96 = arith.constant 9.99999974E-6 : f32
    %189 = vector.broadcast %cst_96 : f32 to vector<32x1xf32>
    %190 = arith.addf %186, %189 : vector<32x1xf32>
    %191 = math.rsqrt %190 : vector<32x1xf32>
    %192 = vector.broadcast %191 : vector<32x1xf32> to vector<32x32xf32>
    %193 = arith.mulf %188, %192 : vector<32x32xf32>
    %194 = vector.broadcast %173 : vector<1x32xf32> to vector<32x32xf32>
    %195 = arith.mulf %193, %194 : vector<32x32xf32>
    %196 = vector.broadcast %175 : vector<1x32xf32> to vector<32x32xf32>
    %197 = arith.addf %195, %196 : vector<32x32xf32>
    %c1 = arith.constant 1 : index
    %c0_97 = arith.constant 0 : index
    %c0_98 = arith.constant 0 : index
    %198 = vector.load %arg9[%c1, %c0_97, %c0_98] : memref<2x32x96xf32, #tpu.memory_space<vmem>>, vector<1x32x96xf32>
    %199 = vector.shape_cast %198 : vector<1x32x96xf32> to vector<32x96xf32>
    %cst_99 = arith.constant dense<0.000000e+00> : vector<32x96xf32>
    %200 = tpu.matmul %197, %199, %cst_99 {dimension_numbers = #tpu.dot_dimension_numbers<[1], [0], [0], [1], [0, 0, 1, 1], [], []>} : vector<32x32xf32>, vector<32x96xf32>, vector<32x96xf32> -> vector<32x96xf32>
    %c1_100 = arith.constant 1 : index
    %c0_101 = arith.constant 0 : index
    %c0_102 = arith.constant 0 : index
    %201 = vector.load %arg10[%c1_100, %c0_101, %c0_102] : memref<2x1x96xf32, #tpu.memory_space<vmem>>, vector<1x1x96xf32>
    %202 = vector.shape_cast %201 : vector<1x1x96xf32> to vector<1x96xf32>
    %203 = vector.broadcast %202 : vector<1x96xf32> to vector<32x96xf32>
    %204 = arith.addf %200, %203 : vector<32x96xf32>
    %205 = vector.shape_cast %204 : vector<32x96xf32> to vector<8x4x96xf32>
    %206 = vector.extract_strided_slice %205 {offsets = [0, 0, 0], sizes = [8, 4, 8], strides = [1, 1, 1]} : vector<8x4x96xf32> to vector<8x4x8xf32>
    %207 = vector.extract_strided_slice %205 {offsets = [0, 0, 32], sizes = [8, 4, 8], strides = [1, 1, 1]} : vector<8x4x96xf32> to vector<8x4x8xf32>
    %208 = vector.extract_strided_slice %205 {offsets = [0, 0, 64], sizes = [8, 4, 8], strides = [1, 1, 1]} : vector<8x4x96xf32> to vector<8x4x8xf32>
    "tpu.trace_start"() <{level = 10 : i32, message = "bqf,bkf->bqk"}> : () -> ()
    %cst_103 = arith.constant dense<0.000000e+00> : vector<8x4x4xf32>
    %209 = tpu.matmul %206, %207, %cst_103 {dimension_numbers = #tpu.dot_dimension_numbers<[2], [2], [1], [1], [0, 0, 0, 1, 1, 1], [0], [0]>} : vector<8x4x8xf32>, vector<8x4x8xf32>, vector<8x4x4xf32> -> vector<8x4x4xf32>
    "tpu.trace_stop"() : () -> ()
    %cst_104 = arith.constant 0.353553385 : f32
    %210 = vector.broadcast %cst_104 : f32 to vector<8x4x4xf32>
    %211 = arith.mulf %209, %210 : vector<8x4x4xf32>
    %cst_105 = arith.constant dense<0xFF800000> : vector<8x4xf32>
    %212 = vector.multi_reduction <maximumf>, %211, %cst_105 [2] : vector<8x4x4xf32> to vector<8x4xf32>
    %213 = vector.shape_cast %212 : vector<8x4xf32> to vector<8x4x1xf32>
    %214 = vector.broadcast %213 : vector<8x4x1xf32> to vector<8x4x4xf32>
    %215 = arith.subf %211, %214 : vector<8x4x4xf32>
    %216 = math.exp %215 : vector<8x4x4xf32>
    %cst_106 = arith.constant dense<0.000000e+00> : vector<8x4xf32>
    %217 = vector.multi_reduction <add>, %216, %cst_106 [2] : vector<8x4x4xf32> to vector<8x4xf32>
    %218 = vector.shape_cast %217 : vector<8x4xf32> to vector<8x4x1xf32>
    %219 = tpu.reciprocal %218 {approx = true} : vector<8x4x1xf32> -> vector<8x4x1xf32>
    %220 = vector.broadcast %219 : vector<8x4x1xf32> to vector<8x4x4xf32>
    %221 = arith.mulf %216, %220 : vector<8x4x4xf32>
    "tpu.trace_start"() <{level = 10 : i32, message = "bqk,bkf->bqf"}> : () -> ()
    %cst_107 = arith.constant dense<0.000000e+00> : vector<8x4x8xf32>
    %222 = tpu.matmul %221, %208, %cst_107 {dimension_numbers = #tpu.dot_dimension_numbers<[2], [1], [1], [2], [0, 0, 0, 1, 1, 2], [0], [0]>} : vector<8x4x4xf32>, vector<8x4x8xf32>, vector<8x4x8xf32> -> vector<8x4x8xf32>
    "tpu.trace_stop"() : () -> ()
    %223 = vector.extract_strided_slice %205 {offsets = [0, 0, 8], sizes = [8, 4, 8], strides = [1, 1, 1]} : vector<8x4x96xf32> to vector<8x4x8xf32>
    %224 = vector.extract_strided_slice %205 {offsets = [0, 0, 40], sizes = [8, 4, 8], strides = [1, 1, 1]} : vector<8x4x96xf32> to vector<8x4x8xf32>
    %225 = vector.extract_strided_slice %205 {offsets = [0, 0, 72], sizes = [8, 4, 8], strides = [1, 1, 1]} : vector<8x4x96xf32> to vector<8x4x8xf32>
    "tpu.trace_start"() <{level = 10 : i32, message = "bqf,bkf->bqk"}> : () -> ()
    %cst_108 = arith.constant dense<0.000000e+00> : vector<8x4x4xf32>
    %226 = tpu.matmul %223, %224, %cst_108 {dimension_numbers = #tpu.dot_dimension_numbers<[2], [2], [1], [1], [0, 0, 0, 1, 1, 1], [0], [0]>} : vector<8x4x8xf32>, vector<8x4x8xf32>, vector<8x4x4xf32> -> vector<8x4x4xf32>
    "tpu.trace_stop"() : () -> ()
    %cst_109 = arith.constant 0.353553385 : f32
    %227 = vector.broadcast %cst_109 : f32 to vector<8x4x4xf32>
    %228 = arith.mulf %226, %227 : vector<8x4x4xf32>
    %cst_110 = arith.constant dense<0xFF800000> : vector<8x4xf32>
    %229 = vector.multi_reduction <maximumf>, %228, %cst_110 [2] : vector<8x4x4xf32> to vector<8x4xf32>
    %230 = vector.shape_cast %229 : vector<8x4xf32> to vector<8x4x1xf32>
    %231 = vector.broadcast %230 : vector<8x4x1xf32> to vector<8x4x4xf32>
    %232 = arith.subf %228, %231 : vector<8x4x4xf32>
    %233 = math.exp %232 : vector<8x4x4xf32>
    %cst_111 = arith.constant dense<0.000000e+00> : vector<8x4xf32>
    %234 = vector.multi_reduction <add>, %233, %cst_111 [2] : vector<8x4x4xf32> to vector<8x4xf32>
    %235 = vector.shape_cast %234 : vector<8x4xf32> to vector<8x4x1xf32>
    %236 = tpu.reciprocal %235 {approx = true} : vector<8x4x1xf32> -> vector<8x4x1xf32>
    %237 = vector.broadcast %236 : vector<8x4x1xf32> to vector<8x4x4xf32>
    %238 = arith.mulf %233, %237 : vector<8x4x4xf32>
    "tpu.trace_start"() <{level = 10 : i32, message = "bqk,bkf->bqf"}> : () -> ()
    %cst_112 = arith.constant dense<0.000000e+00> : vector<8x4x8xf32>
    %239 = tpu.matmul %238, %225, %cst_112 {dimension_numbers = #tpu.dot_dimension_numbers<[2], [1], [1], [2], [0, 0, 0, 1, 1, 2], [0], [0]>} : vector<8x4x4xf32>, vector<8x4x8xf32>, vector<8x4x8xf32> -> vector<8x4x8xf32>
    "tpu.trace_stop"() : () -> ()
    %240 = vector.extract_strided_slice %205 {offsets = [0, 0, 16], sizes = [8, 4, 8], strides = [1, 1, 1]} : vector<8x4x96xf32> to vector<8x4x8xf32>
    %241 = vector.extract_strided_slice %205 {offsets = [0, 0, 48], sizes = [8, 4, 8], strides = [1, 1, 1]} : vector<8x4x96xf32> to vector<8x4x8xf32>
    %242 = vector.extract_strided_slice %205 {offsets = [0, 0, 80], sizes = [8, 4, 8], strides = [1, 1, 1]} : vector<8x4x96xf32> to vector<8x4x8xf32>
    "tpu.trace_start"() <{level = 10 : i32, message = "bqf,bkf->bqk"}> : () -> ()
    %cst_113 = arith.constant dense<0.000000e+00> : vector<8x4x4xf32>
    %243 = tpu.matmul %240, %241, %cst_113 {dimension_numbers = #tpu.dot_dimension_numbers<[2], [2], [1], [1], [0, 0, 0, 1, 1, 1], [0], [0]>} : vector<8x4x8xf32>, vector<8x4x8xf32>, vector<8x4x4xf32> -> vector<8x4x4xf32>
    "tpu.trace_stop"() : () -> ()
    %cst_114 = arith.constant 0.353553385 : f32
    %244 = vector.broadcast %cst_114 : f32 to vector<8x4x4xf32>
    %245 = arith.mulf %243, %244 : vector<8x4x4xf32>
    %cst_115 = arith.constant dense<0xFF800000> : vector<8x4xf32>
    %246 = vector.multi_reduction <maximumf>, %245, %cst_115 [2] : vector<8x4x4xf32> to vector<8x4xf32>
    %247 = vector.shape_cast %246 : vector<8x4xf32> to vector<8x4x1xf32>
    %248 = vector.broadcast %247 : vector<8x4x1xf32> to vector<8x4x4xf32>
    %249 = arith.subf %245, %248 : vector<8x4x4xf32>
    %250 = math.exp %249 : vector<8x4x4xf32>
    %cst_116 = arith.constant dense<0.000000e+00> : vector<8x4xf32>
    %251 = vector.multi_reduction <add>, %250, %cst_116 [2] : vector<8x4x4xf32> to vector<8x4xf32>
    %252 = vector.shape_cast %251 : vector<8x4xf32> to vector<8x4x1xf32>
    %253 = tpu.reciprocal %252 {approx = true} : vector<8x4x1xf32> -> vector<8x4x1xf32>
    %254 = vector.broadcast %253 : vector<8x4x1xf32> to vector<8x4x4xf32>
    %255 = arith.mulf %250, %254 : vector<8x4x4xf32>
    "tpu.trace_start"() <{level = 10 : i32, message = "bqk,bkf->bqf"}> : () -> ()
    %cst_117 = arith.constant dense<0.000000e+00> : vector<8x4x8xf32>
    %256 = tpu.matmul %255, %242, %cst_117 {dimension_numbers = #tpu.dot_dimension_numbers<[2], [1], [1], [2], [0, 0, 0, 1, 1, 2], [0], [0]>} : vector<8x4x4xf32>, vector<8x4x8xf32>, vector<8x4x8xf32> -> vector<8x4x8xf32>
    "tpu.trace_stop"() : () -> ()
    %257 = vector.extract_strided_slice %205 {offsets = [0, 0, 24], sizes = [8, 4, 8], strides = [1, 1, 1]} : vector<8x4x96xf32> to vector<8x4x8xf32>
    %258 = vector.extract_strided_slice %205 {offsets = [0, 0, 56], sizes = [8, 4, 8], strides = [1, 1, 1]} : vector<8x4x96xf32> to vector<8x4x8xf32>
    %259 = vector.extract_strided_slice %205 {offsets = [0, 0, 88], sizes = [8, 4, 8], strides = [1, 1, 1]} : vector<8x4x96xf32> to vector<8x4x8xf32>
    "tpu.trace_start"() <{level = 10 : i32, message = "bqf,bkf->bqk"}> : () -> ()
    %cst_118 = arith.constant dense<0.000000e+00> : vector<8x4x4xf32>
    %260 = tpu.matmul %257, %258, %cst_118 {dimension_numbers = #tpu.dot_dimension_numbers<[2], [2], [1], [1], [0, 0, 0, 1, 1, 1], [0], [0]>} : vector<8x4x8xf32>, vector<8x4x8xf32>, vector<8x4x4xf32> -> vector<8x4x4xf32>
    "tpu.trace_stop"() : () -> ()
    %cst_119 = arith.constant 0.353553385 : f32
    %261 = vector.broadcast %cst_119 : f32 to vector<8x4x4xf32>
    %262 = arith.mulf %260, %261 : vector<8x4x4xf32>
    %cst_120 = arith.constant dense<0xFF800000> : vector<8x4xf32>
    %263 = vector.multi_reduction <maximumf>, %262, %cst_120 [2] : vector<8x4x4xf32> to vector<8x4xf32>
    %264 = vector.shape_cast %263 : vector<8x4xf32> to vector<8x4x1xf32>
    %265 = vector.broadcast %264 : vector<8x4x1xf32> to vector<8x4x4xf32>
    %266 = arith.subf %262, %265 : vector<8x4x4xf32>
    %267 = math.exp %266 : vector<8x4x4xf32>
    %cst_121 = arith.constant dense<0.000000e+00> : vector<8x4xf32>
    %268 = vector.multi_reduction <add>, %267, %cst_121 [2] : vector<8x4x4xf32> to vector<8x4xf32>
    %269 = vector.shape_cast %268 : vector<8x4xf32> to vector<8x4x1xf32>
    %270 = tpu.reciprocal %269 {approx = true} : vector<8x4x1xf32> -> vector<8x4x1xf32>
    %271 = vector.broadcast %270 : vector<8x4x1xf32> to vector<8x4x4xf32>
    %272 = arith.mulf %267, %271 : vector<8x4x4xf32>
    "tpu.trace_start"() <{level = 10 : i32, message = "bqk,bkf->bqf"}> : () -> ()
    %cst_122 = arith.constant dense<0.000000e+00> : vector<8x4x8xf32>
    %273 = tpu.matmul %272, %259, %cst_122 {dimension_numbers = #tpu.dot_dimension_numbers<[2], [1], [1], [2], [0, 0, 0, 1, 1, 2], [0], [0]>} : vector<8x4x4xf32>, vector<8x4x8xf32>, vector<8x4x8xf32> -> vector<8x4x8xf32>
    "tpu.trace_stop"() : () -> ()
    %274 = tpu.concatenate %222, %239, %256, %273 in 2 : vector<8x4x8xf32>, vector<8x4x8xf32>, vector<8x4x8xf32>, vector<8x4x8xf32> -> vector<8x4x32xf32>
    %275 = vector.shape_cast %274 : vector<8x4x32xf32> to vector<32x32xf32>
    %c1_123 = arith.constant 1 : index
    %c0_124 = arith.constant 0 : index
    %c0_125 = arith.constant 0 : index
    %276 = vector.load %arg11[%c1_123, %c0_124, %c0_125] : memref<2x32x32xf32, #tpu.memory_space<vmem>>, vector<1x32x32xf32>
    %277 = vector.shape_cast %276 : vector<1x32x32xf32> to vector<32x32xf32>
    %cst_126 = arith.constant dense<0.000000e+00> : vector<32x32xf32>
    %278 = tpu.matmul %275, %277, %cst_126 {dimension_numbers = #tpu.dot_dimension_numbers<[1], [0], [0], [1], [0, 0, 1, 1], [], []>} : vector<32x32xf32>, vector<32x32xf32>, vector<32x32xf32> -> vector<32x32xf32>
    %c1_127 = arith.constant 1 : index
    %c0_128 = arith.constant 0 : index
    %c0_129 = arith.constant 0 : index
    %279 = vector.load %arg12[%c1_127, %c0_128, %c0_129] : memref<2x1x32xf32, #tpu.memory_space<vmem>>, vector<1x1x32xf32>
    %280 = vector.shape_cast %279 : vector<1x1x32xf32> to vector<1x32xf32>
    %281 = vector.broadcast %280 : vector<1x32xf32> to vector<32x32xf32>
    %282 = arith.addf %278, %281 : vector<32x32xf32>
    %283 = arith.addf %197, %282 : vector<32x32xf32>
    %c1_130 = arith.constant 1 : index
    %c0_131 = arith.constant 0 : index
    %c0_132 = arith.constant 0 : index
    %284 = vector.load %arg13[%c1_130, %c0_131, %c0_132] : memref<2x1x32xf32, #tpu.memory_space<vmem>>, vector<1x1x32xf32>
    %285 = vector.shape_cast %284 : vector<1x1x32xf32> to vector<1x32xf32>
    %c1_133 = arith.constant 1 : index
    %c0_134 = arith.constant 0 : index
    %c0_135 = arith.constant 0 : index
    %286 = vector.load %arg14[%c1_133, %c0_134, %c0_135] : memref<2x1x32xf32, #tpu.memory_space<vmem>>, vector<1x1x32xf32>
    %287 = vector.shape_cast %286 : vector<1x1x32xf32> to vector<1x32xf32>
    %cst_136 = arith.constant dense<0.000000e+00> : vector<32xf32>
    %288 = vector.multi_reduction <add>, %283, %cst_136 [1] : vector<32x32xf32> to vector<32xf32>
    %289 = vector.shape_cast %288 : vector<32xf32> to vector<32x1xf32>
    %cst_137 = arith.constant 3.200000e+01 : f32
    %290 = vector.broadcast %cst_137 : f32 to vector<32x1xf32>
    %291 = arith.divf %289, %290 : vector<32x1xf32>
    %292 = vector.broadcast %291 : vector<32x1xf32> to vector<32x32xf32>
    %293 = arith.subf %283, %292 : vector<32x32xf32>
    %294 = arith.mulf %293, %293 : vector<32x32xf32>
    %cst_138 = arith.constant dense<0.000000e+00> : vector<32xf32>
    %295 = vector.multi_reduction <add>, %294, %cst_138 [1] : vector<32x32xf32> to vector<32xf32>
    %296 = vector.shape_cast %295 : vector<32xf32> to vector<32x1xf32>
    %cst_139 = arith.constant 3.200000e+01 : f32
    %297 = vector.broadcast %cst_139 : f32 to vector<32x1xf32>
    %298 = arith.divf %296, %297 : vector<32x1xf32>
    %299 = vector.broadcast %291 : vector<32x1xf32> to vector<32x32xf32>
    %300 = arith.subf %283, %299 : vector<32x32xf32>
    %cst_140 = arith.constant 9.99999974E-6 : f32
    %301 = vector.broadcast %cst_140 : f32 to vector<32x1xf32>
    %302 = arith.addf %298, %301 : vector<32x1xf32>
    %303 = math.rsqrt %302 : vector<32x1xf32>
    %304 = vector.broadcast %303 : vector<32x1xf32> to vector<32x32xf32>
    %305 = arith.mulf %300, %304 : vector<32x32xf32>
    %306 = vector.broadcast %285 : vector<1x32xf32> to vector<32x32xf32>
    %307 = arith.mulf %305, %306 : vector<32x32xf32>
    %308 = vector.broadcast %287 : vector<1x32xf32> to vector<32x32xf32>
    %309 = arith.addf %307, %308 : vector<32x32xf32>
    %310 = arith.truncf %309 : vector<32x32xf32> to vector<32x32xbf16>
    %c1_141 = arith.constant 1 : index
    %c0_142 = arith.constant 0 : index
    %c0_143 = arith.constant 0 : index
    %311 = vector.load %arg15[%c1_141, %c0_142, %c0_143] : memref<2x32x2048xbf16, #tpu.memory_space<vmem>>, vector<1x32x2048xbf16>
    %312 = vector.shape_cast %311 : vector<1x32x2048xbf16> to vector<32x2048xbf16>
    %cst_144 = arith.constant dense<0.000000e+00> : vector<32x2048xf32>
    %313 = tpu.matmul %310, %312, %cst_144 {dimension_numbers = #tpu.dot_dimension_numbers<[1], [0], [0], [1], [0, 0, 1, 1], [], []>} : vector<32x32xbf16>, vector<32x2048xbf16>, vector<32x2048xf32> -> vector<32x2048xf32>
    %c1_145 = arith.constant 1 : index
    %c0_146 = arith.constant 0 : index
    %c0_147 = arith.constant 0 : index
    %314 = vector.load %arg16[%c1_145, %c0_146, %c0_147] : memref<2x1x2048xf32, #tpu.memory_space<vmem>>, vector<1x1x2048xf32>
    %315 = vector.shape_cast %314 : vector<1x1x2048xf32> to vector<1x2048xf32>
    %316 = vector.broadcast %315 : vector<1x2048xf32> to vector<32x2048xf32>
    %317 = arith.addf %313, %316 : vector<32x2048xf32>
    %318 = arith.mulf %317, %317 : vector<32x2048xf32>
    %319 = arith.mulf %317, %318 : vector<32x2048xf32>
    %cst_148 = arith.constant 4.471500e-02 : f32
    %320 = vector.broadcast %cst_148 : f32 to vector<32x2048xf32>
    %321 = arith.mulf %320, %319 : vector<32x2048xf32>
    %322 = arith.addf %317, %321 : vector<32x2048xf32>
    %cst_149 = arith.constant 0.797884583 : f32
    %323 = vector.broadcast %cst_149 : f32 to vector<32x2048xf32>
    %324 = arith.mulf %323, %322 : vector<32x2048xf32>
    %325 = math.tanh %324 : vector<32x2048xf32>
    %cst_150 = arith.constant 1.000000e+00 : f32
    %326 = vector.broadcast %cst_150 : f32 to vector<32x2048xf32>
    %327 = arith.addf %326, %325 : vector<32x2048xf32>
    %cst_151 = arith.constant 5.000000e-01 : f32
    %328 = vector.broadcast %cst_151 : f32 to vector<32x2048xf32>
    %329 = arith.mulf %328, %327 : vector<32x2048xf32>
    %330 = arith.mulf %317, %329 : vector<32x2048xf32>
    %331 = arith.truncf %330 : vector<32x2048xf32> to vector<32x2048xbf16>
    %c1_152 = arith.constant 1 : index
    %c0_153 = arith.constant 0 : index
    %c0_154 = arith.constant 0 : index
    %332 = vector.load %arg17[%c1_152, %c0_153, %c0_154] : memref<2x2048x32xbf16, #tpu.memory_space<vmem>>, vector<1x2048x32xbf16>
    %333 = vector.shape_cast %332 : vector<1x2048x32xbf16> to vector<2048x32xbf16>
    %cst_155 = arith.constant dense<0.000000e+00> : vector<32x32xf32>
    %334 = tpu.matmul %331, %333, %cst_155 {dimension_numbers = #tpu.dot_dimension_numbers<[1], [0], [0], [1], [0, 0, 1, 1], [], []>} : vector<32x2048xbf16>, vector<2048x32xbf16>, vector<32x32xf32> -> vector<32x32xf32>
    %c1_156 = arith.constant 1 : index
    %c0_157 = arith.constant 0 : index
    %c0_158 = arith.constant 0 : index
    %335 = vector.load %arg18[%c1_156, %c0_157, %c0_158] : memref<2x1x32xf32, #tpu.memory_space<vmem>>, vector<1x1x32xf32>
    %336 = vector.shape_cast %335 : vector<1x1x32xf32> to vector<1x32xf32>
    %337 = vector.broadcast %336 : vector<1x32xf32> to vector<32x32xf32>
    %338 = arith.addf %334, %337 : vector<32x32xf32>
    %339 = arith.addf %309, %338 : vector<32x32xf32>
    %c1_159 = arith.constant 1 : index
    %c0_160 = arith.constant 0 : index
    %c0_161 = arith.constant 0 : index
    %340 = vector.load %arg19[%c1_159, %c0_160, %c0_161] : memref<2x1x32xf32, #tpu.memory_space<vmem>>, vector<1x1x32xf32>
    %341 = vector.shape_cast %340 : vector<1x1x32xf32> to vector<1x32xf32>
    %c1_162 = arith.constant 1 : index
    %c0_163 = arith.constant 0 : index
    %c0_164 = arith.constant 0 : index
    %342 = vector.load %arg20[%c1_162, %c0_163, %c0_164] : memref<2x1x32xf32, #tpu.memory_space<vmem>>, vector<1x1x32xf32>
    %343 = vector.shape_cast %342 : vector<1x1x32xf32> to vector<1x32xf32>
    %cst_165 = arith.constant dense<0.000000e+00> : vector<32xf32>
    %344 = vector.multi_reduction <add>, %339, %cst_165 [1] : vector<32x32xf32> to vector<32xf32>
    %345 = vector.shape_cast %344 : vector<32xf32> to vector<32x1xf32>
    %cst_166 = arith.constant 3.200000e+01 : f32
    %346 = vector.broadcast %cst_166 : f32 to vector<32x1xf32>
    %347 = arith.divf %345, %346 : vector<32x1xf32>
    %348 = vector.broadcast %347 : vector<32x1xf32> to vector<32x32xf32>
    %349 = arith.subf %339, %348 : vector<32x32xf32>
    %350 = arith.mulf %349, %349 : vector<32x32xf32>
    %cst_167 = arith.constant dense<0.000000e+00> : vector<32xf32>
    %351 = vector.multi_reduction <add>, %350, %cst_167 [1] : vector<32x32xf32> to vector<32xf32>
    %352 = vector.shape_cast %351 : vector<32xf32> to vector<32x1xf32>
    %cst_168 = arith.constant 3.200000e+01 : f32
    %353 = vector.broadcast %cst_168 : f32 to vector<32x1xf32>
    %354 = arith.divf %352, %353 : vector<32x1xf32>
    %355 = vector.broadcast %347 : vector<32x1xf32> to vector<32x32xf32>
    %356 = arith.subf %339, %355 : vector<32x32xf32>
    %cst_169 = arith.constant 9.99999974E-6 : f32
    %357 = vector.broadcast %cst_169 : f32 to vector<32x1xf32>
    %358 = arith.addf %354, %357 : vector<32x1xf32>
    %359 = math.rsqrt %358 : vector<32x1xf32>
    %360 = vector.broadcast %359 : vector<32x1xf32> to vector<32x32xf32>
    %361 = arith.mulf %356, %360 : vector<32x32xf32>
    %362 = vector.broadcast %341 : vector<1x32xf32> to vector<32x32xf32>
    %363 = arith.mulf %361, %362 : vector<32x32xf32>
    %364 = vector.broadcast %343 : vector<1x32xf32> to vector<32x32xf32>
    %365 = arith.addf %363, %364 : vector<32x32xf32>
    %366 = vector.shape_cast %365 : vector<32x32xf32> to vector<8x4x32xf32>
    %cst_170 = arith.constant dense<0.000000e+00> : vector<8x32xf32>
    %367 = vector.multi_reduction <add>, %366, %cst_170 [1] : vector<8x4x32xf32> to vector<8x32xf32>
    %cst_171 = arith.constant 4.000000e+00 : f32
    %368 = vector.broadcast %cst_171 : f32 to vector<8x32xf32>
    %369 = arith.divf %367, %368 : vector<8x32xf32>
    %370 = arith.truncf %369 : vector<8x32xf32> to vector<8x32xbf16>
    %c0_172 = arith.constant 0 : index
    %c0_173 = arith.constant 0 : index
    %371 = vector.load %arg21[%c0_172, %c0_173] : memref<32x768xbf16, #tpu.memory_space<vmem>>, vector<32x768xbf16>
    %cst_174 = arith.constant dense<0.000000e+00> : vector<8x768xf32>
    %372 = tpu.matmul %370, %371, %cst_174 {dimension_numbers = #tpu.dot_dimension_numbers<[1], [0], [0], [1], [0, 0, 1, 1], [], []>} : vector<8x32xbf16>, vector<32x768xbf16>, vector<8x768xf32> -> vector<8x768xf32>
    %c0_175 = arith.constant 0 : index
    %c0_176 = arith.constant 0 : index
    %373 = vector.load %arg22[%c0_175, %c0_176] : memref<1x768xf32, #tpu.memory_space<vmem>>, vector<1x768xf32>
    %374 = vector.broadcast %373 : vector<1x768xf32> to vector<8x768xf32>
    %375 = arith.addf %372, %374 : vector<8x768xf32>
    %376 = math.tanh %375 : vector<8x768xf32>
    %c0_177 = arith.constant 0 : index
    %c0_178 = arith.constant 0 : index
    %377 = vector.load %arg23[%c0_177, %c0_178] : memref<8x768xf32, #tpu.memory_space<vmem>>, vector<8x768xf32>
    tpu.vector_store %arg23[%c0_177, %c0_178], %376 {strides = array<i32>} : memref<8x768xf32, #tpu.memory_space<vmem>>, vector<8x768xf32>,
    return
  }
  func.func @transform_0(%arg0: i32) -> (i32, i32, i32, i32) {
    %c0_i32 = arith.constant 0 : i32
    %c0_i32_0 = arith.constant 0 : i32
    %c0_i32_1 = arith.constant 0 : i32
    %c0_i32_2 = arith.constant 0 : i32
    return %arg0, %c0_i32, %c0_i32_0, %c0_i32_1 : i32, i32, i32, i32
  }
  func.func @transform_1(%arg0: i32) -> (i32, i32) {
    %c0_i32 = arith.constant 0 : i32
    %c0_i32_0 = arith.constant 0 : i32
    %c0_i32_1 = arith.constant 0 : i32
    return %c0_i32, %c0_i32_0 : i32, i32
  }
  func.func @transform_2(%arg0: i32) -> (i32, i32, i32) {
    %c0_i32 = arith.constant 0 : i32
    %c0_i32_0 = arith.constant 0 : i32
    %c0_i32_1 = arith.constant 0 : i32
    return %arg0, %c0_i32, %c0_i32_0 : i32, i32, i32
  }
  func.func @transform_3(%arg0: i32) -> (i32, i32, i32) {
    %c0_i32 = arith.constant 0 : i32
    %c0_i32_0 = arith.constant 0 : i32
    %c0_i32_1 = arith.constant 0 : i32
    return %arg0, %c0_i32, %c0_i32_0 : i32, i32, i32
  }
  func.func @transform_4(%arg0: i32) -> (i32, i32) {
    %c0_i32 = arith.constant 0 : i32
    %c0_i32_0 = arith.constant 0 : i32
    %c0_i32_1 = arith.constant 0 : i32
    return %c0_i32, %c0_i32_0 : i32, i32
  }
  func.func @transform_5(%arg0: i32) -> (i32, i32) {
    %c0_i32 = arith.constant 0 : i32
    %c0_i32_0 = arith.constant 0 : i32
    %c0_i32_1 = arith.constant 0 : i32
    return %c0_i32, %c0_i32_0 : i32, i32
  }
  func.func @transform_6(%arg0: i32) -> (i32, i32) {
    %c0_i32 = arith.constant 0 : i32
    %c0_i32_0 = arith.constant 0 : i32
    %c0_i32_1 = arith.constant 0 : i32
    return %c0_i32, %c0_i32_0 : i32, i32
  }
  func.func @transform_7(%arg0: i32) -> (i32, i32) {
    %c0_i32 = arith.constant 0 : i32
    %c0_i32_0 = arith.constant 0 : i32
    %c0_i32_1 = arith.constant 0 : i32
    return %c0_i32, %c0_i32_0 : i32, i32
  }
  func.func @transform_8(%arg0: i32) -> (i32, i32, i32) {
    %c0_i32 = arith.constant 0 : i32
    %c0_i32_0 = arith.constant 0 : i32
    %c0_i32_1 = arith.constant 0 : i32
    %c0_i32_2 = arith.constant 0 : i32
    return %c0_i32, %c0_i32_0, %c0_i32_1 : i32, i32, i32
  }
  func.func @transform_9(%arg0: i32) -> (i32, i32, i32) {
    %c0_i32 = arith.constant 0 : i32
    %c0_i32_0 = arith.constant 0 : i32
    %c0_i32_1 = arith.constant 0 : i32
    %c0_i32_2 = arith.constant 0 : i32
    return %c0_i32, %c0_i32_0, %c0_i32_1 : i32, i32, i32
  }
  func.func @transform_10(%arg0: i32) -> (i32, i32, i32) {
    %c0_i32 = arith.constant 0 : i32
    %c0_i32_0 = arith.constant 0 : i32
    %c0_i32_1 = arith.constant 0 : i32
    %c0_i32_2 = arith.constant 0 : i32
    return %c0_i32, %c0_i32_0, %c0_i32_1 : i32, i32, i32
  }
  func.func @transform_11(%arg0: i32) -> (i32, i32, i32) {
    %c0_i32 = arith.constant 0 : i32
    %c0_i32_0 = arith.constant 0 : i32
    %c0_i32_1 = arith.constant 0 : i32
    %c0_i32_2 = arith.constant 0 : i32
    return %c0_i32, %c0_i32_0, %c0_i32_1 : i32, i32, i32
  }
  func.func @transform_12(%arg0: i32) -> (i32, i32, i32) {
    %c0_i32 = arith.constant 0 : i32
    %c0_i32_0 = arith.constant 0 : i32
    %c0_i32_1 = arith.constant 0 : i32
    %c0_i32_2 = arith.constant 0 : i32
    return %c0_i32, %c0_i32_0, %c0_i32_1 : i32, i32, i32
  }
  func.func @transform_13(%arg0: i32) -> (i32, i32, i32) {
    %c0_i32 = arith.constant 0 : i32
    %c0_i32_0 = arith.constant 0 : i32
    %c0_i32_1 = arith.constant 0 : i32
    %c0_i32_2 = arith.constant 0 : i32
    return %c0_i32, %c0_i32_0, %c0_i32_1 : i32, i32, i32
  }
  func.func @transform_14(%arg0: i32) -> (i32, i32, i32) {
    %c0_i32 = arith.constant 0 : i32
    %c0_i32_0 = arith.constant 0 : i32
    %c0_i32_1 = arith.constant 0 : i32
    %c0_i32_2 = arith.constant 0 : i32
    return %c0_i32, %c0_i32_0, %c0_i32_1 : i32, i32, i32
  }
  func.func @transform_15(%arg0: i32) -> (i32, i32, i32) {
    %c0_i32 = arith.constant 0 : i32
    %c0_i32_0 = arith.constant 0 : i32
    %c0_i32_1 = arith.constant 0 : i32
    %c0_i32_2 = arith.constant 0 : i32
    return %c0_i32, %c0_i32_0, %c0_i32_1 : i32, i32, i32
  }
  func.func @transform_16(%arg0: i32) -> (i32, i32, i32) {
    %c0_i32 = arith.constant 0 : i32
    %c0_i32_0 = arith.constant 0 : i32
    %c0_i32_1 = arith.constant 0 : i32
    %c0_i32_2 = arith.constant 0 : i32
    return %c0_i32, %c0_i32_0, %c0_i32_1 : i32, i32, i32
  }
  func.func @transform_17(%arg0: i32) -> (i32, i32, i32) {
    %c0_i32 = arith.constant 0 : i32
    %c0_i32_0 = arith.constant 0 : i32
    %c0_i32_1 = arith.constant 0 : i32
    %c0_i32_2 = arith.constant 0 : i32
    return %c0_i32, %c0_i32_0, %c0_i32_1 : i32, i32, i32
  }
  func.func @transform_18(%arg0: i32) -> (i32, i32, i32) {
    %c0_i32 = arith.constant 0 : i32
    %c0_i32_0 = arith.constant 0 : i32
    %c0_i32_1 = arith.constant 0 : i32
    %c0_i32_2 = arith.constant 0 : i32
    return %c0_i32, %c0_i32_0, %c0_i32_1 : i32, i32, i32
  }
  func.func @transform_19(%arg0: i32) -> (i32, i32, i32) {
    %c0_i32 = arith.constant 0 : i32
    %c0_i32_0 = arith.constant 0 : i32
    %c0_i32_1 = arith.constant 0 : i32
    %c0_i32_2 = arith.constant 0 : i32
    return %c0_i32, %c0_i32_0, %c0_i32_1 : i32, i32, i32
  }
  func.func @transform_20(%arg0: i32) -> (i32, i32) {
    %c0_i32 = arith.constant 0 : i32
    %c0_i32_0 = arith.constant 0 : i32
    %c0_i32_1 = arith.constant 0 : i32
    return %c0_i32, %c0_i32_0 : i32, i32
  }
  func.func @transform_21(%arg0: i32) -> (i32, i32) {
    %c0_i32 = arith.constant 0 : i32
    %c0_i32_0 = arith.constant 0 : i32
    %c0_i32_1 = arith.constant 0 : i32
    return %c0_i32, %c0_i32_0 : i32, i32
  }
  func.func @transform_22(%arg0: i32) -> (i32, i32) {
    %c0_i32 = arith.constant 0 : i32
    %c0_i32_0 = arith.constant 0 : i32
    return %arg0, %c0_i32 : i32, i32
  }
}

</mosaic_0001>

<bundles_post_ra>
// kernel: tpu_custom_call.1
= control target key start
LH: loop header
LB: loop body
LE: loop exit
PB: predicated region body
PF: predicated region fallthrough
CT: control target
= control target key end

     0   :  { %s30444_s0 = inlined_call_operand.vmem [shape: f32[16,3,3,256], index: 0, kind: input, shape index: {}]   ;;  %s30445_s1 = inlined_call_operand.vmem [shape: f32[1,32], index: 1, kind: input, shape index: {}]   ;;  %s30446_s2 = inlined_call_operand.vmem [shape: f32[16,1,8], index: 2, kind: input, shape index: {}]   ;;  %s30447_s3 = inlined_call_operand.vmem [shape: f32[16,4,32], index: 3, kind: input, shape index: {}]   ;;  %s30448_s4 = inlined_call_operand.vmem [shape: f32[3,512], index: 4, kind: input, shape index: {}]   ;;  %s30449_s5 = inlined_call_operand.vmem [shape: f32[1,512], index: 5, kind: input, shape index: {}]   ;;  %s30450_s6 = inlined_call_operand.vmem [shape: bf16[512,32], index: 6, kind: input, shape index: {}]   ;;  %s30451_s7 = inlined_call_operand.vmem [shape: f32[1,32], index: 7, kind: input, shape index: {}]   ;;  %s30452_s8 = inlined_call_operand.vmem [shape: f32[2,32,96], index: 8, kind: input, shape index: {}]   ;;  %s30453_s9 = inlined_call_operand.vmem [shape: f32[2,1,96], index: 9, kind: input, shape index: {}]   ;;  %s30454_s10 = inlined_call_operand.vmem [shape: f32[2,32,32], index: 10, kind: input, shape index: {}]   ;;  %s30455_s11 = inlined_call_operand.vmem [shape: f32[2,1,32], index: 11, kind: input, shape index: {}]   ;;  %s30456_s12 = inlined_call_operand.vmem [shape: f32[2,1,32], index: 12, kind: input, shape index: {}]   ;;  %s30457_s13 = inlined_call_operand.vmem [shape: f32[2,1,32], index: 13, kind: input, shape index: {}]   ;;  %s30458_s14 = inlined_call_operand.vmem [shape: bf16[2,32,2048], index: 14, kind: input, shape index: {}]   ;;  %s30459_s15 = inlined_call_operand.vmem [shape: f32[2,1,2048], index: 15, kind: input, shape index: {}]   ;;  %s30460_s16 = inlined_call_operand.vmem [shape: bf16[2,2048,32], index: 16, kind: input, shape index: {}]   ;;  %s30461_s17 = inlined_call_operand.vmem [shape: f32[2,1,32], index: 17, kind: input, shape index: {}]   ;;  %s30462_s18 = inlined_call_operand.vmem [shape: f32[2,1,32], index: 18, kind: input, shape index: {}]   ;;  %s30463_s19 = inlined_call_operand.vmem [shape: f32[2,1,32], index: 19, kind: input, shape index: {}]   ;;  %s30464_s20 = inlined_call_operand.vmem [shape: bf16[32,768], index: 20, kind: input, shape index: {}]   ;;  %s30465_s21 = inlined_call_operand.vmem [shape: f32[1,768], index: 21, kind: input, shape index: {}]   ;;  %s30466_s22 = inlined_call_operand.hbm [shape: f32[16,768], index: 22, kind: output, shape index: {}]  }
   0x1   :  { %30619 = sst [smem:[#allocation70_spill]] %s30444_s0 }
   0x2   :  { %30620 = sst [smem:[#allocation71_spill]] %s30445_s1 }
   0x3   :  { %30621 = sst [smem:[#allocation72_spill]] %s30446_s2 }
   0x4   :  { %30622 = sst [smem:[#allocation73_spill]] %s30447_s3 }
   0x5   :  { %30623 = sst [smem:[#allocation74_spill]] %s30448_s4 }
   0x6   :  { %30624 = sst [smem:[#allocation75_spill]] %s30449_s5 }
   0x7   :  { %30625 = sst [smem:[#allocation76_spill]] %s30450_s6 }
   0x8   :  { %27 = vsyncpa [#allocation3], 0 }
   0x9   :  { %29 = vsyncpa [#allocation3 + $0x1], 0  ;;  %s24443_s3 = smov 0   ;;  %s24445_s28 = smov 0  }
   0xa   :  { %s24447_s29 = smov 0   ;;  %s24449_s30 = smov 0  }
   0xb LB: > { %30626 = sst [smem:[#allocation5_spill]] %s24293_s3  ;;  %s24464_s4 = sadd.s32 4294967295, %s24305_s30   ;;  %s24305_s30 = sphi %s24449_s30, %s30921_s30   ;;  %s24301_s29 = sphi %s24447_s29, %s30923_s29   ;;  %s24297_s28 = sphi %s24445_s28, %s30925_s28   ;;  %s24293_s3 = sphi %s24443_s3, %s30924_s3  }
   0xc   : > { %30627 = sst [smem:[#allocation6_spill]] %s24301_s29  ;;  %s20754_s0 = sadd.s32 4294967294, %s24305_s30  }
   0xd   : > { %30628 = sst [smem:[#allocation7_spill]] %s24305_s30  ;;  %s24468_s23 = sadd.s32 1, %s24305_s30  }
   0xe   : > { %30629 = sst [smem:[#allocation8_spill]] %s24468_s23  ;;  %s519_s1 = sadd.s32 1, %s24301_s29 }
   0xf   : > { %s516_s5 = ssub.s32 %s24305_s30, %s24468_s23  ;;  %p529_p0 = scmp.ne.s32.totalorder %s24301_s29, %s24297_s28 }
  0x10   : > { %p517_p1 = scmp.eq.s32.totalorder %s516_s5, 0  ;;  %p530_p2 = scmp.eq.s32.totalorder %s24464_s4, 1 }
  0x11   : > { %p535_p3 = scmp.ne.s32.totalorder %s24297_s28, %s24293_s3  ;;  %p536_p4 = scmp.eq.s32.totalorder %s20754_s0, 1 }
  0x12   : > { %s24479_s24 = scalar_select %p517_p1, %s24301_s29, %s519_s1  }
  0x13   : > { %p24481_p5 = por %p530_p2, %p529_p0  ;;  %p24485_p6 = por %p536_p4, %p535_p3 }
  0x14   : > { %30630 = sst [smem:[#allocation9_spill]] %s24479_s24  ;;  %p20757_p7 = scmp.ge.s32.totalorder %s24305_s30, 1 }
  0x15   : > { %s30632_s25 = scalar_select %p24485_p6, 1, 0 }
  0x16   : > { %p638_p8 = scmp.lt.s32.totalorder %s24305_s30, 3 }
  0x17   : > { %30633 = sst [smem:[#allocation10_spill]] %s30632_s25 }
  0x18   : > { %p639_p9 = pnand %p20757_p7, %p638_p8 }
  0x1a   : > { %642 = sbr.rel (%p639_p9) target bundleno = 10295 (0x2837), region = 108 }
  0x21   : > { %s20758_s26 = sshll.u32 %s24464_s4, 3  ;;  %vm825_vm0 = vcmask 1042432   ;;  %s30634_s1 = sld [smem:[#allocation70_spill]]  ;;  %vm1117_vm1 = vcmask 1041409   ;;  %vm1119_vm2 = vcmask 1042434   ;;  %vm1121_vm3 = vcmask 1043459  }
  0x22   : > { %p711_p10 = scmp.lt.s32.totalorder %s20758_s26, 15  ;;  %s30635_s0 = sld [smem:[#allocation74_spill]]  ;;  %vm1123_vm4 = vcmask 1044484   ;;  %vm1125_vm5 = vcmask 1045509   ;;  %vm1127_vm6 = vcmask 1046534   ;;  %vm1129_vm7 = vcmask 1047559  }
  0x23   : > { %vm1149_vm8 = vcmask 23552   ;;  %s30638_s29 = sld [smem:[#allocation72_spill]]  ;;  %s30498_s23 = smov 8   ;;  %vm2189_vm9 = vcmask 64512   ;;  %vm2198_vm10 = vcmask 130048   ;;  %vm2207_vm11 = vcmask 195584  }
  0x24   : > { %s30927_s26 = smov (!%p711_p10, %s20758_s26), 15  ;;  %s30496_s25 = smov 16   ;;  %vm2060_vm12 = vcmask 1040384   ;;  %vm2295_vm13 = vcmask 261120   ;;  %vm24312_vm14 = vmmov 0   ;;  %vm3108_vm15 = vcmask 1043456  }
  0x25   : > { %s23294_s2 = smul.u32 24, %s30927_s26  ;;  %s30476_s3 = smov 24  }
  0x26   : > { %s30490_s24 = smov 56   ;;  %s30478_s27 = smov 48  }
  0x27   : > { %s24498_s5 = scalar_lea.vmem %s30634_s1, %s23294_s2  ;;  %s30636_s2 = sld [smem:[#allocation76_spill]] }
  0x28   : > { %v731_v0 = vld [vmem:[%s24498_s5 + $0x10] sm:$0x77]  ;;  %v729_v1 = vld [vmem:[%s24498_s5] sm:$0x77]  ;;  %v732_v2 = vld [vmem:[%s24498_s5 + $0x18] sm:$0x77] }
  0x29   : > { %v779_v3 = vcombine.high %v731_v0, %v731_v0  ;;  %v836_v4 = vsel %vm825_vm0, %v731_v0, 0.0  ;;  %v777_v5 = vcombine.high %v729_v1, %v729_v1  ;;  %v826_v6 = vsel %vm825_vm0, %v729_v1, 0.0  ;;  %v730_v7 = vld [vmem:[%s24498_s5 + $0x8] sm:$0x77]  ;;  %v733_v12 = vld [vmem:[%s24498_s5 + $0x20] sm:$0x77] }
  0x2a   : > { %v734_v8 = vld [vmem:[%s24498_s5 + $0x28] sm:$0x77]  ;;  %v780_v9 = vcombine.high %v732_v2, %v732_v2  ;;  %v841_v10 = vsel %vm825_vm0, %v732_v2, 0.0  ;;  %v778_v11 = vcombine.high %v730_v7, %v730_v7  ;;  %v831_v15 = vsel %vm825_vm0, %v730_v7, 0.0  ;;  %v737_v22 = vld [vmem:[%s24498_s5 + $0x40] sm:$0x77] }
  0x2b   : > { %v837_v13 = vsel %vm825_vm0, %v779_v3, 0.0  ;;  %v827_v14 = vsel %vm825_vm0, %v777_v5, 0.0  ;;  %v782_v16 = vcombine.high %v734_v8, %v734_v8  ;;  %v738_v17 = vld [vmem:[%s24498_s5 + $0x48] sm:$0x77]  ;;  %v851_v23 = vsel %vm825_vm0, %v734_v8, 0.0  ;;  %s20762_s1 = sshll.u32 %s30927_s26, 2 }
  0x2c   : > { %v838_v18 = vadd.f32 %v837_v13, %v836_v4  ;;  %v828_v19 = vadd.f32 %v827_v14, %v826_v6  ;;  %v842_v20 = vsel %vm825_vm0, %v780_v9, 0.0  ;;  %v832_v21 = vsel %vm825_vm0, %v778_v11, 0.0  ;;  %v739_v32 = vld [vmem:[%s24498_s5 + $0x50] sm:$0x77]  ;;  %v740_v39 = vld [vmem:[%s24498_s5 + $0x58] sm:$0x77] }
  0x2d   : > { %v781_v24 = vcombine.high %v733_v12, %v733_v12  ;;  %v843_v25 = vadd.f32 %v842_v20, %v841_v10  ;;  %v833_v26 = vadd.f32 %v832_v21, %v831_v15  ;;  %v852_v27 = vsel %vm825_vm0, %v782_v16, 0.0  ;;  %v735_v33 = vld [vmem:[%s24498_s5 + $0x30] sm:$0x77]  ;;  %v736_v43 = vld [vmem:[%s24498_s5 + $0x38] sm:$0x77] }
  0x2e   : > { %839 = vadd.xlane.f32.xlu1 %v838_v18  ;;  %829 = vadd.xlane.f32.xlu0 %v828_v19  ;;  %v786_v28 = vcombine.high %v738_v17, %v738_v17  ;;  %v846_v29 = vsel %vm825_vm0, %v733_v12, 0.0  ;;  %v785_v31 = vcombine.high %v737_v22, %v737_v22  ;;  %v853_v34 = vadd.f32 %v852_v27, %v851_v23  ;;  %v742_v44 = vld [vmem:[%s24498_s5 + $0x68] sm:$0x77]  ;;  %v741_v45 = vld [vmem:[%s24498_s5 + $0x60] sm:$0x77] }
  0x2f   : > { %v847_v30 = vsel %vm825_vm0, %v781_v24, 0.0  ;;  %v871_v36 = vsel %vm825_vm0, %v738_v17, 0.0  ;;  %v787_v38 = vcombine.high %v739_v32, %v739_v32  ;;  %v866_v40 = vsel %vm825_vm0, %v737_v22, 0.0  ;;  %v744_v46 = vld [vmem:[%s24498_s5 + $0x78] sm:$0x77] }
  0x30   : > { %v848_v35 = vadd.f32 %v847_v30, %v846_v29  ;;  %v872_v37 = vsel %vm825_vm0, %v786_v28, 0.0  ;;  %v867_v41 = vsel %vm825_vm0, %v785_v31, 0.0  ;;  %v783_v42 = vcombine.high %v735_v33, %v735_v33  ;;  %v743_v50 = vld [vmem:[%s24498_s5 + $0x70] sm:$0x77]  ;;  %v746_v55 = vld [vmem:[%s24498_s5 + $0x88] sm:$0x77] }
  0x31   : > { %v873_v47 = vadd.f32 %v872_v37, %v871_v36  ;;  %v876_v48 = vsel %vm825_vm0, %v739_v32, 0.0  ;;  %v788_v49 = vcombine.high %v740_v39, %v740_v39  ;;  %v868_v51 = vadd.f32 %v867_v41, %v866_v40  ;;  %v745_v59 = vld [vmem:[%s24498_s5 + $0x80] sm:$0x77]  ;;  %v747_v60 = vld [vmem:[%s24498_s5 + $0x90] sm:$0x77] }
  0x32   : > { %844 = vadd.xlane.f32.xlu1 %v843_v25  ;;  %834 = vadd.xlane.f32.xlu0 %v833_v26  ;;  %v877_v52 = vsel %vm825_vm0, %v787_v38, 0.0  ;;  %v856_v53 = vsel %vm825_vm0, %v735_v33, 0.0  ;;  %v784_v54 = vcombine.high %v736_v43, %v736_v43  ;;  %v857_v56 = vsel %vm825_vm0, %v783_v42, 0.0  ;;  %v748_v3 = vld [vmem:[%s24498_s5 + $0x98] sm:$0x77] }
  0x33   : > { %v790_v57 = vcombine.high %v742_v44, %v742_v44  ;;  %v789_v58 = vcombine.high %v741_v45, %v741_v45  ;;  %v881_v61 = vsel %vm825_vm0, %v740_v39, 0.0  ;;  %v861_v62 = vsel %vm825_vm0, %v736_v43, 0.0  ;;  %v749_v18 = vld [vmem:[%s24498_s5 + $0xa0] sm:$0x77]  ;;  %v750_v25 = vld [vmem:[%s24498_s5 + $0xa8] sm:$0x77] }
  0x34   : > { %v792_v63 = vcombine.high %v744_v46, %v744_v46  ;;  %v878_v0 = vadd.f32 %v877_v52, %v876_v48  ;;  %v882_v1 = vsel %vm825_vm0, %v788_v49, 0.0  ;;  %v891_v2 = vsel %vm825_vm0, %v742_v44, 0.0  ;;  %v752_v44 = vld [vmem:[%s24498_s5 + $0xb8] sm:$0x77]  ;;  %v972_v52 = vld [vmem:[%s30635_s0 + $0x8] sm:$0x77] }
  0x35   : > { %v858_v4 = vadd.f32 %v857_v56, %v856_v53  ;;  %v862_v5 = vsel %vm825_vm0, %v784_v54, 0.0  ;;  %v886_v6 = vsel %vm825_vm0, %v741_v45, 0.0  ;;  %v791_v7 = vcombine.high %v743_v50, %v743_v50 }
  0x36   : > { %854 = vadd.xlane.f32.xlu1 %v853_v34  ;;  %849 = vadd.xlane.f32.xlu0 %v848_v35  ;;  %v892_v8 = vsel %vm825_vm0, %v790_v57, 0.0  ;;  %v887_v9 = vsel %vm825_vm0, %v789_v58, 0.0  ;;  %v901_v10 = vsel %vm825_vm0, %v744_v46, 0.0  ;;  %v794_v11 = vcombine.high %v746_v55, %v746_v55  ;;  %v751_v35 = vld [vmem:[%s24498_s5 + $0xb0] sm:$0x77]  ;;  %s30640_s5 = sld [smem:[#allocation75_spill]] }
  0x37   : > { %v902_v12 = vsel %vm825_vm0, %v792_v63, 0.0  ;;  %v793_v13 = vcombine.high %v745_v59, %v745_v59  ;;  %v795_v14 = vcombine.high %v747_v60, %v747_v60  ;;  %v883_v15 = vadd.f32 %v882_v1, %v881_v61  ;;  %v23381_v61 = vld [vmem:[%s30636_s2 + $0x40] sm:$0xff]  }
  0x38   : > { %v896_v16 = vsel %vm825_vm0, %v743_v50, 0.0  ;;  %v911_v17 = vsel %vm825_vm0, %v746_v55, 0.0  ;;  %v863_v19 = vadd.f32 %v862_v5, %v861_v62  ;;  %v897_v20 = vsel %vm825_vm0, %v791_v7, 0.0  ;;  %v23382_v62 = vld [vmem:[%s30636_s2 + $0xc0] sm:$0xff]  }
  0x39   : > { %v906_v21 = vsel %vm825_vm0, %v745_v59, 0.0  ;;  %v796_v22 = vcombine.high %v748_v3, %v748_v3  ;;  %v912_v23 = vsel %vm825_vm0, %v794_v11, 0.0  ;;  %v916_v24 = vsel %vm825_vm0, %v747_v60, 0.0 }
  0x3a   : > { %874 = vadd.xlane.f32.xlu1 %v873_v47  ;;  %869 = vadd.xlane.f32.xlu0 %v868_v51  ;;  %v907_v26 = vsel %vm825_vm0, %v793_v13, 0.0  ;;  %v917_v27 = vsel %vm825_vm0, %v795_v14, 0.0  ;;  %v893_v28 = vadd.f32 %v892_v8, %v891_v2  ;;  %v888_v29 = vadd.f32 %v887_v9, %v886_v6  ;;  %v971_v51 = vld [vmem:[%s30635_s0] sm:$0x77]  ;;  %s24748_s0 = scalar_lea.vmem %s30638_s29, %s30927_s26  ;;  %s30502_s26 = smov 96  }
  0x3b   : > { %v921_v30 = vsel %vm825_vm0, %v748_v3, 0.0  ;;  %v922_v31 = vsel %vm825_vm0, %v796_v22, 0.0  ;;  %v797_v32 = vcombine.high %v749_v18, %v749_v18  ;;  %v798_v33 = vcombine.high %v750_v25, %v750_v25  ;;  %s30500_s29 = smov 64  }
  0x3c   : > { %v926_v34 = vsel %vm825_vm0, %v749_v18, 0.0  ;;  %v903_v36 = vadd.f32 %v902_v12, %v901_v10  ;;  %v898_v37 = vadd.f32 %v897_v20, %v896_v16  ;;  %v931_v39 = vsel %vm825_vm0, %v750_v25, 0.0 }
  0x3d   : > { %v927_v38 = vsel %vm825_vm0, %v797_v32, 0.0  ;;  %v932_v40 = vsel %vm825_vm0, %v798_v33, 0.0  ;;  %v936_v41 = vsel %vm825_vm0, %v751_v35, 0.0  ;;  %v913_v42 = vadd.f32 %v912_v23, %v911_v17 }
  0x3e   : > { %879 = vadd.xlane.f32.xlu1 %v878_v0  ;;  %859 = vadd.xlane.f32.xlu0 %v858_v4  ;;  %v908_v43 = vadd.f32 %v907_v26, %v906_v21  ;;  %v799_v45 = vcombine.high %v751_v35, %v751_v35  ;;  %v918_v46 = vadd.f32 %v917_v27, %v916_v24  ;;  %v941_v50 = vsel %vm825_vm0, %v752_v44, 0.0 }
  0x3f   : > { %v923_v47 = vadd.f32 %v922_v31, %v921_v30  ;;  %v800_v49 = vcombine.high %v752_v44, %v752_v44  ;;  %v1147_v53 = vcombine.high %v971_v51, %v971_v51  ;;  %v1148_v54 = vcombine.high %v972_v52, %v972_v52 }
  0x40   : > { %v937_v48 = vsel %vm825_vm0, %v799_v45, 0.0  ;;  %v928_v55 = vadd.f32 %v927_v38, %v926_v34  ;;  %v933_v56 = vadd.f32 %v932_v40, %v931_v39  ;;  %v30506_v58 = vmov 0.0   ;;  %v23383_v40 = vld [vmem:[%s30636_s2] sm:$0xff]   ;;  %v23385_v45 = vld [vmem:[%s30636_s2 + $0x48] sm:$0xff]  }
  0x41   : > { %v942_v57 = vsel %vm825_vm0, %v800_v49, 0.0  ;;  %20763 = vmatprep.subr.msk.mxu0 %vm825_vm0, %v1147_v53  ;;  %20768 = vmatprep.subr.msk.mxu1 %vm825_vm0, %v1148_v54  ;;  %v938_v59 = vadd.f32 %v937_v48, %v936_v41  ;;  %v975_v63 = vlaneseq  ;;  %v23384_v41 = vld [vmem:[%s30636_s2 + $0x80] sm:$0xff]  }
  0x42   : > { %884 = vadd.xlane.f32.xlu1 %v883_v15  ;;  %864 = vadd.xlane.f32.xlu0 %v863_v19  ;;  %v943_v60 = vadd.f32 %v942_v57, %v941_v50 }
  0x43   : > { %20764 = vmatpush1.msk.msra.mxu0 %vm825_vm0, %v971_v51  ;;  %1228 = vmatprep.mubr.f32.mxu0 %v30506_v58  ;;  %v24590_v0 = vshrl.u32 %v975_v63, 7  ;;  %v1020_v1 = vand.u32 127, %v975_v63 }
  0x44   : > { %20769 = vmatpush1.msk.msra.mxu1 %vm825_vm0, %v972_v52  ;;  %1311 = vmatprep.mubr.f32.mxu1 %v30506_v58  ;;  %vm3013_vm0 = vcmask 27648  }
  0x45   : > { %21773 = vmatprep.subr.bf16.mxu0 %v23381_v61  ;;  %21801 = vmatprep.subr.bf16.mxu1 %v23382_v62  ;;  %v24593_v8 = vsub.s32 %v1020_v1, %v24590_v0  ;;  %v23390_v61 = vld [vmem:[%s30636_s2 + $0xd0] sm:$0xff]  }
  0x46   : > { %894 = vadd.xlane.f32.xlu1 %v893_v28  ;;  %889 = vadd.xlane.f32.xlu0 %v888_v29 }
  0x4a   : > { %904 = vadd.xlane.f32.xlu1 %v903_v36  ;;  %899 = vadd.xlane.f32.xlu0 %v898_v37 }
  0x4e   : > { %914 = vadd.xlane.f32.xlu1 %v913_v42  ;;  %909 = vadd.xlane.f32.xlu0 %v908_v43 }
  0x52   : > { %919 = vadd.xlane.f32.xlu0 %v918_v46  ;;  %924 = vadd.xlane.f32.xlu1 %v923_v47  ;;  %v23386_v46 = vld [vmem:[%s30636_s2 + $0xc8] sm:$0xff]  }
  0x56   : > { %929 = vadd.xlane.f32.xlu0 %v928_v55  ;;  %934 = vadd.xlane.f32.xlu1 %v933_v56  ;;  %v23387_v55 = vld [vmem:[%s30636_s2 + $0x8] sm:$0xff]  }
  0x57   : > { %v23388_v56 = vld [vmem:[%s30636_s2 + $0x88] sm:$0xff]  }
  0x5a   : > { %939 = vadd.xlane.f32.xlu0 %v938_v59  ;;  %944 = vadd.xlane.f32.xlu1 %v943_v60  ;;  %v23389_v60 = vld [vmem:[%s30636_s2 + $0x50] sm:$0xff]  }
  0xbb   : > { %v840_v2 = vpop.xlane.xlu1 %839  ;;  %v830_v3 = vpop.xlane.xlu0 %829 }
  0xbc   : > { %v949_v4 = vmul.f32 0.00390625, %v840_v2  ;;  %v947_v5 = vmul.f32 0.00390625, %v830_v3 }
  0xbe   : > { %v1024_v14 = vrot.slane %v947_v5, %v24593_v8  ;;  %v1032_v18 = vrot.slane %v949_v4, %v24593_v8 }
  0xbf   : > { %v845_v6 = vpop.xlane.xlu1 %844  ;;  %v835_v7 = vpop.xlane.xlu0 %834 }
  0xc0   : > { %v950_v9 = vmul.f32 0.00390625, %v845_v6  ;;  %v948_v10 = vmul.f32 0.00390625, %v835_v7 }
  0xc2   : > { %v1028_v11 = vrot.slane %v948_v10, %v24593_v8  ;;  %v1036_v21 = vrot.slane %v950_v9, %v24593_v8  ;;  %v23391_v9 = vld [vmem:[%s30636_s2 + $0x10] sm:$0xff]  }
  0xc3   : > { %v855_v12 = vpop.xlane.xlu1 %854  ;;  %v850_v13 = vpop.xlane.xlu0 %849  ;;  %v23392_v10 = vld [vmem:[%s30636_s2 + $0x90] sm:$0xff]  }
  0xc4   : > { %v952_v15 = vmul.f32 0.00390625, %v855_v12  ;;  %v951_v16 = vmul.f32 0.00390625, %v850_v13  ;;  %v1118_v17 = vsel %vm1117_vm1, %v1028_v11, %v1024_v14  ;;  %v23393_v14 = vld [vmem:[%s30636_s2 + $0x58] sm:$0xff]  }
  0xc5   : > { %v1120_v24 = vsel %vm1119_vm2, %v1032_v18, %v1118_v17 }
  0xc6   : > { %v1040_v25 = vrot.slane %v951_v16, %v24593_v8  ;;  %v1122_v28 = vsel %vm1121_vm3, %v1036_v21, %v1120_v24  ;;  %v1044_v31 = vrot.slane %v952_v15, %v24593_v8  ;;  %v23394_v15 = vld [vmem:[%s30636_s2 + $0xd8] sm:$0xff]  }
  0xc7   : > { %v875_v19 = vpop.xlane.xlu1 %874  ;;  %v870_v20 = vpop.xlane.xlu0 %869  ;;  %v23396_v21 = vld [vmem:[%s30636_s2 + $0x98] sm:$0xff]  }
  0xc8   : > { %v956_v22 = vmul.f32 0.00390625, %v875_v19  ;;  %v955_v23 = vmul.f32 0.00390625, %v870_v20  ;;  %v1124_v32 = vsel %vm1123_vm4, %v1040_v25, %v1122_v28  ;;  %v23395_v20 = vld [vmem:[%s30636_s2 + $0x18] sm:$0xff]  }
  0xc9   : > { %v1126_v44 = vsel %vm1125_vm5, %v1044_v31, %v1124_v32 }
  0xca   : > { %v1060_v38 = vrot.slane %v956_v22, %v24593_v8  ;;  %v1056_v39 = vrot.slane %v955_v23, %v24593_v8 }
  0xcb   : > { %v880_v26 = vpop.xlane.xlu1 %879  ;;  %v860_v27 = vpop.xlane.xlu0 %859 }
  0xcc   : > { %v957_v29 = vmul.f32 0.00390625, %v880_v26  ;;  %v953_v30 = vmul.f32 0.00390625, %v860_v27  ;;  %v1131_v54 = vsel %vm1117_vm1, %v1060_v38, %v1056_v39 }
  0xce   : > { %v1048_v33 = vrot.slane %v953_v30, %v24593_v8  ;;  %v1064_v42 = vrot.slane %v957_v29, %v24593_v8 }
  0xcf   : > { %v885_v34 = vpop.xlane.xlu1 %884  ;;  %v865_v35 = vpop.xlane.xlu0 %864 }
  0xd0   : > { %v958_v36 = vmul.f32 0.00390625, %v885_v34  ;;  %v954_v37 = vmul.f32 0.00390625, %v865_v35  ;;  %v1128_v50 = vsel %vm1127_vm6, %v1048_v33, %v1126_v44  ;;  %v1132_v57 = vsel %vm1119_vm2, %v1064_v42, %v1131_v54  ;;  %v23403_v54 = vld [vmem:[%s30636_s2 + $0x28] sm:$0xff]  }
  0xd2   : > { %v1052_v43 = vrot.slane %v954_v37, %v24593_v8  ;;  %v1068_v47 = vrot.slane %v958_v36, %v24593_v8 }
  0xd3   : > { %v895_v48 = vpop.xlane.xlu1 %894  ;;  %v890_v49 = vpop.xlane.xlu0 %889 }
  0xd4   : > { %v960_v51 = vmul.f32 0.00390625, %v895_v48  ;;  %v959_v52 = vmul.f32 0.00390625, %v890_v49  ;;  %v1130_v53 = vsel %vm1129_vm7, %v1052_v43, %v1128_v50  ;;  %v1133_v62 = vsel %vm1121_vm3, %v1068_v47, %v1132_v57  ;;  %v23397_v49 = vld [vmem:[%s30636_s2 + $0x60] sm:$0xff]   ;;  %v23406_v57 = vld [vmem:[%s30636_s2 + $0xf0] sm:$0xff]  }
  0xd5   : > { %20765 = vmatmul.mubr.msk.f32.vlgmr.msra.gmra.mrb[0].mxu0 %vm1149_vm8, %v1130_v53  ;;  %20770 = vmatmul.mubr.msk.f32.vlgmr.msra.gmra.mrb[0].mxu1 %vm1149_vm8, %v1130_v53  ;;  %v23398_v50 = vld [vmem:[%s30636_s2 + $0xe0] sm:$0xff]   ;;  %v23402_v53 = vld [vmem:[%s30636_s2 + $0xe8] sm:$0xff]  }
  0xd6   : > { %v1072_v59 = vrot.slane %v959_v52, %v24593_v8  ;;  %1234 = vmatprep.mubr.f32.mxu0 %v30506_v58  ;;  %1317 = vmatprep.mubr.f32.mxu1 %v30506_v58  ;;  %v1076_v63 = vrot.slane %v960_v51, %v24593_v8  ;;  %v23400_v51 = vld [vmem:[%s30636_s2 + $0xa0] sm:$0xff]   ;;  %v23401_v52 = vld [vmem:[%s30636_s2 + $0x68] sm:$0xff]  }
  0xd7   : > { %v905_v1 = vpop.xlane.xlu1 %904  ;;  %v900_v2 = vpop.xlane.xlu0 %899  ;;  %21774 = vmatpush3.bf16.msra.mxu0 %v23383_v40  ;;  %21802 = vmatpush3.bf16.msra.mxu1 %v23384_v41 }
  0xd8   : > { %v1134_v3 = vsel %vm1123_vm4, %v1072_v59, %v1133_v62  ;;  %v962_v4 = vmul.f32 0.00390625, %v905_v1  ;;  %v961_v5 = vmul.f32 0.00390625, %v900_v2  ;;  %21775 = vmatprep.subr.bf16.mxu0 %v23385_v45  ;;  %21803 = vmatprep.subr.bf16.mxu1 %v23386_v46  ;;  %v23407_v59 = vld [vmem:[%s30636_s2 + $0x30] sm:$0xff]   ;;  %v23410_v62 = vld [vmem:[%s30636_s2 + $0xf8] sm:$0xff]   ;;  %v24742_v2 = vsub.s32 0, %v24590_v0 }
  0xd9   : > { %v1135_v13 = vsel %vm1125_vm5, %v1076_v63, %v1134_v3  ;;  %v23411_v63 = vld [vmem:[%s30636_s2 + $0x38] sm:$0xff]   ;;  %v24751_v3 = vld [vmem:[%s24748_s0 + $0x1] sm:$0x1] }
  0xda   : > { %v1084_v6 = vrot.slane %v962_v4, %v24593_v8  ;;  %v1080_v7 = vrot.slane %v961_v5, %v24593_v8  ;;  %v23412_v1 = vld [vmem:[%s30636_s2 + $0xb8] sm:$0xff]   ;;  %30637 = vst [vmem:[#allocation11_spill] sm:$0xff] %v24742_v2  ;;  %v24754_v4 = vld [vmem:[%s24748_s0 + $0x2] sm:$0x1]  ;;  %v2092_v5 = vrot.slane %v24751_v3, %v24742_v2 }
  0xdb   : > { %v915_v11 = vpop.xlane.xlu1 %914  ;;  %v910_v12 = vpop.xlane.xlu0 %909  ;;  %21776 = vmatpush3.bf16.msra.mxu0 %v23387_v55  ;;  %21804 = vmatpush3.bf16.msra.mxu1 %v23388_v56  ;;  %v23404_v55 = vld [vmem:[%s30636_s2 + $0xa8] sm:$0xff]   ;;  %v23405_v56 = vld [vmem:[%s30636_s2 + $0x70] sm:$0xff]  }
  0xdc   : > { %v964_v16 = vmul.f32 0.00390625, %v915_v11  ;;  %v963_v17 = vmul.f32 0.00390625, %v910_v12  ;;  %v1136_v18 = vsel %vm1127_vm6, %v1080_v7, %v1135_v13  ;;  %21777 = vmatprep.subr.bf16.mxu0 %v23389_v60  ;;  %21805 = vmatprep.subr.bf16.mxu1 %v23390_v61  ;;  %v23408_v60 = vld [vmem:[%s30636_s2 + $0xb0] sm:$0xff]   ;;  %v23409_v61 = vld [vmem:[%s30636_s2 + $0x78] sm:$0xff]   ;;  %v24779_v12 = vld [vmem:[%s24748_s0 + $0x4] sm:$0x1] }
  0xdd   : > { %v1137_v19 = vsel %vm1129_vm7, %v1084_v6, %v1136_v18  ;;  %v24759_v6 = vld [vmem:[%s24748_s0] sm:$0x1]  ;;  %2119 = vrot.lane.b32.xlu1 %v2092_v5, %s30498_s23  ;;  %v2104_v13 = vrot.slane %v24779_v12, %v24742_v2  ;;  %v24799_v18 = vld [vmem:[%s24748_s0 + $0x7] sm:$0x1] }
  0xde   : > { %20766 = vmatmul.mubr.msk.f32.gmra.mrb[2].mxu0 %vm1149_vm8, %v1137_v19  ;;  %20771 = vmatmul.mubr.msk.f32.gmra.mrb[2].mxu1 %vm1149_vm8, %v1137_v19  ;;  %v1092_v22 = vrot.slane %v964_v16, %v24593_v8  ;;  %v1088_v23 = vrot.slane %v963_v17, %v24593_v8  ;;  %v2088_v7 = vrot.slane %v24759_v6, %v24742_v2 }
  0xdf   : > { %v920_v24 = vpop.xlane.xlu0 %919  ;;  %v925_v25 = vpop.xlane.xlu1 %924  ;;  %1240 = vmatprep.mubr.f32.mxu0 %v30506_v58  ;;  %1323 = vmatprep.mubr.f32.mxu1 %v30506_v58  ;;  %v2116_v19 = vrot.slane %v24799_v18, %v24742_v2 }
  0xe0   : > { %v965_v26 = vmul.f32 0.00390625, %v920_v24  ;;  %v966_v27 = vmul.f32 0.00390625, %v925_v25  ;;  %21778 = vmatpush3.bf16.msra.mxu0 %v23391_v9  ;;  %21806 = vmatpush3.bf16.msra.mxu1 %v23392_v10  ;;  %v1138_v29 = vsel %vm1117_vm1, %v1092_v22, %v1088_v23  ;;  %v2096_v9 = vrot.slane %v24754_v4, %v24742_v2  ;;  %v24767_v10 = vld [vmem:[%s24748_s0 + $0x3] sm:$0x1] }
  0xe1   : > { %21779 = vmatprep.subr.bf16.mxu0 %v23393_v14  ;;  %21807 = vmatprep.subr.bf16.mxu1 %v23394_v15  ;;  %v2100_v11 = vrot.slane %v24767_v10, %v24742_v2  ;;  %v24786_v14 = vld [vmem:[%s24748_s0 + $0x6] sm:$0x1]  ;;  %v24790_v15 = vld [vmem:[%s24748_s0 + $0x5] sm:$0x1]  ;;  %v973_v23 = vld [vmem:[%s30640_s5] sm:$0xf] }
  0xe2   : > { %v1096_v28 = vrot.slane %v965_v26, %v24593_v8  ;;  %v1100_v30 = vrot.slane %v966_v27, %v24593_v8  ;;  %2117 = vrot.lane.b32.xlu0 %v2088_v7, %s30498_s23  ;;  %2121 = vrot.lane.b32.xlu1 %v2096_v9, %s30498_s23  ;;  %v2112_v16 = vrot.slane %v24786_v14, %v24742_v2  ;;  %v24821_v24 = vsub.s32 1, %v24590_v0  ;;  %s30643_s0 = sld [smem:[#allocation73_spill]]  ;;  %s30488_s5 = smov 80  }
  0xe3   : > { %v930_v31 = vpop.xlane.xlu0 %929  ;;  %v935_v32 = vpop.xlane.xlu1 %934  ;;  %v2108_v17 = vrot.slane %v24790_v15, %v24742_v2  ;;  %v24824_v26 = vsub.s32 3, %v24590_v0 }
  0xe4   : > { %v1139_v33 = vsel %vm1119_vm2, %v1096_v28, %v1138_v29  ;;  %v967_v34 = vmul.f32 0.00390625, %v930_v31  ;;  %v968_v35 = vmul.f32 0.00390625, %v935_v32  ;;  %21780 = vmatpush3.bf16.msra.mxu0 %v23395_v20  ;;  %21808 = vmatpush3.bf16.msra.mxu1 %v23396_v21  ;;  %v24815_v21 = vsub.s32 2, %v24590_v0  ;;  %30641 = vst [vmem:[#allocation13_spill] sm:$0xff] %v24821_v24 }
  0xe5   : > { %v1140_v37 = vsel %vm1121_vm3, %v1100_v30, %v1139_v33  ;;  %21781 = vmatprep.subr.bf16.mxu0 %v23397_v49  ;;  %21809 = vmatprep.subr.bf16.mxu1 %v23398_v50  ;;  %30642 = vst [vmem:[#allocation14_spill] sm:$0xff] %v24824_v26  ;;  %v978_v28 = vrot.slane %v973_v23, %v24742_v2 }
  0xe6   : > { %v1104_v36 = vrot.slane %v967_v34, %v24593_v8  ;;  %v1108_v38 = vrot.slane %v968_v35, %v24593_v8  ;;  %2141 = vrot.lane.b32.xlu0 %v2088_v7, %s30496_s25  ;;  %2123 = vrot.lane.b32.xlu1 %v2100_v11, %s30498_s23  ;;  %30639 = vst [vmem:[#allocation12_spill] sm:$0xff] %v24815_v21 }
  0xe7   : > { %v940_v39 = vpop.xlane.xlu0 %939  ;;  %v945_v40 = vpop.xlane.xlu1 %944  ;;  %v986_v29 = vrot.slane %v973_v23, %v24815_v21  ;;  %v982_v30 = vrot.slane %v973_v23, %v24821_v24  ;;  %v990_v31 = vrot.slane %v973_v23, %v24824_v26  ;;  %v2274_v23 = vld [vmem:[%s30452_s8 + $0x10] sm:$0xff] }
  0xe8   : > { %v1141_v41 = vsel %vm1123_vm4, %v1104_v36, %v1140_v37  ;;  %v969_v42 = vmul.f32 0.00390625, %v940_v39  ;;  %v970_v43 = vmul.f32 0.00390625, %v945_v40  ;;  %21810 = vmatpush3.bf16.msra.mxu1 %v23400_v51  ;;  %s24923_s30 = scalar_lea.vmem %s30643_s0, %s20762_s1  ;;  %s30494_s0 = smov 88  }
  0xe9   : > { %v1142_v46 = vsel %vm1125_vm5, %v1108_v38, %v1141_v41  ;;  %21811 = vmatprep.subr.bf16.mxu1 %v23402_v53  ;;  %s30484_s1 = smov 72  }
  0xea   : > { %v1112_v44 = vrot.slane %v969_v42, %v24593_v8  ;;  %v1116_v45 = vrot.slane %v970_v43, %v24593_v8  ;;  %v23399_v8 = vld [vmem:[%s30636_s2 + $0x20] sm:$0xff]   ;;  %2145 = vrot.lane.b32.xlu0 %v2096_v9, %s30496_s25  ;;  %2143 = vrot.lane.b32.xlu1 %v2092_v5, %s30496_s25 }
  0xeb   : > { %21782 = vmatpush3.bf16.msra.mxu0 %v23399_v8 }
  0xec   : > { %v1143_v47 = vsel %vm1127_vm6, %v1112_v44, %v1142_v46  ;;  %21783 = vmatprep.subr.bf16.mxu0 %v23401_v52  ;;  %21812 = vmatpush3.bf16.msra.mxu1 %v23404_v55 }
  0xed   : > { %v1144_v48 = vsel %vm1129_vm7, %v1116_v45, %v1143_v47  ;;  %21813 = vmatprep.subr.bf16.mxu1 %v23406_v57 }
  0xee   : > { %20767 = vmatmul.mubr.msk.f32.gmra.mrb[4].mxu0 %vm1149_vm8, %v1144_v48  ;;  %20772 = vmatmul.mubr.msk.f32.gmra.mrb[4].mxu1 %vm1149_vm8, %v1144_v48  ;;  %vm3104_vm8 = vcmask 31744  }
  0xef   : > { %21784 = vmatpush3.bf16.msra.mxu0 %v23403_v54  ;;  %2165 = vrot.lane.b32.xlu0 %v2088_v7, %s30476_s3 }
  0xf0   : > { %21785 = vmatprep.subr.bf16.mxu0 %v23405_v56  ;;  %21814 = vmatpush3.bf16.msra.mxu1 %v23408_v60 }
  0xf1   : > { %21815 = vmatprep.subr.bf16.mxu1 %v23410_v62  ;;  %2147 = vrot.lane.b32.xlu1 %v2100_v11, %s30496_s25 }
  0xf3   : > { %21786 = vmatpush3.bf16.msra.mxu0 %v23407_v59  ;;  %2169 = vrot.lane.b32.xlu0 %v2096_v9, %s30476_s3 }
  0xf4   : > { %21787 = vmatprep.subr.bf16.mxu0 %v23409_v61  ;;  %21816 = vmatpush3.bf16.msra.mxu1 %v23412_v1 }
  0xf5   : > { %22579 = vmatprep.subr.mxu1 %v30506_v58  ;;  %2167 = vrot.lane.b32.xlu1 %v2092_v5, %s30476_s3 }
  0xf7   : > { %21788 = vmatpush3.bf16.msra.mxu0 %v23411_v63  ;;  %2125 = vrot.lane.b32.xlu0 %v2104_v13, %s30498_s23 }
  0xf9   : > { %2171 = vrot.lane.b32.xlu1 %v2100_v11, %s30476_s3 }
  0xfb   : > { %2129 = vrot.lane.b32.xlu0 %v2112_v16, %s30498_s23 }
  0xfd   : > { %2127 = vrot.lane.b32.xlu1 %v2108_v17, %s30498_s23 }
  0xff   : > { %2149 = vrot.lane.b32.xlu0 %v2104_v13, %s30496_s25 }
 0x101   : > { %2131 = vrot.lane.b32.xlu1 %v2116_v19, %s30498_s23 }
 0x103   : > { %2153 = vrot.lane.b32.xlu0 %v2112_v16, %s30496_s25 }
 0x105   : > { %2151 = vrot.lane.b32.xlu1 %v2108_v17, %s30496_s25 }
 0x107   : > { %2173 = vrot.lane.b32.xlu0 %v2104_v13, %s30476_s3 }
 0x109   : > { %2155 = vrot.lane.b32.xlu1 %v2116_v19, %s30496_s25 }
 0x10b   : > { %2177 = vrot.lane.b32.xlu0 %v2112_v16, %s30476_s3 }
 0x10d   : > { %2175 = vrot.lane.b32.xlu1 %v2108_v17, %s30476_s3 }
 0x111   : > { %2179 = vrot.lane.b32.xlu1 %v2116_v19, %s30476_s3  ;;  %v2272_v19 = vld [vmem:[%s30452_s8] sm:$0xff]  ;;  %s30644_s3 = sld [smem:[#allocation71_spill]] }
 0x1a8   : > { %v1230_v20 = vpop.f32.mrb[0].mxu0  ;;  %v1313_v22 = vpop.f32.mrb[0].mxu1 }
 0x1a9   : > { %v1232_v25 = vpop.f32.mrb[1].mxu0  ;;  %v1315_v27 = vpop.f32.mrb[1].mxu1  ;;  %v1231_v32 = vadd.f32 %v1230_v20, %v978_v28  ;;  %v1314_v33 = vadd.f32 %v1313_v22, %v986_v29  ;;  %v2273_v20 = vld [vmem:[%s30452_s8 + $0x8] sm:$0xff] }
 0x1aa   : > { %v1233_v34 = vadd.f32 %v1232_v25, %v982_v30  ;;  %v1316_v35 = vadd.f32 %v1315_v27, %v990_v31  ;;  %v23261_v22 = vpack.c.bf16 %v2273_v20, %v2272_v19  ;;  %v2275_v25 = vld [vmem:[%s30452_s8 + $0x18] sm:$0xff] }
 0x1ab   : > { %v1330_v44 = vmax.f32 %v1231_v32, 0.0  ;;  %v1332_v45 = vmax.f32 %v1314_v33, 0.0  ;;  %v23265_v27 = vpack.c.bf16 %v2275_v25, %v2274_v23 }
 0x1ac   : > { %v1331_v48 = vmax.f32 %v1233_v34, 0.0  ;;  %v1333_v49 = vmax.f32 %v1316_v35, 0.0  ;;  %23262 = vmatprep.subr.bf16.mxu0 %v23261_v22 }
 0x1b1   : > { %v1236_v36 = vpop.f32.mrb[2].mxu0  ;;  %v1319_v37 = vpop.f32.mrb[2].mxu1 }
 0x1b2   : > { %v1237_v38 = vadd.f32 %v1236_v36, %v978_v28  ;;  %v1320_v39 = vadd.f32 %v1319_v37, %v986_v29  ;;  %v1238_v40 = vpop.f32.mrb[3].mxu0  ;;  %v1321_v41 = vpop.f32.mrb[3].mxu1 }
 0x1b3   : > { %v1239_v42 = vadd.f32 %v1238_v40, %v982_v30  ;;  %v1322_v43 = vadd.f32 %v1321_v41, %v990_v31  ;;  %v24311_v40 = vmov 1966171168  }
 0x1b4   : > { %v1334_v46 = vmax.f32 %v1237_v38, 0.0  ;;  %v1336_v47 = vmax.f32 %v1320_v39, 0.0  ;;  %v1714_v41 = vunpack.c.l.s4 %v24311_v40 }
 0x1b5   : > { %v1335_v50 = vmax.f32 %v1239_v42, 0.0  ;;  %v1337_v8 = vmax.f32 %v1322_v43, 0.0 }
 0x1b6   : > { %v1342_v51 = vpack.c.bf16 %v1334_v46, %v1330_v44  ;;  %v1344_v52 = vpack.c.bf16 %v1336_v47, %v1332_v45  ;;  %v1715_v47 = vunpack.c.0.s8 %v1714_v41 }
 0x1b7   : > { %v1343_v53 = vpack.c.bf16 %v1335_v50, %v1331_v48  ;;  %v1345_v54 = vpack.c.bf16 %v1337_v8, %v1333_v49  ;;  %v24852_v48 = vld [vmem:[%s30451_s7] ss:$0 sm:$0xff] }
 0x1b9   : > { %1645 = vmatprep.mubr.bf16.mxu0 %v1343_v53  ;;  %1693 = vmatprep.mubr.bf16.mxu1 %v1345_v54 }
 0x1ba   : > { %1646 = vmatmul.mubr.bf16.vlgmr.msra.gmra.mrb[8].mxu0 %v1342_v51  ;;  %1694 = vmatmul.mubr.bf16.vlgmr.msra.gmra.mrb[8].mxu1 %v1344_v52 }
 0x1bb   : > { %23264 = vmatpush3.bf16.msra.mxu0 %v23261_v22 }
 0x1bc   : > { %23266 = vmatprep.subr.bf16.mxu0 %v23265_v27 }
 0x1bf   : > { %23268 = vmatpush3.bf16.msra.mxu0 %v23265_v27 }
 0x1c0   : > { %22589 = vmatprep.subr.mxu0 %v30506_v58 }
 0x1c1   : > { %v1242_v55 = vpop.f32.mrb[4].mxu0  ;;  %v1325_v56 = vpop.f32.mrb[4].mxu1 }
 0x1c2   : > { %v1243_v57 = vadd.f32 %v1242_v55, %v978_v28  ;;  %v1326_v59 = vadd.f32 %v1325_v56, %v986_v29  ;;  %v1244_v60 = vpop.f32.mrb[5].mxu0  ;;  %v1327_v61 = vpop.f32.mrb[5].mxu1 }
 0x1c3   : > { %v1245_v62 = vadd.f32 %v1244_v60, %v982_v30  ;;  %v1328_v63 = vadd.f32 %v1327_v61, %v990_v31  ;;  %v2120_v28 = vpop.permute.xlu1 %2119  ;;  %v2118_v31 = vpop.permute.xlu0 %2117  ;;  %v24863_v61 = vsub.s32 %v1715_v47, %v24590_v0 }
 0x1c4   : > { %v1338_v1 = vmax.f32 %v1243_v57, 0.0  ;;  %v1340_v5 = vmax.f32 %v1326_v59, 0.0  ;;  %v2190_v44 = vsel %vm2189_vm9, %v24759_v6, %v2118_v31  ;;  %v2191_v6 = vsel %vm2189_vm9, %v24751_v3, %v2120_v28 }
 0x1c5   : > { %v1339_v7 = vmax.f32 %v1245_v62, 0.0  ;;  %v1341_v9 = vmax.f32 %v1328_v63, 0.0 }
 0x1c6   : > { %v1346_v16 = vpack.c.bf16 %v1338_v1, %v1338_v1  ;;  %v1348_v17 = vpack.c.bf16 %v1340_v5, %v1340_v5 }
 0x1c7   : > { %v1347_v11 = vpack.c.bf16 %v1339_v7, %v1339_v7  ;;  %v1349_v13 = vpack.c.bf16 %v1341_v9, %v1341_v9  ;;  %v2122_v29 = vpop.permute.xlu1 %2121  ;;  %v2142_v33 = vpop.permute.xlu0 %2141 }
 0x1c8   : > { %v2192_v8 = vsel %vm2189_vm9, %v24754_v4, %v2122_v29  ;;  %v2199_v56 = vsel %vm2198_vm10, %v2190_v44, %v2142_v33 }
 0x1c9   : > { %1653 = vmatprep.mubr.bf16.mxu0 %v1347_v11  ;;  %1701 = vmatprep.mubr.bf16.mxu1 %v1349_v13 }
 0x1ca   : > { %1654 = vmatmul.mubr.bf16.gmra.mrb[12].mxu0 %v1346_v16  ;;  %1702 = vmatmul.mubr.bf16.gmra.mrb[12].mxu1 %v1348_v17 }
 0x1cb   : > { %v2124_v30 = vpop.permute.xlu1 %2123  ;;  %v2146_v35 = vpop.permute.xlu0 %2145  ;;  %22581 = vmatprep.mubr.msk.f32.mxu1 %vm24312_vm14, %v30506_v58 }
 0x1cc   : > { %v2193_v55 = vsel %vm2189_vm9, %v24767_v10, %v2124_v30  ;;  %v2201_v63 = vsel %vm2198_vm10, %v2192_v8, %v2146_v35 }
 0x1cf   : > { %v2144_v32 = vpop.permute.xlu1 %2143  ;;  %v2166_v37 = vpop.permute.xlu0 %2165 }
 0x1d0   : > { %v2200_v1 = vsel %vm2198_vm10, %v2191_v6, %v2144_v32  ;;  %v24870_v7 = vsel %vm2207_vm11, %v2199_v56, %v2166_v37 }
 0x1d1   : > { %v2219_v28 = vrot.slane %v24870_v7, %v24742_v2 }
 0x1d3   : > { %v2148_v34 = vpop.permute.xlu1 %2147  ;;  %v2170_v39 = vpop.permute.xlu0 %2169 }
 0x1d4   : > { %v2202_v10 = vsel %vm2198_vm10, %v2193_v55, %v2148_v34  ;;  %v24873_v9 = vsel %vm2207_vm11, %v2201_v63, %v2170_v39 }
 0x1d5   : > { %v2227_v29 = vrot.slane %v24873_v9, %v24742_v2 }
 0x1d7   : > { %v2168_v36 = vpop.permute.xlu1 %2167  ;;  %v24845_v43 = vpop.permute.xlu0 %2125 }
 0x1d8   : > { %v24877_v17 = vsel %vm2207_vm11, %v2200_v1, %v2168_v36 }
 0x1d9   : > { %v2223_v36 = vrot.slane %v24877_v17, %v24742_v2 }
 0x1db   : > { %v2172_v38 = vpop.permute.xlu1 %2171  ;;  %v24881_v20 = vpop.permute.xlu0 %2129 }
 0x1dc   : > { %v24890_v30 = vsel %vm2207_vm11, %v2202_v10, %v2172_v38 }
 0x1dd   : > { %v2231_v41 = vrot.slane %v24890_v30, %v24742_v2 }
 0x1df   : > { %v24843_v42 = vpop.permute.xlu1 %2127 }
 0x1e3   : > { %v24879_v19 = vpop.permute.xlu1 %2131 }
 0x1e7   : > { %v2152_v8 = vpop.permute.xlu1 %2151 }
 0x28d   : > { %v21789_v45 = vpop.f32.mrb[8].mxu0  ;;  %v21817_v46 = vpop.f32.mrb[8].mxu1 }
 0x28e   : > { %v21790_v49 = vpop.f32.mrb[9].mxu0  ;;  %v21818_v50 = vpop.f32.mrb[9].mxu1 }
 0x28f   : > { %v21791_v51 = vadd.f32 %v21790_v49, %v21789_v45  ;;  %v21819_v52 = vadd.f32 %v21818_v50, %v21817_v46  ;;  %v21792_v53 = vpop.f32.mrb[10].mxu0  ;;  %v21820_v54 = vpop.f32.mrb[10].mxu1 }
 0x290   : > { %v21793_v57 = vpop.f32.mrb[11].mxu0  ;;  %v21821_v59 = vpop.f32.mrb[11].mxu1 }
 0x291   : > { %v1648_v60 = vadd.f32 %v21791_v51, %v24852_v48  ;;  %v21794_v4 = vadd.f32 %v21793_v57, %v21792_v53  ;;  %v21822_v62 = vadd.f32 %v21821_v59, %v21820_v54  ;;  %v2150_v51 = vpop.permute.xlu0 %2149 }
 0x293   : > { %v1696_v3 = vadd.f32 %v21819_v52, %v1648_v60  ;;  %v1651_v5 = vadd.f32 %v21794_v4, %v24852_v48 }
 0x295   : > { %v1712_v11 = vcombine.high %v1696_v3, %v1696_v3  ;;  %v1719_v13 = vrot.slane %v1696_v3, %v24863_v61  ;;  %v1699_v16 = vadd.f32 %v21822_v62, %v1651_v5 }
 0x297   : > { %v1726_v22 = vrot.slane %v1712_v11, %v24863_v61  ;;  %v1727_v23 = vcombine.high %v1719_v13, %v1719_v13  ;;  %v1735_v25 = vrot.slane %v1719_v13, %v24863_v61  ;;  %v1761_v27 = vcombine.high %v1699_v16, %v1699_v16 }
 0x298   : > { %v1768_v31 = vrot.slane %v1699_v16, %v24863_v61  ;;  %v2195_v16 = vsel %vm2189_vm9, %v24790_v15, %v24843_v42  ;;  %v24928_v15 = vld [vmem:[%s30644_s3] sm:$0x1]  ;;  %s30486_s3 = smov 112  }
 0x299   : > { %v1728_v32 = vcombine.high %v1726_v22, %v1726_v22  ;;  %v1742_v33 = vrot.slane %v1726_v22, %v24863_v61  ;;  %v1749_v34 = vrot.slane %v1727_v23, %v24863_v61  ;;  %v1757_v35 = vcombine.high %v1735_v25, %v1735_v25 }
 0x29a   : > { %v1860_v37 = vcombine.low %v1735_v25, %v1735_v25  ;;  %v1775_v39 = vrot.slane %v1761_v27, %v24863_v61  ;;  %v1776_v40 = vcombine.high %v1768_v31, %v1768_v31  ;;  %v1784_v47 = vrot.slane %v1768_v31, %v24863_v61 }
 0x29b   : > { %v1756_v38 = vrot.slane %v1728_v32, %v24863_v61  ;;  %v1861_v44 = vcombine.low %v1749_v34, %v1757_v35  ;;  %v20806_v45 = vcombine.high %v1749_v34, %v1749_v34  ;;  %v20807_v6 = vcombine.high %v1742_v33, %v1742_v33 }
 0x29c   : > { %v1777_v46 = vcombine.high %v1775_v39, %v1775_v39  ;;  %v1791_v49 = vrot.slane %v1775_v39, %v24863_v61  ;;  %v1798_v50 = vrot.slane %v1776_v40, %v24863_v61  ;;  %v1868_v52 = vrot.slane %v1860_v37, %v24863_v61 }
 0x29d   : > { %v1875_v53 = vrot.slane %v1861_v44, %v24863_v61  ;;  %v1885_v54 = vcombine.low %v1742_v33, %v1756_v38  ;;  %v21795_v55 = vpop.f32.mrb[12].mxu0  ;;  %v21823_v56 = vpop.f32.mrb[12].mxu1  ;;  %v1760_v57 = vcombine.high %v1756_v38, %v1756_v38  ;;  %v1892_v3 = vrot.slane %v20806_v45, %v24863_v61 }
 0x29e   : > { %v24907_v59 = vrot.slane %v1777_v46, %v24863_v61  ;;  %v1807_v60 = vcombine.high %v1791_v49, %v1791_v49  ;;  %v1932_v4 = vcombine.low %v1798_v50, %v1798_v50  ;;  %v21796_v62 = vpop.f32.mrb[13].mxu0  ;;  %v21824_v63 = vpop.f32.mrb[13].mxu1  ;;  %v20808_v10 = vcombine.high %v1784_v47, %v1798_v50 }
 0x29f   : > { %v1876_v1 = vcombine.low %v1868_v52, %v1875_v53  ;;  %v1899_v5 = vrot.slane %v1885_v54, %v24863_v61  ;;  %v21798_v11 = vpop.f32.mrb[14].mxu0  ;;  %v21826_v13 = vpop.f32.mrb[14].mxu1  ;;  %v1909_v22 = vcombine.low %v1760_v57, %v1784_v47  ;;  %v21797_v34 = vadd.f32 %v21796_v62, %v21795_v55  ;;  %v2257_v57 = vld [vmem:[%s24923_s30 + $0x4] sm:$0xf] }
 0x2a0   : > { %v1940_v23 = vrot.slane %v1932_v4, %v24863_v61  ;;  %v1957_v25 = vcombine.low %v24907_v59, %v1807_v60  ;;  %v21799_v27 = vpop.f32.mrb[15].mxu0  ;;  %v21827_v31 = vpop.f32.mrb[15].mxu1  ;;  %v1947_v33 = vrot.slane %v20808_v10, %v24863_v61  ;;  %v21825_v35 = vadd.f32 %v21824_v63, %v21823_v56  ;;  %v2256_v56 = vld [vmem:[%s24923_s30] sm:$0xf]  ;;  %v2258_v11 = vld [vmem:[%s24923_s30 + $0x8] sm:$0xf] }
 0x2a1   : > { %v1900_v32 = vcombine.low %v1892_v3, %v1899_v5  ;;  %v1916_v37 = vrot.slane %v20807_v6, %v24863_v61  ;;  %v1923_v39 = vrot.slane %v1909_v22, %v24863_v61  ;;  %v1956_v40 = vcombine.low %v1791_v49, %v1791_v49  ;;  %v2156_v38 = vpop.permute.xlu1 %2155  ;;  %v2154_v52 = vpop.permute.xlu0 %2153  ;;  %v2259_v13 = vld [vmem:[%s24923_s30 + $0xc] sm:$0xf] }
 0x2a2   : > { %v1948_v42 = vcombine.low %v1940_v23, %v1947_v33  ;;  %v1656_v44 = vadd.f32 %v21797_v34, %v24852_v48  ;;  %v1883_v45 = vrot.slane %v1876_v1, %v24863_v61  ;;  %v2194_v49 = vsel %vm2189_vm9, %v24779_v12, %v24845_v43 }
 0x2a3   : > { %v1907_v46 = vrot.slane %v1900_v32, %v24863_v61  ;;  %v1924_v47 = vcombine.low %v1916_v37, %v1923_v39  ;;  %v2204_v50 = vsel %vm2198_vm10, %v2195_v16, %v2152_v8  ;;  %v1971_v53 = vrot.slane %v1957_v25, %v24863_v61 }
 0x2a4   : > { %v1955_v54 = vrot.slane %v1948_v42, %v24863_v61  ;;  %v1704_v6 = vadd.f32 %v21825_v35, %v1656_v44  ;;  %v2061_v48 = vsel %vm2060_vm12, %v24928_v15, %v1883_v45  ;;  %v1964_v12 = vrot.slane %v1956_v40, %v24863_v61 }
 0x2a5   : > { %v2062_v55 = vsel %vm2060_vm12, %v24928_v15, %v1907_v46  ;;  %v1931_v60 = vrot.slane %v1924_v47, %v24863_v61  ;;  %v2248_v43 = vadd.f32 %v2219_v28, %v2061_v48  ;;  %v2203_v4 = vsel %vm2198_vm10, %v2194_v49, %v2150_v51  ;;  %v2176_v51 = vpop.permute.xlu1 %2175  ;;  %v2174_v22 = vpop.permute.xlu0 %2173 }
 0x2a6   : > { %v2249_v8 = vadd.f32 %v2223_v36, %v2062_v55  ;;  %v1810_v62 = vcombine.high %v1704_v6, %v1704_v6  ;;  %v1817_v63 = vrot.slane %v1704_v6, %v24863_v61  ;;  %v2064_v1 = vsel %vm2060_vm12, %v24928_v15, %v1955_v54 }
 0x2a7   : > { %v1972_v3 = vcombine.low %v1964_v12, %v1971_v53  ;;  %v24957_v5 = vadd.f32 %v2256_v56, %v2248_v43  ;;  %v2063_v7 = vsel %vm2060_vm12, %v24928_v15, %v1931_v60  ;;  %v20809_v16 = vcombine.high %v24907_v59, %v24907_v59 }
 0x2a8   : > { %v24959_v10 = vadd.f32 %v2257_v57, %v2249_v8  ;;  %v1824_v17 = vrot.slane %v1810_v62, %v24863_v61  ;;  %v1825_v28 = vcombine.high %v1817_v63, %v1817_v63  ;;  %v1833_v36 = vrot.slane %v1817_v63, %v24863_v61  ;;  %v2261_v62 = vld [vmem:[%s24923_s30 + $0x14] sm:$0xf] }
 0x2a9   : > { %v2250_v25 = vadd.f32 %v2227_v29, %v2063_v7  ;;  %v2251_v27 = vadd.f32 %v2231_v41, %v2064_v1  ;;  %v2197_v31 = vsel %vm2189_vm9, %v24799_v18, %v24879_v19  ;;  %v2196_v59 = vsel %vm2189_vm9, %v24786_v14, %v24881_v20  ;;  %v2180_v46 = vpop.permute.xlu1 %2179  ;;  %v2178_v54 = vpop.permute.xlu0 %2177  ;;  %v2260_v1 = vld [vmem:[%s24923_s30 + $0x10] sm:$0xf] }
 0x2aa   : > { %v2291_v23 = vcombine.low %v24957_v5, %v24959_v10  ;;  %v1826_v32 = vcombine.high %v1824_v17, %v1824_v17  ;;  %v1847_v33 = vrot.slane %v1825_v28, %v24863_v61  ;;  %v20810_v34 = vcombine.high %v1833_v36, %v1833_v36 }
 0x2ab   : > { %v1979_v35 = vrot.slane %v1972_v3, %v24863_v61  ;;  %v24986_v9 = vadd.f32 %v2258_v11, %v2250_v25  ;;  %v24988_v29 = vadd.f32 %v2259_v13, %v2251_v27  ;;  %v1840_v30 = vrot.slane %v1824_v17, %v24863_v61 }
 0x2ac   : > { %22573 = vmatprep.mubr.msk.f32.mxu0 %vm2295_vm13, %v2291_v23  ;;  %v1854_v18 = vrot.slane %v1826_v32, %v24863_v61  ;;  %v1857_v19 = vcombine.high %v1847_v33, %v1847_v33  ;;  %v1981_v41 = vcombine.low %v1833_v36, %v1847_v33  ;;  %v2206_v14 = vsel %vm2198_vm10, %v2197_v31, %v2156_v38 }
 0x2ad   : > { %v1988_v20 = vrot.slane %v20809_v16, %v24863_v61  ;;  %v2212_v37 = vsel %vm2207_vm11, %v2203_v4, %v2174_v22  ;;  %v2292_v39 = vcombine.low %v24986_v9, %v24988_v29  ;;  %v2205_v47 = vsel %vm2198_vm10, %v2196_v59, %v2154_v52  ;;  %v2262_v16 = vld [vmem:[%s24923_s30 + $0x18] sm:$0xf] }
 0x2ae   : > { %v1995_v40 = vrot.slane %v1981_v41, %v24863_v61  ;;  %v2005_v42 = vcombine.low %v1857_v19, %v1840_v30  ;;  %v2028_v44 = vcombine.low %v1854_v18, %v1854_v18  ;;  %v20811_v45 = vcombine.high %v1840_v30, %v1854_v18 }
 0x2af   : > { %v2012_v49 = vrot.slane %v20810_v34, %v24863_v61  ;;  %v2213_v53 = vsel %vm2207_vm11, %v2204_v50, %v2176_v51  ;;  %v2065_v38 = vsel %vm2060_vm12, %v24928_v15, %v1979_v35  ;;  %22574 = vmatmul.mubr.msk.f32.vlgmr.msra.gmra.mrb[6].mxu0 %vm2295_vm13, %v2292_v39  ;;  %v2235_v52 = vrot.slane %v2212_v37, %v24742_v2  ;;  %v2263_v51 = vld [vmem:[%s24923_s30 + $0x1c] sm:$0xf]  ;;  %s30492_s30 = smov 120  }
 0x2b0   : > { %v1996_v6 = vcombine.low %v1988_v20, %v1995_v40  ;;  %v2036_v48 = vrot.slane %v2028_v44, %v24863_v61  ;;  %v2043_v55 = vrot.slane %v20811_v45, %v24863_v61  ;;  %v2019_v56 = vrot.slane %v2005_v42, %v24863_v61 }
 0x2b1   : > { %v2215_v50 = vsel %vm2207_vm11, %v2206_v14, %v2180_v46  ;;  %v2214_v43 = vsel %vm2207_vm11, %v2205_v47, %v2178_v54  ;;  %v2239_v8 = vrot.slane %v2213_v53, %v24742_v2  ;;  %v2252_v4 = vadd.f32 %v2235_v52, %v2065_v38 }
 0x2b2   : > { %v2003_v57 = vrot.slane %v1996_v6, %v24863_v61  ;;  %v2044_v60 = vcombine.low %v2036_v48, %v2043_v55  ;;  %v2020_v12 = vcombine.low %v2012_v49, %v2019_v56  ;;  %v2247_v28 = vrot.slane %v2215_v50, %v24742_v2 }
 0x2b3   : > { %v2243_v36 = vrot.slane %v2214_v43, %v24742_v2  ;;  %v25028_v23 = vadd.f32 %v2260_v1, %v2252_v4 }
 0x2b4   : > { %v2066_v63 = vsel %vm2060_vm12, %v24928_v15, %v2003_v57  ;;  %v2051_v3 = vrot.slane %v2044_v60, %v24863_v61  ;;  %v2027_v7 = vrot.slane %v2020_v12, %v24863_v61 }
 0x2b5   : > { %v2253_v17 = vadd.f32 %v2239_v8, %v2066_v63 }
 0x2b6   : > { %v2068_v11 = vsel %vm2060_vm12, %v24928_v15, %v2051_v3  ;;  %v2067_v13 = vsel %vm2060_vm12, %v24928_v15, %v2027_v7  ;;  %v20812_v15 = vld [vmem:[%s30453_s9] ss:$0 sm:$0xff] }
 0x2b7   : > { %v25026_v22 = vadd.f32 %v2261_v62, %v2253_v17  ;;  %v2255_v25 = vadd.f32 %v2247_v28, %v2068_v11  ;;  %v2254_v27 = vadd.f32 %v2243_v36, %v2067_v13 }
 0x2b9   : > { %v25030_v61 = vadd.f32 %v2263_v51, %v2255_v25  ;;  %v25032_v31 = vadd.f32 %v2262_v16, %v2254_v27  ;;  %v2293_v59 = vcombine.low %v25028_v23, %v25026_v22 }
 0x2bb   : > { %22576 = vmatprep.mubr.msk.f32.mxu0 %vm2295_vm13, %v2293_v59  ;;  %v2294_v32 = vcombine.low %v25032_v31, %v25030_v61 }
 0x2bd   : > { %22577 = vmatmul.mubr.msk.f32.gmra.mrb[16].mxu0 %vm2295_vm13, %v2294_v32 }
 0x2be   : > { %22591 = vmatprep.mubr.msk.f32.mxu0 %vm24312_vm14, %v30506_v58 }
 0x382   : > { %v22575_v33 = vpop.f32.mrb[6].mxu0 }
 0x383   : > { %v2370_v34 = vpop.f32.mrb[7].mxu0  ;;  %v25049_v30 = vadd.f32 %v22575_v33, %v20812_v15 }
 0x384   : > { %v25047_v35 = vadd.f32 %v20812_v15, %v2370_v34 }
 0x385   : > { %v25063_v19 = vcombine.high %v25049_v30, %v25049_v30 }
 0x386   : > { %2397 = vrot.lane.b32.xlu0 %v25047_v35, %s30502_s26  ;;  %v25055_v18 = vcombine.high %v25047_v35, %v25047_v35 }
 0x388   : > { %2473 = vrot.lane.b32.xlu1 %v25055_v18, %s30502_s26 }
 0x38a   : > { %2549 = vrot.lane.b32.xlu0 %v25049_v30, %s30502_s26 }
 0x38c   : > { %2625 = vrot.lane.b32.xlu1 %v25063_v19, %s30502_s26 }
 0x390   : > { %v22578_v41 = vpop.f32.mrb[16].mxu0 }
 0x391   : > { %v2380_v14 = vpop.f32.mrb[17].mxu0  ;;  %v25069_v37 = vadd.f32 %v22578_v41, %v20812_v15 }
 0x392   : > { %v25067_v20 = vadd.f32 %v20812_v15, %v2380_v14 }
 0x393   : > { %v25083_v40 = vcombine.high %v25069_v37, %v25069_v37 }
 0x394   : > { %2701 = vrot.lane.b32.xlu0 %v25067_v20, %s30502_s26  ;;  %v25075_v39 = vcombine.high %v25067_v20, %v25067_v20 }
 0x396   : > { %2777 = vrot.lane.b32.xlu1 %v25075_v39, %s30502_s26 }
 0x398   : > { %2853 = vrot.lane.b32.xlu0 %v25069_v37, %s30502_s26 }
 0x39a   : > { %2929 = vrot.lane.b32.xlu1 %v25083_v40, %s30502_s26  ;;  %s30781_s26 = smov 112  }
 0x39c   : > { %3102 = vrot.lane.b32.xlu0 %v25047_v35, %s30500_s29 }
 0x39e   : > { %3181 = vrot.lane.b32.xlu1 %v25055_v18, %s30500_s29 }
 0x3a0   : > { %3412 = vrot.lane.b32.xlu0 %v25067_v20, %s30500_s29 }
 0x3a2   : > { %3258 = vrot.lane.b32.xlu1 %v25049_v30, %s30500_s29 }
 0x3a4   : > { %3566 = vrot.lane.b32.xlu0 %v25069_v37, %s30500_s29 }
 0x3a6   : > { %3335 = vrot.lane.b32.xlu1 %v25063_v19, %s30500_s29 }
 0x3a8   : > { %3722 = vrot.lane.b32.xlu0 %v25047_v35, %s30494_s0 }
 0x3aa   : > { %3643 = vrot.lane.b32.xlu1 %v25083_v40, %s30500_s29 }
 0x3ae   : > { %3800 = vrot.lane.b32.xlu1 %v25055_v18, %s30494_s0 }
 0x3b2   : > { %3489 = vrot.lane.b32.xlu1 %v25075_v39, %s30500_s29  ;;  %s30782_s29 = smov 48  }
 0x3f8   : > { %v2398_v42 = vpop.permute.xlu0 %2397 }
 0x3f9   : > { %22580 = vmatpush3.xpose.msk.msra.mxu1 %vm2189_vm9, %v2398_v42 }
 0x3fa   : > { %v2474_v44 = vpop.permute.xlu1 %2473  ;;  %22584 = vmatprep.subr.mxu1 %v30506_v58 }
 0x3fc   : > { %22582 = vmatmul.mubr.msk.f32.vlgmr.msra.gmra.mrb[6].mxu1 %vm2189_vm9, %v25047_v35  ;;  %v2550_v45 = vpop.permute.xlu0 %2549 }
 0x3fd   : > { %22585 = vmatpush3.xpose.msk.msra.mxu1 %vm2189_vm9, %v2474_v44  ;;  %22590 = vmatpush3.xpose.msk.msra.mxu0 %vm2189_vm9, %v2550_v45 }
 0x3fe   : > { %22586 = vmatprep.mubr.msk.f32.mxu1 %vm24312_vm14, %v30506_v58  ;;  %22594 = vmatprep.subr.mxu1 %v30506_v58  ;;  %v2626_v46 = vpop.permute.xlu1 %2625 }
 0x3ff   : > { %22599 = vmatprep.subr.mxu0 %v30506_v58 }
 0x400   : > { %22587 = vmatmul.mubr.msk.f32.vlgmr.msra.gmra.mrb[16].mxu1 %vm2189_vm9, %v25055_v18  ;;  %22592 = vmatmul.mubr.msk.f32.vlgmr.msra.gmra.mrb[18].mxu0 %vm2189_vm9, %v25049_v30 }
 0x401   : > { %22595 = vmatpush3.xpose.msk.msra.mxu1 %vm2189_vm9, %v2626_v46  ;;  %22596 = vmatprep.mubr.msk.f32.mxu1 %vm24312_vm14, %v30506_v58 }
 0x402   : > { %22604 = vmatprep.subr.mxu1 %v30506_v58  ;;  %22601 = vmatprep.mubr.msk.f32.mxu0 %vm24312_vm14, %v30506_v58 }
 0x404   : > { %22597 = vmatmul.mubr.msk.f32.vlgmr.msra.gmra.mrb[18].mxu1 %vm2189_vm9, %v25063_v19 }
 0x405   : > { %22606 = vmatprep.mubr.msk.f32.mxu1 %vm24312_vm14, %v30506_v58 }
 0x406   : > { %v2702_v47 = vpop.permute.xlu0 %2701 }
 0x407   : > { %22600 = vmatpush3.xpose.msk.msra.mxu0 %vm2189_vm9, %v2702_v47 }
 0x408   : > { %v2778_v49 = vpop.permute.xlu1 %2777  ;;  %22609 = vmatprep.subr.mxu0 %v30506_v58 }
 0x409   : > { %22605 = vmatpush3.xpose.msk.msra.mxu1 %vm2189_vm9, %v2778_v49 }
 0x40a   : > { %22602 = vmatmul.mubr.msk.f32.vlgmr.msra.gmra.mrb[20].mxu0 %vm2189_vm9, %v25067_v20  ;;  %v2854_v53 = vpop.permute.xlu0 %2853  ;;  %22614 = vmatprep.subr.mxu1 %v30506_v58 }
 0x40b   : > { %22610 = vmatpush3.xpose.msk.msra.mxu0 %vm2189_vm9, %v2854_v53  ;;  %22611 = vmatprep.mubr.msk.f32.mxu0 %vm24312_vm14, %v30506_v58 }
 0x40c   : > { %v2930_v38 = vpop.permute.xlu1 %2929  ;;  %22607 = vmatmul.mubr.msk.f32.vlgmr.msra.gmra.mrb[20].mxu1 %vm2189_vm9, %v25075_v39  ;;  %22619 = vmatprep.subr.mxu0 %v30506_v58 }
 0x40d   : > { %22615 = vmatpush3.xpose.msk.msra.mxu1 %vm2189_vm9, %v2930_v38  ;;  %22616 = vmatprep.mubr.msk.f32.mxu1 %vm24312_vm14, %v30506_v58 }
 0x40e   : > { %22612 = vmatmul.mubr.msk.f32.vlgmr.msra.gmra.mrb[22].mxu0 %vm2189_vm9, %v25069_v37  ;;  %v3103_v54 = vpop.permute.xlu0 %3102  ;;  %22624 = vmatprep.subr.mxu1 %v30506_v58 }
 0x40f   : > { %22620 = vmatpush3.msk.msra.mxu0 %vm3108_vm15, %v3103_v54  ;;  %22621 = vmatprep.mubr.msk.f32.mxu0 %vm24312_vm14, %v30506_v58 }
 0x410   : > { %v3182_v6 = vpop.permute.xlu1 %3181  ;;  %22617 = vmatmul.mubr.msk.f32.vlgmr.msra.gmra.mrb[22].mxu1 %vm2189_vm9, %v25083_v40  ;;  %22629 = vmatprep.subr.mxu0 %v30506_v58 }
 0x411   : > { %22625 = vmatpush3.msk.msra.mxu1 %vm3108_vm15, %v3182_v6  ;;  %22626 = vmatprep.mubr.msk.f32.mxu1 %vm24312_vm14, %v30506_v58 }
 0x412   : > { %22634 = vmatprep.subr.mxu1 %v30506_v58  ;;  %v25180_v45 = vpop.permute.xlu0 %3412 }
 0x414   : > { %v25176_v42 = vpop.permute.xlu1 %3258 }
 0x416   : > { %v25184_v47 = vpop.permute.xlu0 %3566 }
 0x418   : > { %v25178_v44 = vpop.permute.xlu1 %3335 }
 0x41a   : > { %v25188_v53 = vpop.permute.xlu0 %3722 }
 0x41c   : > { %v25182_v46 = vpop.permute.xlu1 %3643 }
 0x420   : > { %v25186_v49 = vpop.permute.xlu1 %3800 }
 0x424   : > { %v25190_v38 = vpop.permute.xlu1 %3489 }
 0x4cf   : > { %v2469_v48 = vpop.f32.mrb[6].mxu1 }
 0x4d0   : > { %v22583_v55 = vpop.f32.mrb[7].mxu1  ;;  %v3005_v4 = vmul.f32 0.35355338, %v2469_v48 }
 0x4d2   : > { %v3014_v1 = vsel %vm3013_vm0, %v3005_v4, -inf }
 0x4d3   : > { %v2545_v56 = vpop.f32.mrb[16].mxu1  ;;  %v2621_v52 = vpop.f32.mrb[18].mxu0 }
 0x4d4   : > { %v22588_v50 = vpop.f32.mrb[17].mxu1  ;;  %v22593_v57 = vpop.f32.mrb[19].mxu0  ;;  %v3006_v60 = vmul.f32 0.35355338, %v2545_v56  ;;  %v3007_v12 = vmul.f32 0.35355338, %v2621_v52 }
 0x4d6   : > { %v3017_v43 = vsel %vm3013_vm0, %v3006_v60, -inf  ;;  %v3020_v8 = vsel %vm3013_vm0, %v3007_v12, -inf }
 0x4d7   : > { %3018 = vmax.xlane.f32.xlu1 %v3017_v43  ;;  %v2697_v62 = vpop.f32.mrb[18].mxu1  ;;  %3021 = vmax.xlane.f32.xlu0 %v3020_v8 }
 0x4d8   : > { %v22598_v63 = vpop.f32.mrb[19].mxu1  ;;  %v3008_v11 = vmul.f32 0.35355338, %v2697_v62 }
 0x4da   : > { %v3023_v59 = vsel %vm3013_vm0, %v3008_v11, -inf }
 0x4db   : > { %3015 = vmax.xlane.f32.xlu0 %v3014_v1 }
 0x4dd   : > { %v2773_v3 = vpop.f32.mrb[20].mxu0 }
 0x4de   : > { %v22603_v7 = vpop.f32.mrb[21].mxu0  ;;  %v25162_v17 = vmul.f32 0.35355338, %v2773_v3 }
 0x4df   : > { %v2849_v28 = vpop.f32.mrb[20].mxu1 }
 0x4e0   : > { %v22608_v36 = vpop.f32.mrb[21].mxu1  ;;  %v3026_v51 = vsel %vm3013_vm0, %v25162_v17, -inf  ;;  %v3010_v33 = vmul.f32 0.35355338, %v2849_v28 }
 0x4e1   : > { %3027 = vmax.xlane.f32.xlu0 %v3026_v51  ;;  %v2925_v13 = vpop.f32.mrb[22].mxu0 }
 0x4e2   : > { %v22613_v16 = vpop.f32.mrb[23].mxu0  ;;  %v3011_v32 = vmul.f32 0.35355338, %v2925_v13  ;;  %v3029_v34 = vsel %vm3013_vm0, %v3010_v33, -inf }
 0x4e3   : > { %v3001_v25 = vpop.f32.mrb[22].mxu1 }
 0x4e4   : > { %v22618_v27 = vpop.f32.mrb[23].mxu1  ;;  %v3032_v15 = vsel %vm3013_vm0, %v3011_v32, -inf  ;;  %v3012_v41 = vmul.f32 0.35355338, %v3001_v25 }
 0x4e5   : > { %3024 = vmax.xlane.f32.xlu0 %v3023_v59 }
 0x4e6   : > { %v3035_v14 = vsel %vm3013_vm0, %v3012_v41, -inf }
 0x4e8   : > { %3798 = vrot.lane.b32.xlu1 %v25055_v18, %s30492_s30 }
 0x4e9   : > { %3033 = vmax.xlane.f32.xlu0 %v3032_v15 }
 0x4ff   : > { %3720 = vrot.lane.b32.xlu0 %v25047_v35, %s30492_s30 }
 0x50c   : > { %3030 = vmax.xlane.f32.xlu1 %v3029_v34 }
 0x510   : > { %3036 = vmax.xlane.f32.xlu1 %v3035_v14 }
 0x521   : > { %3956 = vrot.lane.b32.xlu1 %v25063_v19, %s30494_s0 }
 0x564   : > { %v3019_v54 = vpop.xlane.xlu1 %3018  ;;  %v3022_v6 = vpop.xlane.xlu0 %3021 }
 0x565   : > { %v3039_v48 = vsub.f32 %v3006_v60, %v3019_v54  ;;  %v3040_v55 = vsub.f32 %v3007_v12, %v3022_v6 }
 0x567   : > { %v3048_v56 = vmul.f32 1.442695, %v3039_v48  ;;  %v3050_v52 = vmul.f32 1.442695, %v3040_v55 }
 0x568   : > { %v3016_v50 = vpop.xlane.xlu0 %3015 }
 0x569   : > { %23687 = vpow2.f32 %v3048_v56  ;;  %v3038_v57 = vsub.f32 %v3005_v4, %v3016_v50 }
 0x56a   : > { %23689 = vpow2.f32 %v3050_v52 }
 0x56b   : > { %v3046_v43 = vmul.f32 1.442695, %v3038_v57 }
 0x56d   : > { %23691 = vpow2.f32 %v3046_v43 }
 0x56e   : > { %v3028_v8 = vpop.xlane.xlu0 %3027 }
 0x56f   : > { %v3042_v13 = vsub.f32 %v25162_v17, %v3028_v8 }
 0x571   : > { %v3054_v25 = vmul.f32 1.442695, %v3042_v13 }
 0x572   : > { %v3025_v62 = vpop.xlane.xlu0 %3024 }
 0x573   : > { %v25192_v63 = vpop.eup %23687  ;;  %v3041_v1 = vsub.f32 %v3008_v11, %v3025_v62  ;;  %v25212_v11 = vpop.permute.xlu1 %3798 }
 0x574   : > { %v25194_v3 = vpop.eup %23689  ;;  %v3065_v7 = vsel %vm3013_vm0, %v25192_v63, 0.0 }
 0x575   : > { %v3052_v60 = vmul.f32 1.442695, %v3041_v1  ;;  %3066 = vadd.xlane.f32.xlu1 %v3065_v7  ;;  %v3068_v12 = vsel %vm3013_vm0, %v25194_v3, 0.0 }
 0x576   : > { %3069 = vadd.xlane.f32.xlu0 %v3068_v12  ;;  %v3034_v16 = vpop.xlane.xlu0 %3033 }
 0x577   : > { %v25200_v4 = vpop.eup %23691  ;;  %23693 = vpow2.f32 %v3052_v60  ;;  %v3044_v27 = vsub.f32 %v3011_v32, %v3034_v16 }
 0x578   : > { %v3062_v28 = vsel %vm3013_vm0, %v25200_v4, 0.0  ;;  %23695 = vpow2.f32 %v3054_v25 }
 0x579   : > { %v3058_v15 = vmul.f32 1.442695, %v3044_v27 }
 0x57a   : > { %3063 = vadd.xlane.f32.xlu0 %v3062_v28  ;;  %v25251_v43 = vpop.permute.xlu0 %3720 }
 0x57b   : > { %23697 = vpow2.f32 %v3058_v15 }
 0x581   : > { %v25204_v36 = vpop.eup %23693 }
 0x582   : > { %v3071_v51 = vsel %vm3013_vm0, %v25204_v36, 0.0  ;;  %v25215_v55 = vpop.eup %23695 }
 0x583   : > { %3072 = vadd.xlane.f32.xlu1 %v3071_v51  ;;  %v3074_v56 = vsel %vm3013_vm0, %v25215_v55, 0.0 }
 0x585   : > { %v25219_v17 = vpop.eup %23697 }
 0x586   : > { %v3080_v32 = vsel %vm3013_vm0, %v25219_v17, 0.0 }
 0x590   : > { %3878 = vrot.lane.b32.xlu0 %v25049_v30, %s30494_s0 }
 0x594   : > { %3954 = vrot.lane.b32.xlu1 %v25063_v19, %s30492_s30 }
 0x599   : > { %v3031_v59 = vpop.xlane.xlu1 %3030 }
 0x59a   : > { %v3043_v34 = vsub.f32 %v3010_v33, %v3031_v59 }
 0x59c   : > { %v3056_v54 = vmul.f32 1.442695, %v3043_v34 }
 0x59d   : > { %v3037_v14 = vpop.xlane.xlu1 %3036 }
 0x59e   : > { %v3045_v6 = vsub.f32 %v3012_v41, %v3037_v14  ;;  %23699 = vpow2.f32 %v3056_v54 }
 0x5a0   : > { %v3060_v48 = vmul.f32 1.442695, %v3045_v6 }
 0x5a1   : > { %v25249_v57 = vpop.permute.xlu1 %3956 }
 0x5a2   : > { %23701 = vpow2.f32 %v3060_v48 }
 0x5a8   : > { %v25223_v33 = vpop.eup %23699 }
 0x5a9   : > { %v3077_v41 = vsel %vm3013_vm0, %v25223_v33, 0.0 }
 0x5ac   : > { %v25227_v52 = vpop.eup %23701 }
 0x5ad   : > { %v3083_v50 = vsel %vm3013_vm0, %v25227_v52, 0.0 }
 0x5af   : > { %3075 = vadd.xlane.f32.xlu0 %v3074_v56 }
 0x5b3   : > { %3081 = vadd.xlane.f32.xlu0 %v3080_v32 }
 0x5b8   : > { %3078 = vadd.xlane.f32.xlu1 %v3077_v41 }
 0x5bc   : > { %3084 = vadd.xlane.f32.xlu1 %v3083_v50 }
 0x5c9   : > { %3876 = vrot.lane.b32.xlu0 %v25049_v30, %s30492_s30 }
 0x5cd   : > { %4034 = vrot.lane.b32.xlu0 %v25067_v20, %s30494_s0  ;;  %4112 = vrot.lane.b32.xlu1 %v25075_v39, %s30494_s0 }
 0x5d1   : > { %4032 = vrot.lane.b32.xlu0 %v25067_v20, %s30492_s30  ;;  %4110 = vrot.lane.b32.xlu1 %v25075_v39, %s30492_s30 }
 0x5d5   : > { %4190 = vrot.lane.b32.xlu0 %v25069_v37, %s30494_s0  ;;  %4268 = vrot.lane.b32.xlu1 %v25083_v40, %s30494_s0  ;;  %s30775_s0 = smov 96  }
 0x5d9   : > { %4188 = vrot.lane.b32.xlu0 %v25069_v37, %s30492_s30  ;;  %4266 = vrot.lane.b32.xlu1 %v25083_v40, %s30492_s30  ;;  %s30776_s30 = smov 64  }
 0x602   : > { %v3067_v8 = vpop.xlane.xlu1 %3066 }
 0x603   : > { %23703 = vrcp.f32 %v3067_v8  ;;  %v3070_v62 = vpop.xlane.xlu0 %3069 }
 0x607   : > { %v3064_v1 = vpop.xlane.xlu0 %3063 }
 0x608   : > { %23705 = vrcp.f32 %v3064_v1 }
 0x609   : > { %23707 = vrcp.f32 %v3070_v62 }
 0x60d   : > { %v23704_v7 = vpop.eup %23703 }
 0x60e   : > { %v3095_v60 = vmul.f32 %v23704_v7, %v25192_v63 }
 0x610   : > { %22627 = vmatmul.mubr.msk.f32.vlgmr.msra.gmra.mrb[24].mxu1 %vm3104_vm8, %v3095_v60  ;;  %v3073_v12 = vpop.xlane.xlu1 %3072 }
 0x611   : > { %22635 = vmatpush3.msk.msra.mxu1 %vm3108_vm15, %v25178_v44  ;;  %23709 = vrcp.f32 %v3073_v12  ;;  %22636 = vmatprep.mubr.msk.f32.mxu1 %vm24312_vm14, %v30506_v58 }
 0x612   : > { %v23706_v28 = vpop.eup %23705  ;;  %22644 = vmatprep.subr.mxu1 %v30506_v58 }
 0x613   : > { %v3094_v51 = vmul.f32 %v23706_v28, %v25200_v4  ;;  %v23708_v13 = vpop.eup %23707 }
 0x614   : > { %v3096_v44 = vmul.f32 %v23708_v13, %v25194_v3  ;;  %v3879_v3 = vpop.permute.xlu0 %3878  ;;  %v3955_v16 = vpop.permute.xlu1 %3954 }
 0x615   : > { %22622 = vmatmul.mubr.msk.f32.vlgmr.msra.gmra.mrb[24].mxu0 %vm3104_vm8, %v3094_v51 }
 0x616   : > { %22630 = vmatpush3.msk.msra.mxu0 %vm3108_vm15, %v25176_v42  ;;  %22631 = vmatprep.mubr.msk.f32.mxu0 %vm24312_vm14, %v30506_v58 }
 0x617   : > { %22639 = vmatprep.subr.mxu0 %v30506_v58 }
 0x619   : > { %22632 = vmatmul.mubr.msk.f32.vlgmr.msra.gmra.mrb[26].mxu0 %vm3104_vm8, %v3096_v44 }
 0x61a   : > { %22640 = vmatpush3.msk.msra.mxu0 %vm3108_vm15, %v25180_v45  ;;  %22641 = vmatprep.mubr.msk.f32.mxu0 %vm24312_vm14, %v30506_v58 }
 0x61b   : > { %v23710_v63 = vpop.eup %23709  ;;  %22649 = vmatprep.subr.mxu0 %v30506_v58 }
 0x61c   : > { %v3097_v42 = vmul.f32 %v23710_v63, %v25204_v36 }
 0x61e   : > { %22637 = vmatmul.mubr.msk.f32.vlgmr.msra.gmra.mrb[26].mxu1 %vm3104_vm8, %v3097_v42 }
 0x61f   : > { %22645 = vmatpush3.msk.msra.mxu1 %vm3108_vm15, %v25190_v38  ;;  %22646 = vmatprep.mubr.msk.f32.mxu1 %vm24312_vm14, %v30506_v58 }
 0x620   : > { %22654 = vmatprep.subr.mxu1 %v30506_v58 }
 0x63c   : > { %v3076_v45 = vpop.xlane.xlu0 %3075 }
 0x63d   : > { %23711 = vrcp.f32 %v3076_v45 }
 0x640   : > { %v3082_v4 = vpop.xlane.xlu0 %3081 }
 0x641   : > { %23713 = vrcp.f32 %v3082_v4 }
 0x644   : > { %v3877_v36 = vpop.permute.xlu0 %3876 }
 0x645   : > { %v3079_v25 = vpop.xlane.xlu1 %3078 }
 0x646   : > { %23715 = vrcp.f32 %v3079_v25 }
 0x647   : > { %v23712_v27 = vpop.eup %23711 }
 0x648   : > { %v3098_v59 = vmul.f32 %v23712_v27, %v25215_v55  ;;  %v4035_v14 = vpop.permute.xlu0 %4034 }
 0x649   : > { %v3085_v15 = vpop.xlane.xlu1 %3084 }
 0x64a   : > { %23717 = vrcp.f32 %v3085_v15  ;;  %22642 = vmatmul.mubr.msk.f32.vlgmr.msra.gmra.mrb[28].mxu0 %vm3104_vm8, %v3098_v59 }
 0x64b   : > { %v23714_v38 = vpop.eup %23713  ;;  %22650 = vmatpush3.msk.msra.mxu0 %vm3108_vm15, %v25184_v47  ;;  %22651 = vmatprep.mubr.msk.f32.mxu0 %vm24312_vm14, %v30506_v58 }
 0x64c   : > { %v3100_v34 = vmul.f32 %v23714_v38, %v25219_v17  ;;  %22659 = vmatprep.subr.mxu0 %v30506_v58  ;;  %v4033_v48 = vpop.permute.xlu0 %4032 }
 0x64e   : > { %22652 = vmatmul.mubr.msk.f32.vlgmr.msra.gmra.mrb[30].mxu0 %vm3104_vm8, %v3100_v34 }
 0x64f   : > { %22661 = vmatprep.mubr.msk.f32.mxu0 %vm24312_vm14, %v30506_v58 }
 0x650   : > { %v23716_v54 = vpop.eup %23715 }
 0x651   : > { %v3099_v6 = vmul.f32 %v23716_v54, %v25223_v33 }
 0x652   : > { %22660 = vmatpush3.xpose.msk.msra.mxu0 %vm2189_vm9, %v25188_v53  ;;  %v4113_v53 = vpop.permute.xlu1 %4112 }
 0x653   : > { %22647 = vmatmul.mubr.msk.f32.vlgmr.msra.gmra.mrb[28].mxu1 %vm3104_vm8, %v3099_v6  ;;  %22669 = vmatprep.subr.mxu0 %v30506_v58 }
 0x654   : > { %v23718_v47 = vpop.eup %23717  ;;  %22655 = vmatpush3.msk.msra.mxu1 %vm3108_vm15, %v25182_v46  ;;  %22656 = vmatprep.mubr.msk.f32.mxu1 %vm24312_vm14, %v30506_v58  ;;  %v4191_v46 = vpop.permute.xlu0 %4190 }
 0x655   : > { %22662 = vmatmul.mubr.msk.f32.vlgmr.msra.gmra.mrb[32].mxu0 %vm2189_vm9, %v25251_v43  ;;  %v3101_v55 = vmul.f32 %v23718_v47, %v25227_v52  ;;  %22664 = vmatprep.subr.mxu1 %v30506_v58 }
 0x656   : > { %22670 = vmatpush3.xpose.msk.msra.mxu0 %vm2189_vm9, %v3879_v3  ;;  %22671 = vmatprep.mubr.msk.f32.mxu0 %vm24312_vm14, %v30506_v58  ;;  %v4111_v56 = vpop.permute.xlu1 %4110 }
 0x657   : > { %22657 = vmatmul.mubr.msk.f32.vlgmr.msra.gmra.mrb[30].mxu1 %vm3104_vm8, %v3101_v55  ;;  %22679 = vmatprep.subr.mxu0 %v30506_v58 }
 0x658   : > { %22666 = vmatprep.mubr.msk.f32.mxu1 %vm24312_vm14, %v30506_v58  ;;  %v4189_v17 = vpop.permute.xlu0 %4188 }
 0x659   : > { %22672 = vmatmul.mubr.msk.f32.vlgmr.msra.gmra.mrb[34].mxu0 %vm2189_vm9, %v3877_v36 }
 0x65a   : > { %22680 = vmatpush3.xpose.msk.msra.mxu0 %vm2189_vm9, %v4035_v14  ;;  %22681 = vmatprep.mubr.msk.f32.mxu0 %vm24312_vm14, %v30506_v58 }
 0x65b   : > { %22665 = vmatpush3.xpose.msk.msra.mxu1 %vm2189_vm9, %v25186_v49  ;;  %22689 = vmatprep.subr.mxu0 %v30506_v58  ;;  %v4269_v49 = vpop.permute.xlu1 %4268 }
 0x65c   : > { %22674 = vmatprep.subr.mxu1 %v30506_v58 }
 0x65d   : > { %22682 = vmatmul.mubr.msk.f32.vlgmr.msra.gmra.mrb[36].mxu0 %vm2189_vm9, %v4033_v48 }
 0x65e   : > { %22690 = vmatpush3.xpose.msk.msra.mxu0 %vm2189_vm9, %v4191_v46  ;;  %22667 = vmatmul.mubr.msk.f32.vlgmr.msra.gmra.mrb[32].mxu1 %vm2189_vm9, %v25212_v11 }
 0x65f   : > { %22675 = vmatpush3.xpose.msk.msra.mxu1 %vm2189_vm9, %v25249_v57  ;;  %22691 = vmatprep.mubr.msk.f32.mxu0 %vm24312_vm14, %v30506_v58  ;;  %v4267_v11 = vpop.permute.xlu1 %4266 }
 0x660   : > { %22676 = vmatprep.mubr.msk.f32.mxu1 %vm24312_vm14, %v30506_v58  ;;  %22684 = vmatprep.subr.mxu1 %v30506_v58 }
 0x661   : > { %22692 = vmatmul.mubr.msk.f32.vlgmr.msra.gmra.mrb[38].mxu0 %vm2189_vm9, %v4189_v17  ;;  %22699 = vmatprep.subr.mxu0 %v30506_v58 }
 0x662   : > { %22677 = vmatmul.mubr.msk.f32.vlgmr.msra.gmra.mrb[34].mxu1 %vm2189_vm9, %v3955_v16  ;;  %22701 = vmatprep.mubr.msk.f32.mxu0 %vm24312_vm14, %v30506_v58 }
 0x663   : > { %22685 = vmatpush3.xpose.msk.msra.mxu1 %vm2189_vm9, %v4113_v53  ;;  %22686 = vmatprep.mubr.msk.f32.mxu1 %vm24312_vm14, %v30506_v58 }
 0x664   : > { %22694 = vmatprep.subr.mxu1 %v30506_v58 }
 0x666   : > { %22687 = vmatmul.mubr.msk.f32.vlgmr.msra.gmra.mrb[36].mxu1 %vm2189_vm9, %v4111_v56 }
 0x667   : > { %22695 = vmatpush3.xpose.msk.msra.mxu1 %vm2189_vm9, %v4269_v49  ;;  %22696 = vmatprep.mubr.msk.f32.mxu1 %vm24312_vm14, %v30506_v58 }
 0x668   : > { %22704 = vmatprep.subr.mxu1 %v30506_v58 }
 0x66a   : > { %22697 = vmatmul.mubr.msk.f32.vlgmr.msra.gmra.mrb[38].mxu1 %vm2189_vm9, %v4267_v11 }
 0x66b   : > { %22706 = vmatprep.mubr.msk.f32.mxu1 %vm24312_vm14, %v30506_v58 }
 0x6e3   : > { %v25348_v32 = vpop.f32.mrb[24].mxu1 }
 0x6e4   : > { %v22628_v33 = vpop.f32.mrb[25].mxu1 }
 0x6e8   : > { %v25350_v41 = vpop.f32.mrb[24].mxu0 }
 0x6e9   : > { %v22623_v52 = vpop.f32.mrb[25].mxu0 }
 0x6ec   : > { %v25352_v50 = vpop.f32.mrb[26].mxu0 }
 0x6ed   : > { %v22633_v57 = vpop.f32.mrb[27].mxu0 }
 0x6f1   : > { %v25354_v43 = vpop.f32.mrb[26].mxu1 }
 0x6f2   : > { %v22638_v8 = vpop.f32.mrb[27].mxu1 }
 0x71d   : > { %v25356_v62 = vpop.f32.mrb[28].mxu0 }
 0x71e   : > { %v22643_v1 = vpop.f32.mrb[29].mxu0 }
 0x721   : > { %v25358_v7 = vpop.f32.mrb[30].mxu0 }
 0x722   : > { %v22653_v60 = vpop.f32.mrb[31].mxu0 }
 0x726   : > { %v25360_v12 = vpop.f32.mrb[28].mxu1 }
 0x727   : > { %v22648_v28 = vpop.f32.mrb[29].mxu1 }
 0x728   : > { %v3794_v51 = vpop.f32.mrb[32].mxu0 }
 0x729   : > { %v4344_v13 = vmul.f32 0.35355338, %v3794_v51  ;;  %v22663_v44 = vpop.f32.mrb[33].mxu0 }
 0x72a   : > { %v25362_v63 = vpop.f32.mrb[30].mxu1 }
 0x72b   : > { %v4352_v42 = vsel %vm3013_vm0, %v4344_v13, -inf  ;;  %v22658_v3 = vpop.f32.mrb[31].mxu1 }
 0x72c   : > { %4353 = vmax.xlane.f32.xlu0 %v4352_v42  ;;  %v3950_v45 = vpop.f32.mrb[34].mxu0 }
 0x72d   : > { %v4346_v4 = vmul.f32 0.35355338, %v3950_v45  ;;  %v22673_v16 = vpop.f32.mrb[35].mxu0 }
 0x72f   : > { %v4358_v25 = vsel %vm3013_vm0, %v4346_v4, -inf }
 0x730   : > { %4359 = vmax.xlane.f32.xlu0 %v4358_v25  ;;  %v4106_v27 = vpop.f32.mrb[36].mxu0 }
 0x731   : > { %v22683_v36 = vpop.f32.mrb[37].mxu0  ;;  %v3872_v59 = vpop.f32.mrb[32].mxu1  ;;  %v4348_v55 = vmul.f32 0.35355338, %v4106_v27 }
 0x732   : > { %v4345_v15 = vmul.f32 0.35355338, %v3872_v59  ;;  %v22668_v38 = vpop.f32.mrb[33].mxu1 }
 0x733   : > { %v4364_v33 = vsel %vm3013_vm0, %v4348_v55, -inf }
 0x734   : > { %v4262_v34 = vpop.f32.mrb[38].mxu0  ;;  %v4355_v14 = vsel %vm3013_vm0, %v4345_v15, -inf }
 0x735   : > { %v22693_v54 = vpop.f32.mrb[39].mxu0  ;;  %4356 = vmax.xlane.f32.xlu1 %v4355_v14  ;;  %v4028_v6 = vpop.f32.mrb[34].mxu1  ;;  %v25368_v49 = vmul.f32 0.35355338, %v4262_v34 }
 0x736   : > { %v4347_v47 = vmul.f32 0.35355338, %v4028_v6  ;;  %v22678_v48 = vpop.f32.mrb[35].mxu1 }
 0x737   : > { %v4370_v8 = vsel %vm3013_vm0, %v25368_v49, -inf }
 0x738   : > { %v4361_v53 = vsel %vm3013_vm0, %v4347_v47, -inf }
 0x739   : > { %v4184_v46 = vpop.f32.mrb[36].mxu1  ;;  %4362 = vmax.xlane.f32.xlu0 %v4361_v53 }
 0x73a   : > { %v4349_v56 = vmul.f32 0.35355338, %v4184_v46  ;;  %v22688_v17 = vpop.f32.mrb[37].mxu1 }
 0x73c   : > { %v4367_v11 = vsel %vm3013_vm0, %v4349_v56, -inf }
 0x73d   : > { %4368 = vmax.xlane.f32.xlu1 %v4367_v11  ;;  %v4340_v52 = vpop.f32.mrb[38].mxu1  ;;  %4365 = vmax.xlane.f32.xlu0 %v4364_v33 }
 0x73e   : > { %v22698_v57 = vpop.f32.mrb[39].mxu1  ;;  %v25400_v1 = vmul.f32 0.35355338, %v4340_v52 }
 0x740   : > { %v4373_v60 = vsel %vm3013_vm0, %v25400_v1, -inf }
 0x741   : > { %4371 = vmax.xlane.f32.xlu0 %v4370_v8 }
 0x74e   : > { %4517 = vrot.lane.b32.xlu1 %v25055_v18, %s30490_s24 }
 0x752   : > { %4594 = vrot.lane.b32.xlu1 %v25049_v30, %s30490_s24 }
 0x756   : > { %4671 = vrot.lane.b32.xlu1 %v25063_v19, %s30490_s24 }
 0x757   : > { %4440 = vrot.lane.b32.xlu0 %v25047_v35, %s30490_s24 }
 0x75a   : > { %4825 = vrot.lane.b32.xlu1 %v25075_v39, %s30490_s24 }
 0x75b   : > { %4748 = vrot.lane.b32.xlu0 %v25067_v20, %s30490_s24 }
 0x75e   : > { %4979 = vrot.lane.b32.xlu1 %v25083_v40, %s30490_s24 }
 0x75f   : > { %4902 = vrot.lane.b32.xlu0 %v25069_v37, %s30490_s24  ;;  %s30779_s24 = smov 56  }
 0x762   : > { %5136 = vrot.lane.b32.xlu1 %v25055_v18, %s30488_s5 }
 0x763   : > { %5058 = vrot.lane.b32.xlu0 %v25047_v35, %s30488_s5 }
 0x766   : > { %5134 = vrot.lane.b32.xlu1 %v25055_v18, %s30486_s3 }
 0x767   : > { %5056 = vrot.lane.b32.xlu0 %v25047_v35, %s30486_s3 }
 0x76b   : > { %5214 = vrot.lane.b32.xlu0 %v25049_v30, %s30488_s5 }
 0x78a   : > { %4374 = vmax.xlane.f32.xlu1 %v4373_v60 }
 0x79b   : > { %5292 = vrot.lane.b32.xlu1 %v25063_v19, %s30488_s5 }
 0x7b9   : > { %v4354_v28 = vpop.xlane.xlu0 %4353 }
 0x7ba   : > { %v4376_v51 = vsub.f32 %v4344_v13, %v4354_v28 }
 0x7bc   : > { %v4384_v44 = vmul.f32 1.442695, %v4376_v51 }
 0x7bd   : > { %v4360_v42 = vpop.xlane.xlu0 %4359 }
 0x7be   : > { %23719 = vpow2.f32 %v4384_v44  ;;  %v4378_v3 = vsub.f32 %v4346_v4, %v4360_v42 }
 0x7c0   : > { %v4388_v45 = vmul.f32 1.442695, %v4378_v3 }
 0x7c2   : > { %23721 = vpow2.f32 %v4388_v45  ;;  %v4357_v16 = vpop.xlane.xlu1 %4356 }
 0x7c3   : > { %v4377_v25 = vsub.f32 %v4345_v15, %v4357_v16 }
 0x7c5   : > { %v4386_v27 = vmul.f32 1.442695, %v4377_v25 }
 0x7c6   : > { %v4363_v36 = vpop.xlane.xlu0 %4362 }
 0x7c7   : > { %23723 = vpow2.f32 %v4386_v27  ;;  %v4379_v59 = vsub.f32 %v4347_v47, %v4363_v36 }
 0x7c8   : > { %v25406_v38 = vpop.eup %23719 }
 0x7c9   : > { %v4390_v34 = vmul.f32 1.442695, %v4379_v59  ;;  %v4400_v14 = vsel %vm3013_vm0, %v25406_v38, 0.0 }
 0x7ca   : > { %4401 = vadd.xlane.f32.xlu0 %v4400_v14  ;;  %v4369_v13 = vpop.xlane.xlu1 %4368  ;;  %v4366_v54 = vpop.xlane.xlu0 %4365 }
 0x7cb   : > { %23725 = vpow2.f32 %v4390_v34  ;;  %v4381_v6 = vsub.f32 %v4349_v56, %v4369_v13  ;;  %v4380_v4 = vsub.f32 %v4348_v55, %v4366_v54 }
 0x7cc   : > { %v25410_v48 = vpop.eup %23721 }
 0x7cd   : > { %v4394_v53 = vmul.f32 1.442695, %v4381_v6  ;;  %v4392_v15 = vmul.f32 1.442695, %v4380_v4  ;;  %v4406_v46 = vsel %vm3013_vm0, %v25410_v48, 0.0 }
 0x7ce   : > { %4407 = vadd.xlane.f32.xlu0 %v4406_v46  ;;  %v4518_v47 = vpop.permute.xlu1 %4517  ;;  %v4372_v17 = vpop.xlane.xlu0 %4371 }
 0x7cf   : > { %23727 = vpow2.f32 %v4394_v53  ;;  %v4382_v11 = vsub.f32 %v25368_v49, %v4372_v17  ;;  %22705 = vmatpush3.msk.msra.mxu1 %vm3108_vm15, %v4518_v47 }
 0x7d0   : > { %23729 = vpow2.f32 %v4392_v15  ;;  %22714 = vmatprep.subr.mxu1 %v30506_v58 }
 0x7d1   : > { %v25417_v56 = vpop.eup %23723  ;;  %v4396_v55 = vmul.f32 1.442695, %v4382_v11 }
 0x7d2   : > { %v4441_v33 = vpop.permute.xlu0 %4440  ;;  %v4403_v52 = vsel %vm3013_vm0, %v25417_v56, 0.0  ;;  %v4595_v3 = vpop.permute.xlu1 %4594 }
 0x7d3   : > { %23731 = vpow2.f32 %v4396_v55  ;;  %4404 = vadd.xlane.f32.xlu1 %v4403_v52  ;;  %22700 = vmatpush3.msk.msra.mxu0 %vm3108_vm15, %v4441_v33 }
 0x7d4   : > { %22709 = vmatprep.subr.mxu0 %v30506_v58 }
 0x7d5   : > { %v25423_v57 = vpop.eup %23725 }
 0x7d6   : > { %v4409_v49 = vsel %vm3013_vm0, %v25423_v57, 0.0  ;;  %v25445_v45 = vpop.permute.xlu1 %4671  ;;  %v4749_v6 = vpop.permute.xlu0 %4748 }
 0x7d7   : > { %4410 = vadd.xlane.f32.xlu1 %v4409_v49 }
 0x7d9   : > { %v25427_v8 = vpop.eup %23727 }
 0x7da   : > { %v25429_v60 = vpop.eup %23729  ;;  %v4415_v28 = vsel %vm3013_vm0, %v25427_v8, 0.0  ;;  %v25449_v16 = vpop.permute.xlu1 %4825 }
 0x7db   : > { %4416 = vadd.xlane.f32.xlu1 %v4415_v28  ;;  %v4412_v51 = vsel %vm3013_vm0, %v25429_v60, 0.0  ;;  %v4903_v4 = vpop.permute.xlu0 %4902 }
 0x7dc   : > { %4413 = vadd.xlane.f32.xlu0 %v4412_v51 }
 0x7dd   : > { %v25435_v44 = vpop.eup %23731 }
 0x7de   : > { %v4418_v42 = vsel %vm3013_vm0, %v25435_v44, 0.0  ;;  %v25455_v25 = vpop.permute.xlu1 %4979 }
 0x7e0   : > { %4419 = vadd.xlane.f32.xlu0 %v4418_v42 }
 0x7e2   : > { %v25459_v27 = vpop.permute.xlu1 %5136 }
 0x7e6   : > { %v25465_v36 = vpop.permute.xlu1 %5134 }
 0x7ec   : > { %5290 = vrot.lane.b32.xlu1 %v25063_v19, %s30486_s3 }
 0x7f6   : > { %5212 = vrot.lane.b32.xlu0 %v25049_v30, %s30486_s3 }
 0x7fa   : > { %5370 = vrot.lane.b32.xlu0 %v25067_v20, %s30488_s5 }
 0x7fe   : > { %5368 = vrot.lane.b32.xlu0 %v25067_v20, %s30486_s3 }
 0x802   : > { %5526 = vrot.lane.b32.xlu0 %v25069_v37, %s30488_s5 }
 0x806   : > { %5524 = vrot.lane.b32.xlu0 %v25069_v37, %s30486_s3 }
 0x80a   : > { %5776 = vrot.lane.b32.xlu0 %v25047_v35, %s30478_s27 }
 0x80e   : > { %6084 = vrot.lane.b32.xlu0 %v25067_v20, %s30478_s27 }
 0x812   : > { %6238 = vrot.lane.b32.xlu0 %v25069_v37, %s30478_s27 }
 0x817   : > { %v4375_v59 = vpop.xlane.xlu1 %4374 }
 0x818   : > { %v4383_v34 = vsub.f32 %v25400_v1, %v4375_v59  ;;  %v25480_v1 = vpop.permute.xlu0 %5058 }
 0x81a   : > { %v4398_v14 = vmul.f32 1.442695, %v4383_v34 }
 0x81b   : > { %v25496_v17 = vpop.permute.xlu1 %5292 }
 0x81c   : > { %23733 = vpow2.f32 %v4398_v14  ;;  %v25484_v53 = vpop.permute.xlu0 %5056 }
 0x820   : > { %v25490_v15 = vpop.permute.xlu0 %5214 }
 0x826   : > { %v25468_v13 = vpop.eup %23733 }
 0x827   : > { %v4421_v54 = vsel %vm3013_vm0, %v25468_v13, 0.0 }
 0x828   : > { %4422 = vadd.xlane.f32.xlu1 %v4421_v54 }
 0x839   : > { %5448 = vrot.lane.b32.xlu1 %v25075_v39, %s30488_s5 }
 0x83d   : > { %5446 = vrot.lane.b32.xlu1 %v25075_v39, %s30486_s3 }
 0x841   : > { %5604 = vrot.lane.b32.xlu1 %v25083_v40, %s30488_s5  ;;  %s30780_s5 = smov 80  }
 0x845   : > { %5602 = vrot.lane.b32.xlu1 %v25083_v40, %s30486_s3  ;;  %s30783_s3 = smov 72  }
 0x849   : > { %5853 = vrot.lane.b32.xlu1 %v25055_v18, %s30478_s27 }
 0x84d   : > { %5930 = vrot.lane.b32.xlu1 %v25049_v30, %s30478_s27 }
 0x851   : > { %6007 = vrot.lane.b32.xlu1 %v25063_v19, %s30478_s27 }
 0x855   : > { %6161 = vrot.lane.b32.xlu1 %v25075_v39, %s30478_s27 }
 0x857   : > { %v4402_v46 = vpop.xlane.xlu0 %4401 }
 0x858   : > { %23735 = vrcp.f32 %v4402_v46 }
 0x859   : > { %6315 = vrot.lane.b32.xlu1 %v25083_v40, %s30478_s27  ;;  %s30480_s27 = smov 104  }
 0x85b   : > { %v4408_v47 = vpop.xlane.xlu0 %4407 }
 0x85c   : > { %23737 = vrcp.f32 %v4408_v47 }
 0x860   : > { %v4405_v11 = vpop.xlane.xlu1 %4404 }
 0x861   : > { %23739 = vrcp.f32 %v4405_v11 }
 0x862   : > { %v23736_v55 = vpop.eup %23735 }
 0x863   : > { %v4432_v33 = vmul.f32 %v23736_v55, %v25406_v38 }
 0x864   : > { %v4411_v52 = vpop.xlane.xlu1 %4410 }
 0x865   : > { %23741 = vrcp.f32 %v4411_v52  ;;  %22702 = vmatmul.mubr.msk.f32.vlgmr.msra.gmra.mrb[40].mxu0 %vm3104_vm8, %v4432_v33 }
 0x866   : > { %v23738_v49 = vpop.eup %23737  ;;  %22710 = vmatpush3.msk.msra.mxu0 %vm3108_vm15, %v4595_v3  ;;  %22711 = vmatprep.mubr.msk.f32.mxu0 %vm24312_vm14, %v30506_v58 }
 0x867   : > { %22719 = vmatprep.subr.mxu0 %v30506_v58  ;;  %v4434_v28 = vmul.f32 %v23738_v49, %v25410_v48 }
 0x868   : > { %v4417_v51 = vpop.xlane.xlu1 %4416 }
 0x869   : > { %23743 = vrcp.f32 %v4417_v51  ;;  %22712 = vmatmul.mubr.msk.f32.vlgmr.msra.gmra.mrb[42].mxu0 %vm3104_vm8, %v4434_v28  ;;  %v4414_v42 = vpop.xlane.xlu0 %4413 }
 0x86a   : > { %22720 = vmatpush3.msk.msra.mxu0 %vm3108_vm15, %v4749_v6  ;;  %23745 = vrcp.f32 %v4414_v42  ;;  %22721 = vmatprep.mubr.msk.f32.mxu0 %vm24312_vm14, %v30506_v58 }
 0x86b   : > { %v23740_v38 = vpop.eup %23739  ;;  %22729 = vmatprep.subr.mxu0 %v30506_v58 }
 0x86c   : > { %v4433_v3 = vmul.f32 %v23740_v38, %v25417_v56 }
 0x86d   : > { %v4420_v59 = vpop.xlane.xlu0 %4419 }
 0x86e   : > { %23747 = vrcp.f32 %v4420_v59  ;;  %22707 = vmatmul.mubr.msk.f32.vlgmr.msra.gmra.mrb[40].mxu1 %vm3104_vm8, %v4433_v3 }
 0x86f   : > { %v23742_v48 = vpop.eup %23741  ;;  %22715 = vmatpush3.msk.msra.mxu1 %vm3108_vm15, %v25445_v45  ;;  %22716 = vmatprep.mubr.msk.f32.mxu1 %vm24312_vm14, %v30506_v58 }
 0x870   : > { %22724 = vmatprep.subr.mxu1 %v30506_v58  ;;  %v4435_v34 = vmul.f32 %v23742_v48, %v25423_v57 }
 0x871   : > { %v5213_v14 = vpop.permute.xlu0 %5212 }
 0x872   : > { %22717 = vmatmul.mubr.msk.f32.vlgmr.msra.gmra.mrb[42].mxu1 %vm3104_vm8, %v4435_v34 }
 0x873   : > { %v23744_v54 = vpop.eup %23743  ;;  %22725 = vmatpush3.msk.msra.mxu1 %vm3108_vm15, %v25449_v16  ;;  %22726 = vmatprep.mubr.msk.f32.mxu1 %vm24312_vm14, %v30506_v58 }
 0x874   : > { %v23746_v56 = vpop.eup %23745  ;;  %22734 = vmatprep.subr.mxu1 %v30506_v58  ;;  %v4437_v45 = vmul.f32 %v23744_v54, %v25427_v8 }
 0x875   : > { %v4436_v6 = vmul.f32 %v23746_v56, %v25429_v60  ;;  %v5371_v46 = vpop.permute.xlu0 %5370 }
 0x876   : > { %22727 = vmatmul.mubr.msk.f32.vlgmr.msra.gmra.mrb[44].mxu1 %vm3104_vm8, %v4437_v45 }
 0x877   : > { %22722 = vmatmul.mubr.msk.f32.vlgmr.msra.gmra.mrb[44].mxu0 %vm3104_vm8, %v4436_v6  ;;  %22735 = vmatpush3.msk.msra.mxu1 %vm3108_vm15, %v25455_v25 }
 0x878   : > { %v23748_v57 = vpop.eup %23747  ;;  %22730 = vmatpush3.msk.msra.mxu0 %vm3108_vm15, %v4903_v4  ;;  %22731 = vmatprep.mubr.msk.f32.mxu0 %vm24312_vm14, %v30506_v58  ;;  %v5291_v4 = vpop.permute.xlu1 %5290 }
 0x879   : > { %v4438_v16 = vmul.f32 %v23748_v57, %v25435_v44  ;;  %22739 = vmatprep.subr.mxu0 %v30506_v58  ;;  %22736 = vmatprep.mubr.msk.f32.mxu1 %vm24312_vm14, %v30506_v58  ;;  %v5369_v8 = vpop.permute.xlu0 %5368 }
 0x87a   : > { %22744 = vmatprep.subr.mxu1 %v30506_v58 }
 0x87b   : > { %22732 = vmatmul.mubr.msk.f32.vlgmr.msra.gmra.mrb[46].mxu0 %vm3104_vm8, %v4438_v16 }
 0x87c   : > { %22741 = vmatprep.mubr.msk.f32.mxu0 %vm24312_vm14, %v30506_v58 }
 0x87d   : > { %v5527_v60 = vpop.permute.xlu0 %5526 }
 0x87f   : > { %22740 = vmatpush3.xpose.msk.msra.mxu0 %vm2189_vm9, %v25480_v1 }
 0x880   : > { %22749 = vmatprep.subr.mxu0 %v30506_v58 }
 0x881   : > { %v5525_v44 = vpop.permute.xlu0 %5524 }
 0x882   : > { %22742 = vmatmul.mubr.msk.f32.vlgmr.msra.gmra.mrb[48].mxu0 %vm2189_vm9, %v25484_v53 }
 0x883   : > { %22750 = vmatpush3.xpose.msk.msra.mxu0 %vm2189_vm9, %v25490_v15  ;;  %22751 = vmatprep.mubr.msk.f32.mxu0 %vm24312_vm14, %v30506_v58 }
 0x884   : > { %22759 = vmatprep.subr.mxu0 %v30506_v58 }
 0x885   : > { %v5777_v25 = vpop.permute.xlu0 %5776 }
 0x886   : > { %22752 = vmatmul.mubr.msk.f32.vlgmr.msra.gmra.mrb[50].mxu0 %vm2189_vm9, %v5213_v14 }
 0x887   : > { %22760 = vmatpush3.xpose.msk.msra.mxu0 %vm2189_vm9, %v5371_v46  ;;  %22761 = vmatprep.mubr.msk.f32.mxu0 %vm24312_vm14, %v30506_v58 }
 0x888   : > { %22769 = vmatprep.subr.mxu0 %v30506_v58 }
 0x88a   : > { %22762 = vmatmul.mubr.msk.f32.vlgmr.msra.gmra.mrb[52].mxu0 %vm2189_vm9, %v5369_v8 }
 0x88b   : > { %22770 = vmatpush3.xpose.msk.msra.mxu0 %vm2189_vm9, %v5527_v60  ;;  %22771 = vmatprep.mubr.msk.f32.mxu0 %vm24312_vm14, %v30506_v58 }
 0x88c   : > { %22779 = vmatprep.subr.mxu0 %v30506_v58 }
 0x88e   : > { %22772 = vmatmul.mubr.msk.f32.vlgmr.msra.gmra.mrb[54].mxu0 %vm2189_vm9, %v5525_v44 }
 0x88f   : > { %22780 = vmatpush3.msk.msra.mxu0 %vm3108_vm15, %v5777_v25  ;;  %22781 = vmatprep.mubr.msk.f32.mxu0 %vm24312_vm14, %v30506_v58 }
 0x890   : > { %22789 = vmatprep.subr.mxu0 %v30506_v58 }
 0x8b5   : > { %v4423_v1 = vpop.xlane.xlu1 %4422 }
 0x8b6   : > { %23749 = vrcp.f32 %v4423_v1 }
 0x8b9   : > { %v5449_v53 = vpop.permute.xlu1 %5448 }
 0x8bd   : > { %v5447_v47 = vpop.permute.xlu1 %5446 }
 0x8c0   : > { %v23750_v15 = vpop.eup %23749 }
 0x8c1   : > { %v4439_v11 = vmul.f32 %v23750_v15, %v25468_v13  ;;  %v5605_v55 = vpop.permute.xlu1 %5604 }
 0x8c3   : > { %22737 = vmatmul.mubr.msk.f32.vlgmr.msra.gmra.mrb[46].mxu1 %vm3104_vm8, %v4439_v11 }
 0x8c4   : > { %22745 = vmatpush3.xpose.msk.msra.mxu1 %vm2189_vm9, %v25459_v27  ;;  %22746 = vmatprep.mubr.msk.f32.mxu1 %vm24312_vm14, %v30506_v58 }
 0x8c5   : > { %22754 = vmatprep.subr.mxu1 %v30506_v58  ;;  %v5603_v27 = vpop.permute.xlu1 %5602 }
 0x8c7   : > { %22747 = vmatmul.mubr.msk.f32.vlgmr.msra.gmra.mrb[48].mxu1 %vm2189_vm9, %v25465_v36 }
 0x8c8   : > { %22755 = vmatpush3.xpose.msk.msra.mxu1 %vm2189_vm9, %v25496_v17  ;;  %22756 = vmatprep.mubr.msk.f32.mxu1 %vm24312_vm14, %v30506_v58 }
 0x8c9   : > { %22764 = vmatprep.subr.mxu1 %v30506_v58  ;;  %v5854_v36 = vpop.permute.xlu1 %5853 }
 0x8cb   : > { %22757 = vmatmul.mubr.msk.f32.vlgmr.msra.gmra.mrb[50].mxu1 %vm2189_vm9, %v5291_v4 }
 0x8cc   : > { %22765 = vmatpush3.xpose.msk.msra.mxu1 %vm2189_vm9, %v5449_v53  ;;  %22766 = vmatprep.mubr.msk.f32.mxu1 %vm24312_vm14, %v30506_v58 }
 0x8cd   : > { %22774 = vmatprep.subr.mxu1 %v30506_v58 }
 0x8cf   : > { %22767 = vmatmul.mubr.msk.f32.vlgmr.msra.gmra.mrb[52].mxu1 %vm2189_vm9, %v5447_v47 }
 0x8d0   : > { %22775 = vmatpush3.xpose.msk.msra.mxu1 %vm2189_vm9, %v5605_v55  ;;  %22776 = vmatprep.mubr.msk.f32.mxu1 %vm24312_vm14, %v30506_v58 }
 0x8d1   : > { %22784 = vmatprep.subr.mxu1 %v30506_v58 }
 0x8d3   : > { %22777 = vmatmul.mubr.msk.f32.vlgmr.msra.gmra.mrb[54].mxu1 %vm2189_vm9, %v5603_v27 }
 0x8d4   : > { %22785 = vmatpush3.msk.msra.mxu1 %vm3108_vm15, %v5854_v36  ;;  %22786 = vmatprep.mubr.msk.f32.mxu1 %vm24312_vm14, %v30506_v58 }
 0x8d5   : > { %22794 = vmatprep.subr.mxu1 %v30506_v58 }
 0x938   : > { %v25595_v13 = vpop.f32.mrb[40].mxu0 }
 0x939   : > { %v22703_v17 = vpop.f32.mrb[41].mxu0 }
 0x93c   : > { %v25597_v33 = vpop.f32.mrb[42].mxu0 }
 0x93d   : > { %v22713_v52 = vpop.f32.mrb[43].mxu0 }
 0x941   : > { %v25599_v49 = vpop.f32.mrb[40].mxu1 }
 0x942   : > { %v22708_v28 = vpop.f32.mrb[41].mxu1 }
 0x945   : > { %v25601_v51 = vpop.f32.mrb[42].mxu1 }
 0x946   : > { %v22718_v42 = vpop.f32.mrb[43].mxu1 }
 0x949   : > { %v25603_v38 = vpop.f32.mrb[44].mxu1 }
 0x94a   : > { %v25605_v3 = vpop.f32.mrb[44].mxu0  ;;  %v22728_v59 = vpop.f32.mrb[45].mxu1 }
 0x94b   : > { %v22723_v48 = vpop.f32.mrb[45].mxu0 }
 0x94e   : > { %v25607_v34 = vpop.f32.mrb[46].mxu0 }
 0x94f   : > { %v22733_v14 = vpop.f32.mrb[47].mxu0 }
 0x955   : > { %v5130_v54 = vpop.f32.mrb[48].mxu0 }
 0x956   : > { %v5680_v56 = vmul.f32 0.35355338, %v5130_v54  ;;  %v22743_v45 = vpop.f32.mrb[49].mxu0 }
 0x958   : > { %v5688_v6 = vsel %vm3013_vm0, %v5680_v56, -inf }
 0x959   : > { %5689 = vmax.xlane.f32.xlu0 %v5688_v6  ;;  %v5286_v46 = vpop.f32.mrb[50].mxu0 }
 0x95a   : > { %v5682_v57 = vmul.f32 0.35355338, %v5286_v46  ;;  %v22753_v16 = vpop.f32.mrb[51].mxu0 }
 0x95c   : > { %v5694_v8 = vsel %vm3013_vm0, %v5682_v57, -inf }
 0x95d   : > { %5695 = vmax.xlane.f32.xlu0 %v5694_v8  ;;  %v5442_v60 = vpop.f32.mrb[52].mxu0 }
 0x95e   : > { %v22763_v44 = vpop.f32.mrb[53].mxu0  ;;  %v5684_v52 = vmul.f32 0.35355338, %v5442_v60 }
 0x95f   : > { %v25632_v44 = vpop.permute.xlu0 %6084 }
 0x960   : > { %v5700_v45 = vsel %vm3013_vm0, %v5684_v52, -inf }
 0x961   : > { %v5598_v25 = vpop.f32.mrb[54].mxu0 }
 0x962   : > { %v22773_v4 = vpop.f32.mrb[55].mxu0  ;;  %v25617_v14 = vmul.f32 0.35355338, %v5598_v25 }
 0x963   : > { %v25634_v25 = vpop.permute.xlu0 %6238 }
 0x964   : > { %v5706_v16 = vsel %vm3013_vm0, %v25617_v14, -inf }
 0x996   : > { %v25611_v1 = vpop.f32.mrb[46].mxu1 }
 0x997   : > { %v22738_v53 = vpop.f32.mrb[47].mxu1 }
 0x99a   : > { %v5208_v15 = vpop.f32.mrb[48].mxu1 }
 0x99b   : > { %v5681_v47 = vmul.f32 0.35355338, %v5208_v15  ;;  %v22748_v11 = vpop.f32.mrb[49].mxu1 }
 0x99d   : > { %v5691_v55 = vsel %vm3013_vm0, %v5681_v47, -inf }
 0x99e   : > { %5692 = vmax.xlane.f32.xlu1 %v5691_v55  ;;  %v5364_v27 = vpop.f32.mrb[50].mxu1 }
 0x99f   : > { %v5683_v36 = vmul.f32 0.35355338, %v5364_v27  ;;  %v22758_v17 = vpop.f32.mrb[51].mxu1 }
 0x9a1   : > { %v5697_v28 = vsel %vm3013_vm0, %v5683_v36, -inf }
 0x9a2   : > { %v5520_v42 = vpop.f32.mrb[52].mxu1  ;;  %5698 = vmax.xlane.f32.xlu0 %v5697_v28 }
 0x9a3   : > { %v25615_v59 = vmul.f32 0.35355338, %v5520_v42  ;;  %v22768_v48 = vpop.f32.mrb[53].mxu1 }
 0x9a5   : > { %v5703_v54 = vsel %vm3013_vm0, %v25615_v59, -inf }
 0x9a6   : > { %5704 = vmax.xlane.f32.xlu1 %v5703_v54  ;;  %v5676_v6 = vpop.f32.mrb[54].mxu1  ;;  %5701 = vmax.xlane.f32.xlu0 %v5700_v45  ;;  %v5931_v54 = vpop.permute.xlu1 %5930 }
 0x9a7   : > { %v22778_v46 = vpop.f32.mrb[55].mxu1  ;;  %v25628_v8 = vmul.f32 0.35355338, %v5676_v6 }
 0x9a9   : > { %v5709_v60 = vsel %vm3013_vm0, %v25628_v8, -inf }
 0x9aa   : > { %5707 = vmax.xlane.f32.xlu0 %v5706_v16  ;;  %v25641_v45 = vpop.permute.xlu1 %6007 }
 0x9b7   : > { %6472 = vrot.lane.b32.xlu1 %v25055_v18, %s30484_s1 }
 0x9c0   : > { %6394 = vrot.lane.b32.xlu0 %v25047_v35, %s30484_s1 }
 0x9db   : > { %5710 = vmax.xlane.f32.xlu1 %v5709_v60 }
 0x9e6   : > { %v5690_v4 = vpop.xlane.xlu0 %5689 }
 0x9e7   : > { %v5712_v53 = vsub.f32 %v5680_v56, %v5690_v4  ;;  %v25643_v56 = vpop.permute.xlu1 %6161 }
 0x9e9   : > { %v5720_v15 = vmul.f32 1.442695, %v5712_v53 }
 0x9ea   : > { %v5696_v11 = vpop.xlane.xlu0 %5695 }
 0x9eb   : > { %23751 = vpow2.f32 %v5720_v15  ;;  %v5714_v55 = vsub.f32 %v5682_v57, %v5696_v11  ;;  %v25645_v6 = vpop.permute.xlu1 %6315 }
 0x9ed   : > { %v5724_v27 = vmul.f32 1.442695, %v5714_v55 }
 0x9ef   : > { %23753 = vpow2.f32 %v5724_v27 }
 0x9f5   : > { %v23752_v17 = vpop.eup %23751 }
 0x9f6   : > { %v5736_v28 = vsel %vm3013_vm0, %v23752_v17, 0.0 }
 0x9f7   : > { %5737 = vadd.xlane.f32.xlu0 %v5736_v28 }
 0x9f9   : > { %v25637_v42 = vpop.eup %23753 }
 0x9fa   : > { %v5742_v48 = vsel %vm3013_vm0, %v25637_v42, 0.0 }
 0x9fb   : > { %5743 = vadd.xlane.f32.xlu0 %v5742_v48 }
 0xa2b   : > { %v5693_v57 = vpop.xlane.xlu1 %5692 }
 0xa2c   : > { %v5713_v46 = vsub.f32 %v5681_v47, %v5693_v57 }
 0xa2e   : > { %v5722_v16 = vmul.f32 1.442695, %v5713_v46 }
 0xa2f   : > { %v5699_v60 = vpop.xlane.xlu0 %5698 }
 0xa30   : > { %23755 = vpow2.f32 %v5722_v16  ;;  %v5715_v4 = vsub.f32 %v5683_v36, %v5699_v60 }
 0xa32   : > { %v5726_v53 = vmul.f32 1.442695, %v5715_v4 }
 0xa33   : > { %v5702_v15 = vpop.xlane.xlu0 %5701 }
 0xa34   : > { %23757 = vpow2.f32 %v5726_v53  ;;  %v5716_v11 = vsub.f32 %v5684_v52, %v5702_v15  ;;  %v5705_v52 = vpop.xlane.xlu1 %5704 }
 0xa35   : > { %v5717_v46 = vsub.f32 %v25615_v59, %v5705_v52 }
 0xa36   : > { %v5728_v55 = vmul.f32 1.442695, %v5716_v11 }
 0xa37   : > { %v5708_v16 = vpop.xlane.xlu0 %5707  ;;  %v5730_v60 = vmul.f32 1.442695, %v5717_v46 }
 0xa38   : > { %23759 = vpow2.f32 %v5728_v55  ;;  %v5718_v4 = vsub.f32 %v25617_v14, %v5708_v16 }
 0xa39   : > { %23761 = vpow2.f32 %v5730_v60 }
 0xa3a   : > { %v25647_v27 = vpop.eup %23755  ;;  %v5732_v53 = vmul.f32 1.442695, %v5718_v4 }
 0xa3b   : > { %v5739_v28 = vsel %vm3013_vm0, %v25647_v27, 0.0  ;;  %v25673_v59 = vpop.permute.xlu0 %6394 }
 0xa3c   : > { %5740 = vadd.xlane.f32.xlu1 %v5739_v28  ;;  %23763 = vpow2.f32 %v5732_v53 }
 0xa3e   : > { %v25651_v48 = vpop.eup %23757 }
 0xa3f   : > { %v5745_v47 = vsel %vm3013_vm0, %v25651_v48, 0.0 }
 0xa40   : > { %5746 = vadd.xlane.f32.xlu1 %v5745_v47 }
 0xa42   : > { %v25655_v57 = vpop.eup %23759 }
 0xa43   : > { %v5748_v36 = vsel %vm3013_vm0, %v25655_v57, 0.0  ;;  %v25665_v15 = vpop.eup %23761 }
 0xa44   : > { %5749 = vadd.xlane.f32.xlu0 %v5748_v36  ;;  %v5751_v11 = vsel %vm3013_vm0, %v25665_v15, 0.0  ;;  %v25677_v36 = vpop.permute.xlu1 %6472 }
 0xa46   : > { %v25669_v55 = vpop.eup %23763 }
 0xa47   : > { %v5754_v28 = vsel %vm3013_vm0, %v25669_v55, 0.0 }
 0xa51   : > { %6470 = vrot.lane.b32.xlu1 %v25055_v18, %s30480_s27 }
 0xa5a   : > { %6392 = vrot.lane.b32.xlu0 %v25047_v35, %s30480_s27 }
 0xa68   : > { %v5711_v16 = vpop.xlane.xlu1 %5710 }
 0xa69   : > { %v5719_v4 = vsub.f32 %v25628_v8, %v5711_v16 }
 0xa75   : > { %5752 = vadd.xlane.f32.xlu1 %v5751_v11 }
 0xa79   : > { %5755 = vadd.xlane.f32.xlu0 %v5754_v28 }
 0xa84   : > { %v5738_v47 = vpop.xlane.xlu0 %5737 }
 0xa85   : > { %23765 = vrcp.f32 %v5738_v47 }
 0xa86   : > { %6628 = vrot.lane.b32.xlu1 %v25063_v19, %s30484_s1 }
 0xa88   : > { %v5744_v14 = vpop.xlane.xlu0 %5743 }
 0xa89   : > { %23767 = vrcp.f32 %v5744_v14 }
 0xa8f   : > { %v23766_v52 = vpop.eup %23765  ;;  %6550 = vrot.lane.b32.xlu0 %v25049_v30, %s30484_s1 }
 0xa90   : > { %v5768_v46 = vmul.f32 %v23766_v52, %v23752_v17  ;;  %v5734_v17 = vmul.f32 1.442695, %v5719_v4 }
 0xa92   : > { %22782 = vmatmul.mubr.msk.f32.vlgmr.msra.gmra.mrb[56].mxu0 %vm3104_vm8, %v5768_v46  ;;  %23769 = vpow2.f32 %v5734_v17 }
 0xa93   : > { %v23768_v60 = vpop.eup %23767  ;;  %22790 = vmatpush3.msk.msra.mxu0 %vm3108_vm15, %v5931_v54  ;;  %22791 = vmatprep.mubr.msk.f32.mxu0 %vm24312_vm14, %v30506_v58 }
 0xa94   : > { %6548 = vrot.lane.b32.xlu0 %v25049_v30, %s30480_s27  ;;  %22799 = vmatprep.subr.mxu0 %v30506_v58  ;;  %v5770_v53 = vmul.f32 %v23768_v60, %v25637_v42 }
 0xa96   : > { %22792 = vmatmul.mubr.msk.f32.vlgmr.msra.gmra.mrb[58].mxu0 %vm3104_vm8, %v5770_v53 }
 0xa97   : > { %22800 = vmatpush3.msk.msra.mxu0 %vm3108_vm15, %v25632_v44  ;;  %22801 = vmatprep.mubr.msk.f32.mxu0 %vm24312_vm14, %v30506_v58 }
 0xa98   : > { %6706 = vrot.lane.b32.xlu0 %v25067_v20, %s30484_s1  ;;  %22809 = vmatprep.subr.mxu0 %v30506_v58 }
 0xa9c   : > { %6704 = vrot.lane.b32.xlu0 %v25067_v20, %s30480_s27  ;;  %v25704_v8 = vpop.eup %23769 }
 0xa9d   : > { %v5757_v44 = vsel %vm3013_vm0, %v25704_v8, 0.0 }
 0xaa0   : > { %6862 = vrot.lane.b32.xlu0 %v25069_v37, %s30484_s1 }
 0xaa4   : > { %6860 = vrot.lane.b32.xlu0 %v25069_v37, %s30480_s27 }
 0xaaa   : > { %5758 = vadd.xlane.f32.xlu1 %v5757_v44 }
 0xabb   : > { %6626 = vrot.lane.b32.xlu1 %v25063_v19, %s30480_s27 }
 0xabf   : > { %6784 = vrot.lane.b32.xlu1 %v25075_v39, %s30484_s1 }
 0xac3   : > { %6782 = vrot.lane.b32.xlu1 %v25075_v39, %s30480_s27 }
 0xac7   : > { %6940 = vrot.lane.b32.xlu1 %v25083_v40, %s30484_s1  ;;  %s30784_s1 = smov 104  }
 0xac9   : > { %v5741_v42 = vpop.xlane.xlu1 %5740 }
 0xaca   : > { %23771 = vrcp.f32 %v5741_v42 }
 0xacb   : > { %6938 = vrot.lane.b32.xlu1 %v25083_v40, %s30480_s27  ;;  %s30482_s27 = smov 40  }
 0xacd   : > { %v5747_v54 = vpop.xlane.xlu1 %5746 }
 0xace   : > { %23773 = vrcp.f32 %v5747_v54 }
 0xad1   : > { %v5750_v11 = vpop.xlane.xlu0 %5749 }
 0xad2   : > { %23775 = vrcp.f32 %v5750_v11 }
 0xad4   : > { %v23772_v28 = vpop.eup %23771 }
 0xad5   : > { %v5769_v47 = vmul.f32 %v23772_v28, %v25647_v27  ;;  %v6393_v46 = vpop.permute.xlu0 %6392 }
 0xad7   : > { %22787 = vmatmul.mubr.msk.f32.vlgmr.msra.gmra.mrb[56].mxu1 %vm3104_vm8, %v5769_v47 }
 0xad8   : > { %v23774_v14 = vpop.eup %23773  ;;  %22795 = vmatpush3.msk.msra.mxu1 %vm3108_vm15, %v25641_v45  ;;  %22796 = vmatprep.mubr.msk.f32.mxu1 %vm24312_vm14, %v30506_v58 }
 0xad9   : > { %22804 = vmatprep.subr.mxu1 %v30506_v58  ;;  %v5771_v52 = vmul.f32 %v23774_v14, %v25651_v48  ;;  %v6471_v48 = vpop.permute.xlu1 %6470 }
 0xadb   : > { %22797 = vmatmul.mubr.msk.f32.vlgmr.msra.gmra.mrb[58].mxu1 %vm3104_vm8, %v5771_v52 }
 0xadc   : > { %22805 = vmatpush3.msk.msra.mxu1 %vm3108_vm15, %v25643_v56  ;;  %22806 = vmatprep.mubr.msk.f32.mxu1 %vm24312_vm14, %v30506_v58  ;;  %v23776_v27 = vpop.eup %23775 }
 0xadd   : > { %22814 = vmatprep.subr.mxu1 %v30506_v58  ;;  %v5772_v45 = vmul.f32 %v23776_v27, %v25655_v57 }
 0xadf   : > { %22802 = vmatmul.mubr.msk.f32.vlgmr.msra.gmra.mrb[60].mxu0 %vm3104_vm8, %v5772_v45 }
 0xae0   : > { %22810 = vmatpush3.msk.msra.mxu0 %vm3108_vm15, %v25634_v25  ;;  %22811 = vmatprep.mubr.msk.f32.mxu0 %vm24312_vm14, %v30506_v58 }
 0xae1   : > { %22819 = vmatprep.subr.mxu0 %v30506_v58 }
 0xb02   : > { %v5753_v56 = vpop.xlane.xlu1 %5752 }
 0xb03   : > { %23777 = vrcp.f32 %v5753_v56 }
 0xb06   : > { %v5756_v16 = vpop.xlane.xlu0 %5755 }
 0xb07   : > { %23779 = vrcp.f32 %v5756_v16 }
 0xb0a   : > { %v6551_v60 = vpop.permute.xlu0 %6550 }
 0xb0d   : > { %v23778_v4 = vpop.eup %23777 }
 0xb0e   : > { %v5773_v57 = vmul.f32 %v23778_v4, %v25665_v15  ;;  %v6549_v53 = vpop.permute.xlu0 %6548 }
 0xb10   : > { %22807 = vmatmul.mubr.msk.f32.vlgmr.msra.gmra.mrb[60].mxu1 %vm3104_vm8, %v5773_v57 }
 0xb11   : > { %22815 = vmatpush3.msk.msra.mxu1 %vm3108_vm15, %v25645_v6  ;;  %22816 = vmatprep.mubr.msk.f32.mxu1 %vm24312_vm14, %v30506_v58  ;;  %v23780_v25 = vpop.eup %23779 }
 0xb12   : > { %22824 = vmatprep.subr.mxu1 %v30506_v58  ;;  %v6707_v17 = vpop.permute.xlu0 %6706  ;;  %v5774_v44 = vmul.f32 %v23780_v25, %v25669_v55 }
 0xb14   : > { %22812 = vmatmul.mubr.msk.f32.vlgmr.msra.gmra.mrb[62].mxu0 %vm3104_vm8, %v5774_v44 }
 0xb15   : > { %22820 = vmatpush3.xpose.msk.msra.mxu0 %vm2189_vm9, %v25673_v59  ;;  %22821 = vmatprep.mubr.msk.f32.mxu0 %vm24312_vm14, %v30506_v58  ;;  %v6629_v59 = vpop.permute.xlu1 %6628 }
 0xb16   : > { %22829 = vmatprep.subr.mxu0 %v30506_v58  ;;  %v6705_v6 = vpop.permute.xlu0 %6704 }
 0xb18   : > { %22822 = vmatmul.mubr.msk.f32.vlgmr.msra.gmra.mrb[64].mxu0 %vm2189_vm9, %v6393_v46 }
 0xb19   : > { %22830 = vmatpush3.xpose.msk.msra.mxu0 %vm2189_vm9, %v6551_v60  ;;  %22831 = vmatprep.mubr.msk.f32.mxu0 %vm24312_vm14, %v30506_v58 }
 0xb1a   : > { %22839 = vmatprep.subr.mxu0 %v30506_v58  ;;  %v6863_v15 = vpop.permute.xlu0 %6862 }
 0xb1c   : > { %22832 = vmatmul.mubr.msk.f32.vlgmr.msra.gmra.mrb[66].mxu0 %vm2189_vm9, %v6549_v53 }
 0xb1d   : > { %22840 = vmatpush3.xpose.msk.msra.mxu0 %vm2189_vm9, %v6707_v17  ;;  %22841 = vmatprep.mubr.msk.f32.mxu0 %vm24312_vm14, %v30506_v58 }
 0xb1e   : > { %22849 = vmatprep.subr.mxu0 %v30506_v58  ;;  %v6861_v55 = vpop.permute.xlu0 %6860 }
 0xb20   : > { %22842 = vmatmul.mubr.msk.f32.vlgmr.msra.gmra.mrb[68].mxu0 %vm2189_vm9, %v6705_v6 }
 0xb21   : > { %22850 = vmatpush3.xpose.msk.msra.mxu0 %vm2189_vm9, %v6863_v15  ;;  %22851 = vmatprep.mubr.msk.f32.mxu0 %vm24312_vm14, %v30506_v58 }
 0xb22   : > { %22859 = vmatprep.subr.mxu0 %v30506_v58 }
 0xb24   : > { %22852 = vmatmul.mubr.msk.f32.vlgmr.msra.gmra.mrb[70].mxu0 %vm2189_vm9, %v6861_v55 }
 0xb25   : > { %22861 = vmatprep.mubr.msk.f32.mxu0 %vm24312_vm14, %v30506_v58 }
 0xb37   : > { %v5759_v42 = vpop.xlane.xlu1 %5758 }
 0xb38   : > { %23781 = vrcp.f32 %v5759_v42 }
 0xb3b   : > { %v6627_v54 = vpop.permute.xlu1 %6626 }
 0xb3f   : > { %v6785_v28 = vpop.permute.xlu1 %6784 }
 0xb42   : > { %v23782_v11 = vpop.eup %23781 }
 0xb43   : > { %v5775_v47 = vmul.f32 %v23782_v11, %v25704_v8  ;;  %v6783_v14 = vpop.permute.xlu1 %6782 }
 0xb45   : > { %22817 = vmatmul.mubr.msk.f32.vlgmr.msra.gmra.mrb[62].mxu1 %vm3104_vm8, %v5775_v47 }
 0xb46   : > { %22825 = vmatpush3.xpose.msk.msra.mxu1 %vm2189_vm9, %v25677_v36  ;;  %22826 = vmatprep.mubr.msk.f32.mxu1 %vm24312_vm14, %v30506_v58 }
 0xb47   : > { %22834 = vmatprep.subr.mxu1 %v30506_v58  ;;  %v6941_v8 = vpop.permute.xlu1 %6940 }
 0xb49   : > { %22827 = vmatmul.mubr.msk.f32.vlgmr.msra.gmra.mrb[64].mxu1 %vm2189_vm9, %v6471_v48 }
 0xb4a   : > { %22835 = vmatpush3.xpose.msk.msra.mxu1 %vm2189_vm9, %v6629_v59  ;;  %22836 = vmatprep.mubr.msk.f32.mxu1 %vm24312_vm14, %v30506_v58 }
 0xb4b   : > { %22844 = vmatprep.subr.mxu1 %v30506_v58  ;;  %v6939_v36 = vpop.permute.xlu1 %6938 }
 0xb4d   : > { %22837 = vmatmul.mubr.msk.f32.vlgmr.msra.gmra.mrb[66].mxu1 %vm2189_vm9, %v6627_v54 }
 0xb4e   : > { %22845 = vmatpush3.xpose.msk.msra.mxu1 %vm2189_vm9, %v6785_v28  ;;  %22846 = vmatprep.mubr.msk.f32.mxu1 %vm24312_vm14, %v30506_v58 }
 0xb4f   : > { %22854 = vmatprep.subr.mxu1 %v30506_v58 }
 0xb51   : > { %22847 = vmatmul.mubr.msk.f32.vlgmr.msra.gmra.mrb[68].mxu1 %vm2189_vm9, %v6783_v14 }
 0xb52   : > { %22855 = vmatpush3.xpose.msk.msra.mxu1 %vm2189_vm9, %v6941_v8  ;;  %22856 = vmatprep.mubr.msk.f32.mxu1 %vm24312_vm14, %v30506_v58 }
 0xb53   : > { %22864 = vmatprep.subr.mxu1 %v30506_v58 }
 0xb55   : > { %22857 = vmatmul.mubr.msk.f32.vlgmr.msra.gmra.mrb[70].mxu1 %vm2189_vm9, %v6939_v36 }
 0xb56   : > { %22866 = vmatprep.mubr.msk.f32.mxu1 %vm24312_vm14, %v30506_v58 }
 0xb65   : > { %v25796_v52 = vpop.f32.mrb[56].mxu0 }
 0xb66   : > { %v22783_v27 = vpop.f32.mrb[57].mxu0 }
 0xb69   : > { %v25798_v45 = vpop.f32.mrb[58].mxu0 }
 0xb6a   : > { %v22793_v48 = vpop.f32.mrb[59].mxu0 }
 0xbaa   : > { %v25800_v56 = vpop.f32.mrb[56].mxu1 }
 0xbab   : > { %v22788_v46 = vpop.f32.mrb[57].mxu1 }
 0xbae   : > { %v25802_v16 = vpop.f32.mrb[58].mxu1 }
 0xbaf   : > { %v22798_v60 = vpop.f32.mrb[59].mxu1 }
 0xbb2   : > { %v25804_v4 = vpop.f32.mrb[60].mxu0 }
 0xbb3   : > { %v22803_v57 = vpop.f32.mrb[61].mxu0 }
 0xbe3   : > { %v25806_v53 = vpop.f32.mrb[60].mxu1 }
 0xbe4   : > { %v22808_v25 = vpop.f32.mrb[61].mxu1 }
 0xbe7   : > { %v25808_v17 = vpop.f32.mrb[62].mxu0 }
 0xbe8   : > { %v22813_v44 = vpop.f32.mrb[63].mxu0 }
 0xbeb   : > { %v6466_v6 = vpop.f32.mrb[64].mxu0 }
 0xbec   : > { %v7016_v15 = vmul.f32 0.35355338, %v6466_v6  ;;  %v22823_v55 = vpop.f32.mrb[65].mxu0 }
 0xbee   : > { %v7024_v59 = vsel %vm3013_vm0, %v7016_v15, -inf }
 0xbef   : > { %7025 = vmax.xlane.f32.xlu0 %v7024_v59  ;;  %v6622_v42 = vpop.f32.mrb[66].mxu0 }
 0xbf0   : > { %v7018_v54 = vmul.f32 0.35355338, %v6622_v42  ;;  %v22833_v11 = vpop.f32.mrb[67].mxu0 }
 0xbf2   : > { %v7030_v28 = vsel %vm3013_vm0, %v7018_v54, -inf }
 0xbf3   : > { %7031 = vmax.xlane.f32.xlu0 %v7030_v28  ;;  %v6778_v47 = vpop.f32.mrb[68].mxu0 }
 0xbf4   : > { %v22843_v14 = vpop.f32.mrb[69].mxu0  ;;  %v7020_v59 = vmul.f32 0.35355338, %v6778_v47 }
 0xbf7   : > { %v6934_v8 = vpop.f32.mrb[70].mxu0 }
 0xbf8   : > { %v22853_v36 = vpop.f32.mrb[71].mxu0 }
 0xbf9   : > { %v25821_v36 = vmul.f32 0.35355338, %v6934_v8 }
 0xbfb   : > { %v7042_v47 = vsel %vm3013_vm0, %v25821_v36, -inf }
 0xc18   : > { %v25812_v27 = vpop.f32.mrb[62].mxu1 }
 0xc19   : > { %v22818_v48 = vpop.f32.mrb[63].mxu1 }
 0xc1c   : > { %v6544_v46 = vpop.f32.mrb[64].mxu1 }
 0xc1d   : > { %v7017_v60 = vmul.f32 0.35355338, %v6544_v46  ;;  %v22828_v57 = vpop.f32.mrb[65].mxu1  ;;  %v7036_v46 = vsel %vm3013_vm0, %v7020_v59, -inf }
 0xc1f   : > { %v7027_v25 = vsel %vm3013_vm0, %v7017_v60, -inf }
 0xc20   : > { %7028 = vmax.xlane.f32.xlu1 %v7027_v25  ;;  %v6700_v44 = vpop.f32.mrb[66].mxu1 }
 0xc21   : > { %v25815_v6 = vmul.f32 0.35355338, %v6700_v44  ;;  %v22838_v55 = vpop.f32.mrb[67].mxu1 }
 0xc23   : > { %v7033_v42 = vsel %vm3013_vm0, %v25815_v6, -inf }
 0xc24   : > { %v6856_v11 = vpop.f32.mrb[68].mxu1  ;;  %7034 = vmax.xlane.f32.xlu0 %v7033_v42 }
 0xc25   : > { %v25819_v28 = vmul.f32 0.35355338, %v6856_v11  ;;  %v22848_v14 = vpop.f32.mrb[69].mxu1 }
 0xc27   : > { %v7039_v48 = vsel %vm3013_vm0, %v25819_v28, -inf }
 0xc28   : > { %7040 = vmax.xlane.f32.xlu1 %v7039_v48  ;;  %v7012_v57 = vpop.f32.mrb[70].mxu1  ;;  %7037 = vmax.xlane.f32.xlu0 %v7036_v46 }
 0xc29   : > { %v22858_v25 = vpop.f32.mrb[71].mxu1  ;;  %v7023_v8 = vmul.f32 0.35355338, %v7012_v57 }
 0xc2b   : > { %v7045_v44 = vsel %vm3013_vm0, %v7023_v8, -inf }
 0xc2c   : > { %7043 = vmax.xlane.f32.xlu0 %v7042_v47 }
 0xc39   : > { %7189 = vrot.lane.b32.xlu1 %v25055_v18, %s30482_s27 }
 0xc42   : > { %7112 = vrot.lane.b32.xlu0 %v25047_v35, %s30482_s27 }
 0xc5d   : > { %7046 = vmax.xlane.f32.xlu1 %v7045_v44 }
 0xc7c   : > { %v7026_v55 = vpop.xlane.xlu0 %7025 }
 0xc7d   : > { %v7048_v42 = vsub.f32 %v7016_v15, %v7026_v55 }
 0xc7f   : > { %v7056_v11 = vmul.f32 1.442695, %v7048_v42 }
 0xc80   : > { %v7032_v14 = vpop.xlane.xlu0 %7031 }
 0xc81   : > { %23783 = vpow2.f32 %v7056_v11  ;;  %v7050_v48 = vsub.f32 %v7018_v54, %v7032_v14 }
 0xc83   : > { %v7060_v46 = vmul.f32 1.442695, %v7050_v48 }
 0xc85   : > { %23785 = vpow2.f32 %v7060_v46 }
 0xc8b   : > { %v23784_v25 = vpop.eup %23783 }
 0xc8c   : > { %v7072_v47 = vsel %vm3013_vm0, %v23784_v25, 0.0 }
 0xc8d   : > { %7073 = vadd.xlane.f32.xlu0 %v7072_v47 }
 0xc8f   : > { %v25834_v18 = vpop.eup %23785 }
 0xc90   : > { %v7078_v35 = vsel %vm3013_vm0, %v25834_v18, 0.0 }
 0xc91   : > { %7079 = vadd.xlane.f32.xlu0 %v7078_v35 }
 0xca7   : > { %7266 = vrot.lane.b32.xlu0 %v25049_v30, %s30482_s27 }
 0xcad   : > { %v7029_v15 = vpop.xlane.xlu1 %7028 }
 0xcae   : > { %v7049_v57 = vsub.f32 %v7017_v60, %v7029_v15 }
 0xcb0   : > { %v7058_v44 = vmul.f32 1.442695, %v7049_v57 }
 0xcb1   : > { %v7035_v55 = vpop.xlane.xlu0 %7034 }
 0xcb2   : > { %23787 = vpow2.f32 %v7058_v44  ;;  %v7051_v15 = vsub.f32 %v25815_v6, %v7035_v55 }
 0xcb4   : > { %v7062_v57 = vmul.f32 1.442695, %v7051_v15 }
 0xcb5   : > { %v7041_v54 = vpop.xlane.xlu1 %7040  ;;  %v7038_v42 = vpop.xlane.xlu0 %7037 }
 0xcb6   : > { %v7052_v11 = vsub.f32 %v7020_v59, %v7038_v42 }
 0xcb8   : > { %v7064_v14 = vmul.f32 1.442695, %v7052_v11 }
 0xcb9   : > { %v7190_v48 = vpop.permute.xlu1 %7189  ;;  %v7044_v46 = vpop.xlane.xlu0 %7043 }
 0xcba   : > { %22865 = vmatpush3.msk.msra.mxu1 %vm3108_vm15, %v7190_v48  ;;  %23789 = vpow2.f32 %v7064_v14 }
 0xcbb   : > { %22874 = vmatprep.subr.mxu1 %v30506_v58  ;;  %23791 = vpow2.f32 %v7062_v57 }
 0xcbc   : > { %v25842_v47 = vpop.eup %23787 }
 0xcbd   : > { %v7113_v35 = vpop.permute.xlu0 %7112  ;;  %v7075_v30 = vsel %vm3013_vm0, %v25842_v47, 0.0 }
 0xcbe   : > { %7076 = vadd.xlane.f32.xlu1 %v7075_v30  ;;  %22860 = vmatpush3.msk.msra.mxu0 %vm3108_vm15, %v7113_v35 }
 0xcbf   : > { %22869 = vmatprep.subr.mxu0 %v30506_v58 }
 0xcc4   : > { %v25848_v60 = vpop.eup %23789 }
 0xcc5   : > { %v7084_v59 = vsel %vm3013_vm0, %v25848_v60, 0.0  ;;  %v25857_v14 = vpop.eup %23791 }
 0xcc6   : > { %7085 = vadd.xlane.f32.xlu0 %v7084_v59  ;;  %v7081_v48 = vsel %vm3013_vm0, %v25857_v14, 0.0 }
 0xccf   : > { %7343 = vrot.lane.b32.xlu1 %v25063_v19, %s30482_s27 }
 0xcd3   : > { %7420 = vrot.lane.b32.xlu1 %v25067_v20, %s30482_s27  ;;  %v7053_v20 = vsub.f32 %v25819_v28, %v7041_v54 }
 0xcd5   : > { %v7066_v6 = vmul.f32 1.442695, %v7053_v20 }
 0xcea   : > { %v7047_v44 = vpop.xlane.xlu1 %7046 }
 0xceb   : > { %v7055_v42 = vsub.f32 %v7023_v8, %v7047_v44  ;;  %v7054_v8 = vsub.f32 %v25821_v36, %v7044_v46 }
 0xced   : > { %v7070_v11 = vmul.f32 1.442695, %v7055_v42 }
 0xcef   : > { %23793 = vpow2.f32 %v7070_v11 }
 0xcf7   : > { %7082 = vadd.xlane.f32.xlu1 %v7081_v48 }
 0xcf9   : > { %v25861_v35 = vpop.eup %23793 }
 0xcfa   : > { %v7093_v19 = vsel %vm3013_vm0, %v25861_v35, 0.0 }
 0xcfb   : > { %7094 = vadd.xlane.f32.xlu0 %v7093_v19 }
 0xd08   : > { %7497 = vrot.lane.b32.xlu1 %v25075_v39, %s30482_s27  ;;  %v7068_v39 = vmul.f32 1.442695, %v7054_v8 }
 0xd11   : > { %7574 = vrot.lane.b32.xlu0 %v25069_v37, %s30482_s27 }
 0xd15   : > { %7736 = vrot.lane.b32.xlu0 %v25595_v13, %s30498_s23 }
 0xd19   : > { %7740 = vrot.lane.b32.xlu0 %v25597_v33, %s30498_s23 }
 0xd1a   : > { %v7074_v55 = vpop.xlane.xlu0 %7073 }
 0xd1b   : > { %23795 = vrcp.f32 %v7074_v55 }
 0xd1c   : > { %23797 = vpow2.f32 %v7066_v6 }
 0xd1d   : > { %7768 = vrot.lane.b32.xlu0 %v25796_v52, %s30496_s25 }
 0xd1e   : > { %v7080_v30 = vpop.xlane.xlu0 %7079 }
 0xd1f   : > { %23799 = vrcp.f32 %v7080_v30 }
 0xd20   : > { %23801 = vpow2.f32 %v7068_v39 }
 0xd21   : > { %7772 = vrot.lane.b32.xlu0 %v25798_v45, %s30496_s25 }
 0xd22   : > { %v7267_v33 = vpop.permute.xlu0 %7266 }
 0xd25   : > { %v23796_v37 = vpop.eup %23795 }
 0xd26   : > { %v7104_v13 = vmul.f32 %v23796_v37, %v23784_v25  ;;  %v23798_v28 = vpop.eup %23797 }
 0xd27   : > { %v7087_v52 = vsel %vm3013_vm0, %v23798_v28, 0.0 }
 0xd28   : > { %22862 = vmatmul.mubr.msk.f32.vlgmr.msra.gmra.mrb[72].mxu0 %vm3104_vm8, %v7104_v13 }
 0xd29   : > { %v23800_v36 = vpop.eup %23799  ;;  %22870 = vmatpush3.msk.msra.mxu0 %vm3108_vm15, %v7267_v33  ;;  %22871 = vmatprep.mubr.msk.f32.mxu0 %vm24312_vm14, %v30506_v58  ;;  %v7849_v33 = vld [vmem:[%s30454_s10 + $0x8] sm:$0xff] }
 0xd2a   : > { %v7106_v54 = vmul.f32 %v23800_v36, %v25834_v18  ;;  %22879 = vmatprep.subr.mxu0 %v30506_v58  ;;  %v23802_v45 = vpop.eup %23801 }
 0xd2b   : > { %v7090_v25 = vsel %vm3013_vm0, %v23802_v45, 0.0 }
 0xd2c   : > { %7088 = vadd.xlane.f32.xlu1 %v7087_v52  ;;  %22872 = vmatmul.mubr.msk.f32.vlgmr.msra.gmra.mrb[74].mxu0 %vm3104_vm8, %v7106_v54  ;;  %v7851_v54 = vld [vmem:[%s30454_s10 + $0x18] sm:$0xff] }
 0xd2d   : > { %22881 = vmatprep.mubr.msk.f32.mxu0 %vm24312_vm14, %v30506_v58 }
 0xd30   : > { %7091 = vadd.xlane.f32.xlu1 %v7090_v25 }
 0xd41   : > { %7651 = vrot.lane.b32.xlu1 %v25083_v40, %s30482_s27  ;;  %s30645_s27 = smov 24  }
 0xd45   : > { %7738 = vrot.lane.b32.xlu1 %v25599_v49, %s30498_s23 }
 0xd49   : > { %7742 = vrot.lane.b32.xlu1 %v25601_v51, %s30498_s23 }
 0xd4b   : > { %v7077_v18 = vpop.xlane.xlu1 %7076 }
 0xd4c   : > { %23803 = vrcp.f32 %v7077_v18 }
 0xd4d   : > { %7770 = vrot.lane.b32.xlu1 %v25800_v56, %s30496_s25 }
 0xd4f   : > { %v7344_v46 = vpop.permute.xlu1 %7343 }
 0xd51   : > { %7774 = vrot.lane.b32.xlu1 %v25802_v16, %s30496_s25 }
 0xd53   : > { %v7421_v59 = vpop.permute.xlu1 %7420  ;;  %v7086_v15 = vpop.xlane.xlu0 %7085 }
 0xd54   : > { %22880 = vmatpush3.msk.msra.mxu0 %vm3108_vm15, %v7421_v59  ;;  %23805 = vrcp.f32 %v7086_v15 }
 0xd55   : > { %22889 = vmatprep.subr.mxu0 %v30506_v58 }
 0xd56   : > { %v23804_v40 = vpop.eup %23803 }
 0xd57   : > { %v7105_v49 = vmul.f32 %v23804_v40, %v25842_v47 }
 0xd59   : > { %22867 = vmatmul.mubr.msk.f32.vlgmr.msra.gmra.mrb[72].mxu1 %vm3104_vm8, %v7105_v49 }
 0xd5a   : > { %22875 = vmatpush3.msk.msra.mxu1 %vm3108_vm15, %v7344_v46  ;;  %22876 = vmatprep.mubr.msk.f32.mxu1 %vm24312_vm14, %v30506_v58 }
 0xd5b   : > { %22884 = vmatprep.subr.mxu1 %v30506_v58 }
 0xd5e   : > { %v23806_v51 = vpop.eup %23805 }
 0xd5f   : > { %v7108_v56 = vmul.f32 %v23806_v51, %v25848_v60 }
 0xd61   : > { %22882 = vmatmul.mubr.msk.f32.vlgmr.msra.gmra.mrb[76].mxu0 %vm3104_vm8, %v7108_v56 }
 0xd62   : > { %22891 = vmatprep.mubr.msk.f32.mxu0 %vm24312_vm14, %v30506_v58 }
 0xd84   : > { %v7083_v16 = vpop.xlane.xlu1 %7082 }
 0xd85   : > { %23807 = vrcp.f32 %v7083_v16 }
 0xd88   : > { %v7095_v47 = vpop.xlane.xlu0 %7094  ;;  %v7498_v11 = vpop.permute.xlu1 %7497 }
 0xd8c   : > { %v7575_v57 = vpop.permute.xlu0 %7574 }
 0xd8d   : > { %22890 = vmatpush3.msk.msra.mxu0 %vm3108_vm15, %v7575_v57 }
 0xd8f   : > { %v23808_v44 = vpop.eup %23807 }
 0xd90   : > { %v7107_v42 = vmul.f32 %v23808_v44, %v25857_v14  ;;  %v7737_v46 = vpop.permute.xlu0 %7736 }
 0xd92   : > { %22877 = vmatmul.mubr.msk.f32.vlgmr.msra.gmra.mrb[74].mxu1 %vm3104_vm8, %v7107_v42 }
 0xd93   : > { %22885 = vmatpush3.msk.msra.mxu1 %vm3108_vm15, %v7498_v11  ;;  %22886 = vmatprep.mubr.msk.f32.mxu1 %vm24312_vm14, %v30506_v58 }
 0xd94   : > { %22894 = vmatprep.subr.mxu1 %v30506_v58  ;;  %v7741_v15 = vpop.permute.xlu0 %7740 }
 0xd98   : > { %v7769_v49 = vpop.permute.xlu0 %7768 }
 0xd9c   : > { %v7773_v56 = vpop.permute.xlu0 %7772 }
 0xdb9   : > { %v7089_v60 = vpop.xlane.xlu1 %7088 }
 0xdba   : > { %23809 = vrcp.f32 %v7089_v60 }
 0xdbb   : > { %23811 = vrcp.f32 %v7095_v47 }
 0xdbd   : > { %v7092_v48 = vpop.xlane.xlu1 %7091 }
 0xdbe   : > { %23813 = vrcp.f32 %v7092_v48 }
 0xdc1   : > { %v7652_v8 = vpop.permute.xlu1 %7651 }
 0xdc4   : > { %v23810_v19 = vpop.eup %23809 }
 0xdc5   : > { %v7109_v20 = vmul.f32 %v23810_v19, %v23798_v28  ;;  %v23812_v6 = vpop.eup %23811  ;;  %v7739_v59 = vpop.permute.xlu1 %7738 }
 0xdc6   : > { %v7111_v39 = vmul.f32 %v23812_v6, %v25861_v35  ;;  %v7848_v35 = vld [vmem:[%s30454_s10] sm:$0xff] }
 0xdc7   : > { %22887 = vmatmul.mubr.msk.f32.vlgmr.msra.gmra.mrb[76].mxu1 %vm3104_vm8, %v7109_v20  ;;  %v23269_v36 = vpack.c.bf16 %v7849_v33, %v7848_v35 }
 0xdc8   : > { %v23814_v14 = vpop.eup %23813  ;;  %22895 = vmatpush3.msk.msra.mxu1 %vm3108_vm15, %v7652_v8  ;;  %22896 = vmatprep.mubr.msk.f32.mxu1 %vm24312_vm14, %v30506_v58  ;;  %v7826_v8 = vsel %vm2189_vm9, %v25352_v50, %v7741_v15 }
 0xdc9   : > { %v7110_v55 = vmul.f32 %v23814_v14, %v23802_v45  ;;  %23270 = vmatprep.subr.bf16.mxu0 %v23269_v36  ;;  %v7743_v40 = vpop.permute.xlu1 %7742 }
 0xdca   : > { %v7827_v14 = vsel %vm2189_vm9, %v25354_v43, %v7743_v40 }
 0xdcb   : > { %22892 = vmatmul.mubr.msk.f32.vlgmr.msra.gmra.mrb[78].mxu0 %vm3104_vm8, %v7110_v55  ;;  %22897 = vmatmul.mubr.msk.f32.vlgmr.msra.gmra.mrb[78].mxu1 %vm3104_vm8, %v7111_v39  ;;  %v7834_v55 = vsel %vm2198_vm10, %v7826_v8, %v7773_v56 }
 0xdcc   : > { %23272 = vmatpush3.bf16.msra.mxu0 %v23269_v36 }
 0xdcd   : > { %v7771_v51 = vpop.permute.xlu1 %7770 }
 0xdd1   : > { %v7775_v47 = vpop.permute.xlu1 %7774 }
 0xdd2   : > { %v7835_v39 = vsel %vm2198_vm10, %v7827_v14, %v7775_v47 }
 0xdfb   : > { %v7185_v30 = vpop.f32.mrb[72].mxu0 }
 0xdfc   : > { %7800 = vrot.lane.b32.xlu0 %v7185_v30, %s30645_s27  ;;  %v22863_v37 = vpop.f32.mrb[73].mxu0 }
 0xdff   : > { %v7339_v13 = vpop.f32.mrb[74].mxu0 }
 0xe00   : > { %7804 = vrot.lane.b32.xlu0 %v7339_v13, %s30645_s27  ;;  %v22873_v28 = vpop.f32.mrb[75].mxu0 }
 0xe04   : > { %7744 = vrot.lane.b32.xlu0 %v25605_v3, %s30498_s23 }
 0xe08   : > { %7748 = vrot.lane.b32.xlu0 %v25607_v34, %s30498_s23 }
 0xe0c   : > { %7776 = vrot.lane.b32.xlu0 %v25804_v4, %s30496_s25 }
 0xe10   : > { %7780 = vrot.lane.b32.xlu0 %v25808_v17, %s30496_s25  ;;  %v7850_v17 = vld [vmem:[%s30454_s10 + $0x10] sm:$0xff] }
 0xe11   : > { %v23273_v45 = vpack.c.bf16 %v7851_v54, %v7850_v17 }
 0xe13   : > { %23274 = vmatprep.subr.bf16.mxu0 %v23273_v45 }
 0xe14   : > { %23276 = vmatpush3.bf16.msra.mxu0 %v23273_v45 }
 0xe2c   : > { %v7262_v52 = vpop.f32.mrb[72].mxu1 }
 0xe2d   : > { %v22868_v3 = vpop.f32.mrb[73].mxu1  ;;  %7802 = vrot.lane.b32.xlu1 %v7262_v52, %s30645_s27 }
 0xe34   : > { %v7493_v34 = vpop.f32.mrb[76].mxu0 }
 0xe35   : > { %7808 = vrot.lane.b32.xlu0 %v7493_v34, %s30645_s27  ;;  %v22883_v4 = vpop.f32.mrb[77].mxu0 }
 0xe65   : > { %v7416_v25 = vpop.f32.mrb[74].mxu1 }
 0xe66   : > { %v22878_v18 = vpop.f32.mrb[75].mxu1  ;;  %7806 = vrot.lane.b32.xlu1 %v7416_v25, %s30645_s27 }
 0xe6a   : > { %7746 = vrot.lane.b32.xlu1 %v25603_v38, %s30498_s23 }
 0xe6e   : > { %7750 = vrot.lane.b32.xlu1 %v25611_v1, %s30498_s23  ;;  %v7801_v38 = vpop.permute.xlu0 %7800  ;;  %v7824_v1 = vsel %vm2189_vm9, %v25350_v41, %v7737_v46  ;;  %s30777_s23 = smov 88  }
 0xe6f   : > { %v7832_v42 = vsel %vm2198_vm10, %v7824_v1, %v7769_v49 }
 0xe70   : > { %v7840_v19 = vsel %vm2207_vm11, %v7832_v42, %v7801_v38 }
 0xe72   : > { %7778 = vrot.lane.b32.xlu1 %v25806_v53, %s30496_s25  ;;  %v7825_v53 = vsel %vm2189_vm9, %v25348_v32, %v7739_v59  ;;  %v7805_v32 = vpop.permute.xlu0 %7804 }
 0xe73   : > { %v7833_v11 = vsel %vm2198_vm10, %v7825_v53, %v7771_v51  ;;  %v7842_v37 = vsel %vm2207_vm11, %v7834_v55, %v7805_v32 }
 0xe76   : > { %7782 = vrot.lane.b32.xlu1 %v25812_v27, %s30496_s25  ;;  %v7745_v35 = vpop.permute.xlu0 %7744  ;;  %s30778_s25 = smov 120  }
 0xe77   : > { %v7828_v17 = vsel %vm2189_vm9, %v25356_v62, %v7745_v35 }
 0xe7a   : > { %v7749_v36 = vpop.permute.xlu0 %7748 }
 0xe7b   : > { %v7830_v40 = vsel %vm2189_vm9, %v25358_v7, %v7749_v36  ;;  %v20945_v7 = vld [vmem:[%s30455_s11] ss:$0 sm:$0xff] }
 0xe7e   : > { %v7777_v50 = vpop.permute.xlu0 %7776 }
 0xe7f   : > { %v7836_v45 = vsel %vm2198_vm10, %v7828_v17, %v7777_v50 }
 0xe82   : > { %v7781_v34 = vpop.permute.xlu0 %7780 }
 0xe83   : > { %v7838_v62 = vsel %vm2198_vm10, %v7830_v40, %v7781_v34 }
 0xe9a   : > { %v7570_v16 = vpop.f32.mrb[76].mxu1 }
 0xe9b   : > { %v22888_v57 = vpop.f32.mrb[77].mxu1  ;;  %7810 = vrot.lane.b32.xlu1 %v7570_v16, %s30645_s27 }
 0xe9e   : > { %v7647_v27 = vpop.f32.mrb[78].mxu0  ;;  %v7724_v44 = vpop.f32.mrb[78].mxu1 }
 0xe9f   : > { %v7803_v60 = vpop.permute.xlu1 %7802  ;;  %7814 = vrot.lane.b32.xlu1 %v7724_v44, %s30645_s27  ;;  %v22898_v48 = vpop.f32.mrb[79].mxu1  ;;  %7812 = vrot.lane.b32.xlu0 %v7647_v27, %s30645_s27 }
 0xea0   : > { %v7841_v20 = vsel %vm2207_vm11, %v7833_v11, %v7803_v60  ;;  %v22893_v41 = vpop.f32.mrb[79].mxu0 }
 0xea1   : > { %v7867_v6 = vcombine.low %v7840_v19, %v7841_v20 }
 0xea3   : > { %22907 = vmatprep.mubr.msk.f32.mxu0 %vm2295_vm13, %v7867_v6 }
 0xea7   : > { %v7809_v4 = vpop.permute.xlu0 %7808 }
 0xea8   : > { %v7844_v46 = vsel %vm2207_vm11, %v7836_v45, %v7809_v4 }
 0xed8   : > { %v7807_v30 = vpop.permute.xlu1 %7806 }
 0xed9   : > { %v7843_v13 = vsel %vm2207_vm11, %v7835_v39, %v7807_v30 }
 0xeda   : > { %v7868_v28 = vcombine.low %v7842_v37, %v7843_v13 }
 0xedc   : > { %22908 = vmatmul.mubr.msk.f32.vlgmr.msra.gmra.mrb[80].mxu0 %vm2295_vm13, %v7868_v28  ;;  %v7747_v33 = vpop.permute.xlu1 %7746 }
 0xedd   : > { %v7829_v54 = vsel %vm2189_vm9, %v25360_v12, %v7747_v33  ;;  %v24325_v33 = vmov 1985246804  }
 0xee0   : > { %v7751_v52 = vpop.permute.xlu1 %7750 }
 0xee1   : > { %v7831_v49 = vsel %vm2189_vm9, %v25362_v63, %v7751_v52 }
 0xee4   : > { %v7779_v3 = vpop.permute.xlu1 %7778 }
 0xee5   : > { %v7837_v25 = vsel %vm2198_vm10, %v7829_v54, %v7779_v3 }
 0xee8   : > { %v7783_v43 = vpop.permute.xlu1 %7782 }
 0xee9   : > { %v7839_v12 = vsel %vm2198_vm10, %v7831_v49, %v7783_v43 }
 0xf0d   : > { %v7811_v18 = vpop.permute.xlu1 %7810 }
 0xf0e   : > { %v7845_v59 = vsel %vm2207_vm11, %v7837_v25, %v7811_v18 }
 0xf0f   : > { %v7869_v15 = vcombine.low %v7844_v46, %v7845_v59 }
 0xf11   : > { %v7815_v51 = vpop.permute.xlu1 %7814  ;;  %22910 = vmatprep.mubr.msk.f32.mxu0 %vm2295_vm13, %v7869_v15  ;;  %v7813_v56 = vpop.permute.xlu0 %7812 }
 0xf12   : > { %v7847_v16 = vsel %vm2207_vm11, %v7839_v12, %v7815_v51  ;;  %v7846_v47 = vsel %vm2207_vm11, %v7838_v62, %v7813_v56 }
 0xf13   : > { %v7870_v57 = vcombine.low %v7846_v47, %v7847_v16 }
 0xf15   : > { %22911 = vmatmul.mubr.msk.f32.gmra.mrb[82].mxu0 %vm2295_vm13, %v7870_v57  ;;  %v8269_v57 = vld [vmem:[%s30458_s14] sm:$0xff] }
 0xfaf   : > { %v22909_v63 = vpop.f32.mrb[80].mxu0 }
 0xfb0   : > { %v7951_v38 = vadd.f32 %v22909_v63, %v20945_v7  ;;  %v7945_v1 = vpop.f32.mrb[81].mxu0  ;;  %v8270_v63 = vld [vmem:[%s30458_s14 + $0x8] sm:$0xff] }
 0xfb1   : > { %v7946_v53 = vadd.f32 %v20945_v7, %v7945_v1  ;;  %v8278_v1 = vld [vmem:[%s30458_s14 + $0x48] sm:$0xff] }
 0xfb2   : > { %v7969_v27 = vcombine.high %v7951_v38, %v7951_v38  ;;  %v7978_v42 = vadd.f32 %v7951_v38, %v24986_v9 }
 0xfb3   : > { %v7968_v44 = vcombine.high %v7946_v53, %v7946_v53  ;;  %v7976_v60 = vadd.f32 %v7946_v53, %v24957_v5 }
 0xfb4   : > { %v7979_v11 = vadd.f32 %v7969_v27, %v24988_v29  ;;  %v20954_v27 = vcombine.low %v8270_v63, %v8278_v1 }
 0xfb5   : > { %v7977_v48 = vadd.f32 %v7968_v44, %v24959_v10  ;;  %v20955_v44 = vcombine.high %v8270_v63, %v8278_v1 }
 0xfb6   : > { %v7995_v19 = vcombine.low %v7978_v42, %v7979_v11 }
 0xfb7   : > { %v7994_v20 = vcombine.low %v7976_v60, %v7977_v48  ;;  %8604 = vmatprep.subr.bf16.mxu0 %v20955_v44  ;;  %v26149_v44 = vld [vmem:[%s30457_s13] ss:$0 sm:$0xff] }
 0xfb8   : > { %v8005_v41 = vsel %vm2295_vm13, %v7995_v19, 0.0  ;;  %8605 = vmatpush1.bf16.msra.mxu0 %v20954_v27  ;;  %v8294_v19 = vld [vmem:[%s30458_s14 + $0xc8] sm:$0xff] }
 0xfb9   : > { %8006 = vadd.xlane.f32.xlu1 %v8005_v41  ;;  %v8002_v6 = vsel %vm2295_vm13, %v7994_v20, 0.0 }
 0xfba   : > { %8003 = vadd.xlane.f32.xlu0 %v8002_v6 }
 0xfe8   : > { %v22912_v32 = vpop.f32.mrb[82].mxu0 }
 0xfe9   : > { %v7961_v8 = vadd.f32 %v22912_v32, %v20945_v7  ;;  %v7955_v14 = vpop.f32.mrb[83].mxu0  ;;  %v30504_v32 = vmov 0  }
 0xfea   : > { %v7956_v55 = vadd.f32 %v20945_v7, %v7955_v14  ;;  %v8277_v7 = vld [vmem:[%s30458_s14 + $0x40] sm:$0xff]  ;;  %8583 = vmatprep.mubr.bf16.mxu1 %v30504_v32  ;;  %8636 = vmatprep.mubr.bf16.mxu0 %v30504_v32 }
 0xfeb   : > { %v7971_v39 = vcombine.high %v7961_v8, %v7961_v8  ;;  %v26017_v30 = vadd.f32 %v7961_v8, %v25032_v31  ;;  %v20953_v38 = vcombine.high %v8269_v57, %v8277_v7  ;;  %v20952_v53 = vcombine.low %v8269_v57, %v8277_v7 }
 0xfec   : > { %v7970_v9 = vcombine.high %v7956_v55, %v7956_v55  ;;  %v26011_v5 = vadd.f32 %v7956_v55, %v25028_v23  ;;  %v24324_v23 = vmov 839922192  }
 0xfed   : > { %v26008_v29 = vadd.f32 %v7971_v39, %v25030_v61  ;;  %v8024_v35 = vunpack.c.l.s4 %v24324_v23  ;;  %8551 = vmatprep.subr.bf16.mxu1 %v20953_v38 }
 0xfee   : > { %v26014_v10 = vadd.f32 %v7970_v9, %v25026_v22  ;;  %v8031_v22 = vunpack.c.l.s4 %v24325_v33  ;;  %8552 = vmatpush1.bf16.msra.mxu1 %v20952_v53  ;;  %v26144_v53 = vld [vmem:[%s30456_s12] ss:$0 sm:$0xff] }
 0xfef   : > { %v7997_v28 = vcombine.low %v26017_v30, %v26008_v29  ;;  %v8025_v36 = vunpack.c.0.s8 %v8024_v35 }
 0xff0   : > { %v7996_v37 = vcombine.low %v26011_v5, %v26014_v10  ;;  %v8032_v52 = vunpack.c.0.s8 %v8031_v22 }
 0xff1   : > { %v8011_v61 = vsel %vm2295_vm13, %v7997_v28, 0.0  ;;  %v26026_v31 = vsub.s32 %v8025_v36, %v24590_v0 }
 0xff2   : > { %v8008_v13 = vsel %vm2295_vm13, %v7996_v37, 0.0  ;;  %v26029_v50 = vsub.s32 %v8032_v52, %v24590_v0 }
 0xff3   : > { %8009 = vadd.xlane.f32.xlu0 %v8008_v13  ;;  %30646 = vst [vmem:[#allocation15_spill] sm:$0xff] %v26026_v31 }
 0xff4   : > { %30647 = vst [vmem:[#allocation16_spill] sm:$0xff] %v26029_v50 }
 0xff7   : > { %8012 = vadd.xlane.f32.xlu0 %v8011_v61 }
0x1046   : > { %v8007_v3 = vpop.xlane.xlu1 %8006 }
0x1047   : > { %v8016_v34 = vmul.f32 0.03125, %v8007_v3  ;;  %v8004_v43 = vpop.xlane.xlu0 %8003 }
0x1048   : > { %v8015_v4 = vmul.f32 0.03125, %v8004_v43 }
0x1049   : > { %v8043_v17 = vrot.slane %v8016_v34, %v26026_v31  ;;  %v8050_v54 = vrot.slane %v8016_v34, %v26029_v50 }
0x104a   : > { %v8029_v45 = vrot.slane %v8015_v4, %v26026_v31  ;;  %v8036_v25 = vrot.slane %v8015_v4, %v26029_v50  ;;  %v8272_v4 = vld [vmem:[%s30458_s14 + $0x18] sm:$0xff] }
0x104b   : > { %v26035_v18 = vsub.f32 %v7978_v42, %v8043_v17  ;;  %v26037_v46 = vsub.f32 %v7979_v11, %v8050_v54  ;;  %v8285_v42 = vld [vmem:[%s30458_s14 + $0x80] sm:$0xff] }
0x104c   : > { %v26039_v59 = vsub.f32 %v7976_v60, %v8029_v45  ;;  %v26041_v15 = vsub.f32 %v7977_v48, %v8036_v25  ;;  %v8293_v11 = vld [vmem:[%s30458_s14 + $0xc0] sm:$0xff]  ;;  %v8286_v60 = vld [vmem:[%s30458_s14 + $0x88] sm:$0xff]  ;;  %v8280_v45 = vld [vmem:[%s30458_s14 + $0x58] sm:$0xff] }
0x104d   : > { %v8097_v40 = vmul.f32 %v26035_v18, %v26035_v18  ;;  %v8098_v49 = vmul.f32 %v26037_v46, %v26037_v46  ;;  %v20969_v48 = vcombine.high %v8285_v42, %v8293_v11  ;;  %v20968_v20 = vcombine.low %v8285_v42, %v8293_v11 }
0x104e   : > { %v8095_v62 = vmul.f32 %v26039_v59, %v26039_v59  ;;  %v8096_v12 = vmul.f32 %v26041_v15, %v26041_v15  ;;  %v20970_v41 = vcombine.low %v8286_v60, %v8294_v19  ;;  %v20971_v6 = vcombine.high %v8286_v60, %v8294_v19 }
0x104f   : > { %v8112_v51 = vcombine.low %v8097_v40, %v8098_v49  ;;  %8553 = vmatprep.subr.bf16.mxu1 %v20969_v48  ;;  %v20958_v25 = vcombine.low %v8272_v4, %v8280_v45  ;;  %v20959_v40 = vcombine.high %v8272_v4, %v8280_v45  ;;  %v26120_v49 = vld [vmem:[%s30458_s14 + $0x20] sm:$0xff]  ;;  %v26153_v11 = vcombine.high %v26144_v53, %v26144_v53 }
0x1050   : > { %v8111_v56 = vcombine.low %v8095_v62, %v8096_v12  ;;  %8606 = vmatprep.subr.bf16.mxu0 %v20971_v6  ;;  %8554 = vmatpush1.bf16.msra.mxu1 %v20968_v20  ;;  %v26125_v62 = vld [vmem:[%s30458_s14 + $0x60] sm:$0xff]  ;;  %v26130_v12 = vld [vmem:[%s30458_s14 + $0x28] sm:$0xff] }
0x1051   : > { %v8122_v16 = vsel %vm2295_vm13, %v8112_v51, 0.0  ;;  %8607 = vmatpush1.bf16.msra.mxu0 %v20970_v41  ;;  %v20960_v51 = vcombine.low %v26120_v49, %v26125_v62  ;;  %v26161_v41 = vcombine.high %v26149_v44, %v26149_v44  ;;  %v20961_v4 = vcombine.high %v26120_v49, %v26125_v62  ;;  %v8291_v49 = vld [vmem:[%s30458_s14 + $0xb0] sm:$0xff] }
0x1052   : > { %8123 = vadd.xlane.f32.xlu1 %v8122_v16  ;;  %v8119_v47 = vsel %vm2295_vm13, %v8111_v56, 0.0  ;;  %8710 = vmatprep.subr.bf16.mxu0 %v20959_v40  ;;  %v26137_v56 = vld [vmem:[%s30458_s14 + $0x68] sm:$0xff]  ;;  %v8299_v62 = vld [vmem:[%s30458_s14 + $0xf0] sm:$0xff] }
0x1053   : > { %8120 = vadd.xlane.f32.xlu0 %v8119_v47  ;;  %v20962_v16 = vcombine.low %v26130_v12, %v26137_v56 }
0x1080   : > { %v8010_v8 = vpop.xlane.xlu0 %8009 }
0x1081   : > { %v8017_v14 = vmul.f32 0.03125, %v8010_v8 }
0x1083   : > { %v8057_v55 = vrot.slane %v8017_v14, %v26026_v31  ;;  %v8064_v39 = vrot.slane %v8017_v14, %v26029_v50 }
0x1084   : > { %v8013_v9 = vpop.xlane.xlu0 %8012 }
0x1085   : > { %v26082_v37 = vsub.f32 %v26011_v5, %v8057_v55  ;;  %v26085_v13 = vsub.f32 %v26014_v10, %v8064_v39  ;;  %v8018_v28 = vmul.f32 0.03125, %v8013_v9 }
0x1087   : > { %v8071_v61 = vrot.slane %v8018_v28, %v26026_v31  ;;  %v8078_v23 = vrot.slane %v8018_v28, %v26029_v50  ;;  %v8099_v35 = vmul.f32 %v26082_v37, %v26082_v37  ;;  %v8100_v33 = vmul.f32 %v26085_v13, %v26085_v13 }
0x1089   : > { %v26094_v22 = vsub.f32 %v26017_v30, %v8071_v61  ;;  %v26097_v5 = vsub.f32 %v26008_v29, %v8078_v23  ;;  %v8113_v36 = vcombine.low %v8099_v35, %v8100_v33  ;;  %v8271_v30 = vld [vmem:[%s30458_s14 + $0x10] sm:$0xff] }
0x108a   : > { %v8279_v29 = vld [vmem:[%s30458_s14 + $0x50] sm:$0xff] }
0x108b   : > { %v8125_v10 = vsel %vm2295_vm13, %v8113_v36, 0.0  ;;  %v8101_v52 = vmul.f32 %v26094_v22, %v26094_v22  ;;  %v8102_v3 = vmul.f32 %v26097_v5, %v26097_v5  ;;  %v20956_v17 = vcombine.low %v8271_v30, %v8279_v29  ;;  %v8295_v36 = vld [vmem:[%s30458_s14 + $0xd0] sm:$0xff] }
0x108c   : > { %8126 = vadd.xlane.f32.xlu0 %v8125_v10  ;;  %v20957_v54 = vcombine.high %v8271_v30, %v8279_v29  ;;  %v8288_v10 = vld [vmem:[%s30458_s14 + $0x98] sm:$0xff] }
0x108d   : > { %v8114_v34 = vcombine.low %v8101_v52, %v8102_v3  ;;  %v8296_v52 = vld [vmem:[%s30458_s14 + $0xd8] sm:$0xff] }
0x108e   : > { %8657 = vmatprep.subr.bf16.mxu1 %v20957_v54  ;;  %v20974_v29 = vcombine.low %v8288_v10, %v8296_v52  ;;  %v20963_v54 = vcombine.high %v26130_v12, %v26137_v56  ;;  %v8292_v12 = vld [vmem:[%s30458_s14 + $0xb8] sm:$0xff] }
0x108f   : > { %v8128_v43 = vsel %vm2295_vm13, %v8114_v34, 0.0 }
0x1090   : > { %8129 = vadd.xlane.f32.xlu1 %v8128_v43  ;;  %v20975_v43 = vcombine.high %v8288_v10, %v8296_v52  ;;  %v8284_v10 = vld [vmem:[%s30458_s14 + $0x78] sm:$0xff] }
0x10df   : > { %v8124_v47 = vpop.xlane.xlu1 %8123 }
0x10e0   : > { %v8132_v57 = vmul.f32 0.03125, %v8124_v47  ;;  %v8121_v7 = vpop.xlane.xlu0 %8120 }
0x10e1   : > { %v8131_v63 = vmul.f32 0.03125, %v8121_v7 }
0x10e2   : > { %v8136_v38 = vadd.f32 1e-05, %v8132_v57 }
0x10e3   : > { %v8135_v1 = vadd.f32 1e-05, %v8131_v63 }
0x10e4   : > { %23815 = vrsqrt.f32 %v8136_v38 }
0x10e5   : > { %23817 = vrsqrt.f32 %v8135_v1 }
0x10ee   : > { %v23816_v27 = vpop.eup %23815 }
0x10ef   : > { %v23818_v42 = vpop.eup %23817  ;;  %v8167_v60 = vrot.slane %v23816_v27, %v26026_v31  ;;  %v8174_v48 = vrot.slane %v23816_v27, %v26029_v50 }
0x10f0   : > { %v8153_v19 = vrot.slane %v23818_v42, %v26026_v31  ;;  %v8160_v20 = vrot.slane %v23818_v42, %v26029_v50 }
0x10f1   : > { %v8213_v6 = vmul.f32 %v8167_v60, %v26035_v18  ;;  %v8214_v8 = vmul.f32 %v8174_v48, %v26037_v46 }
0x10f2   : > { %v8211_v14 = vmul.f32 %v8153_v19, %v26039_v59  ;;  %v8212_v55 = vmul.f32 %v8160_v20, %v26041_v15  ;;  %v8287_v15 = vld [vmem:[%s30458_s14 + $0x90] sm:$0xff] }
0x10f3   : > { %v8229_v39 = vmul.f32 %v26144_v53, %v8213_v6  ;;  %v8230_v9 = vmul.f32 %v26153_v11, %v8214_v8  ;;  %v20973_v34 = vcombine.high %v8287_v15, %v8295_v36  ;;  %v20972_v30 = vcombine.low %v8287_v15, %v8295_v36  ;;  %v8275_v15 = vld [vmem:[%s30458_s14 + $0x30] sm:$0xff]  ;;  %v8276_v36 = vld [vmem:[%s30458_s14 + $0x38] sm:$0xff] }
0x10f4   : > { %v8227_v28 = vmul.f32 %v26144_v53, %v8211_v14  ;;  %v8228_v61 = vmul.f32 %v26153_v11, %v8212_v55 }
0x10f5   : > { %v26172_v23 = vadd.f32 %v26149_v44, %v8229_v39  ;;  %v26175_v35 = vadd.f32 %v26161_v41, %v8230_v9 }
0x10f6   : > { %v26178_v18 = vadd.f32 %v26149_v44, %v8227_v28  ;;  %v26181_v46 = vadd.f32 %v26161_v41, %v8228_v61 }
0x10f7   : > { %30648 = vst [vmem:[#allocation17_spill] sm:$0xff] %v26172_v23  ;;  %30649 = vst [vmem:[#allocation18_spill] sm:$0xff] %v26175_v35  ;;  %v8260_v59 = vcombine.low %v26172_v23, %v26175_v35 }
0x10f8   : > { %30650 = vst [vmem:[#allocation19_spill] sm:$0xff] %v26178_v18  ;;  %30651 = vst [vmem:[#allocation20_spill] sm:$0xff] %v26181_v46  ;;  %v8259_v33 = vcombine.low %v26178_v18, %v26181_v46 }
0x10fa   : > { %v26199_v3 = vpack.c.bf16 %v8260_v59, %v8259_v33  ;;  %v8283_v33 = vld [vmem:[%s30458_s14 + $0x70] sm:$0xff] }
0x10fb   : > { %v20964_v56 = vcombine.low %v8275_v15, %v8283_v33 }
0x10fc   : > { %20984 = vmatmul.mubr.msk.bf16.vlgmr.msra.gmra.mrb[80].mxu1 %vm2295_vm13, %v26199_v3  ;;  %20986 = vmatmul.mubr.msk.bf16.vlgmr.msra.gmra.mrb[84].mxu0 %vm2295_vm13, %v26199_v3 }
0x10fd   : > { %8658 = vmatpush1.bf16.msra.mxu1 %v20956_v17  ;;  %8593 = vmatprep.mubr.bf16.mxu1 %v30504_v32 }
0x10fe   : > { %8646 = vmatprep.mubr.bf16.mxu0 %v30504_v32  ;;  %8711 = vmatpush1.bf16.msra.mxu0 %v20958_v25 }
0x10ff   : > { %8659 = vmatprep.subr.bf16.mxu1 %v20973_v34  ;;  %8712 = vmatprep.subr.bf16.mxu0 %v20975_v43  ;;  %v20965_v43 = vcombine.high %v8275_v15, %v8283_v33  ;;  %v23442_v15 = vld [vmem:[%s30460_s16 + $0xf8] sm:$0xff]  }
0x1100   : > { %v23443_v33 = vld [vmem:[%s30460_s16 + $0x38] sm:$0xff]  }
0x1101   : > { %8660 = vmatpush1.bf16.msra.mxu1 %v20972_v30  ;;  %v20967_v30 = vcombine.high %v8276_v36, %v8284_v10 }
0x1102   : > { %8713 = vmatpush1.bf16.msra.mxu0 %v20974_v29  ;;  %8763 = vmatprep.subr.bf16.mxu1 %v20961_v4  ;;  %v20981_v29 = vcombine.high %v8291_v49, %v8299_v62 }
0x1103   : > { %8816 = vmatprep.subr.bf16.mxu0 %v20963_v54  ;;  %v20980_v54 = vcombine.low %v8291_v49, %v8299_v62 }
0x1119   : > { %v8127_v17 = vpop.xlane.xlu0 %8126 }
0x111a   : > { %v8133_v45 = vmul.f32 0.03125, %v8127_v17 }
0x111c   : > { %v8137_v40 = vadd.f32 1e-05, %v8133_v45  ;;  %v23413_v45 = vld [vmem:[%s30460_s16 + $0x40] sm:$0xff]  }
0x111d   : > { %v8130_v47 = vpop.xlane.xlu1 %8129 }
0x111e   : > { %23819 = vrsqrt.f32 %v8137_v40  ;;  %v8134_v57 = vmul.f32 0.03125, %v8130_v47  ;;  %v23414_v40 = vld [vmem:[%s30460_s16 + $0xc0] sm:$0xff]  }
0x111f   : > { %v23415_v47 = vld [vmem:[%s30460_s16] sm:$0xff]  }
0x1120   : > { %v8138_v25 = vadd.f32 1e-05, %v8134_v57  ;;  %v23416_v57 = vld [vmem:[%s30460_s16 + $0x80] sm:$0xff]  }
0x1122   : > { %23821 = vrsqrt.f32 %v8138_v25  ;;  %v23417_v25 = vld [vmem:[%s30460_s16 + $0x48] sm:$0xff]  }
0x1128   : > { %v23820_v7 = vpop.eup %23819 }
0x1129   : > { %v8181_v63 = vrot.slane %v23820_v7, %v26026_v31  ;;  %v8188_v38 = vrot.slane %v23820_v7, %v26029_v50  ;;  %v23418_v7 = vld [vmem:[%s30460_s16 + $0xc8] sm:$0xff]  }
0x112b   : > { %v8215_v1 = vmul.f32 %v8181_v63, %v26082_v37  ;;  %v8216_v27 = vmul.f32 %v8188_v38, %v26085_v13  ;;  %v23419_v63 = vld [vmem:[%s30460_s16 + $0x8] sm:$0xff]  }
0x112c   : > { %v23822_v42 = vpop.eup %23821  ;;  %v23420_v38 = vld [vmem:[%s30460_s16 + $0x88] sm:$0xff]  }
0x112d   : > { %v8231_v60 = vmul.f32 %v26144_v53, %v8215_v1  ;;  %v8232_v48 = vmul.f32 %v26153_v11, %v8216_v27  ;;  %v8195_v19 = vrot.slane %v23822_v42, %v26026_v31  ;;  %v8202_v20 = vrot.slane %v23822_v42, %v26029_v50  ;;  %v23422_v1 = vld [vmem:[%s30460_s16 + $0xd0] sm:$0xff]  }
0x112e   : > { %v23423_v27 = vld [vmem:[%s30460_s16 + $0x10] sm:$0xff]  }
0x112f   : > { %v8217_v6 = vmul.f32 %v8195_v19, %v26094_v22  ;;  %v8218_v8 = vmul.f32 %v8202_v20, %v26097_v5  ;;  %v26222_v14 = vadd.f32 %v26149_v44, %v8231_v60  ;;  %v26225_v37 = vadd.f32 %v26161_v41, %v8232_v48  ;;  %v23424_v42 = vld [vmem:[%s30460_s16 + $0x90] sm:$0xff]   ;;  %v23425_v60 = vld [vmem:[%s30460_s16 + $0x58] sm:$0xff]  }
0x1130   : > { %v23426_v48 = vld [vmem:[%s30460_s16 + $0xd8] sm:$0xff]  }
0x1131   : > { %30652 = vst [vmem:[#allocation21_spill] sm:$0xff] %v26222_v14  ;;  %30653 = vst [vmem:[#allocation22_spill] sm:$0xff] %v26225_v37  ;;  %v8233_v13 = vmul.f32 %v26144_v53, %v8217_v6  ;;  %v8234_v55 = vmul.f32 %v26153_v11, %v8218_v8  ;;  %v8261_v22 = vcombine.low %v26222_v14, %v26225_v37  ;;  %v8289_v53 = vld [vmem:[%s30458_s14 + $0xa0] sm:$0xff]  ;;  %v8290_v11 = vld [vmem:[%s30458_s14 + $0xa8] sm:$0xff] }
0x1132   : > { %v23427_v19 = vld [vmem:[%s30460_s16 + $0x18] sm:$0xff]   ;;  %v23429_v6 = vld [vmem:[%s30460_s16 + $0x60] sm:$0xff]  }
0x1133   : > { %v26230_v39 = vadd.f32 %v26149_v44, %v8233_v13  ;;  %v26233_v9 = vadd.f32 %v26161_v41, %v8234_v55  ;;  %v8297_v44 = vld [vmem:[%s30458_s14 + $0xe0] sm:$0xff]  ;;  %v8298_v41 = vld [vmem:[%s30458_s14 + $0xe8] sm:$0xff]  ;;  %v23428_v20 = vld [vmem:[%s30460_s16 + $0x98] sm:$0xff]  }
0x1134   : > { %v20977_v61 = vcombine.high %v8289_v53, %v8297_v44  ;;  %v20979_v59 = vcombine.high %v8290_v11, %v8298_v41  ;;  %v20976_v52 = vcombine.low %v8289_v53, %v8297_v44  ;;  %v20978_v34 = vcombine.low %v8290_v11, %v8298_v41  ;;  %v23430_v8 = vld [vmem:[%s30460_s16 + $0xe0] sm:$0xff]   ;;  %v23436_v53 = vld [vmem:[%s30460_s16 + $0xa8] sm:$0xff]   ;;  %v23437_v44 = vld [vmem:[%s30460_s16 + $0x70] sm:$0xff]  }
0x1135   : > { %30654 = vst [vmem:[#allocation23_spill] sm:$0xff] %v26230_v39  ;;  %30655 = vst [vmem:[#allocation24_spill] sm:$0xff] %v26233_v9  ;;  %v8262_v5 = vcombine.low %v26230_v39, %v26233_v9  ;;  %v23431_v13 = vld [vmem:[%s30460_s16 + $0x20] sm:$0xff]   ;;  %v23438_v11 = vld [vmem:[%s30460_s16 + $0xf0] sm:$0xff]  }
0x1136   : > { %v23432_v55 = vld [vmem:[%s30460_s16 + $0xa0] sm:$0xff]   ;;  %v23439_v41 = vld [vmem:[%s30460_s16 + $0x30] sm:$0xff]  }
0x1137   : > { %v26239_v28 = vpack.c.bf16 %v8262_v5, %v8261_v22  ;;  %v23433_v22 = vld [vmem:[%s30460_s16 + $0x68] sm:$0xff]  }
0x1138   : > { %v23434_v5 = vld [vmem:[%s30460_s16 + $0xe8] sm:$0xff]  }
0x1139   : > { %20985 = vmatmul.mubr.msk.bf16.gmra.mrb[84].mxu1 %vm2295_vm13, %v26239_v28  ;;  %20987 = vmatmul.mubr.msk.bf16.gmra.mrb[88].mxu0 %vm2295_vm13, %v26239_v28 }
0x113a   : > { %8689 = vmatprep.mubr.bf16.mxu1 %v30504_v32  ;;  %8742 = vmatprep.mubr.bf16.mxu0 %v30504_v32 }
0x1141   : > { %20988 = vmatmul.mubr.msk.bf16.vlgmr.msra.gmra.mrb[88].mxu1 %vm2295_vm13, %v26199_v3  ;;  %20990 = vmatmul.mubr.msk.bf16.vlgmr.msra.gmra.mrb[92].mxu0 %vm2295_vm13, %v26199_v3 }
0x1142   : > { %8699 = vmatprep.mubr.bf16.mxu1 %v30504_v32  ;;  %8752 = vmatprep.mubr.bf16.mxu0 %v30504_v32 }
0x1143   : > { %8764 = vmatpush1.bf16.msra.mxu1 %v20960_v51  ;;  %8817 = vmatpush1.bf16.msra.mxu0 %v20962_v16  ;;  %v8300_v51 = vld [vmem:[%s30458_s14 + $0xf8] sm:$0xff]  ;;  %v20966_v16 = vcombine.low %v8276_v36, %v8284_v10  ;;  %v23445_v10 = vld [vmem:[%s30460_s16 + $0x140] sm:$0xff]  }
0x1144   : > { %8765 = vmatprep.subr.bf16.mxu1 %v20977_v61  ;;  %8818 = vmatprep.subr.bf16.mxu0 %v20979_v59  ;;  %v20983_v4 = vcombine.high %v8292_v12, %v8300_v51  ;;  %v20982_v17 = vcombine.low %v8292_v12, %v8300_v51  ;;  %v23440_v61 = vld [vmem:[%s30460_s16 + $0xb0] sm:$0xff]   ;;  %v23441_v59 = vld [vmem:[%s30460_s16 + $0x78] sm:$0xff]  }
0x1145   : > { %v23444_v36 = vld [vmem:[%s30460_s16 + $0xb8] sm:$0xff]  }
0x1147   : > { %8766 = vmatpush1.bf16.msra.mxu1 %v20976_v52  ;;  %8819 = vmatpush1.bf16.msra.mxu0 %v20978_v34  ;;  %v23446_v52 = vld [vmem:[%s30460_s16 + $0x1c0] sm:$0xff]  }
0x1148   : > { %8869 = vmatprep.subr.bf16.mxu1 %v20965_v43  ;;  %8922 = vmatprep.subr.bf16.mxu0 %v20967_v30  ;;  %v26428_v34 = vld [vmem:[%s30459_s15] sm:$0xff] }
0x1149   : > { %20989 = vmatmul.mubr.msk.bf16.gmra.mrb[92].mxu1 %vm2295_vm13, %v26239_v28  ;;  %20991 = vmatmul.mubr.msk.bf16.gmra.mrb[96].mxu0 %vm2295_vm13, %v26239_v28  ;;  %v26432_v43 = vrot.slane %v26428_v34, %v24742_v2  ;;  %v26436_v30 = vrot.slane %v26428_v34, %v24815_v21  ;;  %v26440_v49 = vrot.slane %v26428_v34, %v24821_v24 }
0x114a   : > { %8795 = vmatprep.mubr.bf16.mxu1 %v30504_v32  ;;  %8848 = vmatprep.mubr.bf16.mxu0 %v30504_v32  ;;  %v26444_v62 = vrot.slane %v26428_v34, %v24824_v26 }
0x1151   : > { %20992 = vmatmul.mubr.msk.bf16.vlgmr.msra.gmra.mrb[96].mxu1 %vm2295_vm13, %v26199_v3  ;;  %20994 = vmatmul.mubr.msk.bf16.vlgmr.msra.gmra.mrb[100].mxu0 %vm2295_vm13, %v26199_v3 }
0x1152   : > { %8805 = vmatprep.mubr.bf16.mxu1 %v30504_v32  ;;  %8858 = vmatprep.mubr.bf16.mxu0 %v30504_v32 }
0x1153   : > { %8870 = vmatpush1.bf16.msra.mxu1 %v20964_v56  ;;  %8923 = vmatpush1.bf16.msra.mxu0 %v20966_v16 }
0x1154   : > { %8871 = vmatprep.subr.bf16.mxu1 %v20981_v29  ;;  %8924 = vmatprep.subr.bf16.mxu0 %v20983_v4 }
0x1157   : > { %8872 = vmatpush1.bf16.msra.mxu1 %v20980_v54  ;;  %8925 = vmatpush1.bf16.msra.mxu0 %v20982_v17 }
0x1158   : > { %21973 = vmatprep.subr.bf16.mxu1 %v23413_v45  ;;  %22001 = vmatprep.subr.bf16.mxu0 %v23414_v40 }
0x1159   : > { %20993 = vmatmul.mubr.msk.bf16.gmra.mrb[100].mxu1 %vm2295_vm13, %v26239_v28  ;;  %20995 = vmatmul.mubr.msk.bf16.gmra.mrb[104].mxu0 %vm2295_vm13, %v26239_v28 }
0x115a   : > { %8901 = vmatprep.mubr.bf16.mxu1 %v30504_v32  ;;  %8954 = vmatprep.mubr.bf16.mxu0 %v30504_v32 }
0x1161   : > { %20996 = vmatmul.mubr.msk.bf16.vlgmr.msra.gmra.mrb[104].mxu1 %vm2295_vm13, %v26199_v3  ;;  %20998 = vmatmul.mubr.msk.bf16.vlgmr.msra.gmra.mrb[108].mxu0 %vm2295_vm13, %v26199_v3  ;;  %v23421_v3 = vld [vmem:[%s30460_s16 + $0x50] sm:$0xff]  }
0x1162   : > { %8911 = vmatprep.mubr.bf16.mxu1 %v30504_v32  ;;  %8964 = vmatprep.mubr.bf16.mxu0 %v30504_v32 }
0x1163   : > { %21974 = vmatpush3.bf16.msra.mxu1 %v23415_v47  ;;  %22002 = vmatpush3.bf16.msra.mxu0 %v23416_v57 }
0x1164   : > { %21975 = vmatprep.subr.bf16.mxu1 %v23417_v25  ;;  %22003 = vmatprep.subr.bf16.mxu0 %v23418_v7 }
0x1167   : > { %21976 = vmatpush3.bf16.msra.mxu1 %v23419_v63  ;;  %22004 = vmatpush3.bf16.msra.mxu0 %v23420_v38 }
0x1168   : > { %21977 = vmatprep.subr.bf16.mxu1 %v23421_v3  ;;  %22005 = vmatprep.subr.bf16.mxu0 %v23422_v1 }
0x1169   : > { %20997 = vmatmul.mubr.msk.bf16.gmra.mrb[108].mxu1 %vm2295_vm13, %v26239_v28  ;;  %20999 = vmatmul.mubr.msk.bf16.gmra.mrb[112].mxu0 %vm2295_vm13, %v26239_v28  ;;  %v23435_v28 = vld [vmem:[%s30460_s16 + $0x28] sm:$0xff]  }
0x116b   : > { %21978 = vmatpush3.bf16.msra.mxu1 %v23423_v27  ;;  %22006 = vmatpush3.bf16.msra.mxu0 %v23424_v42 }
0x116c   : > { %21979 = vmatprep.subr.bf16.mxu1 %v23425_v60  ;;  %22007 = vmatprep.subr.bf16.mxu0 %v23426_v48 }
0x116f   : > { %21980 = vmatpush3.bf16.msra.mxu1 %v23427_v19  ;;  %22008 = vmatpush3.bf16.msra.mxu0 %v23428_v20 }
0x1170   : > { %21981 = vmatprep.subr.bf16.mxu1 %v23429_v6  ;;  %22009 = vmatprep.subr.bf16.mxu0 %v23430_v8 }
0x1173   : > { %21982 = vmatpush3.bf16.msra.mxu1 %v23431_v13  ;;  %22010 = vmatpush3.bf16.msra.mxu0 %v23432_v55 }
0x1174   : > { %21983 = vmatprep.subr.bf16.mxu1 %v23433_v22  ;;  %22011 = vmatprep.subr.bf16.mxu0 %v23434_v5 }
0x1177   : > { %21984 = vmatpush3.bf16.msra.mxu1 %v23435_v28  ;;  %22012 = vmatpush3.bf16.msra.mxu0 %v23436_v53 }
0x1178   : > { %21985 = vmatprep.subr.bf16.mxu1 %v23437_v44  ;;  %22013 = vmatprep.subr.bf16.mxu0 %v23438_v11 }
0x117b   : > { %21986 = vmatpush3.bf16.msra.mxu1 %v23439_v41  ;;  %22014 = vmatpush3.bf16.msra.mxu0 %v23440_v61 }
0x117c   : > { %21987 = vmatprep.subr.bf16.mxu1 %v23441_v59  ;;  %22015 = vmatprep.subr.bf16.mxu0 %v23442_v15 }
0x117f   : > { %21988 = vmatpush3.bf16.msra.mxu1 %v23443_v33  ;;  %22016 = vmatpush3.bf16.msra.mxu0 %v23444_v36 }
0x1180   : > { %22029 = vmatprep.subr.bf16.mxu1 %v23445_v10  ;;  %22057 = vmatprep.subr.bf16.mxu0 %v23446_v52 }
0x11cf   : > { %v8585_v12 = vpop.f32.mrb[80].mxu1  ;;  %v8638_v51 = vpop.f32.mrb[84].mxu0 }
0x11d0   : > { %v26447_v56 = vadd.f32 %v8585_v12, %v26432_v43  ;;  %v26450_v16 = vadd.f32 %v8638_v51, %v26436_v30  ;;  %v8587_v29 = vpop.f32.mrb[81].mxu1  ;;  %v8640_v4 = vpop.f32.mrb[85].mxu0 }
0x11d1   : > { %v26453_v54 = vadd.f32 %v8587_v29, %v26440_v49  ;;  %v26456_v17 = vadd.f32 %v8640_v4, %v26444_v62  ;;  %v8589_v45 = vpop.f32.mrb[82].mxu1  ;;  %v8642_v40 = vpop.f32.mrb[86].mxu0 }
0x11d2   : > { %v8975_v47 = vmul.f32 %v26447_v56, %v26447_v56  ;;  %v8977_v57 = vmul.f32 %v26450_v16, %v26450_v16  ;;  %v26463_v25 = vadd.f32 %v8589_v45, %v26432_v43  ;;  %v26466_v7 = vadd.f32 %v8642_v40, %v26436_v30  ;;  %v8591_v63 = vpop.f32.mrb[83].mxu1  ;;  %v8644_v38 = vpop.f32.mrb[87].mxu0 }
0x11d3   : > { %v8976_v3 = vmul.f32 %v26453_v54, %v26453_v54  ;;  %v8978_v1 = vmul.f32 %v26456_v17, %v26456_v17  ;;  %v26473_v27 = vadd.f32 %v8591_v63, %v26440_v49  ;;  %v26476_v42 = vadd.f32 %v8644_v38, %v26444_v62 }
0x11d4   : > { %v9039_v60 = vmul.f32 %v8975_v47, %v26447_v56  ;;  %v9041_v48 = vmul.f32 %v8977_v57, %v26450_v16  ;;  %v8991_v19 = vmul.f32 %v26463_v25, %v26463_v25  ;;  %v8993_v20 = vmul.f32 %v26466_v7, %v26466_v7 }
0x11d5   : > { %v9040_v6 = vmul.f32 %v8976_v3, %v26453_v54  ;;  %v9042_v8 = vmul.f32 %v8978_v1, %v26456_v17  ;;  %v8992_v13 = vmul.f32 %v26473_v27, %v26473_v27  ;;  %v8994_v55 = vmul.f32 %v26476_v42, %v26476_v42 }
0x11d6   : > { %v9103_v22 = vmul.f32 0.044715, %v9039_v60  ;;  %v9105_v5 = vmul.f32 0.044715, %v9041_v48  ;;  %v9055_v28 = vmul.f32 %v8991_v19, %v26463_v25  ;;  %v9057_v53 = vmul.f32 %v8993_v20, %v26466_v7 }
0x11d7   : > { %v9104_v44 = vmul.f32 0.044715, %v9040_v6  ;;  %v9106_v11 = vmul.f32 0.044715, %v9042_v8  ;;  %v9056_v41 = vmul.f32 %v8992_v13, %v26473_v27  ;;  %v9058_v61 = vmul.f32 %v8994_v55, %v26476_v42 }
0x11d8   : > { %v9167_v59 = vadd.f32 %v9103_v22, %v26447_v56  ;;  %v9169_v15 = vadd.f32 %v9105_v5, %v26450_v16  ;;  %v9119_v33 = vmul.f32 0.044715, %v9055_v28  ;;  %v9121_v36 = vmul.f32 0.044715, %v9057_v53 }
0x11d9   : > { %v9168_v10 = vadd.f32 %v9104_v44, %v26453_v54  ;;  %v9170_v52 = vadd.f32 %v9106_v11, %v26456_v17  ;;  %v9120_v12 = vmul.f32 0.044715, %v9056_v41  ;;  %v9122_v51 = vmul.f32 0.044715, %v9058_v61 }
0x11da   : > { %v9231_v29 = vmul.f32 0.7978846, %v9167_v59  ;;  %v9233_v4 = vmul.f32 0.7978846, %v9169_v15  ;;  %v9183_v45 = vadd.f32 %v9119_v33, %v26463_v25  ;;  %v9185_v40 = vadd.f32 %v9121_v36, %v26466_v7 }
0x11db   : > { %v9232_v47 = vmul.f32 0.7978846, %v9168_v10  ;;  %v9234_v57 = vmul.f32 0.7978846, %v9170_v52  ;;  %v9184_v63 = vadd.f32 %v9120_v12, %v26473_v27  ;;  %v9186_v38 = vadd.f32 %v9122_v51, %v26476_v42 }
0x11dc   : > { %23823 = vtanh.f32 %v9231_v29  ;;  %v9247_v3 = vmul.f32 0.7978846, %v9183_v45  ;;  %v9249_v1 = vmul.f32 0.7978846, %v9185_v40 }
0x11dd   : > { %23825 = vtanh.f32 %v9233_v4  ;;  %v9248_v60 = vmul.f32 0.7978846, %v9184_v63  ;;  %v9250_v48 = vmul.f32 0.7978846, %v9186_v38 }
0x11de   : > { %23827 = vtanh.f32 %v9232_v47 }
0x11df   : > { %23829 = vtanh.f32 %v9234_v57 }
0x11e0   : > { %23831 = vtanh.f32 %v9247_v3 }
0x11e1   : > { %23833 = vtanh.f32 %v9249_v1 }
0x11e2   : > { %23835 = vtanh.f32 %v9248_v60 }
0x11e3   : > { %23837 = vtanh.f32 %v9250_v48 }
0x11e6   : > { %v23824_v19 = vpop.eup %23823 }
0x11e7   : > { %v23826_v20 = vpop.eup %23825  ;;  %v9359_v6 = vadd.f32 1.0, %v23824_v19 }
0x11e8   : > { %v23828_v8 = vpop.eup %23827  ;;  %v9361_v13 = vadd.f32 1.0, %v23826_v20  ;;  %v23454_v20 = vld [vmem:[%s30460_s16 + $0x1d0] sm:$0xff]  }
0x11e9   : > { %v23830_v55 = vpop.eup %23829  ;;  %v9360_v22 = vadd.f32 1.0, %v23828_v8  ;;  %v9423_v44 = vmul.f32 0.5, %v9359_v6  ;;  %v23455_v6 = vld [vmem:[%s30460_s16 + $0x110] sm:$0xff]  }
0x11ea   : > { %v23832_v5 = vpop.eup %23831  ;;  %v9362_v28 = vadd.f32 1.0, %v23830_v55  ;;  %v9425_v61 = vmul.f32 0.5, %v9361_v13  ;;  %v23456_v8 = vld [vmem:[%s30460_s16 + $0x190] sm:$0xff]   ;;  %v23457_v13 = vld [vmem:[%s30460_s16 + $0x158] sm:$0xff]  }
0x11eb   : > { %v23834_v53 = vpop.eup %23833  ;;  %v9375_v11 = vadd.f32 1.0, %v23832_v5  ;;  %v9424_v10 = vmul.f32 0.5, %v9360_v22  ;;  %v9487_v29 = vmul.f32 %v9423_v44, %v26447_v56  ;;  %v23447_v56 = vld [vmem:[%s30460_s16 + $0x100] sm:$0xff]   ;;  %v23458_v55 = vld [vmem:[%s30460_s16 + $0x1d8] sm:$0xff]  }
0x11ec   : > { %v23836_v41 = vpop.eup %23835  ;;  %v9377_v59 = vadd.f32 1.0, %v23834_v53  ;;  %v9426_v51 = vmul.f32 0.5, %v9362_v28  ;;  %v9489_v40 = vmul.f32 %v9425_v61, %v26450_v16  ;;  %v23448_v16 = vld [vmem:[%s30460_s16 + $0x180] sm:$0xff]   ;;  %v23459_v22 = vld [vmem:[%s30460_s16 + $0x118] sm:$0xff]   ;;  %v23466_v61 = vld [vmem:[%s30460_s16 + $0x1e8] sm:$0xff]  }
0x11ed   : > { %v23838_v15 = vpop.eup %23837  ;;  %v9439_v33 = vmul.f32 0.5, %v9375_v11  ;;  %v9376_v36 = vadd.f32 1.0, %v23836_v41  ;;  %v9488_v38 = vmul.f32 %v9424_v10, %v26453_v54  ;;  %v23449_v54 = vld [vmem:[%s30460_s16 + $0x148] sm:$0xff]   ;;  %v23460_v5 = vld [vmem:[%s30460_s16 + $0x198] sm:$0xff]   ;;  %v23461_v28 = vld [vmem:[%s30460_s16 + $0x160] sm:$0xff]  }
0x11ee   : > { %v9441_v52 = vmul.f32 0.5, %v9377_v59  ;;  %v9378_v12 = vadd.f32 1.0, %v23838_v15  ;;  %v9490_v60 = vmul.f32 %v9426_v51, %v26456_v17  ;;  %v23450_v17 = vld [vmem:[%s30460_s16 + $0x1c8] sm:$0xff]   ;;  %v23462_v53 = vld [vmem:[%s30460_s16 + $0x1e0] sm:$0xff]   ;;  %v26571_v59 = vsub.s32 4, %v24590_v0  ;;  %v23470_v51 = vld [vmem:[%s30460_s16 + $0x1f0] sm:$0xff]  }
0x11ef   : > { %v9503_v4 = vmul.f32 %v9439_v33, %v26463_v25  ;;  %v9440_v45 = vmul.f32 0.5, %v9376_v36  ;;  %v23463_v44 = vld [vmem:[%s30460_s16 + $0x120] sm:$0xff]   ;;  %v23465_v41 = vld [vmem:[%s30460_s16 + $0x168] sm:$0xff]   ;;  %v26574_v15 = vsub.s32 6, %v24590_v0  ;;  %v26577_v33 = vsub.s32 5, %v24590_v0 }
0x11f0   : > { %v9505_v47 = vmul.f32 %v9441_v52, %v26466_v7  ;;  %v9442_v57 = vmul.f32 0.5, %v9378_v12  ;;  %v23451_v7 = vld [vmem:[%s30460_s16 + $0x108] sm:$0xff]   ;;  %v23464_v11 = vld [vmem:[%s30460_s16 + $0x1a0] sm:$0xff]   ;;  %30656 = vst [vmem:[#allocation25_spill] sm:$0xff] %v26571_v59  ;;  %v26580_v36 = vsub.s32 7, %v24590_v0  ;;  %v23469_v0 = vld [vmem:[%s30460_s16 + $0x170] sm:$0xff]  }
0x11f1   : > { %v9551_v63 = vpack.c.bf16 %v9503_v4, %v9487_v29  ;;  %v9504_v3 = vmul.f32 %v9440_v45, %v26473_v27  ;;  %v23452_v27 = vld [vmem:[%s30460_s16 + $0x188] sm:$0xff]   ;;  %30657 = vst [vmem:[#allocation26_spill] sm:$0xff] %v26574_v15  ;;  %30658 = vst [vmem:[#allocation27_spill] sm:$0xff] %v26577_v33  ;;  %v26599_v29 = vrot.slane %v26428_v34, %v26571_v59 }
0x11f2   : > { %v9553_v1 = vpack.c.bf16 %v9505_v47, %v9489_v40  ;;  %v9506_v48 = vmul.f32 %v9442_v57, %v26476_v42  ;;  %v23453_v42 = vld [vmem:[%s30460_s16 + $0x150] sm:$0xff]   ;;  %30659 = vst [vmem:[#allocation28_spill] sm:$0xff] %v26580_v36  ;;  %v23467_v10 = vld [vmem:[%s30460_s16 + $0x128] sm:$0xff]   ;;  %v26603_v4 = vrot.slane %v26428_v34, %v26574_v15  ;;  %v26607_v45 = vrot.slane %v26428_v34, %v26577_v33 }
0x11f3   : > { %v9552_v19 = vpack.c.bf16 %v9504_v3, %v9488_v38  ;;  %v8302_v52 = vld [vmem:[%s30459_s15 + $0x8] sm:$0xff]  ;;  %v26611_v40 = vrot.slane %v26428_v34, %v26580_v36  ;;  %v23471_v57 = vld [vmem:[%s30460_s16 + $0x130] sm:$0xff]  }
0x11f4   : > { %v9554_v25 = vpack.c.bf16 %v9506_v48, %v9490_v60  ;;  %v23468_v12 = vld [vmem:[%s30460_s16 + $0x1a8] sm:$0xff]   ;;  %v26614_v47 = vrot.slane %v8302_v52, %v24742_v2  ;;  %v26620_v3 = vrot.slane %v8302_v52, %v24815_v21  ;;  %v26626_v60 = vrot.slane %v8302_v52, %v24824_v26  ;;  %v23472_v34 = vld [vmem:[%s30460_s16 + $0x1b0] sm:$0xff]  }
0x11f5   : > { %10646 = vmatprep.mubr.bf16.mxu1 %v9552_v19 }
0x11f6   : > { %10695 = vmatprep.mubr.bf16.mxu0 %v9554_v25  ;;  %10647 = vmatmul.mubr.bf16.vlgmr.msra.gmra.mrb[112].mxu1 %v9551_v63 }
0x11f7   : > { %10696 = vmatmul.mubr.bf16.vlgmr.msra.gmra.mrb[116].mxu0 %v9553_v1  ;;  %22030 = vmatpush3.bf16.msra.mxu1 %v23447_v56  ;;  %v26623_v1 = vrot.slane %v8302_v52, %v24821_v24 }
0x11f8   : > { %22058 = vmatpush3.bf16.msra.mxu0 %v23448_v16  ;;  %22031 = vmatprep.subr.bf16.mxu1 %v23449_v54  ;;  %v23473_v16 = vld [vmem:[%s30460_s16 + $0x178] sm:$0xff]   ;;  %v26641_v54 = vrot.slane %v8302_v52, %v26571_v59 }
0x11f9   : > { %22059 = vmatprep.subr.bf16.mxu0 %v23450_v17  ;;  %v26644_v17 = vrot.slane %v8302_v52, %v26574_v15 }
0x11fa   : > { %30662 = vst [vmem:[#allocation31_spill] sm:$0xff] %v26641_v54 }
0x11fb   : > { %22032 = vmatpush3.bf16.msra.mxu1 %v23451_v7  ;;  %30663 = vst [vmem:[#allocation32_spill] sm:$0xff] %v26644_v17 }
0x11fc   : > { %22060 = vmatpush3.bf16.msra.mxu0 %v23452_v27  ;;  %22033 = vmatprep.subr.bf16.mxu1 %v23453_v42 }
0x11fd   : > { %22061 = vmatprep.subr.bf16.mxu0 %v23454_v20 }
0x11ff   : > { %22034 = vmatpush3.bf16.msra.mxu1 %v23455_v6  ;;  %v23474_v6 = vld [vmem:[%s30460_s16 + $0x1f8] sm:$0xff]  }
0x1200   : > { %22062 = vmatpush3.bf16.msra.mxu0 %v23456_v8  ;;  %22035 = vmatprep.subr.bf16.mxu1 %v23457_v13  ;;  %v26656_v8 = vrot.slane %v8302_v52, %v26577_v33  ;;  %v26659_v13 = vrot.slane %v8302_v52, %v26580_v36  ;;  %v23477_v52 = vld [vmem:[%s30460_s16 + $0x240] sm:$0xff]  }
0x1201   : > { %22063 = vmatprep.subr.bf16.mxu0 %v23458_v55 }
0x1202   : > { %30664 = vst [vmem:[#allocation33_spill] sm:$0xff] %v26656_v8  ;;  %30665 = vst [vmem:[#allocation34_spill] sm:$0xff] %v26659_v13 }
0x1203   : > { %22036 = vmatpush3.bf16.msra.mxu1 %v23459_v22 }
0x1204   : > { %22064 = vmatpush3.bf16.msra.mxu0 %v23460_v5  ;;  %22037 = vmatprep.subr.bf16.mxu1 %v23461_v28 }
0x1205   : > { %22065 = vmatprep.subr.bf16.mxu0 %v23462_v53 }
0x1207   : > { %22038 = vmatpush3.bf16.msra.mxu1 %v23463_v44 }
0x1208   : > { %22066 = vmatpush3.bf16.msra.mxu0 %v23464_v11  ;;  %22039 = vmatprep.subr.bf16.mxu1 %v23465_v41  ;;  %v23475_v11 = vld [vmem:[%s30460_s16 + $0x138] sm:$0xff]  }
0x1209   : > { %22067 = vmatprep.subr.bf16.mxu0 %v23466_v61 }
0x120b   : > { %22040 = vmatpush3.bf16.msra.mxu1 %v23467_v10 }
0x120c   : > { %v8595_v63 = vpop.f32.mrb[84].mxu1  ;;  %v8648_v38 = vpop.f32.mrb[88].mxu0  ;;  %22068 = vmatpush3.bf16.msra.mxu0 %v23468_v12  ;;  %22041 = vmatprep.subr.bf16.mxu1 %v23469_v0 }
0x120d   : > { %v26632_v48 = vadd.f32 %v8595_v63, %v26432_v43  ;;  %v26635_v19 = vadd.f32 %v8648_v38, %v26436_v30  ;;  %v8597_v56 = vpop.f32.mrb[85].mxu1  ;;  %v8650_v25 = vpop.f32.mrb[89].mxu0  ;;  %22069 = vmatprep.subr.bf16.mxu0 %v23470_v51  ;;  %v23478_v51 = vld [vmem:[%s30460_s16 + $0x2c0] sm:$0xff]  }
0x120e   : > { %v26647_v7 = vadd.f32 %v8597_v56, %v26440_v49  ;;  %v26650_v27 = vadd.f32 %v8650_v25, %v26444_v62  ;;  %v8599_v42 = vpop.f32.mrb[86].mxu1  ;;  %v8652_v20 = vpop.f32.mrb[90].mxu0 }
0x120f   : > { %30660 = vst [vmem:[#allocation29_spill] sm:$0xff] %v26632_v48  ;;  %30661 = vst [vmem:[#allocation30_spill] sm:$0xff] %v26635_v19  ;;  %v9007_v55 = vmul.f32 %v26632_v48, %v26632_v48  ;;  %v9009_v22 = vmul.f32 %v26635_v19, %v26635_v19  ;;  %v26666_v5 = vadd.f32 %v8599_v42, %v26432_v43  ;;  %v8601_v53 = vpop.f32.mrb[87].mxu1  ;;  %v8654_v44 = vpop.f32.mrb[91].mxu0  ;;  %22042 = vmatpush3.bf16.msra.mxu1 %v23471_v57 }
0x1210   : > { %v26669_v28 = vadd.f32 %v8652_v20, %v26436_v30  ;;  %v9008_v41 = vmul.f32 %v26647_v7, %v26647_v7  ;;  %v9010_v61 = vmul.f32 %v26650_v27, %v26650_v27  ;;  %v26679_v10 = vadd.f32 %v8601_v53, %v26440_v49  ;;  %22070 = vmatpush3.bf16.msra.mxu0 %v23472_v34  ;;  %v23476_v30 = vld [vmem:[%s30460_s16 + $0x1b8] sm:$0xff]  }
0x1211   : > { %30666 = vst [vmem:[#allocation35_spill] sm:$0xff] %v26666_v5  ;;  %v26682_v43 = vadd.f32 %v8654_v44, %v26444_v62  ;;  %v9071_v12 = vmul.f32 %v9007_v55, %v26632_v48  ;;  %v9073_v0 = vmul.f32 %v9009_v22, %v26635_v19  ;;  %v9023_v49 = vmul.f32 %v26666_v5, %v26666_v5 }
0x1212   : > { %30667 = vst [vmem:[#allocation36_spill] sm:$0xff] %v26669_v28  ;;  %v9025_v62 = vmul.f32 %v26669_v28, %v26669_v28  ;;  %22043 = vmatprep.subr.bf16.mxu1 %v23473_v16  ;;  %v9072_v57 = vmul.f32 %v9008_v41, %v26647_v7  ;;  %v9074_v63 = vmul.f32 %v9010_v61, %v26650_v27 }
0x1213   : > { %v9024_v38 = vmul.f32 %v26679_v10, %v26679_v10  ;;  %v9026_v34 = vmul.f32 %v26682_v43, %v26682_v43  ;;  %22071 = vmatprep.subr.bf16.mxu0 %v23474_v6  ;;  %v9135_v56 = vmul.f32 0.044715, %v9071_v12  ;;  %v9137_v25 = vmul.f32 0.044715, %v9073_v0  ;;  %22044 = vmatpush3.bf16.msra.mxu1 %v23475_v11 }
0x1214   : > { %v9087_v42 = vmul.f32 %v9023_v49, %v26666_v5  ;;  %v9089_v16 = vmul.f32 %v9025_v62, %v26669_v28  ;;  %v9136_v20 = vmul.f32 0.044715, %v9072_v57  ;;  %v9138_v55 = vmul.f32 0.044715, %v9074_v63  ;;  %v8691_v44 = vpop.f32.mrb[88].mxu1  ;;  %v8744_v41 = vpop.f32.mrb[92].mxu0  ;;  %22072 = vmatpush3.bf16.msra.mxu0 %v23476_v30  ;;  %22085 = vmatprep.subr.bf16.mxu1 %v23477_v52 }
0x1215   : > { %v9088_v22 = vmul.f32 %v9024_v38, %v26679_v10  ;;  %v9090_v53 = vmul.f32 %v9026_v34, %v26682_v43  ;;  %v9199_v61 = vadd.f32 %v9135_v56, %v26632_v48  ;;  %v9201_v6 = vadd.f32 %v9137_v25, %v26635_v19  ;;  %v8693_v49 = vpop.f32.mrb[89].mxu1  ;;  %v8746_v32 = vpop.f32.mrb[93].mxu0  ;;  %22113 = vmatprep.subr.bf16.mxu0 %v23478_v51 }
0x1216   : > { %v9151_v12 = vmul.f32 0.044715, %v9087_v42  ;;  %v9153_v0 = vmul.f32 0.044715, %v9089_v16  ;;  %v9200_v11 = vadd.f32 %v9136_v20, %v26647_v7  ;;  %v9202_v62 = vadd.f32 %v9138_v55, %v26650_v27  ;;  %v8695_v38 = vpop.f32.mrb[90].mxu1  ;;  %v8748_v34 = vpop.f32.mrb[94].mxu0 }
0x1217   : > { %v9152_v57 = vmul.f32 0.044715, %v9088_v22  ;;  %v9154_v63 = vmul.f32 0.044715, %v9090_v53  ;;  %v9263_v58 = vmul.f32 0.7978846, %v9199_v61  ;;  %v26718_v53 = vadd.f32 %v8691_v44, %v26599_v29 }
0x1218   : > { %v9265_v30 = vmul.f32 0.7978846, %v9201_v6  ;;  %v9215_v52 = vadd.f32 %v9151_v12, %v26666_v5  ;;  %v9217_v56 = vadd.f32 %v9153_v0, %v26669_v28  ;;  %v8697_v25 = vpop.f32.mrb[91].mxu1  ;;  %v8750_v42 = vpop.f32.mrb[95].mxu0  ;;  %v9264_v16 = vmul.f32 0.7978846, %v9200_v11 }
0x1219   : > { %v9266_v36 = vmul.f32 0.7978846, %v9202_v62  ;;  %v9216_v51 = vadd.f32 %v9152_v57, %v26679_v10  ;;  %v9218_v20 = vadd.f32 %v9154_v63, %v26682_v43  ;;  %23839 = vtanh.f32 %v9263_v58 }
0x121a   : > { %v9279_v55 = vmul.f32 0.7978846, %v9215_v52  ;;  %v9281_v22 = vmul.f32 0.7978846, %v9217_v56  ;;  %23841 = vtanh.f32 %v9265_v30  ;;  %v26721_v12 = vadd.f32 %v8744_v41, %v26603_v4 }
0x121b   : > { %v9280_v61 = vmul.f32 0.7978846, %v9216_v51  ;;  %v9282_v6 = vmul.f32 0.7978846, %v9218_v20  ;;  %23843 = vtanh.f32 %v9264_v16  ;;  %v8979_v0 = vmul.f32 %v26718_v53, %v26718_v53 }
0x121c   : > { %v26726_v11 = vadd.f32 %v8693_v49, %v26607_v45  ;;  %v26729_v58 = vadd.f32 %v8746_v32, %v26611_v40  ;;  %23845 = vtanh.f32 %v9266_v36  ;;  %v8981_v44 = vmul.f32 %v26721_v12, %v26721_v12  ;;  %v8701_v57 = vpop.f32.mrb[92].mxu1  ;;  %v8754_v63 = vpop.f32.mrb[96].mxu0 }
0x121d   : > { %v26734_v62 = vadd.f32 %v8695_v38, %v26599_v29  ;;  %v26737_v41 = vadd.f32 %v8748_v34, %v26603_v4  ;;  %23847 = vtanh.f32 %v9279_v55  ;;  %v9043_v30 = vmul.f32 %v8979_v0, %v26718_v53  ;;  %v8703_v36 = vpop.f32.mrb[93].mxu1  ;;  %v8756_v52 = vpop.f32.mrb[97].mxu0 }
0x121e   : > { %30668 = vst [vmem:[#allocation37_spill] sm:$0xff] %v26726_v11  ;;  %30669 = vst [vmem:[#allocation38_spill] sm:$0xff] %v26729_v58  ;;  %v8980_v49 = vmul.f32 %v26726_v11, %v26726_v11  ;;  %v8982_v32 = vmul.f32 %v26729_v58, %v26729_v58  ;;  %23849 = vtanh.f32 %v9281_v22  ;;  %v9045_v38 = vmul.f32 %v8981_v44, %v26721_v12  ;;  %v26749_v16 = vpop.f32.mrb[94].mxu1  ;;  %v26751_v51 = vpop.f32.mrb[98].mxu0 }
0x121f   : > { %v8995_v34 = vmul.f32 %v26734_v62, %v26734_v62  ;;  %v8997_v56 = vmul.f32 %v26737_v41, %v26737_v41  ;;  %23851 = vtanh.f32 %v9280_v61  ;;  %v9107_v20 = vmul.f32 0.044715, %v9043_v30  ;;  %v26755_v33 = vpop.f32.mrb[95].mxu1  ;;  %v26757_v22 = vpop.f32.mrb[99].mxu0 }
0x1220   : > { %v9044_v55 = vmul.f32 %v8980_v49, %v26726_v11  ;;  %v9046_v0 = vmul.f32 %v8982_v32, %v26729_v58  ;;  %23853 = vtanh.f32 %v9282_v6  ;;  %v9109_v44 = vmul.f32 0.044715, %v9045_v38 }
0x1221   : > { %v9059_v15 = vmul.f32 %v8995_v34, %v26734_v62  ;;  %v9061_v59 = vmul.f32 %v8997_v56, %v26737_v41  ;;  %v9171_v26 = vadd.f32 %v9107_v20, %v26718_v53  ;;  %v26763_v61 = vadd.f32 %v8697_v25, %v26607_v45 }
0x1222   : > { %v9108_v24 = vmul.f32 0.044715, %v9044_v55  ;;  %v9110_v21 = vmul.f32 0.044715, %v9046_v0  ;;  %v9173_v30 = vadd.f32 %v9109_v44, %v26721_v12  ;;  %v26767_v2 = vadd.f32 %v8750_v42, %v26611_v40 }
0x1223   : > { %30670 = vst [vmem:[#allocation39_spill] sm:$0xff] %v26763_v61  ;;  %v9123_v49 = vmul.f32 0.044715, %v9059_v15  ;;  %v9125_v32 = vmul.f32 0.044715, %v9061_v59  ;;  %v26769_v6 = vpop.eup %23839  ;;  %v8996_v20 = vmul.f32 %v26763_v61, %v26763_v61  ;;  %v26837_v18 = vadd.f32 %v26749_v16, %v26599_v29 }
0x1224   : > { %30671 = vst [vmem:[#allocation40_spill] sm:$0xff] %v26767_v2  ;;  %v9235_v38 = vmul.f32 0.7978846, %v9171_v26  ;;  %v9172_v34 = vadd.f32 %v9108_v24, %v26726_v11  ;;  %v9174_v56 = vadd.f32 %v9110_v21, %v26729_v58  ;;  %v26775_v55 = vpop.eup %23841  ;;  %v9237_v25 = vmul.f32 0.7978846, %v9173_v30  ;;  %v26781_v42 = vpop.f32.mrb[96].mxu1 }
0x1225   : > { %v9187_v0 = vadd.f32 %v9123_v49, %v26734_v62  ;;  %v9189_v59 = vadd.f32 %v9125_v32, %v26737_v41  ;;  %v8998_v15 = vmul.f32 %v26767_v2, %v26767_v2  ;;  %v26783_v26 = vpop.f32.mrb[100].mxu0  ;;  %v26785_v24 = vpop.eup %23843  ;;  %v9060_v50 = vmul.f32 %v8996_v20, %v26763_v61  ;;  %30676 = vst [vmem:[#allocation45_spill] sm:$0xff] %v26837_v18 }
0x1226   : > { %23855 = vtanh.f32 %v9235_v38  ;;  %v9236_v21 = vmul.f32 0.7978846, %v9172_v34  ;;  %v9238_v44 = vmul.f32 0.7978846, %v9174_v56  ;;  %v26788_v31 = vpop.f32.mrb[97].mxu1  ;;  %v26790_v30 = vpop.f32.mrb[101].mxu0  ;;  %v26802_v56 = vadd.f32 %v8701_v57, %v26599_v29 }
0x1227   : > { %v26792_v49 = vpop.eup %23845  ;;  %23857 = vtanh.f32 %v9237_v25  ;;  %v9251_v32 = vmul.f32 0.7978846, %v9187_v0  ;;  %v9253_v9 = vmul.f32 0.7978846, %v9189_v59  ;;  %v9062_v39 = vmul.f32 %v8998_v15, %v26767_v2  ;;  %v26795_v37 = vpop.f32.mrb[98].mxu1 }
0x1228   : > { %v26797_v14 = vpop.f32.mrb[102].mxu0  ;;  %v26799_v38 = vpop.eup %23847  ;;  %23859 = vtanh.f32 %v9236_v21  ;;  %v9124_v34 = vmul.f32 0.044715, %v9060_v50  ;;  %30672 = vst [vmem:[#allocation41_spill] sm:$0xff] %v26802_v56  ;;  %v26805_v20 = vadd.f32 %v8754_v63, %v26603_v4  ;;  %v26814_v15 = vadd.f32 %v8703_v36, %v26607_v45 }
0x1229   : > { %v26807_v35 = vpop.f32.mrb[99].mxu1  ;;  %v26809_v25 = vpop.f32.mrb[103].mxu0  ;;  %23861 = vtanh.f32 %v9238_v44  ;;  %v9126_v59 = vmul.f32 0.044715, %v9062_v39  ;;  %v26817_v21 = vadd.f32 %v8756_v52, %v26611_v40  ;;  %v9011_v63 = vmul.f32 %v26802_v56, %v26802_v56 }
0x122a   : > { %30673 = vst [vmem:[#allocation42_spill] sm:$0xff] %v26805_v20  ;;  %v26811_v0 = vpop.eup %23849  ;;  %30674 = vst [vmem:[#allocation43_spill] sm:$0xff] %v26814_v15  ;;  %23863 = vtanh.f32 %v9251_v32  ;;  %v9188_v57 = vadd.f32 %v9124_v34, %v26763_v61  ;;  %v9013_v23 = vmul.f32 %v26805_v20, %v26805_v20  ;;  %v9012_v36 = vmul.f32 %v26814_v15, %v26814_v15 }
0x122b   : > { %30675 = vst [vmem:[#allocation44_spill] sm:$0xff] %v26817_v21  ;;  %v26819_v50 = vpop.eup %23851  ;;  %23865 = vtanh.f32 %v9253_v9  ;;  %v9190_v39 = vadd.f32 %v9126_v59, %v26767_v2  ;;  %v9014_v52 = vmul.f32 %v26817_v21, %v26817_v21  ;;  %v9075_v32 = vmul.f32 %v9011_v63, %v26802_v56 }
0x122c   : > { %v26826_v46 = vpop.eup %23853  ;;  %v9252_v44 = vmul.f32 0.7978846, %v9188_v57  ;;  %v9077_v34 = vmul.f32 %v9013_v23, %v26805_v20  ;;  %v9076_v9 = vmul.f32 %v9012_v36, %v26814_v15  ;;  %v26843_v2 = vadd.f32 %v26751_v51, %v26603_v4  ;;  %v26845_v61 = vpop.f32.mrb[100].mxu1 }
0x122d   : > { %v9254_v58 = vmul.f32 0.7978846, %v9190_v39  ;;  %v9078_v59 = vmul.f32 %v9014_v52, %v26817_v21  ;;  %v26847_v57 = vpop.f32.mrb[104].mxu0  ;;  %v9139_v63 = vmul.f32 0.044715, %v9075_v32  ;;  %v9027_v29 = vmul.f32 %v26837_v18, %v26837_v18  ;;  %v26851_v16 = vpop.f32.mrb[101].mxu1 }
0x122e   : > { %30677 = vst [vmem:[#allocation46_spill] sm:$0xff] %v26843_v2  ;;  %23867 = vtanh.f32 %v9252_v44  ;;  %v9141_v23 = vmul.f32 0.044715, %v9077_v34  ;;  %v26853_v39 = vpop.f32.mrb[105].mxu0  ;;  %v9140_v36 = vmul.f32 0.044715, %v9076_v9  ;;  %v9029_v4 = vmul.f32 %v26843_v2, %v26843_v2 }
0x122f   : > { %23869 = vtanh.f32 %v9254_v58  ;;  %v9142_v52 = vmul.f32 0.044715, %v9078_v59  ;;  %v26857_v51 = vpop.f32.mrb[102].mxu1  ;;  %v26859_v11 = vpop.f32.mrb[106].mxu0  ;;  %v9203_v32 = vadd.f32 %v9139_v63, %v26802_v56  ;;  %v9091_v28 = vmul.f32 %v9027_v29, %v26837_v18 }
0x1230   : > { %v23856_v44 = vpop.eup %23855  ;;  %v9205_v34 = vadd.f32 %v9141_v23, %v26805_v20  ;;  %v26866_v13 = vadd.f32 %v26755_v33, %v26607_v45  ;;  %v26868_v58 = vpop.f32.mrb[103].mxu1  ;;  %v9204_v19 = vadd.f32 %v9140_v36, %v26814_v15  ;;  %v9093_v63 = vmul.f32 %v9029_v4, %v26843_v2 }
0x1231   : > { %v26870_v9 = vpop.f32.mrb[107].mxu0  ;;  %v23858_v59 = vpop.eup %23857  ;;  %v9363_v8 = vadd.f32 1.0, %v23856_v44  ;;  %v9206_v5 = vadd.f32 %v9142_v52, %v26817_v21  ;;  %v9267_v29 = vmul.f32 0.7978846, %v9203_v32  ;;  %v26883_v36 = vadd.f32 %v26757_v22, %v26611_v40 }
0x1232   : > { %30678 = vst [vmem:[#allocation47_spill] sm:$0xff] %v26866_v13  ;;  %v26875_v56 = vpop.eup %23859  ;;  %v9365_v23 = vadd.f32 1.0, %v23858_v59  ;;  %v9269_v20 = vmul.f32 0.7978846, %v9205_v34  ;;  %v9028_v33 = vmul.f32 %v26866_v13, %v26866_v13  ;;  %v9268_v48 = vmul.f32 0.7978846, %v9204_v19 }
0x1233   : > { %v26879_v45 = vpop.eup %23861  ;;  %v9427_v17 = vmul.f32 0.5, %v9363_v8  ;;  %v9270_v54 = vmul.f32 0.7978846, %v9206_v5  ;;  %30679 = vst [vmem:[#allocation48_spill] sm:$0xff] %v26883_v36  ;;  %23871 = vtanh.f32 %v9267_v29  ;;  %v9155_v4 = vmul.f32 0.044715, %v9091_v28 }
0x1234   : > { %v23864_v52 = vpop.eup %23863  ;;  %v9429_v44 = vmul.f32 0.5, %v9365_v23  ;;  %v9157_v21 = vmul.f32 0.044715, %v9093_v63  ;;  %23873 = vtanh.f32 %v9269_v20  ;;  %v9092_v15 = vmul.f32 %v9028_v33, %v26866_v13  ;;  %v26889_v8 = vpop.f32.mrb[104].mxu1 }
0x1235   : > { %v23866_v59 = vpop.eup %23865  ;;  %v26886_v32 = vmul.f32 %v9427_v17, %v26718_v53  ;;  %v9379_v34 = vadd.f32 1.0, %v23864_v52  ;;  %v26891_v19 = vpop.f32.mrb[108].mxu0  ;;  %23875 = vtanh.f32 %v9268_v48  ;;  %v9219_v28 = vadd.f32 %v9155_v4, %v26837_v18 }
0x1236   : > { %v26894_v40 = vmul.f32 %v9429_v44, %v26721_v12  ;;  %v9381_v5 = vadd.f32 1.0, %v23866_v59  ;;  %v26897_v22 = vpop.f32.mrb[105].mxu1  ;;  %v26899_v63 = vpop.f32.mrb[109].mxu0  ;;  %23877 = vtanh.f32 %v9270_v54  ;;  %v9221_v53 = vadd.f32 %v9157_v21, %v26843_v2 }
0x1237   : > { %30680 = vst [vmem:[#allocation49_spill] sm:$0xff] %v26886_v32  ;;  %v9443_v17 = vmul.f32 0.5, %v9379_v34  ;;  %v9156_v20 = vmul.f32 0.044715, %v9092_v15  ;;  %v26902_v23 = vpop.f32.mrb[106].mxu1  ;;  %v26904_v29 = vpop.f32.mrb[110].mxu0  ;;  %v9030_v48 = vmul.f32 %v26883_v36, %v26883_v36  ;;  %v26912_v44 = vadd.f32 %v26781_v42, %v26614_v47 }
0x1238   : > { %30681 = vst [vmem:[#allocation50_spill] sm:$0xff] %v26894_v40  ;;  %v26906_v33 = vpop.eup %23867  ;;  %v9445_v12 = vmul.f32 0.5, %v9381_v5  ;;  %v9283_v52 = vmul.f32 0.7978846, %v9219_v28  ;;  %v26914_v4 = vpop.f32.mrb[107].mxu1  ;;  %v26926_v5 = vadd.f32 %v26783_v26, %v26620_v3 }
0x1239   : > { %v26916_v54 = vpop.f32.mrb[111].mxu0  ;;  %v26918_v15 = vpop.eup %23869  ;;  %v26921_v21 = vmul.f32 %v9443_v17, %v26734_v62  ;;  %v9285_v59 = vmul.f32 0.7978846, %v9221_v53  ;;  %v9220_v34 = vadd.f32 %v9156_v20, %v26866_v13  ;;  %v9094_v42 = vmul.f32 %v9030_v48, %v26883_v36 }
0x123a   : > { %v26929_v28 = vmul.f32 %v9445_v12, %v26737_v41  ;;  %23879 = vtanh.f32 %v9283_v52  ;;  %v8983_v2 = vmul.f32 %v26912_v44, %v26912_v44  ;;  %v8985_v53 = vmul.f32 %v26926_v5, %v26926_v5 }
0x123b   : > { %30682 = vst [vmem:[#allocation51_spill] sm:$0xff] %v26921_v21  ;;  %23881 = vtanh.f32 %v9285_v59  ;;  %v9284_v17 = vmul.f32 0.7978846, %v9220_v34  ;;  %v9158_v20 = vmul.f32 0.044715, %v9094_v42  ;;  %v26943_v12 = vadd.f32 %v26788_v31, %v26623_v1 }
0x123c   : > { %30683 = vst [vmem:[#allocation52_spill] sm:$0xff] %v26929_v28  ;;  %v9047_v41 = vmul.f32 %v8983_v2, %v26912_v44  ;;  %v9049_v52 = vmul.f32 %v8985_v53, %v26926_v5  ;;  %v26948_v48 = vadd.f32 %v26790_v30, %v26626_v60  ;;  %v26952_v59 = vadd.f32 %v26795_v37, %v26614_v47  ;;  %v26954_v34 = vpop.f32.mrb[108].mxu1  ;;  %v26956_v42 = vpop.f32.mrb[112].mxu0 }
0x123d   : > { %23883 = vtanh.f32 %v9284_v17  ;;  %30685 = vst [vmem:[#allocation54_spill] sm:$0xff] %v26956_v42  ;;  %v26958_v2 = vpop.eup %23871  ;;  %v9222_v31 = vadd.f32 %v9158_v20, %v26883_v36  ;;  %v8984_v17 = vmul.f32 %v26943_v12, %v26943_v12  ;;  %v26965_v30 = vadd.f32 %v26797_v14, %v26620_v3  ;;  %v26967_v53 = vpop.f32.mrb[109].mxu1 }
0x123e   : > { %30684 = vst [vmem:[#allocation53_spill] sm:$0xff] %v26948_v48  ;;  %30686 = vst [vmem:[#allocation55_spill] sm:$0xff] %v26958_v2  ;;  %v9111_v26 = vmul.f32 0.044715, %v9047_v41  ;;  %v26969_v37 = vpop.f32.mrb[113].mxu0  ;;  %v26971_v62 = vpop.eup %23873  ;;  %v8986_v13 = vmul.f32 %v26948_v48, %v26948_v48  ;;  %v8999_v20 = vmul.f32 %v26952_v59, %v26952_v59  ;;  %v26979_v41 = vadd.f32 %v26807_v35, %v26623_v1 }
0x123f   : > { %30687 = vst [vmem:[#allocation56_spill] sm:$0xff] %v26967_v53  ;;  %30688 = vst [vmem:[#allocation57_spill] sm:$0xff] %v26969_v37  ;;  %v9113_v18 = vmul.f32 0.044715, %v9049_v52  ;;  %v26981_v36 = vpop.f32.mrb[110].mxu1  ;;  %v26983_v14 = vpop.f32.mrb[114].mxu0  ;;  %v9048_v52 = vmul.f32 %v8984_v17, %v26943_v12  ;;  %v9001_v28 = vmul.f32 %v26965_v30, %v26965_v30 }
0x1240   : > { %30689 = vst [vmem:[#allocation58_spill] sm:$0xff] %v26971_v62  ;;  %30690 = vst [vmem:[#allocation59_spill] sm:$0xff] %v26979_v41  ;;  %v26985_v2 = vpop.eup %23875  ;;  %v9286_v40 = vmul.f32 0.7978846, %v9222_v31  ;;  %v9175_v62 = vadd.f32 %v9111_v26, %v26912_v44  ;;  %v26991_v32 = vpop.f32.mrb[111].mxu1  ;;  %v9000_v26 = vmul.f32 %v26979_v41, %v26979_v41 }
0x1241   : > { %30691 = vst [vmem:[#allocation60_spill] sm:$0xff] %v26981_v36  ;;  %30692 = vst [vmem:[#allocation61_spill] sm:$0xff] %v26983_v14  ;;  %v26993_v21 = vpop.f32.mrb[115].mxu0  ;;  %v26995_v35 = vpop.eup %23877  ;;  %v9177_v36 = vadd.f32 %v9113_v18, %v26926_v5  ;;  %v9050_v14 = vmul.f32 %v8986_v13, %v26948_v48  ;;  %v9112_v17 = vmul.f32 0.044715, %v9048_v52  ;;  %v9065_v37 = vmul.f32 %v9001_v28, %v26965_v30 }
0x1242   : > { %30693 = vst [vmem:[#allocation62_spill] sm:$0xff] %v26985_v2  ;;  %30694 = vst [vmem:[#allocation63_spill] sm:$0xff] %v26991_v32  ;;  %v9063_v2 = vmul.f32 %v8999_v20, %v26952_v59  ;;  %23885 = vtanh.f32 %v9286_v40  ;;  %v9239_v31 = vmul.f32 0.7978846, %v9175_v62  ;;  %v27009_v20 = vadd.f32 %v26809_v25, %v26626_v60 }
0x1243   : > { %30695 = vst [vmem:[#allocation64_spill] sm:$0xff] %v26993_v21  ;;  %30696 = vst [vmem:[#allocation65_spill] sm:$0xff] %v26995_v35  ;;  %v9241_v53 = vmul.f32 0.7978846, %v9177_v36  ;;  %v9114_v32 = vmul.f32 0.044715, %v9050_v14  ;;  %v9064_v21 = vmul.f32 %v9000_v26, %v26979_v41  ;;  %v9176_v18 = vadd.f32 %v9112_v17, %v26943_v12 }
0x1244   : > { %v9127_v42 = vmul.f32 0.044715, %v9063_v2  ;;  %v27004_v35 = vpop.eup %23879  ;;  %23887 = vtanh.f32 %v9239_v31  ;;  %v9129_v13 = vmul.f32 0.044715, %v9065_v37  ;;  %30697 = vst [vmem:[#allocation66_spill] sm:$0xff] %v27009_v20  ;;  %v9002_v52 = vmul.f32 %v27009_v20, %v27009_v20 }
0x1245   : > { %v27011_v40 = vpop.eup %23881  ;;  %23889 = vtanh.f32 %v9241_v53  ;;  %v9178_v28 = vadd.f32 %v9114_v32, %v26948_v48  ;;  %v9128_v62 = vmul.f32 0.044715, %v9064_v21  ;;  %v9240_v2 = vmul.f32 0.7978846, %v9176_v18 }
0x1246   : > { %v9191_v36 = vadd.f32 %v9127_v42, %v26952_v59  ;;  %v9193_v14 = vadd.f32 %v9129_v13, %v26965_v30  ;;  %v27020_v37 = vadd.f32 %v26845_v61, %v26614_v47  ;;  %v27027_v32 = vadd.f32 %v26847_v57, %v26620_v3 }
0x1247   : > { %v27022_v25 = vpop.eup %23883  ;;  %v9242_v26 = vmul.f32 0.7978846, %v9178_v28  ;;  %v9192_v53 = vadd.f32 %v9128_v62, %v26979_v41  ;;  %23891 = vtanh.f32 %v9240_v2  ;;  %v9066_v42 = vmul.f32 %v9002_v52, %v27009_v20 }
0x1248   : > { %30698 = vst [vmem:[#allocation67_spill] sm:$0xff] %v27020_v37  ;;  %v9255_v31 = vmul.f32 0.7978846, %v9191_v36  ;;  %v9257_v21 = vmul.f32 0.7978846, %v9193_v14  ;;  %v9015_v17 = vmul.f32 %v27020_v37, %v27020_v37  ;;  %v9017_v18 = vmul.f32 %v27027_v32, %v27027_v32 }
0x1249   : > { %23893 = vtanh.f32 %v9242_v26  ;;  %v9256_v61 = vmul.f32 0.7978846, %v9192_v53  ;;  %v27036_v13 = vadd.f32 %v26851_v16, %v26623_v1  ;;  %v9130_v28 = vmul.f32 0.044715, %v9066_v42 }
0x124a   : > { %23895 = vtanh.f32 %v9255_v31  ;;  %v9079_v57 = vmul.f32 %v9015_v17, %v27020_v37  ;;  %v27041_v36 = vadd.f32 %v26853_v39, %v26626_v60  ;;  %v9081_v62 = vmul.f32 %v9017_v18, %v27027_v32 }
0x124b   : > { %23897 = vtanh.f32 %v9257_v21  ;;  %v9016_v2 = vmul.f32 %v27036_v13, %v27036_v13  ;;  %v27048_v14 = vadd.f32 %v26857_v51, %v26614_v47  ;;  %v9194_v52 = vadd.f32 %v9130_v28, %v27009_v20 }
0x124c   : > { %v27050_v16 = vpop.eup %23885  ;;  %23899 = vtanh.f32 %v9256_v61  ;;  %v9143_v26 = vmul.f32 0.044715, %v9079_v57  ;;  %v9018_v39 = vmul.f32 %v27041_v36, %v27041_v36  ;;  %v9145_v31 = vmul.f32 0.044715, %v9081_v62 }
0x124d   : > { %v9080_v53 = vmul.f32 %v9016_v2, %v27036_v13  ;;  %v9031_v21 = vmul.f32 %v27048_v14, %v27048_v14  ;;  %v27060_v42 = vadd.f32 %v26859_v11, %v26620_v3  ;;  %v9258_v51 = vmul.f32 0.7978846, %v9194_v52 }
0x124e   : > { %v23888_v47 = vpop.eup %23887  ;;  %v9207_v17 = vadd.f32 %v9143_v26, %v27020_v37  ;;  %v9082_v61 = vmul.f32 %v9018_v39, %v27041_v36  ;;  %v27066_v18 = vadd.f32 %v26868_v58, %v26623_v1  ;;  %v9209_v62 = vadd.f32 %v9145_v31, %v27027_v32 }
0x124f   : > { %v23890_v28 = vpop.eup %23889  ;;  %v9367_v57 = vadd.f32 1.0, %v23888_v47  ;;  %v9144_v2 = vmul.f32 0.044715, %v9080_v53  ;;  %v9095_v20 = vmul.f32 %v9031_v21, %v27048_v14  ;;  %23901 = vtanh.f32 %v9258_v51 }
0x1250   : > { %v9369_v48 = vadd.f32 1.0, %v23890_v28  ;;  %v9271_v3 = vmul.f32 0.7978846, %v9207_v17  ;;  %v9146_v11 = vmul.f32 0.044715, %v9082_v61  ;;  %v9033_v31 = vmul.f32 %v27060_v42, %v27060_v42 }
0x1251   : > { %v9431_v52 = vmul.f32 0.5, %v9367_v57  ;;  %v9273_v41 = vmul.f32 0.7978846, %v9209_v62  ;;  %v9208_v26 = vadd.f32 %v9144_v2, %v27036_v13  ;;  %v9159_v39 = vmul.f32 0.044715, %v9095_v20  ;;  %v27071_v37 = vpop.eup %23891 }
0x1252   : > { %v9433_v1 = vmul.f32 0.5, %v9369_v48  ;;  %23903 = vtanh.f32 %v9271_v3  ;;  %v9210_v58 = vadd.f32 %v9146_v11, %v27041_v36  ;;  %v9097_v61 = vmul.f32 %v9033_v31, %v27060_v42 }
0x1253   : > { %v27076_v53 = vpop.eup %23893  ;;  %v27079_v21 = vmul.f32 %v9431_v52, %v26912_v44  ;;  %23905 = vtanh.f32 %v9273_v41  ;;  %v9272_v47 = vmul.f32 0.7978846, %v9208_v26  ;;  %v9223_v51 = vadd.f32 %v9159_v39, %v27048_v14 }
0x1254   : > { %v23896_v17 = vpop.eup %23895  ;;  %v27083_v20 = vmul.f32 %v9433_v1, %v26926_v5  ;;  %v9274_v48 = vmul.f32 0.7978846, %v9210_v58  ;;  %v9032_v28 = vmul.f32 %v27066_v18, %v27066_v18  ;;  %v27090_v44 = vadd.f32 %v26870_v9, %v26626_v60 }
0x1255   : > { %v23898_v57 = vpop.eup %23897  ;;  %v9383_v62 = vadd.f32 1.0, %v23896_v17  ;;  %23907 = vtanh.f32 %v9272_v47  ;;  %v9287_v2 = vmul.f32 0.7978846, %v9223_v51  ;;  %v9161_v5 = vmul.f32 0.044715, %v9097_v61 }
0x1256   : > { %30699 = vst [vmem:[#allocation68_spill] sm:$0xff] %v27083_v20  ;;  %v27092_v41 = vpop.eup %23899  ;;  %v9385_v3 = vadd.f32 1.0, %v23898_v57  ;;  %23909 = vtanh.f32 %v9274_v48  ;;  %v9096_v11 = vmul.f32 %v9032_v28, %v27066_v18  ;;  %v9034_v26 = vmul.f32 %v27090_v44, %v27090_v44 }
0x1257   : > { %v9447_v52 = vmul.f32 0.5, %v9383_v62  ;;  %23911 = vtanh.f32 %v9287_v2  ;;  %v9392_v39 = vadd.f32 1.0, %v26785_v24  ;;  %v9225_v58 = vadd.f32 %v9161_v5, %v27060_v42 }
0x1258   : > { %v9449_v1 = vmul.f32 0.5, %v9385_v3  ;;  %v9160_v31 = vmul.f32 0.044715, %v9096_v11  ;;  %v9408_v60 = vadd.f32 1.0, %v26819_v50  ;;  %v9098_v47 = vmul.f32 %v9034_v26, %v27090_v44 }
0x1259   : > { %v27101_v9 = vmul.f32 %v9447_v52, %v26952_v59  ;;  %v9456_v51 = vmul.f32 0.5, %v9392_v39  ;;  %v9394_v17 = vadd.f32 1.0, %v26792_v49  ;;  %v27105_v48 = vpop.eup %23901  ;;  %v9289_v24 = vmul.f32 0.7978846, %v9225_v58 }
0x125a   : > { %v27108_v61 = vmul.f32 %v9449_v1, %v26965_v30  ;;  %v9224_v28 = vadd.f32 %v9160_v31, %v27066_v18  ;;  %v9472_v57 = vmul.f32 0.5, %v9408_v60  ;;  %v9162_v62 = vmul.f32 0.044715, %v9098_v47 }
0x125b   : > { %v9520_v59 = vmul.f32 %v9456_v51, %v26647_v7  ;;  %v9410_v2 = vadd.f32 1.0, %v26826_v46  ;;  %23913 = vtanh.f32 %v9289_v24  ;;  %v9458_v26 = vmul.f32 0.5, %v9394_v17 }
0x125c   : > { %30700 = vst [vmem:[#allocation69_spill] sm:$0xff] %v27108_v61  ;;  %v27115_v3 = vpop.eup %23903  ;;  %v9288_v30 = vmul.f32 0.7978846, %v9224_v28  ;;  %v9536_v5 = vmul.f32 %v9472_v57, %v26679_v10  ;;  %v9226_v52 = vadd.f32 %v9162_v62, %v27090_v44  ;;  %v9391_v1 = vadd.f32 1.0, %v26769_v6  ;;  %v30701_v57 = vld [vmem:[#allocation31_spill] sm:$0xff] }
0x125d   : > { %v27120_v11 = vpop.eup %23905  ;;  %v9474_v39 = vmul.f32 0.5, %v9410_v2  ;;  %v9407_v46 = vadd.f32 1.0, %v26799_v38  ;;  %v9393_v58 = vadd.f32 1.0, %v26775_v55  ;;  %v9522_v47 = vmul.f32 %v9458_v26, %v26650_v27  ;;  %v30703_v2 = vld [vmem:[#allocation32_spill] sm:$0xff]  ;;  %v30705_v26 = vld [vmem:[#allocation30_spill] sm:$0xff] }
0x125e   : > { %23915 = vtanh.f32 %v9288_v30  ;;  %v9568_v7 = vpack.c.bf16 %v9536_v5, %v9520_v59  ;;  %v9290_v60 = vmul.f32 0.7978846, %v9226_v52  ;;  %v9455_v51 = vmul.f32 0.5, %v9391_v1  ;;  %v30702_v59 = vld [vmem:[#allocation29_spill] sm:$0xff]  ;;  %v30704_v30 = vld [vmem:[#allocation35_spill] sm:$0xff] }
0x125f   : > { %v27126_v31 = vpop.eup %23907  ;;  %v9538_v10 = vmul.f32 %v9474_v39, %v26682_v43  ;;  %v9471_v17 = vmul.f32 0.5, %v9407_v46  ;;  %v9409_v6 = vadd.f32 1.0, %v26811_v0  ;;  %v9457_v28 = vmul.f32 0.5, %v9393_v58  ;;  %v30706_v1 = vld [vmem:[#allocation33_spill] sm:$0xff]  ;;  %v30708_v46 = vld [vmem:[#allocation34_spill] sm:$0xff] }
0x1260   : > { %v27130_v24 = vpop.eup %23909  ;;  %10654 = vmatprep.mubr.bf16.mxu1 %v9568_v7  ;;  %v27135_v38 = vadd.f32 %v26889_v8, %v30701_v57  ;;  %23917 = vtanh.f32 %v9290_v60  ;;  %v9519_v27 = vmul.f32 %v9455_v51, %v30702_v59  ;;  %v27142_v43 = vadd.f32 %v26891_v19, %v30703_v2 }
0x1261   : > { %v27137_v55 = vpop.eup %23911  ;;  %v9570_v62 = vpack.c.bf16 %v9538_v10, %v9522_v47  ;;  %v9535_v5 = vmul.f32 %v9471_v17, %v30704_v30  ;;  %v9473_v52 = vmul.f32 0.5, %v9409_v6  ;;  %v9521_v0 = vmul.f32 %v9457_v28, %v30705_v26  ;;  %v30710_v47 = vld [vmem:[#allocation36_spill] sm:$0xff] }
0x1262   : > { %v8987_v39 = vmul.f32 %v27135_v38, %v27135_v38  ;;  %v8989_v8 = vmul.f32 %v27142_v43, %v27142_v43  ;;  %v27152_v7 = vadd.f32 %v26897_v22, %v30706_v1  ;;  %v27156_v19 = vadd.f32 %v26899_v63, %v30708_v46 }
0x1263   : > { %10703 = vmatprep.mubr.bf16.mxu0 %v9570_v62  ;;  %v27160_v58 = vadd.f32 %v26902_v23, %v30701_v57  ;;  %v9567_v60 = vpack.c.bf16 %v9535_v5, %v9519_v27  ;;  %v9537_v10 = vmul.f32 %v9473_v52, %v30710_v47  ;;  %v27166_v17 = vadd.f32 %v26904_v29, %v30703_v2 }
0x1264   : > { %30707 = vst [vmem:[#allocation31_spill] sm:$0xff] %v27152_v7  ;;  %30709 = vst [vmem:[#allocation29_spill] sm:$0xff] %v27156_v19  ;;  %v9051_v51 = vmul.f32 %v8987_v39, %v27135_v38  ;;  %v9053_v22 = vmul.f32 %v8989_v8, %v27142_v43  ;;  %v8988_v6 = vmul.f32 %v27152_v7, %v27152_v7 }
0x1265   : > { %v8990_v63 = vmul.f32 %v27156_v19, %v27156_v19  ;;  %v9003_v23 = vmul.f32 %v27160_v58, %v27160_v58  ;;  %v27175_v28 = vpop.eup %23913  ;;  %10655 = vmatmul.mubr.bf16.gmra.mrb[116].mxu1 %v9567_v60  ;;  %v9569_v62 = vpack.c.bf16 %v9537_v10, %v9521_v0  ;;  %v9005_v29 = vmul.f32 %v27166_v17, %v27166_v17 }
0x1266   : > { %v9115_v59 = vmul.f32 0.044715, %v9051_v51  ;;  %v27181_v27 = vadd.f32 %v26914_v4, %v30706_v1  ;;  %v9117_v30 = vmul.f32 0.044715, %v9053_v22  ;;  %v9052_v5 = vmul.f32 %v8988_v6, %v27152_v7 }
0x1267   : > { %v9054_v52 = vmul.f32 %v8990_v63, %v27156_v19  ;;  %v9067_v26 = vmul.f32 %v9003_v23, %v27160_v58  ;;  %10704 = vmatmul.mubr.bf16.gmra.mrb[120].mxu0 %v9569_v62  ;;  %v9069_v8 = vmul.f32 %v9005_v29, %v27166_v17  ;;  %v27194_v4 = vadd.f32 %v26916_v54, %v30708_v46 }
0x1268   : > { %30711 = vst [vmem:[#allocation32_spill] sm:$0xff] %v27181_v27  ;;  %v27186_v39 = vpop.eup %23915  ;;  %v9179_v0 = vadd.f32 %v9115_v59, %v27135_v38  ;;  %v9004_v60 = vmul.f32 %v27181_v27, %v27181_v27  ;;  %v9181_v47 = vadd.f32 %v9117_v30, %v27142_v43  ;;  %v9116_v10 = vmul.f32 0.044715, %v9052_v5 }
0x1269   : > { %30712 = vst [vmem:[#allocation35_spill] sm:$0xff] %v27194_v4  ;;  %v9118_v51 = vmul.f32 0.044715, %v9054_v52  ;;  %v9131_v22 = vmul.f32 0.044715, %v9067_v26  ;;  %v9006_v62 = vmul.f32 %v27194_v4, %v27194_v4 }
0x126a   : > { %v9243_v6 = vmul.f32 0.7978846, %v9179_v0  ;;  %v9133_v63 = vmul.f32 0.044715, %v9069_v8  ;;  %v9068_v23 = vmul.f32 %v9004_v60, %v27181_v27  ;;  %v27200_v59 = vpop.eup %23917  ;;  %v9245_v29 = vmul.f32 0.7978846, %v9181_v47 }
0x126b   : > { %v9180_v49 = vadd.f32 %v9116_v10, %v27152_v7  ;;  %v9182_v54 = vadd.f32 %v9118_v51, %v27156_v19  ;;  %v9195_v50 = vadd.f32 %v9131_v22, %v27160_v58  ;;  %v9070_v52 = vmul.f32 %v9006_v62, %v27194_v4 }
0x126c   : > { %23919 = vtanh.f32 %v9243_v6  ;;  %v9197_v30 = vadd.f32 %v9133_v63, %v27166_v17  ;;  %v9132_v5 = vmul.f32 0.044715, %v9068_v23  ;;  %v9364_v10 = vadd.f32 1.0, %v26875_v56 }
0x126d   : > { %23921 = vtanh.f32 %v9245_v29  ;;  %v9244_v26 = vmul.f32 0.7978846, %v9180_v49  ;;  %v9246_v0 = vmul.f32 0.7978846, %v9182_v54  ;;  %v9259_v8 = vmul.f32 0.7978846, %v9195_v50 }
0x126e   : > { %v9261_v60 = vmul.f32 0.7978846, %v9197_v30  ;;  %v9196_v20 = vadd.f32 %v9132_v5, %v27181_v27  ;;  %v9134_v47 = vmul.f32 0.044715, %v9070_v52  ;;  %v9380_v51 = vadd.f32 1.0, %v26906_v33  ;;  %v30713_v30 = vld [vmem:[#allocation37_spill] sm:$0xff] }
0x126f   : > { %23923 = vtanh.f32 %v9244_v26  ;;  %v9366_v22 = vadd.f32 1.0, %v26879_v45  ;;  %v9382_v6 = vadd.f32 1.0, %v26918_v15  ;;  %v9428_v49 = vmul.f32 0.5, %v9364_v10  ;;  %v30714_v45 = vld [vmem:[#allocation39_spill] sm:$0xff]  ;;  %v30715_v5 = vld [vmem:[#allocation38_spill] sm:$0xff]  ;;  %v30716_v52 = vld [vmem:[#allocation40_spill] sm:$0xff] }
0x1270   : > { %23925 = vtanh.f32 %v9246_v0  ;;  %v9260_v63 = vmul.f32 0.7978846, %v9196_v20  ;;  %v9198_v23 = vadd.f32 %v9134_v47, %v27194_v4  ;;  %v9444_v50 = vmul.f32 0.5, %v9380_v51  ;;  %v30718_v47 = vld [vmem:[#allocation56_spill] sm:$0xff] }
0x1271   : > { %23927 = vtanh.f32 %v9259_v8  ;;  %v9430_v62 = vmul.f32 0.5, %v9366_v22  ;;  %v9446_v29 = vmul.f32 0.5, %v9382_v6  ;;  %v9492_v56 = vmul.f32 %v9428_v49, %v30713_v30  ;;  %v30717_v8 = vld [vmem:[#allocation54_spill] sm:$0xff]  ;;  %v23479_v22 = vld [vmem:[%s30460_s16 + $0x200] sm:$0xff]   ;;  %v30720_v49 = vld [vmem:[#allocation60_spill] sm:$0xff] }
0x1272   : > { %23929 = vtanh.f32 %v9261_v60  ;;  %v9262_v54 = vmul.f32 0.7978846, %v9198_v23  ;;  %v27216_v33 = vadd.f32 %v26954_v34, %v30701_v57  ;;  %v9508_v15 = vmul.f32 %v9444_v50, %v30714_v45  ;;  %v23480_v6 = vld [vmem:[%s30460_s16 + $0x280] sm:$0xff]  }
0x1273   : > { %23931 = vtanh.f32 %v9260_v63  ;;  %v9494_v20 = vmul.f32 %v9430_v62, %v30715_v5  ;;  %v9510_v26 = vmul.f32 %v9446_v29, %v30716_v52  ;;  %v27225_v60 = vadd.f32 %v30717_v8, %v30703_v2  ;;  %v30719_v63 = vld [vmem:[#allocation57_spill] sm:$0xff]  ;;  %v23481_v29 = vld [vmem:[%s30460_s16 + $0x248] sm:$0xff]  }
0x1274   : > { %23933 = vtanh.f32 %v9262_v54  ;;  %v9019_v0 = vmul.f32 %v27216_v33, %v27216_v33  ;;  %v27229_v10 = vadd.f32 %v30718_v47, %v30706_v1  ;;  %v9556_v34 = vpack.c.bf16 %v9508_v15, %v9492_v56  ;;  %v23482_v54 = vld [vmem:[%s30460_s16 + $0x2c8] sm:$0xff]  }
0x1275   : > { %v9558_v51 = vpack.c.bf16 %v9510_v26, %v9494_v20  ;;  %v27239_v23 = vadd.f32 %v30719_v63, %v30708_v46  ;;  %v27243_v50 = vadd.f32 %v30720_v49, %v30701_v57  ;;  %v9021_v56 = vmul.f32 %v27225_v60, %v27225_v60  ;;  %v30721_v57 = vld [vmem:[#allocation61_spill] sm:$0xff]  ;;  %v30723_v63 = vld [vmem:[#allocation51_spill] sm:$0xff] }
0x1276   : > { %v23920_v62 = vpop.eup %23919  ;;  %v9083_v30 = vmul.f32 %v9019_v0, %v27216_v33  ;;  %v9020_v45 = vmul.f32 %v27229_v10, %v27229_v10  ;;  %v27258_v15 = vadd.f32 %v30721_v57, %v30703_v2  ;;  %10744 = vmatprep.mubr.bf16.mxu1 %v9556_v34  ;;  %v30722_v0 = vld [vmem:[#allocation63_spill] sm:$0xff]  ;;  %v30724_v49 = vld [vmem:[#allocation49_spill] sm:$0xff]  ;;  %v30726_v2 = vld [vmem:[#allocation52_spill] sm:$0xff] }
0x1277   : > { %v23922_v5 = vpop.eup %23921  ;;  %v9371_v20 = vadd.f32 1.0, %v23920_v62  ;;  %10793 = vmatprep.mubr.bf16.mxu0 %v9558_v51  ;;  %v9022_v52 = vmul.f32 %v27239_v23, %v27239_v23  ;;  %v9035_v26 = vmul.f32 %v27243_v50, %v27243_v50  ;;  %v27266_v8 = vadd.f32 %v30722_v0, %v30706_v1  ;;  %v30727_v57 = vld [vmem:[#allocation50_spill] sm:$0xff]  ;;  %v23483_v1 = vld [vmem:[%s30460_s16 + $0x208] sm:$0xff]  }
0x1278   : > { %v9373_v47 = vadd.f32 1.0, %v23922_v5  ;;  %v30725_v4 = vpack.c.bf16 %v30723_v63, %v30724_v49  ;;  %v30728_v62 = vpack.c.bf16 %v30726_v2, %v30727_v57  ;;  %v9147_v34 = vmul.f32 0.044715, %v9083_v30 }
0x1279   : > { %v9085_v51 = vmul.f32 %v9021_v56, %v27225_v60  ;;  %v9084_v19 = vmul.f32 %v9020_v45, %v27229_v10  ;;  %v27276_v61 = vpop.eup %23923  ;;  %v9435_v27 = vmul.f32 0.5, %v9371_v20  ;;  %v9086_v5 = vmul.f32 %v9022_v52, %v27239_v23  ;;  %v23486_v52 = vld [vmem:[%s30460_s16 + $0x2d0] sm:$0xff]  }
0x127a   : > { %10745 = vmatmul.mubr.bf16.vlgmr.msra.gmra.mrb[120].mxu1 %v30725_v4  ;;  %10794 = vmatmul.mubr.bf16.vlgmr.msra.gmra.mrb[124].mxu0 %v30728_v62  ;;  %v23484_v4 = vld [vmem:[%s30460_s16 + $0x288] sm:$0xff]   ;;  %v9099_v30 = vmul.f32 %v9035_v26, %v27243_v50  ;;  %v9037_v56 = vmul.f32 %v27258_v15, %v27258_v15  ;;  %v9437_v45 = vmul.f32 0.5, %v9373_v47  ;;  %v9211_v20 = vadd.f32 %v9147_v34, %v27216_v33 }
0x127b   : > { %22086 = vmatpush3.bf16.msra.mxu1 %v23479_v22  ;;  %22114 = vmatpush3.bf16.msra.mxu0 %v23480_v6  ;;  %v23485_v22 = vld [vmem:[%s30460_s16 + $0x250] sm:$0xff]   ;;  %v27291_v6 = vpop.eup %23925  ;;  %v9149_v0 = vmul.f32 0.044715, %v9085_v51  ;;  %v9148_v63 = vmul.f32 0.044715, %v9084_v19  ;;  %v27298_v49 = vmul.f32 %v9435_v27, %v27135_v38 }
0x127c   : > { %22087 = vmatprep.subr.bf16.mxu1 %v23481_v29  ;;  %22115 = vmatprep.subr.bf16.mxu0 %v23482_v54  ;;  %v23928_v26 = vpop.eup %23927  ;;  %v9150_v2 = vmul.f32 0.044715, %v9086_v5  ;;  %v9163_v57 = vmul.f32 0.044715, %v9099_v30  ;;  %v9101_v62 = vmul.f32 %v9037_v56, %v27258_v15  ;;  %v27302_v29 = vmul.f32 %v9437_v45, %v27142_v43  ;;  %v23487_v43 = vld [vmem:[%s30460_s16 + $0x210] sm:$0xff]  }
0x127d   : > { %30729 = vst [vmem:[#allocation30_spill] sm:$0xff] %v27298_v49  ;;  %v23930_v7 = vpop.eup %23929  ;;  %v9387_v54 = vadd.f32 1.0, %v23928_v26  ;;  %v9275_v47 = vmul.f32 0.7978846, %v9211_v20  ;;  %v9213_v19 = vadd.f32 %v9149_v0, %v27225_v60  ;;  %v9212_v38 = vadd.f32 %v9148_v63, %v27229_v10  ;;  %v23488_v30 = vld [vmem:[%s30460_s16 + $0x290] sm:$0xff]   ;;  %v23490_v20 = vld [vmem:[%s30460_s16 + $0x2d8] sm:$0xff]  }
0x127e   : > { %30730 = vst [vmem:[#allocation33_spill] sm:$0xff] %v27302_v29  ;;  %v27305_v34 = vpop.eup %23931  ;;  %v9389_v51 = vadd.f32 1.0, %v23930_v7  ;;  %v9214_v27 = vadd.f32 %v9150_v2, %v27239_v23  ;;  %v9227_v5 = vadd.f32 %v9163_v57, %v27243_v50  ;;  %v23489_v7 = vld [vmem:[%s30460_s16 + $0x258] sm:$0xff]   ;;  %v9165_v45 = vmul.f32 0.044715, %v9101_v62  ;;  %v30733_v62 = vld [vmem:[#allocation64_spill] sm:$0xff] }
0x127f   : > { %22088 = vmatpush3.bf16.msra.mxu1 %v23483_v1  ;;  %22116 = vmatpush3.bf16.msra.mxu0 %v23484_v4  ;;  %v27319_v1 = vpop.eup %23933  ;;  %v9451_v4 = vmul.f32 0.5, %v9387_v54  ;;  %23935 = vtanh.f32 %v9275_v47  ;;  %v9277_v56 = vmul.f32 0.7978846, %v9213_v19  ;;  %v9276_v63 = vmul.f32 0.7978846, %v9212_v38  ;;  %v30741_v29 = vld [vmem:[#allocation48_spill] sm:$0xff] }
0x1280   : > { %22089 = vmatprep.subr.bf16.mxu1 %v23485_v22  ;;  %22117 = vmatprep.subr.bf16.mxu0 %v23486_v52  ;;  %v9453_v0 = vmul.f32 0.5, %v9389_v51  ;;  %v9278_v26 = vmul.f32 0.7978846, %v9214_v27  ;;  %v9036_v2 = vmul.f32 %v27266_v8, %v27266_v8  ;;  %v9291_v54 = vmul.f32 0.7978846, %v9227_v5  ;;  %v23492_v51 = vld [vmem:[%s30460_s16 + $0x298] sm:$0xff]  }
0x1281   : > { %v27327_v57 = vmul.f32 %v9451_v4, %v27160_v58  ;;  %23937 = vtanh.f32 %v9277_v56  ;;  %v9229_v47 = vadd.f32 %v9165_v45, %v27258_v15  ;;  %v27336_v19 = vadd.f32 %v30733_v62, %v30708_v46  ;;  %v23491_v58 = vld [vmem:[%s30460_s16 + $0x218] sm:$0xff]   ;;  %v23493_v46 = vld [vmem:[%s30460_s16 + $0x260] sm:$0xff]   ;;  %v30742_v49 = vld [vmem:[#allocation41_spill] sm:$0xff] }
0x1282   : > { %v27331_v22 = vmul.f32 %v9453_v0, %v27166_v17  ;;  %23939 = vtanh.f32 %v9276_v63  ;;  %v9100_v52 = vmul.f32 %v9036_v2, %v27266_v8  ;;  %v30734_v27 = vld [vmem:[#allocation62_spill] sm:$0xff]  ;;  %v9414_v2 = vadd.f32 1.0, %v27050_v16  ;;  %v23497_v16 = vld [vmem:[%s30460_s16 + $0x268] sm:$0xff]  }
0x1283   : > { %30731 = vst [vmem:[#allocation34_spill] sm:$0xff] %v27327_v57  ;;  %22090 = vmatpush3.bf16.msra.mxu1 %v23487_v43  ;;  %22118 = vmatpush3.bf16.msra.mxu0 %v23488_v30  ;;  %23941 = vtanh.f32 %v9278_v26  ;;  %v9293_v38 = vmul.f32 0.7978846, %v9229_v47  ;;  %v9396_v5 = vadd.f32 1.0, %v30734_v27  ;;  %v23494_v43 = vld [vmem:[%s30460_s16 + $0x2e0] sm:$0xff]   ;;  %v9038_v56 = vmul.f32 %v27336_v19, %v27336_v19 }
0x1284   : > { %30732 = vst [vmem:[#allocation36_spill] sm:$0xff] %v27331_v22  ;;  %22091 = vmatprep.subr.bf16.mxu1 %v23489_v7  ;;  %22119 = vmatprep.subr.bf16.mxu0 %v23490_v20  ;;  %23943 = vtanh.f32 %v9291_v54  ;;  %v9164_v4 = vmul.f32 0.044715, %v9100_v52  ;;  %v9412_v7 = vadd.f32 1.0, %v27022_v25  ;;  %v30735_v20 = vld [vmem:[#allocation65_spill] sm:$0xff]  ;;  %v30736_v47 = vld [vmem:[#allocation55_spill] sm:$0xff] }
0x1285   : > { %23945 = vtanh.f32 %v9293_v38  ;;  %v9460_v45 = vmul.f32 0.5, %v9396_v5  ;;  %v9398_v0 = vadd.f32 1.0, %v30735_v20  ;;  %v9102_v26 = vmul.f32 %v9038_v56, %v27336_v19  ;;  %v23495_v54 = vld [vmem:[%s30460_s16 + $0x220] sm:$0xff]  }
0x1286   : > { %v9228_v63 = vadd.f32 %v9164_v4, %v27266_v8  ;;  %v9395_v62 = vadd.f32 1.0, %v30736_v47  ;;  %v23496_v25 = vld [vmem:[%s30460_s16 + $0x2a0] sm:$0xff]   ;;  %v9476_v52 = vmul.f32 0.5, %v9412_v7  ;;  %v9411_v4 = vadd.f32 1.0, %v27004_v35 }
0x1287   : > { %22092 = vmatpush3.bf16.msra.mxu1 %v23491_v58  ;;  %22120 = vmatpush3.bf16.msra.mxu0 %v23492_v51  ;;  %v30737_v38 = vld [vmem:[#allocation43_spill] sm:$0xff]  ;;  %v9462_v5 = vmul.f32 0.5, %v9398_v0  ;;  %v23498_v58 = vld [vmem:[%s30460_s16 + $0x2e8] sm:$0xff]   ;;  %v9166_v56 = vmul.f32 0.044715, %v9102_v26  ;;  %v9478_v20 = vmul.f32 0.5, %v9414_v2 }
0x1288   : > { %v9524_v27 = vmul.f32 %v9460_v45, %v30737_v38  ;;  %22093 = vmatprep.subr.bf16.mxu1 %v23493_v46  ;;  %22121 = vmatprep.subr.bf16.mxu0 %v23494_v43  ;;  %v9292_v51 = vmul.f32 0.7978846, %v9228_v63  ;;  %v9459_v47 = vmul.f32 0.5, %v9395_v62  ;;  %v30738_v45 = vld [vmem:[#allocation47_spill] sm:$0xff]  ;;  %v30739_v38 = vld [vmem:[#allocation44_spill] sm:$0xff]  ;;  %v9475_v46 = vmul.f32 0.5, %v9411_v4 }
0x1289   : > { %v27377_v7 = vpop.eup %23935  ;;  %v9540_v0 = vmul.f32 %v9476_v52, %v30738_v45  ;;  %v9526_v35 = vmul.f32 %v9462_v5, %v30739_v38  ;;  %v30740_v43 = vld [vmem:[#allocation58_spill] sm:$0xff]  ;;  %v9230_v17 = vadd.f32 %v9166_v56, %v27336_v19  ;;  %v9542_v22 = vmul.f32 %v9478_v20, %v30741_v29  ;;  %v23499_v63 = vld [vmem:[%s30460_s16 + $0x228] sm:$0xff]   ;;  %v30743_v62 = vld [vmem:[#allocation45_spill] sm:$0xff] }
0x128a   : > { %v9397_v30 = vadd.f32 1.0, %v30740_v43  ;;  %23947 = vtanh.f32 %v9292_v51  ;;  %v9523_v57 = vmul.f32 %v9459_v47, %v30742_v49  ;;  %v9539_v52 = vmul.f32 %v9475_v46, %v30743_v62  ;;  %v23500_v49 = vld [vmem:[%s30460_s16 + $0x2a8] sm:$0xff]   ;;  %v30744_v20 = vld [vmem:[#allocation42_spill] sm:$0xff] }
0x128b   : > { %22094 = vmatpush3.bf16.msra.mxu1 %v23495_v54  ;;  %22122 = vmatpush3.bf16.msra.mxu0 %v23496_v25  ;;  %v27388_v26 = vpop.eup %23937  ;;  %v9572_v2 = vpack.c.bf16 %v9540_v0, %v9524_v27  ;;  %v9413_v5 = vadd.f32 1.0, %v27011_v40  ;;  %v9294_v54 = vmul.f32 0.7978846, %v9230_v17  ;;  %v9574_v25 = vpack.c.bf16 %v9542_v22, %v9526_v35  ;;  %v23501_v27 = vld [vmem:[%s30460_s16 + $0x270] sm:$0xff]  }
0x128c   : > { %v9461_v4 = vmul.f32 0.5, %v9397_v30  ;;  %22095 = vmatprep.subr.bf16.mxu1 %v23497_v16  ;;  %22123 = vmatprep.subr.bf16.mxu0 %v23498_v58  ;;  %v27395_v29 = vpop.eup %23939  ;;  %v9368_v51 = vadd.f32 1.0, %v27071_v37  ;;  %v9384_v56 = vadd.f32 1.0, %v27092_v41  ;;  %v23502_v40 = vld [vmem:[%s30460_s16 + $0x2f0] sm:$0xff]   ;;  %v9571_v16 = vpack.c.bf16 %v9539_v52, %v9523_v57  ;;  %v30745_v57 = vld [vmem:[#allocation46_spill] sm:$0xff] }
0x128d   : > { %v27405_v30 = vpop.eup %23941  ;;  %10752 = vmatprep.mubr.bf16.mxu1 %v9572_v2  ;;  %v9477_v58 = vmul.f32 0.5, %v9413_v5  ;;  %v9370_v22 = vadd.f32 1.0, %v27076_v53  ;;  %23949 = vtanh.f32 %v9294_v54  ;;  %10801 = vmatprep.mubr.bf16.mxu0 %v9574_v25  ;;  %v9386_v45 = vadd.f32 1.0, %v27105_v48  ;;  %v23503_v0 = vld [vmem:[%s30460_s16 + $0x230] sm:$0xff]   ;;  %v23505_v53 = vld [vmem:[%s30460_s16 + $0x278] sm:$0xff]   ;;  %v30746_v2 = vld [vmem:[#allocation59_spill] sm:$0xff] }
0x128e   : > { %v9525_v17 = vmul.f32 %v9461_v4, %v30744_v20  ;;  %v27409_v37 = vpop.eup %23943  ;;  %v9432_v41 = vmul.f32 0.5, %v9368_v51  ;;  %v9448_v47 = vmul.f32 0.5, %v9384_v56  ;;  %10753 = vmatmul.mubr.bf16.gmra.mrb[124].mxu1 %v9571_v16  ;;  %v9400_v43 = vadd.f32 1.0, %v27126_v31  ;;  %v23504_v5 = vld [vmem:[%s30460_s16 + $0x2b0] sm:$0xff]   ;;  %v23506_v31 = vld [vmem:[%s30460_s16 + $0x2f8] sm:$0xff]  }
0x128f   : > { %22096 = vmatpush3.bf16.msra.mxu1 %v23499_v63  ;;  %v27415_v38 = vpop.eup %23945  ;;  %v9541_v35 = vmul.f32 %v9477_v58, %v30745_v57  ;;  %v9434_v46 = vmul.f32 0.5, %v9370_v22  ;;  %22124 = vmatpush3.bf16.msra.mxu0 %v23500_v49  ;;  %v9416_v48 = vadd.f32 1.0, %v27186_v39  ;;  %v9450_v52 = vmul.f32 0.5, %v9386_v45  ;;  %v30747_v54 = vld [vmem:[#allocation53_spill] sm:$0xff]  ;;  %v30748_v56 = vld [vmem:[#allocation66_spill] sm:$0xff]  ;;  %v23509_v58 = vld [vmem:[%s30460_s16 + $0x340] sm:$0xff]  }
0x1290   : > { %v9496_v63 = vmul.f32 %v9432_v41, %v26943_v12  ;;  %v9512_v62 = vmul.f32 %v9448_v47, %v30746_v2  ;;  %22097 = vmatprep.subr.bf16.mxu1 %v23501_v27  ;;  %22125 = vmatprep.subr.bf16.mxu0 %v23502_v40  ;;  %v9402_v4 = vadd.f32 1.0, %v27130_v24  ;;  %v9464_v39 = vmul.f32 0.5, %v9400_v43  ;;  %v23507_v27 = vld [vmem:[%s30460_s16 + $0x238] sm:$0xff]   ;;  %v30749_v2 = vld [vmem:[#allocation67_spill] sm:$0xff] }
0x1291   : > { %v9573_v49 = vpack.c.bf16 %v9541_v35, %v9525_v17  ;;  %v9498_v25 = vmul.f32 %v9434_v46, %v30747_v54  ;;  %v9480_v12 = vmul.f32 0.5, %v9416_v48  ;;  %v9514_v16 = vmul.f32 %v9450_v52, %v30748_v56 }
0x1292   : > { %v9560_v51 = vpack.c.bf16 %v9512_v62, %v9496_v63  ;;  %v9418_v40 = vadd.f32 1.0, %v27200_v59  ;;  %v9466_v24 = vmul.f32 0.5, %v9402_v4  ;;  %v9528_v20 = vmul.f32 %v9464_v39, %v27036_v13  ;;  %v23508_v59 = vld [vmem:[%s30460_s16 + $0x2b8] sm:$0xff]   ;;  %v23510_v13 = vld [vmem:[%s30460_s16 + $0x3c0] sm:$0xff]   ;;  %v23513_v63 = vld [vmem:[%s30460_s16 + $0x348] sm:$0xff]  }
0x1293   : > { %22098 = vmatpush3.bf16.msra.mxu1 %v23503_v0  ;;  %10802 = vmatmul.mubr.bf16.gmra.mrb[128].mxu0 %v9573_v49  ;;  %v9544_v17 = vmul.f32 %v9480_v12, %v27066_v18  ;;  %v9399_v22 = vadd.f32 1.0, %v27115_v3  ;;  %v9415_v41 = vadd.f32 1.0, %v27137_v55  ;;  %v9562_v45 = vpack.c.bf16 %v9514_v16, %v9498_v25 }
0x1294   : > { %22099 = vmatprep.subr.bf16.mxu1 %v23505_v53  ;;  %v23948_v47 = vpop.eup %23947  ;;  %10842 = vmatprep.mubr.bf16.mxu1 %v9560_v51  ;;  %v9482_v0 = vmul.f32 0.5, %v9418_v40  ;;  %v9530_v57 = vmul.f32 %v9466_v24, %v27041_v36  ;;  %v9401_v35 = vadd.f32 1.0, %v27120_v11  ;;  %v9417_v46 = vadd.f32 1.0, %v27175_v28  ;;  %v23511_v36 = vld [vmem:[%s30460_s16 + $0x300] sm:$0xff]   ;;  %v30752_v51 = vld [vmem:[#allocation32_spill] sm:$0xff]  ;;  %v30753_v40 = vld [vmem:[#allocation69_spill] sm:$0xff] }
0x1295   : > { %22126 = vmatpush3.bf16.msra.mxu0 %v23504_v5  ;;  %v9576_v18 = vpack.c.bf16 %v9544_v17, %v9528_v20  ;;  %v9463_v3 = vmul.f32 0.5, %v9399_v22  ;;  %v9479_v55 = vmul.f32 0.5, %v9415_v41  ;;  %10891 = vmatprep.mubr.bf16.mxu0 %v9562_v45  ;;  %v9372_v11 = vadd.f32 1.0, %v27276_v61  ;;  %v23512_v61 = vld [vmem:[%s30460_s16 + $0x380] sm:$0xff]   ;;  %v30754_v24 = vld [vmem:[#allocation68_spill] sm:$0xff]  ;;  %v30756_v17 = vld [vmem:[#allocation29_spill] sm:$0xff] }
0x1296   : > { %22127 = vmatprep.subr.bf16.mxu0 %v23506_v31  ;;  %v9546_v53 = vmul.f32 %v9482_v0, %v27090_v44  ;;  %v9465_v43 = vmul.f32 0.5, %v9401_v35  ;;  %v9388_v48 = vadd.f32 1.0, %v27305_v34  ;;  %v9481_v44 = vmul.f32 0.5, %v9417_v46  ;;  %v30757_v35 = vld [vmem:[#allocation35_spill] sm:$0xff] }
0x1297   : > { %22100 = vmatpush3.bf16.msra.mxu1 %v23507_v27  ;;  %v27464_v28 = vmul.f32 %v9463_v3, %v30749_v2  ;;  %v9543_v62 = vmul.f32 %v9479_v55, %v27048_v14  ;;  %v9374_v52 = vadd.f32 1.0, %v27291_v6  ;;  %v23950_v5 = vpop.eup %23949  ;;  %v9436_v49 = vmul.f32 0.5, %v9372_v11  ;;  %v23514_v14 = vld [vmem:[%s30460_s16 + $0x3c8] sm:$0xff]   ;;  %v23519_v55 = vld [vmem:[%s30460_s16 + $0x310] sm:$0xff]  }
0x1298   : > { %22141 = vmatprep.subr.bf16.mxu1 %v23509_v58  ;;  %v9578_v4 = vpack.c.bf16 %v9546_v53, %v9530_v57  ;;  %v27472_v34 = vmul.f32 %v9465_v43, %v27027_v32  ;;  %v9452_v54 = vmul.f32 0.5, %v9388_v48  ;;  %v30750_v25 = vpack.c.bf16 %v27101_v9, %v27079_v21  ;;  %v23515_v32 = vld [vmem:[%s30460_s16 + $0x308] sm:$0xff]   ;;  %v30751_v21 = vld [vmem:[#allocation31_spill] sm:$0xff]  ;;  %v23518_v57 = vld [vmem:[%s30460_s16 + $0x3d0] sm:$0xff]  }
0x1299   : > { %22128 = vmatpush3.bf16.msra.mxu0 %v23508_v59  ;;  %v9575_v6 = vpack.c.bf16 %v9543_v62, %v27464_v28  ;;  %v9545_v31 = vmul.f32 %v9481_v44, %v27060_v42  ;;  %v9390_v39 = vadd.f32 1.0, %v27319_v1  ;;  %v9438_v12 = vmul.f32 0.5, %v9374_v52  ;;  %v23517_v1 = vld [vmem:[%s30460_s16 + $0x350] sm:$0xff]   ;;  %v23523_v52 = vld [vmem:[%s30460_s16 + $0x318] sm:$0xff]  }
0x129a   : > { %10843 = vmatmul.mubr.bf16.vlgmr.msra.gmra.mrb[128].mxu1 %v30750_v25  ;;  %22169 = vmatprep.subr.bf16.mxu0 %v23510_v13  ;;  %v9500_v9 = vmul.f32 %v9436_v49, %v30751_v21  ;;  %v9516_v56 = vmul.f32 %v9452_v54, %v30752_v51  ;;  %v9404_v16 = vadd.f32 1.0, %v27395_v29  ;;  %v9420_v27 = vadd.f32 1.0, %v23948_v47  ;;  %v23516_v29 = vld [vmem:[%s30460_s16 + $0x388] sm:$0xff]   ;;  %v23527_v49 = vld [vmem:[%s30460_s16 + $0x320] sm:$0xff]   ;;  %v23536_v21 = vld [vmem:[%s30460_s16 + $0x3b0] sm:$0xff]  }
0x129b   : > { %10850 = vmatprep.mubr.bf16.mxu1 %v9576_v18  ;;  %22142 = vmatpush3.bf16.msra.mxu1 %v23511_v36  ;;  %v30755_v58 = vpack.c.bf16 %v30753_v40, %v30754_v24  ;;  %v9577_v42 = vpack.c.bf16 %v9545_v31, %v27472_v34  ;;  %v9454_v20 = vmul.f32 0.5, %v9390_v39  ;;  %v9502_v22 = vmul.f32 %v9438_v12, %v30756_v17  ;;  %v23526_v34 = vld [vmem:[%s30460_s16 + $0x3e0] sm:$0xff]   ;;  %v23529_v25 = vld [vmem:[%s30460_s16 + $0x368] sm:$0xff]   ;;  %v23534_v39 = vld [vmem:[%s30460_s16 + $0x3f0] sm:$0xff]  }
0x129c   : > { %22143 = vmatprep.subr.bf16.mxu1 %v23513_v63  ;;  %v9406_v41 = vadd.f32 1.0, %v27405_v30  ;;  %v9564_v47 = vpack.c.bf16 %v9516_v56, %v9500_v9  ;;  %v9468_v45 = vmul.f32 0.5, %v9404_v16  ;;  %v9484_v59 = vmul.f32 0.5, %v9420_v27  ;;  %v23532_v31 = vld [vmem:[%s30460_s16 + $0x3a8] sm:$0xff]   ;;  %v23535_v12 = vld [vmem:[%s30460_s16 + $0x330] sm:$0xff]   ;;  %v23538_v9 = vld [vmem:[%s30460_s16 + $0x3f8] sm:$0xff]  }
0x129d   : > { %10892 = vmatmul.mubr.bf16.vlgmr.msra.gmra.mrb[132].mxu0 %v30755_v58  ;;  %v9422_v0 = vadd.f32 1.0, %v23950_v5  ;;  %v9518_v13 = vmul.f32 %v9454_v20, %v30757_v35  ;;  %v9403_v30 = vadd.f32 1.0, %v27377_v7  ;;  %v9419_v3 = vadd.f32 1.0, %v27409_v37  ;;  %v23521_v7 = vld [vmem:[%s30460_s16 + $0x358] sm:$0xff]   ;;  %v23525_v5 = vld [vmem:[%s30460_s16 + $0x360] sm:$0xff]   ;;  %v30762_v58 = vld [vmem:[#allocation36_spill] sm:$0xff] }
0x129e   : > { %10899 = vmatprep.mubr.bf16.mxu0 %v9578_v4  ;;  %22170 = vmatpush3.bf16.msra.mxu0 %v23512_v61  ;;  %v9470_v18 = vmul.f32 0.5, %v9406_v41  ;;  %v27511_v46 = vmul.f32 %v9468_v45, %v27229_v10  ;;  %v27514_v53 = vmul.f32 %v9484_v59, %v27266_v8  ;;  %v9405_v43 = vadd.f32 1.0, %v27388_v26  ;;  %v23520_v10 = vld [vmem:[%s30460_s16 + $0x390] sm:$0xff]   ;;  %v23539_v51 = vld [vmem:[%s30460_s16 + $0x338] sm:$0xff]  }
0x129f   : > { %22171 = vmatprep.subr.bf16.mxu0 %v23514_v14  ;;  %22144 = vmatpush3.bf16.msra.mxu1 %v23515_v32  ;;  %v9486_v36 = vmul.f32 0.5, %v9422_v0  ;;  %v9566_v11 = vpack.c.bf16 %v9518_v13, %v9502_v22  ;;  %v9467_v48 = vmul.f32 0.5, %v9403_v30  ;;  %v9483_v63 = vmul.f32 0.5, %v9419_v3  ;;  %v23531_v14 = vld [vmem:[%s30460_s16 + $0x328] sm:$0xff]   ;;  %v23537_v32 = vld [vmem:[%s30460_s16 + $0x378] sm:$0xff]  }
0x12a0   : > { %22145 = vmatprep.subr.bf16.mxu1 %v23517_v1  ;;  %v27521_v37 = vmul.f32 %v9470_v18, %v27239_v23  ;;  %v9580_v8 = vpack.c.bf16 %v27514_v53, %v27511_v46  ;;  %v9421_v2 = vadd.f32 1.0, %v27415_v38  ;;  %v9469_v28 = vmul.f32 0.5, %v9405_v43  ;;  %v23522_v23 = vld [vmem:[%s30460_s16 + $0x3d8] sm:$0xff]   ;;  %v21000_v22 = vld [vmem:[%s30461_s17] ss:$0 sm:$0xff] }
0x12a1   : > { %v9550_v26 = vmul.f32 %v9486_v36, %v27336_v19  ;;  %v9531_v62 = vmul.f32 %v9467_v48, %v27216_v33  ;;  %v9547_v44 = vmul.f32 %v9483_v63, %v27243_v50  ;;  %v23524_v33 = vld [vmem:[%s30460_s16 + $0x398] sm:$0xff]   ;;  %v30761_v24 = vmov 0.0  }
0x12a2   : > { %22172 = vmatpush3.bf16.msra.mxu0 %v23516_v29  ;;  %10851 = vmatmul.mubr.bf16.gmra.mrb[132].mxu1 %v9575_v6  ;;  %v9485_v38 = vmul.f32 0.5, %v9421_v2  ;;  %v9533_v50 = vmul.f32 %v9469_v28, %v27225_v60  ;;  %v23528_v60 = vld [vmem:[%s30460_s16 + $0x3a0] sm:$0xff]   ;;  %v23533_v6 = vld [vmem:[%s30460_s16 + $0x370] sm:$0xff]   ;;  %v23540_v56 = vld [vmem:[%s30460_s16 + $0x3b8] sm:$0xff]  }
0x12a3   : > { %22173 = vmatprep.subr.bf16.mxu0 %v23518_v57  ;;  %22146 = vmatpush3.bf16.msra.mxu1 %v23519_v55  ;;  %v9582_v19 = vpack.c.bf16 %v9550_v26, %v27521_v37  ;;  %v9579_v4 = vpack.c.bf16 %v9547_v44, %v9531_v62  ;;  %v30758_v16 = vld [vmem:[#allocation34_spill] sm:$0xff] }
0x12a4   : > { %10940 = vmatprep.mubr.bf16.mxu1 %v9564_v47  ;;  %22147 = vmatprep.subr.bf16.mxu1 %v23521_v7  ;;  %v9549_v61 = vmul.f32 %v9485_v38, %v27258_v15  ;;  %v23530_v15 = vld [vmem:[%s30460_s16 + $0x3e8] sm:$0xff]   ;;  %v30759_v27 = vld [vmem:[#allocation30_spill] sm:$0xff] }
0x12a5   : > { %10900 = vmatmul.mubr.bf16.gmra.mrb[136].mxu0 %v9577_v42  ;;  %v30760_v40 = vpack.c.bf16 %v30758_v16, %v30759_v27  ;;  %v30763_v42 = vld [vmem:[#allocation33_spill] sm:$0xff] }
0x12a6   : > { %22174 = vmatpush3.bf16.msra.mxu0 %v23520_v10  ;;  %10989 = vmatprep.mubr.bf16.mxu0 %v9566_v11  ;;  %v9581_v54 = vpack.c.bf16 %v9549_v61, %v9533_v50  ;;  %v30764_v1 = vpack.c.bf16 %v30762_v58, %v30763_v42 }
0x12a7   : > { %22175 = vmatprep.subr.bf16.mxu0 %v23522_v23  ;;  %22148 = vmatpush3.bf16.msra.mxu1 %v23523_v52 }
0x12a8   : > { %22149 = vmatprep.subr.bf16.mxu1 %v23525_v5 }
0x12aa   : > { %22176 = vmatpush3.bf16.msra.mxu0 %v23524_v33 }
0x12ab   : > { %22177 = vmatprep.subr.bf16.mxu0 %v23526_v34  ;;  %22150 = vmatpush3.bf16.msra.mxu1 %v23527_v49 }
0x12ac   : > { %22151 = vmatprep.subr.bf16.mxu1 %v23529_v25 }
0x12ae   : > { %22178 = vmatpush3.bf16.msra.mxu0 %v23528_v60 }
0x12af   : > { %22179 = vmatprep.subr.bf16.mxu0 %v23530_v15  ;;  %22152 = vmatpush3.bf16.msra.mxu1 %v23531_v14 }
0x12b0   : > { %22153 = vmatprep.subr.bf16.mxu1 %v23533_v6 }
0x12b2   : > { %22180 = vmatpush3.bf16.msra.mxu0 %v23532_v31 }
0x12b3   : > { %22181 = vmatprep.subr.bf16.mxu0 %v23534_v39  ;;  %22154 = vmatpush3.bf16.msra.mxu1 %v23535_v12 }
0x12b4   : > { %22155 = vmatprep.subr.bf16.mxu1 %v23537_v32 }
0x12b6   : > { %22182 = vmatpush3.bf16.msra.mxu0 %v23536_v21 }
0x12b7   : > { %22183 = vmatprep.subr.bf16.mxu0 %v23538_v9  ;;  %22156 = vmatpush3.bf16.msra.mxu1 %v23539_v51 }
0x12ba   : > { %22184 = vmatpush3.bf16.msra.mxu0 %v23540_v56  ;;  %10941 = vmatmul.mubr.bf16.vlgmr.msra.gmra.mrb[136].mxu1 %v30760_v40 }
0x12bb   : > { %22927 = vmatprep.subr.mxu0 %v30761_v24  ;;  %10948 = vmatprep.mubr.bf16.mxu1 %v9580_v8 }
0x12bd   : > { %10990 = vmatmul.mubr.bf16.vlgmr.msra.gmra.mrb[140].mxu0 %v30764_v1 }
0x12be   : > { %10997 = vmatprep.mubr.bf16.mxu0 %v9582_v19 }
0x12c2   : > { %10949 = vmatmul.mubr.bf16.gmra.mrb[140].mxu1 %v9579_v4 }
0x12c5   : > { %10998 = vmatmul.mubr.bf16.gmra.mrb[144].mxu0 %v9581_v54 }
0x12c6   : > { %22929 = vmatprep.mubr.msk.f32.mxu0 %vm24312_vm14, %v30761_v24 }
0x12c9   : > { %v21989_v20 = vpop.f32.mrb[112].mxu1 }
0x12ca   : > { %v22017_v17 = vpop.f32.mrb[116].mxu0  ;;  %v21990_v41 = vpop.f32.mrb[113].mxu1 }
0x12cb   : > { %v21991_v29 = vadd.f32 %v21990_v41, %v21989_v20  ;;  %v22018_v47 = vpop.f32.mrb[117].mxu0  ;;  %v21992_v45 = vpop.f32.mrb[114].mxu1 }
0x12cc   : > { %v22019_v59 = vadd.f32 %v22018_v47, %v22017_v17  ;;  %v22020_v0 = vpop.f32.mrb[118].mxu0  ;;  %v21993_v57 = vpop.f32.mrb[115].mxu1 }
0x12cd   : > { %v10649_v35 = vadd.f32 %v21991_v29, %v21000_v22  ;;  %v21994_v13 = vadd.f32 %v21993_v57, %v21992_v45  ;;  %v22021_v18 = vpop.f32.mrb[119].mxu0 }
0x12ce   : > { %v22022_v30 = vadd.f32 %v22021_v18, %v22020_v0 }
0x12cf   : > { %v10698_v3 = vadd.f32 %v22019_v59, %v10649_v35  ;;  %v10652_v55 = vadd.f32 %v21994_v13, %v21000_v22 }
0x12d1   : > { %v10701_v46 = vadd.f32 %v22022_v30, %v10652_v55 }
0x1338   : > { %v21995_v53 = vpop.f32.mrb[116].mxu1 }
0x1339   : > { %v21996_v36 = vpop.f32.mrb[117].mxu1 }
0x133a   : > { %v22023_v43 = vpop.f32.mrb[120].mxu0  ;;  %v21997_v11 = vadd.f32 %v21996_v36, %v21995_v53  ;;  %v21998_v7 = vpop.f32.mrb[118].mxu1 }
0x133b   : > { %v22024_v37 = vpop.f32.mrb[121].mxu0  ;;  %v21999_v48 = vpop.f32.mrb[119].mxu1 }
0x133c   : > { %v10657_v63 = vadd.f32 %v21997_v11, %v21000_v22  ;;  %v22025_v10 = vadd.f32 %v22024_v37, %v22023_v43  ;;  %v22026_v8 = vpop.f32.mrb[122].mxu0  ;;  %v22000_v26 = vadd.f32 %v21999_v48, %v21998_v7 }
0x133d   : > { %v22027_v2 = vpop.f32.mrb[123].mxu0 }
0x133e   : > { %v10706_v28 = vadd.f32 %v22025_v10, %v10657_v63  ;;  %v10660_v23 = vadd.f32 %v22000_v26, %v21000_v22  ;;  %v22028_v62 = vadd.f32 %v22027_v2, %v22026_v8 }
0x1340   : > { %v10709_v44 = vadd.f32 %v22028_v62, %v10660_v23 }
0x134d   : > { %v22045_v52 = vpop.f32.mrb[120].mxu1  ;;  %v22073_v19 = vpop.f32.mrb[124].mxu0 }
0x134e   : > { %v22046_v38 = vpop.f32.mrb[121].mxu1  ;;  %v22074_v5 = vpop.f32.mrb[125].mxu0 }
0x134f   : > { %v22047_v4 = vadd.f32 %v22046_v38, %v22045_v52  ;;  %v22075_v33 = vadd.f32 %v22074_v5, %v22073_v19  ;;  %v22048_v50 = vpop.f32.mrb[122].mxu1  ;;  %v22076_v61 = vpop.f32.mrb[126].mxu0 }
0x1350   : > { %v22049_v34 = vpop.f32.mrb[123].mxu1  ;;  %v22077_v49 = vpop.f32.mrb[127].mxu0 }
0x1351   : > { %v10747_v54 = vadd.f32 %v22047_v4, %v10698_v3  ;;  %v22050_v25 = vadd.f32 %v22049_v34, %v22048_v50  ;;  %v22078_v60 = vadd.f32 %v22077_v49, %v22076_v61 }
0x1353   : > { %v10796_v15 = vadd.f32 %v22075_v33, %v10747_v54  ;;  %v10750_v14 = vadd.f32 %v22050_v25, %v10701_v46 }
0x1355   : > { %v10799_v6 = vadd.f32 %v22078_v60, %v10750_v14 }
0x1361   : > { %v22051_v31 = vpop.f32.mrb[124].mxu1 }
0x1362   : > { %v22052_v39 = vpop.f32.mrb[125].mxu1 }
0x1363   : > { %v22053_v12 = vadd.f32 %v22052_v39, %v22051_v31  ;;  %v22054_v32 = vpop.f32.mrb[126].mxu1 }
0x1364   : > { %v22055_v21 = vpop.f32.mrb[127].mxu1 }
0x1365   : > { %v10755_v51 = vadd.f32 %v22053_v12, %v10706_v28  ;;  %v22056_v56 = vadd.f32 %v22055_v21, %v22054_v32  ;;  %v30765_v21 = vld [vmem:[#allocation19_spill] sm:$0xff] }
0x1366   : > { %v22079_v9 = vpop.f32.mrb[128].mxu0 }
0x1367   : > { %v22080_v16 = vpop.f32.mrb[129].mxu0  ;;  %v10758_v58 = vadd.f32 %v22056_v56, %v10709_v44 }
0x1368   : > { %v22081_v27 = vadd.f32 %v22080_v16, %v22079_v9  ;;  %v22082_v40 = vpop.f32.mrb[130].mxu0 }
0x1369   : > { %v22083_v42 = vpop.f32.mrb[131].mxu0 }
0x136a   : > { %v10804_v1 = vadd.f32 %v22081_v27, %v10755_v51  ;;  %v22084_v20 = vadd.f32 %v22083_v42, %v22082_v40  ;;  %v30766_v40 = vld [vmem:[#allocation20_spill] sm:$0xff] }
0x136c   : > { %v10807_v17 = vadd.f32 %v22084_v20, %v10758_v58 }
0x136d   : > { %v22101_v22 = vpop.f32.mrb[128].mxu1 }
0x136e   : > { %v22102_v41 = vpop.f32.mrb[129].mxu1 }
0x136f   : > { %v22103_v47 = vadd.f32 %v22102_v41, %v22101_v22  ;;  %v22104_v45 = vpop.f32.mrb[130].mxu1 }
0x1370   : > { %v22129_v29 = vpop.f32.mrb[132].mxu0  ;;  %v22105_v0 = vpop.f32.mrb[131].mxu1 }
0x1371   : > { %v22130_v59 = vpop.f32.mrb[133].mxu0  ;;  %v10845_v57 = vadd.f32 %v22103_v47, %v10796_v15  ;;  %v22106_v18 = vadd.f32 %v22105_v0, %v22104_v45  ;;  %v30767_v47 = vld [vmem:[#allocation17_spill] sm:$0xff]  ;;  %v30768_v0 = vld [vmem:[#allocation18_spill] sm:$0xff] }
0x1372   : > { %v22131_v35 = vadd.f32 %v22130_v59, %v22129_v29  ;;  %v22132_v13 = vpop.f32.mrb[134].mxu0 }
0x1373   : > { %v22133_v30 = vpop.f32.mrb[135].mxu0  ;;  %v10848_v55 = vadd.f32 %v22106_v18, %v10799_v6 }
0x1374   : > { %v10894_v3 = vadd.f32 %v22131_v35, %v10845_v57  ;;  %v22134_v46 = vadd.f32 %v22133_v30, %v22132_v13 }
0x1375   : > { %v22107_v36 = vpop.f32.mrb[132].mxu1 }
0x1376   : > { %v10897_v53 = vadd.f32 %v22134_v46, %v10848_v55  ;;  %v22108_v43 = vpop.f32.mrb[133].mxu1 }
0x1377   : > { %v22109_v7 = vadd.f32 %v22108_v43, %v22107_v36  ;;  %v22110_v37 = vpop.f32.mrb[134].mxu1  ;;  %v30769_v36 = vld [vmem:[#allocation21_spill] sm:$0xff] }
0x1378   : > { %v22135_v11 = vpop.f32.mrb[136].mxu0  ;;  %v22111_v63 = vpop.f32.mrb[135].mxu1 }
0x1379   : > { %v22136_v48 = vpop.f32.mrb[137].mxu0  ;;  %v10853_v10 = vadd.f32 %v22109_v7, %v10804_v1  ;;  %v22112_v2 = vadd.f32 %v22111_v63, %v22110_v37  ;;  %v30770_v7 = vld [vmem:[#allocation22_spill] sm:$0xff] }
0x137a   : > { %v22137_v8 = vadd.f32 %v22136_v48, %v22135_v11  ;;  %v22138_v26 = vpop.f32.mrb[138].mxu0  ;;  %v30771_v48 = vld [vmem:[#allocation23_spill] sm:$0xff] }
0x137b   : > { %v22139_v28 = vpop.f32.mrb[139].mxu0  ;;  %v10856_v62 = vadd.f32 %v22112_v2, %v10807_v17 }
0x137c   : > { %v10902_v23 = vadd.f32 %v22137_v8, %v10853_v10  ;;  %v22140_v44 = vadd.f32 %v22139_v28, %v22138_v26  ;;  %v30772_v8 = vld [vmem:[#allocation24_spill] sm:$0xff] }
0x137e   : > { %v10905_v52 = vadd.f32 %v22140_v44, %v10856_v62 }
0x138d   : > { %v22157_v19 = vpop.f32.mrb[136].mxu1 }
0x138e   : > { %v22158_v38 = vpop.f32.mrb[137].mxu1 }
0x138f   : > { %v22159_v4 = vadd.f32 %v22158_v38, %v22157_v19  ;;  %v22160_v33 = vpop.f32.mrb[138].mxu1  ;;  %v30774_v38 = vld [vmem:[#allocation16_spill] sm:$0xff] }
0x1390   : > { %v22185_v5 = vpop.f32.mrb[140].mxu0  ;;  %v22161_v61 = vpop.f32.mrb[139].mxu1 }
0x1391   : > { %v22186_v50 = vpop.f32.mrb[141].mxu0  ;;  %v10943_v34 = vadd.f32 %v22159_v4, %v10894_v3  ;;  %v22162_v25 = vadd.f32 %v22161_v61, %v22160_v33 }
0x1392   : > { %v22187_v49 = vadd.f32 %v22186_v50, %v22185_v5  ;;  %v22188_v54 = vpop.f32.mrb[142].mxu0 }
0x1393   : > { %v22189_v60 = vpop.f32.mrb[143].mxu0  ;;  %v10946_v14 = vadd.f32 %v22162_v25, %v10897_v53 }
0x1394   : > { %v10992_v15 = vadd.f32 %v22187_v49, %v10943_v34  ;;  %v22190_v6 = vadd.f32 %v22189_v60, %v22188_v54 }
0x1395   : > { %v22163_v12 = vpop.f32.mrb[140].mxu1 }
0x1396   : > { %v11010_v31 = vcombine.high %v10992_v15, %v10992_v15  ;;  %v10995_v39 = vadd.f32 %v22190_v6, %v10946_v14  ;;  %v22164_v32 = vpop.f32.mrb[141].mxu1  ;;  %v11018_v9 = vadd.f32 %v10992_v15, %v30765_v21 }
0x1397   : > { %v22165_v16 = vadd.f32 %v22164_v32, %v22163_v12  ;;  %v22166_v27 = vpop.f32.mrb[142].mxu1 }
0x1398   : > { %v11011_v51 = vcombine.high %v10995_v39, %v10995_v39  ;;  %v22191_v56 = vpop.f32.mrb[144].mxu0  ;;  %v11019_v58 = vadd.f32 %v11010_v31, %v30766_v40  ;;  %v22167_v1 = vpop.f32.mrb[143].mxu1  ;;  %v11020_v45 = vadd.f32 %v10995_v39, %v30767_v47 }
0x1399   : > { %v22192_v42 = vpop.f32.mrb[145].mxu0  ;;  %v10951_v20 = vadd.f32 %v22165_v16, %v10902_v23  ;;  %v22168_v41 = vadd.f32 %v22167_v1, %v22166_v27 }
0x139a   : > { %v22193_v17 = vadd.f32 %v22192_v42, %v22191_v56  ;;  %v22194_v22 = vpop.f32.mrb[146].mxu0  ;;  %v11036_v29 = vcombine.low %v11018_v9, %v11019_v58  ;;  %v11021_v57 = vadd.f32 %v11011_v51, %v30768_v0 }
0x139b   : > { %v22195_v59 = vpop.f32.mrb[147].mxu0  ;;  %v10954_v13 = vadd.f32 %v22168_v41, %v10905_v52  ;;  %v30773_v52 = vld [vmem:[#allocation15_spill] sm:$0xff] }
0x139c   : > { %v11000_v35 = vadd.f32 %v22193_v17, %v10951_v20  ;;  %v22196_v18 = vadd.f32 %v22195_v59, %v22194_v22  ;;  %v11044_v30 = vsel %vm2295_vm13, %v11036_v29, 0.0  ;;  %v11037_v3 = vcombine.low %v11020_v45, %v11021_v57 }
0x139d   : > { %11045 = vadd.xlane.f32.xlu0 %v11044_v30 }
0x139e   : > { %v11012_v55 = vcombine.high %v11000_v35, %v11000_v35  ;;  %v11003_v46 = vadd.f32 %v22196_v18, %v10954_v13  ;;  %v11047_v53 = vsel %vm2295_vm13, %v11037_v3, 0.0  ;;  %v11022_v43 = vadd.f32 %v11000_v35, %v30769_v36  ;;  %v21131_v35 = vld [vmem:[%s30452_s8 + $0x20] sm:$0xff]  ;;  %v21132_v13 = vld [vmem:[%s30452_s8 + $0x28] sm:$0xff]  ;;  %v21133_v18 = vld [vmem:[%s30452_s8 + $0x30] sm:$0xff] }
0x139f   : > { %11048 = vadd.xlane.f32.xlu1 %v11047_v53  ;;  %v23277_v30 = vpack.c.bf16 %v21132_v13, %v21131_v35  ;;  %v21134_v3 = vld [vmem:[%s30452_s8 + $0x38] sm:$0xff] }
0x13a0   : > { %v11013_v11 = vcombine.high %v11003_v46, %v11003_v46  ;;  %v11023_v37 = vadd.f32 %v11012_v55, %v30770_v7  ;;  %v11024_v63 = vadd.f32 %v11003_v46, %v30771_v48  ;;  %v23281_v55 = vpack.c.bf16 %v21134_v3, %v21133_v18 }
0x13a1   : > { %23278 = vmatprep.subr.bf16.mxu1 %v23277_v30 }
0x13a2   : > { %v11038_v10 = vcombine.low %v11022_v43, %v11023_v37  ;;  %v11025_v26 = vadd.f32 %v11013_v11, %v30772_v8  ;;  %23280 = vmatpush3.bf16.msra.mxu1 %v23277_v30 }
0x13a3   : > { %23282 = vmatprep.subr.bf16.mxu1 %v23281_v55 }
0x13a4   : > { %v11050_v2 = vsel %vm2295_vm13, %v11038_v10, 0.0  ;;  %v11039_v28 = vcombine.low %v11024_v63, %v11025_v26 }
0x13a5   : > { %11051 = vadd.xlane.f32.xlu0 %v11050_v2 }
0x13a6   : > { %v11053_v23 = vsel %vm2295_vm13, %v11039_v28, 0.0  ;;  %23284 = vmatpush3.bf16.msra.mxu1 %v23281_v55 }
0x13a7   : > { %11054 = vadd.xlane.f32.xlu1 %v11053_v23  ;;  %22932 = vmatprep.subr.mxu1 %v30761_v24  ;;  %v21130_v23 = vld [vmem:[%s30463_s19] ss:$0 sm:$0xff] }
0x142a   : > { %v11046_v62 = vpop.xlane.xlu0 %11045 }
0x142b   : > { %v11056_v44 = vmul.f32 0.03125, %v11046_v62 }
0x142c   : > { %v11049_v4 = vpop.xlane.xlu1 %11048 }
0x142d   : > { %v11070_v19 = vrot.slane %v11056_v44, %v30773_v52  ;;  %v11077_v5 = vrot.slane %v11056_v44, %v30774_v38  ;;  %v11057_v33 = vmul.f32 0.03125, %v11049_v4 }
0x142f   : > { %v27618_v50 = vsub.f32 %v11018_v9, %v11070_v19  ;;  %v27620_v61 = vsub.f32 %v11019_v58, %v11077_v5  ;;  %v11084_v34 = vrot.slane %v11057_v33, %v30773_v52  ;;  %v11091_v49 = vrot.slane %v11057_v33, %v30774_v38 }
0x1431   : > { %v11136_v54 = vmul.f32 %v27618_v50, %v27618_v50  ;;  %v11137_v25 = vmul.f32 %v27620_v61, %v27620_v61  ;;  %v27628_v60 = vsub.f32 %v11020_v45, %v11084_v34  ;;  %v27630_v15 = vsub.f32 %v11021_v57, %v11091_v49 }
0x1432   : > { %v11052_v14 = vpop.xlane.xlu0 %11051  ;;  %v11282_v34 = vcombine.high %v21130_v23, %v21130_v23 }
0x1433   : > { %v11058_v6 = vmul.f32 0.03125, %v11052_v14  ;;  %v11152_v31 = vcombine.low %v11136_v54, %v11137_v25  ;;  %v11138_v12 = vmul.f32 %v27628_v60, %v27628_v60  ;;  %v11139_v32 = vmul.f32 %v27630_v15, %v27630_v15 }
0x1434   : > { %v11055_v39 = vpop.xlane.xlu1 %11054 }
0x1435   : > { %v11098_v21 = vrot.slane %v11058_v6, %v30773_v52  ;;  %v11105_v9 = vrot.slane %v11058_v6, %v30774_v38  ;;  %v11059_v51 = vmul.f32 0.03125, %v11055_v39  ;;  %v11160_v56 = vsel %vm2295_vm13, %v11152_v31, 0.0 }
0x1436   : > { %11161 = vadd.xlane.f32.xlu0 %v11160_v56  ;;  %v11153_v16 = vcombine.low %v11138_v12, %v11139_v32 }
0x1437   : > { %v27639_v27 = vsub.f32 %v11022_v43, %v11098_v21  ;;  %v27641_v40 = vsub.f32 %v11023_v37, %v11105_v9  ;;  %v11112_v58 = vrot.slane %v11059_v51, %v30773_v52  ;;  %v11119_v42 = vrot.slane %v11059_v51, %v30774_v38 }
0x1438   : > { %v11163_v1 = vsel %vm2295_vm13, %v11153_v16, 0.0 }
0x1439   : > { %v27646_v20 = vsub.f32 %v11024_v63, %v11112_v58  ;;  %v27648_v17 = vsub.f32 %v11025_v26, %v11119_v42  ;;  %11164 = vadd.xlane.f32.xlu1 %v11163_v1  ;;  %v11140_v22 = vmul.f32 %v27639_v27, %v27639_v27  ;;  %v11141_v41 = vmul.f32 %v27641_v40, %v27641_v40  ;;  %v21129_v26 = vld [vmem:[%s30462_s18] ss:$0 sm:$0xff] }
0x143a   : > { %v11266_v19 = vcombine.high %v21129_v26, %v21129_v26 }
0x143b   : > { %v11154_v29 = vcombine.low %v11140_v22, %v11141_v41  ;;  %v11142_v47 = vmul.f32 %v27646_v20, %v27646_v20  ;;  %v11143_v45 = vmul.f32 %v27648_v17, %v27648_v17 }
0x143d   : > { %v11166_v59 = vsel %vm2295_vm13, %v11154_v29, 0.0  ;;  %v11155_v0 = vcombine.low %v11142_v47, %v11143_v45 }
0x143e   : > { %11167 = vadd.xlane.f32.xlu0 %v11166_v59 }
0x143f   : > { %v11169_v57 = vsel %vm2295_vm13, %v11155_v0, 0.0 }
0x1440   : > { %11170 = vadd.xlane.f32.xlu1 %v11169_v57 }
0x14c3   : > { %v11162_v46 = vpop.xlane.xlu0 %11161 }
0x14c4   : > { %v11172_v53 = vmul.f32 0.03125, %v11162_v46 }
0x14c6   : > { %v11176_v36 = vadd.f32 1e-05, %v11172_v53  ;;  %v11165_v43 = vpop.xlane.xlu1 %11164 }
0x14c7   : > { %v11173_v11 = vmul.f32 0.03125, %v11165_v43 }
0x14c8   : > { %23951 = vrsqrt.f32 %v11176_v36 }
0x14c9   : > { %v11177_v7 = vadd.f32 1e-05, %v11173_v11 }
0x14cb   : > { %23953 = vrsqrt.f32 %v11177_v7  ;;  %v11168_v37 = vpop.xlane.xlu0 %11167 }
0x14cc   : > { %v11174_v48 = vmul.f32 0.03125, %v11168_v37 }
0x14cd   : > { %v11171_v63 = vpop.xlane.xlu1 %11170 }
0x14ce   : > { %v11178_v10 = vadd.f32 1e-05, %v11174_v48  ;;  %v11175_v8 = vmul.f32 0.03125, %v11171_v63 }
0x14d0   : > { %23955 = vrsqrt.f32 %v11178_v10  ;;  %v11179_v2 = vadd.f32 1e-05, %v11175_v8 }
0x14d2   : > { %v23952_v28 = vpop.eup %23951  ;;  %23957 = vrsqrt.f32 %v11179_v2 }
0x14d3   : > { %v11194_v62 = vrot.slane %v23952_v28, %v30773_v52  ;;  %v11201_v44 = vrot.slane %v23952_v28, %v30774_v38 }
0x14d5   : > { %v23954_v5 = vpop.eup %23953  ;;  %v11252_v4 = vmul.f32 %v11194_v62, %v27618_v50  ;;  %v11253_v33 = vmul.f32 %v11201_v44, %v27620_v61 }
0x14d6   : > { %v11208_v49 = vrot.slane %v23954_v5, %v30773_v52  ;;  %v11215_v54 = vrot.slane %v23954_v5, %v30774_v38 }
0x14d7   : > { %v11268_v25 = vmul.f32 %v21129_v26, %v11252_v4  ;;  %v11269_v14 = vmul.f32 %v11266_v19, %v11253_v33 }
0x14d8   : > { %v11254_v6 = vmul.f32 %v11208_v49, %v27628_v60  ;;  %v11255_v31 = vmul.f32 %v11215_v54, %v27630_v15 }
0x14d9   : > { %v27687_v39 = vadd.f32 %v21130_v23, %v11268_v25  ;;  %v27689_v12 = vadd.f32 %v11282_v34, %v11269_v14 }
0x14da   : > { %v23956_v32 = vpop.eup %23955  ;;  %v11270_v21 = vmul.f32 %v21129_v26, %v11254_v6  ;;  %v11271_v50 = vmul.f32 %v11266_v19, %v11255_v31 }
0x14db   : > { %v11222_v61 = vrot.slane %v23956_v32, %v30773_v52  ;;  %v11229_v9 = vrot.slane %v23956_v32, %v30774_v38  ;;  %v11313_v51 = vcombine.low %v27687_v39, %v27689_v12 }
0x14dc   : > { %v23958_v56 = vpop.eup %23957  ;;  %v27695_v16 = vadd.f32 %v21130_v23, %v11270_v21  ;;  %v27697_v60 = vadd.f32 %v11282_v34, %v11271_v50 }
0x14dd   : > { %v11236_v15 = vrot.slane %v23958_v56, %v30773_v52  ;;  %v11243_v58 = vrot.slane %v23958_v56, %v30774_v38  ;;  %22921 = vmatprep.mubr.msk.f32.mxu1 %vm2295_vm13, %v11313_v51  ;;  %v11256_v42 = vmul.f32 %v11222_v61, %v27639_v27  ;;  %v11257_v1 = vmul.f32 %v11229_v9, %v27641_v40 }
0x14de   : > { %v11314_v22 = vcombine.low %v27695_v16, %v27697_v60 }
0x14df   : > { %v11272_v41 = vmul.f32 %v21129_v26, %v11256_v42  ;;  %v11273_v29 = vmul.f32 %v11266_v19, %v11257_v1  ;;  %v11258_v47 = vmul.f32 %v11236_v15, %v27646_v20  ;;  %v11259_v45 = vmul.f32 %v11243_v58, %v27648_v17  ;;  %v21136_v17 = vld [vmem:[%s30453_s9 + $0x1] ss:$0 sm:$0xff] }
0x14e0   : > { %22922 = vmatmul.mubr.msk.f32.vlgmr.msra.gmra.mrb[144].mxu1 %vm2295_vm13, %v11314_v22 }
0x14e1   : > { %v27709_v59 = vadd.f32 %v21130_v23, %v11272_v41  ;;  %v27711_v0 = vadd.f32 %v11282_v34, %v11273_v29  ;;  %v11274_v57 = vmul.f32 %v21129_v26, %v11258_v47  ;;  %v11275_v35 = vmul.f32 %v11266_v19, %v11259_v45 }
0x14e3   : > { %v11315_v27 = vcombine.low %v27709_v59, %v27711_v0  ;;  %v27715_v40 = vadd.f32 %v21130_v23, %v11274_v57  ;;  %v27717_v13 = vadd.f32 %v11282_v34, %v11275_v35 }
0x14e5   : > { %22924 = vmatprep.mubr.msk.f32.mxu1 %vm2295_vm13, %v11315_v27  ;;  %v11316_v20 = vcombine.low %v27715_v40, %v27717_v13 }
0x14e7   : > { %22925 = vmatmul.mubr.msk.f32.gmra.mrb[146].mxu1 %vm2295_vm13, %v11316_v20 }
0x14e8   : > { %22934 = vmatprep.mubr.msk.f32.mxu1 %vm24312_vm14, %v30761_v24 }
0x15b3   : > { %v22923_v18 = vpop.f32.mrb[144].mxu1 }
0x15b4   : > { %v27728_v30 = vadd.f32 %v22923_v18, %v21136_v17  ;;  %v11391_v3 = vpop.f32.mrb[145].mxu1 }
0x15b5   : > { %v27730_v55 = vadd.f32 %v21136_v17, %v11391_v3 }
0x15b6   : > { %11570 = vrot.lane.b32.xlu1 %v27728_v30, %s30775_s0  ;;  %v27746_v11 = vcombine.high %v27728_v30, %v27728_v30 }
0x15b7   : > { %11418 = vrot.lane.b32.xlu0 %v27730_v55, %s30775_s0  ;;  %v27738_v46 = vcombine.high %v27730_v55, %v27730_v55 }
0x15ba   : > { %11494 = vrot.lane.b32.xlu1 %v27738_v46, %s30775_s0  ;;  %v22926_v53 = vpop.f32.mrb[146].mxu1 }
0x15bb   : > { %v11401_v36 = vpop.f32.mrb[147].mxu1  ;;  %v27756_v37 = vadd.f32 %v22926_v53, %v21136_v17 }
0x15bc   : > { %v27742_v43 = vadd.f32 %v21136_v17, %v11401_v36 }
0x15bd   : > { %v27764_v48 = vcombine.high %v27756_v37, %v27756_v37 }
0x15be   : > { %11646 = vrot.lane.b32.xlu1 %v27746_v11, %s30775_s0  ;;  %11722 = vrot.lane.b32.xlu0 %v27742_v43, %s30775_s0  ;;  %v27754_v7 = vcombine.high %v27742_v43, %v27742_v43 }
0x15c2   : > { %11798 = vrot.lane.b32.xlu1 %v27754_v7, %s30775_s0  ;;  %11874 = vrot.lane.b32.xlu0 %v27756_v37, %s30775_s0 }
0x15c6   : > { %11950 = vrot.lane.b32.xlu1 %v27764_v48, %s30775_s0  ;;  %s30785_s0 = smov 40  }
0x1628   : > { %v11571_v63 = vpop.permute.xlu1 %11570 }
0x1629   : > { %v11419_v10 = vpop.permute.xlu0 %11418 }
0x162a   : > { %22928 = vmatpush3.xpose.msk.msra.mxu0 %vm2189_vm9, %v11419_v10 }
0x162b   : > { %22937 = vmatprep.subr.mxu0 %v30761_v24 }
0x162c   : > { %v11495_v8 = vpop.permute.xlu1 %11494 }
0x162d   : > { %22930 = vmatmul.mubr.msk.f32.vlgmr.msra.gmra.mrb[148].mxu0 %vm2189_vm9, %v27730_v55  ;;  %22933 = vmatpush3.xpose.msk.msra.mxu1 %vm2189_vm9, %v11495_v8 }
0x162e   : > { %22938 = vmatpush3.xpose.msk.msra.mxu0 %vm2189_vm9, %v11571_v63  ;;  %22942 = vmatprep.subr.mxu1 %v30761_v24 }
0x162f   : > { %22939 = vmatprep.mubr.msk.f32.mxu0 %vm24312_vm14, %v30761_v24  ;;  %22947 = vmatprep.subr.mxu0 %v30761_v24 }
0x1630   : > { %v11647_v26 = vpop.permute.xlu1 %11646  ;;  %22935 = vmatmul.mubr.msk.f32.vlgmr.msra.gmra.mrb[148].mxu1 %vm2189_vm9, %v27738_v46  ;;  %v11723_v2 = vpop.permute.xlu0 %11722 }
0x1631   : > { %22940 = vmatmul.mubr.msk.f32.vlgmr.msra.gmra.mrb[150].mxu0 %vm2189_vm9, %v27728_v30  ;;  %22943 = vmatpush3.xpose.msk.msra.mxu1 %vm2189_vm9, %v11647_v26 }
0x1632   : > { %22948 = vmatpush3.xpose.msk.msra.mxu0 %vm2189_vm9, %v11723_v2  ;;  %22944 = vmatprep.mubr.msk.f32.mxu1 %vm24312_vm14, %v30761_v24 }
0x1633   : > { %22952 = vmatprep.subr.mxu1 %v30761_v24  ;;  %22949 = vmatprep.mubr.msk.f32.mxu0 %vm24312_vm14, %v30761_v24 }
0x1634   : > { %22945 = vmatmul.mubr.msk.f32.vlgmr.msra.gmra.mrb[150].mxu1 %vm2189_vm9, %v27746_v11  ;;  %v11799_v28 = vpop.permute.xlu1 %11798  ;;  %22957 = vmatprep.subr.mxu0 %v30761_v24  ;;  %v11875_v23 = vpop.permute.xlu0 %11874 }
0x1635   : > { %22950 = vmatmul.mubr.msk.f32.vlgmr.msra.gmra.mrb[152].mxu0 %vm2189_vm9, %v27742_v43  ;;  %22953 = vmatpush3.xpose.msk.msra.mxu1 %vm2189_vm9, %v11799_v28 }
0x1636   : > { %22958 = vmatpush3.xpose.msk.msra.mxu0 %vm2189_vm9, %v11875_v23  ;;  %22954 = vmatprep.mubr.msk.f32.mxu1 %vm24312_vm14, %v30761_v24 }
0x1637   : > { %22962 = vmatprep.subr.mxu1 %v30761_v24  ;;  %22959 = vmatprep.mubr.msk.f32.mxu0 %vm24312_vm14, %v30761_v24 }
0x1638   : > { %22955 = vmatmul.mubr.msk.f32.vlgmr.msra.gmra.mrb[152].mxu1 %vm2189_vm9, %v27754_v7  ;;  %v11951_v62 = vpop.permute.xlu1 %11950  ;;  %22967 = vmatprep.subr.mxu0 %v30761_v24 }
0x1639   : > { %22960 = vmatmul.mubr.msk.f32.vlgmr.msra.gmra.mrb[154].mxu0 %vm2189_vm9, %v27756_v37  ;;  %22963 = vmatpush3.xpose.msk.msra.mxu1 %vm2189_vm9, %v11951_v62 }
0x163a   : > { %22964 = vmatprep.mubr.msk.f32.mxu1 %vm24312_vm14, %v30761_v24  ;;  %22972 = vmatprep.subr.mxu1 %v30761_v24 }
0x163b   : > { %22969 = vmatprep.mubr.msk.f32.mxu0 %vm24312_vm14, %v30761_v24 }
0x163c   : > { %22965 = vmatmul.mubr.msk.f32.vlgmr.msra.gmra.mrb[154].mxu1 %vm2189_vm9, %v27764_v48 }
0x163d   : > { %22974 = vmatprep.mubr.msk.f32.mxu1 %vm24312_vm14, %v30761_v24 }
0x1700   : > { %v11490_v44 = vpop.f32.mrb[148].mxu0 }
0x1701   : > { %v12026_v19 = vmul.f32 0.35355338, %v11490_v44  ;;  %v22931_v5 = vpop.f32.mrb[149].mxu0 }
0x1703   : > { %v11566_v4 = vpop.f32.mrb[148].mxu1  ;;  %v12034_v33 = vsel %vm3013_vm0, %v12026_v19, -inf }
0x1704   : > { %v12027_v34 = vmul.f32 0.35355338, %v11566_v4  ;;  %v22936_v49 = vpop.f32.mrb[149].mxu1  ;;  %12035 = vmax.xlane.f32.xlu0 %v12034_v33  ;;  %v11642_v54 = vpop.f32.mrb[150].mxu0 }
0x1705   : > { %v12028_v25 = vmul.f32 0.35355338, %v11642_v54  ;;  %v22941_v14 = vpop.f32.mrb[151].mxu0 }
0x1706   : > { %v12037_v6 = vsel %vm3013_vm0, %v12027_v34, -inf }
0x1707   : > { %v11718_v31 = vpop.f32.mrb[150].mxu1  ;;  %12038 = vmax.xlane.f32.xlu1 %v12037_v6  ;;  %v12040_v32 = vsel %vm3013_vm0, %v12028_v25, -inf }
0x1708   : > { %v12029_v21 = vmul.f32 0.35355338, %v11718_v31  ;;  %v22946_v50 = vpop.f32.mrb[151].mxu1  ;;  %12041 = vmax.xlane.f32.xlu0 %v12040_v32  ;;  %v11794_v61 = vpop.f32.mrb[152].mxu0 }
0x1709   : > { %v22951_v9 = vpop.f32.mrb[153].mxu0  ;;  %v12030_v56 = vmul.f32 0.35355338, %v11794_v61 }
0x170a   : > { %v12043_v51 = vsel %vm3013_vm0, %v12029_v21, -inf }
0x170b   : > { %v11870_v15 = vpop.f32.mrb[152].mxu1  ;;  %v12046_v45 = vsel %vm3013_vm0, %v12030_v56, -inf }
0x170c   : > { %v12031_v58 = vmul.f32 0.35355338, %v11870_v15  ;;  %v22956_v42 = vpop.f32.mrb[153].mxu1  ;;  %12044 = vmax.xlane.f32.xlu0 %v12043_v51  ;;  %v11946_v1 = vpop.f32.mrb[154].mxu0 }
0x170d   : > { %v22961_v22 = vpop.f32.mrb[155].mxu0  ;;  %v12032_v29 = vmul.f32 0.35355338, %v11946_v1 }
0x170e   : > { %v12049_v41 = vsel %vm3013_vm0, %v12031_v58, -inf }
0x170f   : > { %12050 = vmax.xlane.f32.xlu1 %v12049_v41  ;;  %v12022_v47 = vpop.f32.mrb[154].mxu1  ;;  %v12052_v35 = vsel %vm3013_vm0, %v12032_v29, -inf }
0x1710   : > { %v22966_v57 = vpop.f32.mrb[155].mxu1  ;;  %12047 = vmax.xlane.f32.xlu0 %v12046_v45  ;;  %v27849_v27 = vmul.f32 0.35355338, %v12022_v47 }
0x1712   : > { %v12055_v20 = vsel %vm3013_vm0, %v27849_v27, -inf }
0x1714   : > { %12053 = vmax.xlane.f32.xlu0 %v12052_v35 }
0x1720   : > { %12199 = vrot.lane.b32.xlu1 %v27738_v46, %s30776_s30 }
0x1724   : > { %12276 = vrot.lane.b32.xlu1 %v27728_v30, %s30776_s30 }
0x1728   : > { %12353 = vrot.lane.b32.xlu1 %v27746_v11, %s30776_s30 }
0x172a   : > { %12122 = vrot.lane.b32.xlu0 %v27730_v55, %s30776_s30 }
0x172c   : > { %12507 = vrot.lane.b32.xlu1 %v27754_v7, %s30776_s30 }
0x172e   : > { %12430 = vrot.lane.b32.xlu0 %v27742_v43, %s30776_s30 }
0x1730   : > { %12661 = vrot.lane.b32.xlu1 %v27764_v48, %s30776_s30 }
0x1732   : > { %12584 = vrot.lane.b32.xlu0 %v27756_v37, %s30776_s30  ;;  %s30786_s30 = smov 8  }
0x1734   : > { %12818 = vrot.lane.b32.xlu1 %v27738_v46, %s30777_s23 }
0x1736   : > { %12740 = vrot.lane.b32.xlu0 %v27730_v55, %s30777_s23 }
0x1738   : > { %12816 = vrot.lane.b32.xlu1 %v27738_v46, %s30778_s25 }
0x173a   : > { %12738 = vrot.lane.b32.xlu0 %v27730_v55, %s30778_s25 }
0x173e   : > { %12896 = vrot.lane.b32.xlu0 %v27728_v30, %s30777_s23 }
0x175c   : > { %12056 = vmax.xlane.f32.xlu1 %v12055_v20 }
0x176d   : > { %12974 = vrot.lane.b32.xlu1 %v27746_v11, %s30777_s23 }
0x1791   : > { %v12036_v17 = vpop.xlane.xlu0 %12035 }
0x1792   : > { %v12058_v18 = vsub.f32 %v12026_v19, %v12036_v17 }
0x1794   : > { %v12066_v3 = vmul.f32 1.442695, %v12058_v18  ;;  %v12039_v53 = vpop.xlane.xlu1 %12038 }
0x1795   : > { %v12059_v36 = vsub.f32 %v12027_v34, %v12039_v53  ;;  %v12042_v63 = vpop.xlane.xlu0 %12041 }
0x1796   : > { %23959 = vpow2.f32 %v12066_v3  ;;  %v12060_v10 = vsub.f32 %v12028_v25, %v12042_v63 }
0x1797   : > { %v12068_v8 = vmul.f32 1.442695, %v12059_v36 }
0x1798   : > { %v12070_v26 = vmul.f32 1.442695, %v12060_v10 }
0x1799   : > { %23961 = vpow2.f32 %v12068_v8  ;;  %v12045_v2 = vpop.xlane.xlu0 %12044 }
0x179a   : > { %23963 = vpow2.f32 %v12070_v26  ;;  %v12061_v28 = vsub.f32 %v12029_v21, %v12045_v2 }
0x179c   : > { %v12072_v23 = vmul.f32 1.442695, %v12061_v28  ;;  %v12051_v62 = vpop.xlane.xlu1 %12050 }
0x179d   : > { %v12063_v44 = vsub.f32 %v12031_v58, %v12051_v62  ;;  %v12048_v5 = vpop.xlane.xlu0 %12047 }
0x179e   : > { %23965 = vpow2.f32 %v12072_v23  ;;  %v12062_v4 = vsub.f32 %v12030_v56, %v12048_v5 }
0x179f   : > { %v12076_v33 = vmul.f32 1.442695, %v12063_v44 }
0x17a0   : > { %v27855_v19 = vpop.eup %23959  ;;  %v12074_v49 = vmul.f32 1.442695, %v12062_v4  ;;  %v12200_v34 = vpop.permute.xlu1 %12199 }
0x17a1   : > { %23967 = vpow2.f32 %v12076_v33  ;;  %22973 = vmatpush3.msk.msra.mxu1 %vm3108_vm15, %v12200_v34  ;;  %v12054_v54 = vpop.xlane.xlu0 %12053  ;;  %v12082_v25 = vsel %vm3013_vm0, %v27855_v19, 0.0 }
0x17a2   : > { %23969 = vpow2.f32 %v12074_v49  ;;  %v12064_v14 = vsub.f32 %v12032_v29, %v12054_v54  ;;  %12083 = vadd.xlane.f32.xlu0 %v12082_v25  ;;  %22982 = vmatprep.subr.mxu1 %v30761_v24 }
0x17a3   : > { %v27861_v6 = vpop.eup %23961 }
0x17a4   : > { %v27863_v31 = vpop.eup %23963  ;;  %v12078_v32 = vmul.f32 1.442695, %v12064_v14  ;;  %v12085_v21 = vsel %vm3013_vm0, %v27861_v6, 0.0  ;;  %v12277_v41 = vpop.permute.xlu1 %12276 }
0x17a5   : > { %12086 = vadd.xlane.f32.xlu1 %v12085_v21  ;;  %v12123_v50 = vpop.permute.xlu0 %12122  ;;  %v12088_v61 = vsel %vm3013_vm0, %v27863_v31, 0.0 }
0x17a6   : > { %23971 = vpow2.f32 %v12078_v32  ;;  %12089 = vadd.xlane.f32.xlu0 %v12088_v61  ;;  %22968 = vmatpush3.msk.msra.mxu0 %vm3108_vm15, %v12123_v50 }
0x17a7   : > { %22977 = vmatprep.subr.mxu0 %v30761_v24 }
0x17a8   : > { %v27871_v9 = vpop.eup %23965  ;;  %v12354_v29 = vpop.permute.xlu1 %12353 }
0x17a9   : > { %v12091_v51 = vsel %vm3013_vm0, %v27871_v9, 0.0  ;;  %v12431_v36 = vpop.permute.xlu0 %12430 }
0x17aa   : > { %12092 = vadd.xlane.f32.xlu1 %v12091_v51 }
0x17ab   : > { %v27875_v56 = vpop.eup %23967 }
0x17ac   : > { %v27877_v15 = vpop.eup %23969  ;;  %v12097_v58 = vsel %vm3013_vm0, %v27875_v56, 0.0  ;;  %v12508_v47 = vpop.permute.xlu1 %12507 }
0x17ad   : > { %v12094_v42 = vsel %vm3013_vm0, %v27877_v15, 0.0 }
0x17ae   : > { %12098 = vadd.xlane.f32.xlu1 %v12097_v58  ;;  %12095 = vadd.xlane.f32.xlu0 %v12094_v42 }
0x17b0   : > { %v27883_v1 = vpop.eup %23971  ;;  %v27899_v45 = vpop.permute.xlu1 %12661 }
0x17b1   : > { %v12100_v22 = vsel %vm3013_vm0, %v27883_v1, 0.0 }
0x17b2   : > { %12101 = vadd.xlane.f32.xlu0 %v12100_v22 }
0x17b4   : > { %v27901_v57 = vpop.permute.xlu1 %12818 }
0x17b8   : > { %v27903_v35 = vpop.permute.xlu1 %12816 }
0x17bf   : > { %12972 = vrot.lane.b32.xlu1 %v27746_v11, %s30778_s25 }
0x17c8   : > { %12894 = vrot.lane.b32.xlu0 %v27728_v30, %s30778_s25 }
0x17cc   : > { %13052 = vrot.lane.b32.xlu0 %v27742_v43, %s30777_s23 }
0x17d0   : > { %13050 = vrot.lane.b32.xlu0 %v27742_v43, %s30778_s25 }
0x17d4   : > { %13208 = vrot.lane.b32.xlu0 %v27756_v37, %s30777_s23 }
0x17d8   : > { %13206 = vrot.lane.b32.xlu0 %v27756_v37, %s30778_s25 }
0x17e9   : > { %v12057_v20 = vpop.xlane.xlu1 %12056 }
0x17ea   : > { %v12065_v17 = vsub.f32 %v27849_v27, %v12057_v20  ;;  %v12585_v27 = vpop.permute.xlu0 %12584 }
0x17ec   : > { %v12080_v18 = vmul.f32 1.442695, %v12065_v17 }
0x17ed   : > { %v27918_v26 = vpop.permute.xlu1 %12974 }
0x17ee   : > { %23973 = vpow2.f32 %v12080_v18  ;;  %v12741_v63 = vpop.permute.xlu0 %12740 }
0x17f2   : > { %v12739_v10 = vpop.permute.xlu0 %12738 }
0x17f6   : > { %v12897_v8 = vpop.permute.xlu0 %12896 }
0x17f8   : > { %v27906_v3 = vpop.eup %23973 }
0x17f9   : > { %v12103_v53 = vsel %vm3013_vm0, %v27906_v3, 0.0 }
0x17fa   : > { %12104 = vadd.xlane.f32.xlu1 %v12103_v53 }
0x180b   : > { %13130 = vrot.lane.b32.xlu1 %v27754_v7, %s30777_s23 }
0x180f   : > { %13128 = vrot.lane.b32.xlu1 %v27754_v7, %s30778_s25 }
0x1813   : > { %13286 = vrot.lane.b32.xlu1 %v27764_v48, %s30777_s23  ;;  %s30787_s23 = smov 16  }
0x1817   : > { %13284 = vrot.lane.b32.xlu1 %v27764_v48, %s30778_s25 }
0x182f   : > { %v12084_v2 = vpop.xlane.xlu0 %12083 }
0x1830   : > { %23975 = vrcp.f32 %v12084_v2 }
0x1832   : > { %v12087_v28 = vpop.xlane.xlu1 %12086 }
0x1833   : > { %23977 = vrcp.f32 %v12087_v28  ;;  %v12090_v23 = vpop.xlane.xlu0 %12089 }
0x1834   : > { %23979 = vrcp.f32 %v12090_v23 }
0x1837   : > { %v12093_v62 = vpop.xlane.xlu1 %12092 }
0x1838   : > { %23981 = vrcp.f32 %v12093_v62 }
0x183a   : > { %v23976_v44 = vpop.eup %23975 }
0x183b   : > { %v12099_v5 = vpop.xlane.xlu1 %12098  ;;  %v12096_v4 = vpop.xlane.xlu0 %12095  ;;  %v12114_v33 = vmul.f32 %v23976_v44, %v27855_v19 }
0x183c   : > { %23983 = vrcp.f32 %v12099_v5 }
0x183d   : > { %v23978_v49 = vpop.eup %23977  ;;  %23985 = vrcp.f32 %v12096_v4  ;;  %22970 = vmatmul.mubr.msk.f32.vlgmr.msra.gmra.mrb[156].mxu0 %vm3104_vm8, %v12114_v33 }
0x183e   : > { %v23980_v34 = vpop.eup %23979  ;;  %22978 = vmatpush3.msk.msra.mxu0 %vm3108_vm15, %v12277_v41  ;;  %v12115_v54 = vmul.f32 %v23978_v49, %v27861_v6  ;;  %22979 = vmatprep.mubr.msk.f32.mxu0 %vm24312_vm14, %v30761_v24 }
0x183f   : > { %v12102_v25 = vpop.xlane.xlu0 %12101  ;;  %22987 = vmatprep.subr.mxu0 %v30761_v24  ;;  %v12116_v14 = vmul.f32 %v23980_v34, %v27863_v31 }
0x1840   : > { %23987 = vrcp.f32 %v12102_v25  ;;  %22975 = vmatmul.mubr.msk.f32.vlgmr.msra.gmra.mrb[156].mxu1 %vm3104_vm8, %v12115_v54 }
0x1841   : > { %22983 = vmatpush3.msk.msra.mxu1 %vm3108_vm15, %v12354_v29  ;;  %22980 = vmatmul.mubr.msk.f32.vlgmr.msra.gmra.mrb[158].mxu0 %vm3104_vm8, %v12116_v14 }
0x1842   : > { %v23982_v19 = vpop.eup %23981  ;;  %22988 = vmatpush3.msk.msra.mxu0 %vm3108_vm15, %v12431_v36  ;;  %22984 = vmatprep.mubr.msk.f32.mxu1 %vm24312_vm14, %v30761_v24 }
0x1843   : > { %22992 = vmatprep.subr.mxu1 %v30761_v24  ;;  %v12117_v6 = vmul.f32 %v23982_v19, %v27871_v9  ;;  %22989 = vmatprep.mubr.msk.f32.mxu0 %vm24312_vm14, %v30761_v24  ;;  %v12895_v50 = vpop.permute.xlu0 %12894 }
0x1844   : > { %22997 = vmatprep.subr.mxu0 %v30761_v24 }
0x1845   : > { %22985 = vmatmul.mubr.msk.f32.vlgmr.msra.gmra.mrb[158].mxu1 %vm3104_vm8, %v12117_v6 }
0x1846   : > { %v23984_v31 = vpop.eup %23983  ;;  %22993 = vmatpush3.msk.msra.mxu1 %vm3108_vm15, %v12508_v47  ;;  %22994 = vmatprep.mubr.msk.f32.mxu1 %vm24312_vm14, %v30761_v24 }
0x1847   : > { %v23986_v32 = vpop.eup %23985  ;;  %23002 = vmatprep.subr.mxu1 %v30761_v24  ;;  %v12119_v21 = vmul.f32 %v23984_v31, %v27875_v56  ;;  %v13053_v56 = vpop.permute.xlu0 %13052 }
0x1848   : > { %v12118_v61 = vmul.f32 %v23986_v32, %v27877_v15 }
0x1849   : > { %22995 = vmatmul.mubr.msk.f32.vlgmr.msra.gmra.mrb[160].mxu1 %vm3104_vm8, %v12119_v21 }
0x184a   : > { %v23988_v9 = vpop.eup %23987  ;;  %22990 = vmatmul.mubr.msk.f32.vlgmr.msra.gmra.mrb[160].mxu0 %vm3104_vm8, %v12118_v61  ;;  %23003 = vmatpush3.msk.msra.mxu1 %vm3108_vm15, %v27899_v45 }
0x184b   : > { %22998 = vmatpush3.msk.msra.mxu0 %vm3108_vm15, %v12585_v27  ;;  %22999 = vmatprep.mubr.msk.f32.mxu0 %vm24312_vm14, %v30761_v24  ;;  %v12120_v51 = vmul.f32 %v23988_v9, %v27883_v1  ;;  %v13051_v15 = vpop.permute.xlu0 %13050  ;;  %v12973_v1 = vpop.permute.xlu1 %12972 }
0x184c   : > { %23007 = vmatprep.subr.mxu0 %v30761_v24  ;;  %23004 = vmatprep.mubr.msk.f32.mxu1 %vm24312_vm14, %v30761_v24 }
0x184d   : > { %23012 = vmatprep.subr.mxu1 %v30761_v24 }
0x184e   : > { %23000 = vmatmul.mubr.msk.f32.vlgmr.msra.gmra.mrb[162].mxu0 %vm3104_vm8, %v12120_v51 }
0x184f   : > { %23009 = vmatprep.mubr.msk.f32.mxu0 %vm24312_vm14, %v30761_v24  ;;  %v13209_v58 = vpop.permute.xlu0 %13208 }
0x1852   : > { %23008 = vmatpush3.xpose.msk.msra.mxu0 %vm2189_vm9, %v12741_v63 }
0x1853   : > { %23017 = vmatprep.subr.mxu0 %v30761_v24  ;;  %v13207_v42 = vpop.permute.xlu0 %13206 }
0x1855   : > { %23010 = vmatmul.mubr.msk.f32.vlgmr.msra.gmra.mrb[164].mxu0 %vm2189_vm9, %v12739_v10 }
0x1856   : > { %23018 = vmatpush3.xpose.msk.msra.mxu0 %vm2189_vm9, %v12897_v8  ;;  %23019 = vmatprep.mubr.msk.f32.mxu0 %vm24312_vm14, %v30761_v24 }
0x1857   : > { %23027 = vmatprep.subr.mxu0 %v30761_v24 }
0x1859   : > { %23020 = vmatmul.mubr.msk.f32.vlgmr.msra.gmra.mrb[166].mxu0 %vm2189_vm9, %v12895_v50 }
0x185a   : > { %23028 = vmatpush3.xpose.msk.msra.mxu0 %vm2189_vm9, %v13053_v56  ;;  %23029 = vmatprep.mubr.msk.f32.mxu0 %vm24312_vm14, %v30761_v24 }
0x185b   : > { %23037 = vmatprep.subr.mxu0 %v30761_v24 }
0x185d   : > { %23030 = vmatmul.mubr.msk.f32.vlgmr.msra.gmra.mrb[168].mxu0 %vm2189_vm9, %v13051_v15 }
0x185e   : > { %23038 = vmatpush3.xpose.msk.msra.mxu0 %vm2189_vm9, %v13209_v58  ;;  %23039 = vmatprep.mubr.msk.f32.mxu0 %vm24312_vm14, %v30761_v24 }
0x185f   : > { %23047 = vmatprep.subr.mxu0 %v30761_v24 }
0x1861   : > { %23040 = vmatmul.mubr.msk.f32.vlgmr.msra.gmra.mrb[170].mxu0 %vm2189_vm9, %v13207_v42 }
0x1862   : > { %23049 = vmatprep.mubr.msk.f32.mxu0 %vm24312_vm14, %v30761_v24 }
0x1887   : > { %v12105_v22 = vpop.xlane.xlu1 %12104 }
0x1888   : > { %23989 = vrcp.f32 %v12105_v22 }
0x188b   : > { %v13131_v29 = vpop.permute.xlu1 %13130 }
0x188f   : > { %v13129_v45 = vpop.permute.xlu1 %13128 }
0x1892   : > { %v23990_v41 = vpop.eup %23989 }
0x1893   : > { %v12121_v47 = vmul.f32 %v23990_v41, %v27906_v3 }
0x1895   : > { %23005 = vmatmul.mubr.msk.f32.vlgmr.msra.gmra.mrb[162].mxu1 %vm3104_vm8, %v12121_v47 }
0x1896   : > { %23013 = vmatpush3.xpose.msk.msra.mxu1 %vm2189_vm9, %v27901_v57  ;;  %23014 = vmatprep.mubr.msk.f32.mxu1 %vm24312_vm14, %v30761_v24  ;;  %v13287_v57 = vpop.permute.xlu1 %13286 }
0x1897   : > { %23022 = vmatprep.subr.mxu1 %v30761_v24 }
0x1899   : > { %23015 = vmatmul.mubr.msk.f32.vlgmr.msra.gmra.mrb[164].mxu1 %vm2189_vm9, %v27903_v35 }
0x189a   : > { %23023 = vmatpush3.xpose.msk.msra.mxu1 %vm2189_vm9, %v27918_v26  ;;  %23024 = vmatprep.mubr.msk.f32.mxu1 %vm24312_vm14, %v30761_v24  ;;  %v13285_v35 = vpop.permute.xlu1 %13284 }
0x189b   : > { %23032 = vmatprep.subr.mxu1 %v30761_v24 }
0x189d   : > { %23025 = vmatmul.mubr.msk.f32.vlgmr.msra.gmra.mrb[166].mxu1 %vm2189_vm9, %v12973_v1 }
0x189e   : > { %23033 = vmatpush3.xpose.msk.msra.mxu1 %vm2189_vm9, %v13131_v29  ;;  %23034 = vmatprep.mubr.msk.f32.mxu1 %vm24312_vm14, %v30761_v24 }
0x189f   : > { %23042 = vmatprep.subr.mxu1 %v30761_v24 }
0x18a1   : > { %23035 = vmatmul.mubr.msk.f32.vlgmr.msra.gmra.mrb[168].mxu1 %vm2189_vm9, %v13129_v45 }
0x18a2   : > { %23043 = vmatpush3.xpose.msk.msra.mxu1 %vm2189_vm9, %v13287_v57  ;;  %23044 = vmatprep.mubr.msk.f32.mxu1 %vm24312_vm14, %v30761_v24 }
0x18a3   : > { %23052 = vmatprep.subr.mxu1 %v30761_v24 }
0x18a5   : > { %23045 = vmatmul.mubr.msk.f32.vlgmr.msra.gmra.mrb[170].mxu1 %vm2189_vm9, %v13285_v35 }
0x18a6   : > { %23054 = vmatprep.mubr.msk.f32.mxu1 %vm24312_vm14, %v30761_v24 }
0x1910   : > { %v28008_v20 = vpop.f32.mrb[156].mxu0 }
0x1911   : > { %v22971_v17 = vpop.f32.mrb[157].mxu0 }
0x1913   : > { %v28010_v18 = vpop.f32.mrb[156].mxu1 }
0x1914   : > { %v22976_v3 = vpop.f32.mrb[157].mxu1  ;;  %v28012_v53 = vpop.f32.mrb[158].mxu0 }
0x1915   : > { %v22981_v36 = vpop.f32.mrb[159].mxu0 }
0x1918   : > { %v28014_v27 = vpop.f32.mrb[158].mxu1 }
0x1919   : > { %v22986_v63 = vpop.f32.mrb[159].mxu1 }
0x191c   : > { %v28016_v10 = vpop.f32.mrb[160].mxu1 }
0x191d   : > { %v28018_v8 = vpop.f32.mrb[160].mxu0  ;;  %v22996_v26 = vpop.f32.mrb[161].mxu1 }
0x191e   : > { %v22991_v2 = vpop.f32.mrb[161].mxu0 }
0x1921   : > { %v28020_v28 = vpop.f32.mrb[162].mxu0 }
0x1922   : > { %v23001_v23 = vpop.f32.mrb[163].mxu0 }
0x1928   : > { %v12812_v62 = vpop.f32.mrb[164].mxu0 }
0x1929   : > { %v13362_v44 = vmul.f32 0.35355338, %v12812_v62  ;;  %v23011_v5 = vpop.f32.mrb[165].mxu0 }
0x192b   : > { %v13370_v4 = vsel %vm3013_vm0, %v13362_v44, -inf }
0x192c   : > { %13371 = vmax.xlane.f32.xlu0 %v13370_v4  ;;  %v12968_v33 = vpop.f32.mrb[166].mxu0 }
0x192d   : > { %v13364_v49 = vmul.f32 0.35355338, %v12968_v33  ;;  %v23021_v34 = vpop.f32.mrb[167].mxu0 }
0x192f   : > { %v13376_v54 = vsel %vm3013_vm0, %v13364_v49, -inf }
0x1930   : > { %13377 = vmax.xlane.f32.xlu0 %v13376_v54  ;;  %v13124_v25 = vpop.f32.mrb[168].mxu0 }
0x1931   : > { %v23031_v14 = vpop.f32.mrb[169].mxu0  ;;  %v13366_v58 = vmul.f32 0.35355338, %v13124_v25 }
0x1933   : > { %v13382_v45 = vsel %vm3013_vm0, %v13366_v58, -inf }
0x1934   : > { %v13280_v19 = vpop.f32.mrb[170].mxu0 }
0x1935   : > { %v23041_v6 = vpop.f32.mrb[171].mxu0  ;;  %v13368_v29 = vmul.f32 0.35355338, %v13280_v19 }
0x1937   : > { %v13388_v17 = vsel %vm3013_vm0, %v13368_v29, -inf }
0x1968   : > { %v28024_v31 = vpop.f32.mrb[162].mxu1 }
0x1969   : > { %v23006_v32 = vpop.f32.mrb[163].mxu1 }
0x196c   : > { %v12890_v21 = vpop.f32.mrb[164].mxu1 }
0x196d   : > { %v13363_v50 = vmul.f32 0.35355338, %v12890_v21  ;;  %v23016_v61 = vpop.f32.mrb[165].mxu1 }
0x196f   : > { %v13373_v9 = vsel %vm3013_vm0, %v13363_v50, -inf }
0x1970   : > { %13374 = vmax.xlane.f32.xlu1 %v13373_v9  ;;  %v13046_v51 = vpop.f32.mrb[166].mxu1 }
0x1971   : > { %v13365_v56 = vmul.f32 0.35355338, %v13046_v51  ;;  %v23026_v15 = vpop.f32.mrb[167].mxu1 }
0x1973   : > { %v13379_v42 = vsel %vm3013_vm0, %v13365_v56, -inf }
0x1974   : > { %v13202_v1 = vpop.f32.mrb[168].mxu1  ;;  %13380 = vmax.xlane.f32.xlu0 %v13379_v42 }
0x1975   : > { %v13367_v22 = vmul.f32 0.35355338, %v13202_v1  ;;  %v23036_v41 = vpop.f32.mrb[169].mxu1 }
0x1977   : > { %v13385_v47 = vsel %vm3013_vm0, %v13367_v22, -inf }
0x1978   : > { %13386 = vmax.xlane.f32.xlu1 %v13385_v47  ;;  %v13358_v57 = vpop.f32.mrb[170].mxu1  ;;  %13383 = vmax.xlane.f32.xlu0 %v13382_v45 }
0x1979   : > { %v23046_v35 = vpop.f32.mrb[171].mxu1  ;;  %v28057_v23 = vmul.f32 0.35355338, %v13358_v57 }
0x197b   : > { %v13391_v5 = vsel %vm3013_vm0, %v28057_v23, -inf }
0x197c   : > { %13389 = vmax.xlane.f32.xlu0 %v13388_v17 }
0x1989   : > { %13535 = vrot.lane.b32.xlu1 %v27738_v46, %s30779_s24 }
0x198d   : > { %13612 = vrot.lane.b32.xlu1 %v27728_v30, %s30779_s24 }
0x1991   : > { %13689 = vrot.lane.b32.xlu1 %v27746_v11, %s30779_s24 }
0x1992   : > { %13458 = vrot.lane.b32.xlu0 %v27730_v55, %s30779_s24 }
0x1995   : > { %13843 = vrot.lane.b32.xlu1 %v27754_v7, %s30779_s24 }
0x1996   : > { %13766 = vrot.lane.b32.xlu0 %v27742_v43, %s30779_s24 }
0x1999   : > { %13997 = vrot.lane.b32.xlu1 %v27764_v48, %s30779_s24 }
0x199a   : > { %13920 = vrot.lane.b32.xlu0 %v27756_v37, %s30779_s24 }
0x199d   : > { %14154 = vrot.lane.b32.xlu1 %v27738_v46, %s30780_s5 }
0x199e   : > { %14076 = vrot.lane.b32.xlu0 %v27730_v55, %s30780_s5 }
0x19a1   : > { %14152 = vrot.lane.b32.xlu1 %v27738_v46, %s30781_s26 }
0x19a2   : > { %14074 = vrot.lane.b32.xlu0 %v27730_v55, %s30781_s26 }
0x19a6   : > { %14232 = vrot.lane.b32.xlu0 %v27728_v30, %s30780_s5 }
0x19b9   : > { %v13372_v3 = vpop.xlane.xlu0 %13371 }
0x19ba   : > { %v13394_v36 = vsub.f32 %v13362_v44, %v13372_v3 }
0x19bc   : > { %v13402_v63 = vmul.f32 1.442695, %v13394_v36 }
0x19bd   : > { %v13378_v26 = vpop.xlane.xlu0 %13377 }
0x19be   : > { %23991 = vpow2.f32 %v13402_v63  ;;  %v13396_v2 = vsub.f32 %v13364_v49, %v13378_v26 }
0x19c0   : > { %v13406_v62 = vmul.f32 1.442695, %v13396_v2 }
0x19c2   : > { %23993 = vpow2.f32 %v13406_v62 }
0x19c5   : > { %13392 = vmax.xlane.f32.xlu1 %v13391_v5 }
0x19c8   : > { %v28061_v4 = vpop.eup %23991 }
0x19c9   : > { %v13418_v33 = vsel %vm3013_vm0, %v28061_v4, 0.0 }
0x19ca   : > { %13419 = vadd.xlane.f32.xlu0 %v13418_v33 }
0x19cc   : > { %v28065_v34 = vpop.eup %23993 }
0x19cd   : > { %v13424_v44 = vsel %vm3013_vm0, %v28065_v34, 0.0 }
0x19ce   : > { %13425 = vadd.xlane.f32.xlu0 %v13424_v44 }
0x19d6   : > { %14310 = vrot.lane.b32.xlu1 %v27746_v11, %s30780_s5 }
0x19fd   : > { %v13375_v49 = vpop.xlane.xlu1 %13374 }
0x19fe   : > { %v13395_v54 = vsub.f32 %v13363_v50, %v13375_v49 }
0x1a00   : > { %v13404_v25 = vmul.f32 1.442695, %v13395_v54 }
0x1a01   : > { %v13381_v14 = vpop.xlane.xlu0 %13380 }
0x1a02   : > { %23995 = vpow2.f32 %v13404_v25  ;;  %v13397_v19 = vsub.f32 %v13365_v56, %v13381_v14 }
0x1a04   : > { %v13408_v6 = vmul.f32 1.442695, %v13397_v19 }
0x1a05   : > { %v13387_v32 = vpop.xlane.xlu1 %13386  ;;  %v13384_v21 = vpop.xlane.xlu0 %13383 }
0x1a06   : > { %23997 = vpow2.f32 %v13408_v6  ;;  %v13399_v61 = vsub.f32 %v13367_v22, %v13387_v32  ;;  %v13398_v9 = vsub.f32 %v13366_v58, %v13384_v21 }
0x1a08   : > { %v13412_v51 = vmul.f32 1.442695, %v13399_v61  ;;  %v13410_v15 = vmul.f32 1.442695, %v13398_v9 }
0x1a09   : > { %v13536_v42 = vpop.permute.xlu1 %13535  ;;  %v13390_v1 = vpop.xlane.xlu0 %13389 }
0x1a0a   : > { %23999 = vpow2.f32 %v13412_v51  ;;  %v13400_v41 = vsub.f32 %v13368_v29, %v13390_v1  ;;  %23053 = vmatpush3.msk.msra.mxu1 %vm3108_vm15, %v13536_v42 }
0x1a0b   : > { %24001 = vpow2.f32 %v13410_v15  ;;  %23062 = vmatprep.subr.mxu1 %v30761_v24 }
0x1a0c   : > { %v28073_v50 = vpop.eup %23995  ;;  %v13414_v56 = vmul.f32 1.442695, %v13400_v41 }
0x1a0d   : > { %v13459_v47 = vpop.permute.xlu0 %13458  ;;  %v13421_v45 = vsel %vm3013_vm0, %v28073_v50, 0.0  ;;  %v13613_v63 = vpop.permute.xlu1 %13612 }
0x1a0e   : > { %24003 = vpow2.f32 %v13414_v56  ;;  %13422 = vadd.xlane.f32.xlu1 %v13421_v45  ;;  %23048 = vmatpush3.msk.msra.mxu0 %vm3108_vm15, %v13459_v47 }
0x1a0f   : > { %23057 = vmatprep.subr.mxu0 %v30761_v24 }
0x1a10   : > { %v28079_v58 = vpop.eup %23997 }
0x1a11   : > { %v13427_v22 = vsel %vm3013_vm0, %v28079_v58, 0.0  ;;  %v28101_v26 = vpop.permute.xlu1 %13689  ;;  %v13767_v2 = vpop.permute.xlu0 %13766 }
0x1a12   : > { %13428 = vadd.xlane.f32.xlu1 %v13427_v22 }
0x1a14   : > { %v28083_v29 = vpop.eup %23999 }
0x1a15   : > { %v28085_v57 = vpop.eup %24001  ;;  %v13433_v35 = vsel %vm3013_vm0, %v28083_v29, 0.0  ;;  %v28105_v62 = vpop.permute.xlu1 %13843 }
0x1a16   : > { %13434 = vadd.xlane.f32.xlu1 %v13433_v35  ;;  %v13430_v17 = vsel %vm3013_vm0, %v28085_v57, 0.0  ;;  %v28109_v5 = vpop.permute.xlu0 %13920 }
0x1a17   : > { %13431 = vadd.xlane.f32.xlu0 %v13430_v17 }
0x1a18   : > { %v28091_v3 = vpop.eup %24003 }
0x1a19   : > { %v13436_v36 = vsel %vm3013_vm0, %v28091_v3, 0.0  ;;  %v28113_v33 = vpop.permute.xlu1 %13997 }
0x1a1a   : > { %v28117_v44 = vpop.permute.xlu0 %14076 }
0x1a1b   : > { %13437 = vadd.xlane.f32.xlu0 %v13436_v36 }
0x1a1d   : > { %v28119_v49 = vpop.permute.xlu1 %14154 }
0x1a1e   : > { %v28123_v54 = vpop.permute.xlu0 %14074 }
0x1a21   : > { %v28127_v25 = vpop.permute.xlu1 %14152 }
0x1a22   : > { %v28129_v19 = vpop.permute.xlu0 %14232 }
0x1a27   : > { %14308 = vrot.lane.b32.xlu1 %v27746_v11, %s30781_s26 }
0x1a31   : > { %14230 = vrot.lane.b32.xlu0 %v27728_v30, %s30781_s26 }
0x1a35   : > { %14388 = vrot.lane.b32.xlu0 %v27742_v43, %s30780_s5 }
0x1a39   : > { %14386 = vrot.lane.b32.xlu0 %v27742_v43, %s30781_s26 }
0x1a3d   : > { %14544 = vrot.lane.b32.xlu0 %v27756_v37, %s30780_s5 }
0x1a41   : > { %14542 = vrot.lane.b32.xlu0 %v27756_v37, %s30781_s26 }
0x1a45   : > { %14794 = vrot.lane.b32.xlu0 %v27730_v55, %s30782_s29 }
0x1a49   : > { %15102 = vrot.lane.b32.xlu0 %v27742_v43, %s30782_s29 }
0x1a4d   : > { %15256 = vrot.lane.b32.xlu0 %v27756_v37, %s30782_s29 }
0x1a52   : > { %v13393_v14 = vpop.xlane.xlu1 %13392 }
0x1a53   : > { %v13401_v6 = vsub.f32 %v28057_v23, %v13393_v14 }
0x1a55   : > { %v13416_v32 = vmul.f32 1.442695, %v13401_v6 }
0x1a57   : > { %24005 = vpow2.f32 %v13416_v32  ;;  %v13420_v21 = vpop.xlane.xlu0 %13419 }
0x1a58   : > { %24007 = vrcp.f32 %v13420_v21 }
0x1a5b   : > { %v13426_v61 = vpop.xlane.xlu0 %13425 }
0x1a5c   : > { %24009 = vrcp.f32 %v13426_v61 }
0x1a61   : > { %v28132_v9 = vpop.eup %24005 }
0x1a62   : > { %v24008_v51 = vpop.eup %24007  ;;  %v13439_v15 = vsel %vm3013_vm0, %v28132_v9, 0.0 }
0x1a63   : > { %13440 = vadd.xlane.f32.xlu1 %v13439_v15  ;;  %v13450_v42 = vmul.f32 %v24008_v51, %v28061_v4  ;;  %v28166_v4 = vpop.permute.xlu1 %14310 }
0x1a65   : > { %23050 = vmatmul.mubr.msk.f32.vlgmr.msra.gmra.mrb[172].mxu0 %vm3104_vm8, %v13450_v42 }
0x1a66   : > { %v24010_v1 = vpop.eup %24009  ;;  %23058 = vmatpush3.msk.msra.mxu0 %vm3108_vm15, %v13613_v63  ;;  %23059 = vmatprep.mubr.msk.f32.mxu0 %vm24312_vm14, %v30761_v24 }
0x1a67   : > { %23067 = vmatprep.subr.mxu0 %v30761_v24  ;;  %v13452_v23 = vmul.f32 %v24010_v1, %v28065_v34 }
0x1a69   : > { %23060 = vmatmul.mubr.msk.f32.vlgmr.msra.gmra.mrb[174].mxu0 %vm3104_vm8, %v13452_v23 }
0x1a6a   : > { %23068 = vmatpush3.msk.msra.mxu0 %vm3108_vm15, %v13767_v2  ;;  %23069 = vmatprep.mubr.msk.f32.mxu0 %vm24312_vm14, %v30761_v24 }
0x1a6b   : > { %23077 = vmatprep.subr.mxu0 %v30761_v24 }
0x1a74   : > { %14466 = vrot.lane.b32.xlu1 %v27754_v7, %s30780_s5 }
0x1a78   : > { %14464 = vrot.lane.b32.xlu1 %v27754_v7, %s30781_s26 }
0x1a7c   : > { %14622 = vrot.lane.b32.xlu1 %v27764_v48, %s30780_s5 }
0x1a80   : > { %14620 = vrot.lane.b32.xlu1 %v27764_v48, %s30781_s26 }
0x1a84   : > { %14871 = vrot.lane.b32.xlu1 %v27738_v46, %s30782_s29 }
0x1a88   : > { %14948 = vrot.lane.b32.xlu1 %v27728_v30, %s30782_s29 }
0x1a8c   : > { %15025 = vrot.lane.b32.xlu1 %v27746_v11, %s30782_s29 }
0x1a90   : > { %15179 = vrot.lane.b32.xlu1 %v27754_v7, %s30782_s29 }
0x1a94   : > { %15333 = vrot.lane.b32.xlu1 %v27764_v48, %s30782_s29 }
0x1a9b   : > { %v13423_v34 = vpop.xlane.xlu1 %13422 }
0x1a9c   : > { %24011 = vrcp.f32 %v13423_v34 }
0x1a9f   : > { %v13429_v41 = vpop.xlane.xlu1 %13428 }
0x1aa0   : > { %24013 = vrcp.f32 %v13429_v41 }
0x1aa3   : > { %v13435_v56 = vpop.xlane.xlu1 %13434 }
0x1aa4   : > { %24015 = vrcp.f32 %v13435_v56  ;;  %v13432_v47 = vpop.xlane.xlu0 %13431 }
0x1aa5   : > { %24017 = vrcp.f32 %v13432_v47 }
0x1aa6   : > { %v24012_v45 = vpop.eup %24011 }
0x1aa7   : > { %v13451_v22 = vmul.f32 %v24012_v45, %v28073_v50 }
0x1aa8   : > { %v13438_v35 = vpop.xlane.xlu0 %13437 }
0x1aa9   : > { %24019 = vrcp.f32 %v13438_v35  ;;  %23055 = vmatmul.mubr.msk.f32.vlgmr.msra.gmra.mrb[172].mxu1 %vm3104_vm8, %v13451_v22 }
0x1aaa   : > { %v24014_v17 = vpop.eup %24013  ;;  %23063 = vmatpush3.msk.msra.mxu1 %vm3108_vm15, %v28101_v26  ;;  %23064 = vmatprep.mubr.msk.f32.mxu1 %vm24312_vm14, %v30761_v24 }
0x1aab   : > { %23072 = vmatprep.subr.mxu1 %v30761_v24  ;;  %v13453_v36 = vmul.f32 %v24014_v17, %v28079_v58 }
0x1aac   : > { %v14231_v63 = vpop.permute.xlu0 %14230 }
0x1aad   : > { %23065 = vmatmul.mubr.msk.f32.vlgmr.msra.gmra.mrb[174].mxu1 %vm3104_vm8, %v13453_v36 }
0x1aae   : > { %v24016_v2 = vpop.eup %24015  ;;  %23073 = vmatpush3.msk.msra.mxu1 %vm3108_vm15, %v28105_v62  ;;  %23074 = vmatprep.mubr.msk.f32.mxu1 %vm24312_vm14, %v30761_v24 }
0x1aaf   : > { %v24018_v50 = vpop.eup %24017  ;;  %23082 = vmatprep.subr.mxu1 %v30761_v24  ;;  %v13455_v26 = vmul.f32 %v24016_v2, %v28083_v29 }
0x1ab0   : > { %v13454_v14 = vmul.f32 %v24018_v50, %v28085_v57  ;;  %v14389_v6 = vpop.permute.xlu0 %14388 }
0x1ab1   : > { %23075 = vmatmul.mubr.msk.f32.vlgmr.msra.gmra.mrb[176].mxu1 %vm3104_vm8, %v13455_v26 }
0x1ab2   : > { %23070 = vmatmul.mubr.msk.f32.vlgmr.msra.gmra.mrb[176].mxu0 %vm3104_vm8, %v13454_v14  ;;  %23083 = vmatpush3.msk.msra.mxu1 %vm3108_vm15, %v28113_v33  ;;  %v14309_v33 = vpop.permute.xlu1 %14308 }
0x1ab3   : > { %v24020_v58 = vpop.eup %24019  ;;  %23078 = vmatpush3.msk.msra.mxu0 %vm3108_vm15, %v28109_v5  ;;  %23079 = vmatprep.mubr.msk.f32.mxu0 %vm24312_vm14, %v30761_v24 }
0x1ab4   : > { %v13456_v62 = vmul.f32 %v24020_v58, %v28091_v3  ;;  %23087 = vmatprep.subr.mxu0 %v30761_v24  ;;  %23084 = vmatprep.mubr.msk.f32.mxu1 %vm24312_vm14, %v30761_v24  ;;  %v14387_v29 = vpop.permute.xlu0 %14386 }
0x1ab5   : > { %23092 = vmatprep.subr.mxu1 %v30761_v24 }
0x1ab6   : > { %23080 = vmatmul.mubr.msk.f32.vlgmr.msra.gmra.mrb[178].mxu0 %vm3104_vm8, %v13456_v62 }
0x1ab7   : > { %23089 = vmatprep.mubr.msk.f32.mxu0 %vm24312_vm14, %v30761_v24 }
0x1ab8   : > { %v14545_v57 = vpop.permute.xlu0 %14544 }
0x1aba   : > { %23088 = vmatpush3.xpose.msk.msra.mxu0 %vm2189_vm9, %v28117_v44 }
0x1abb   : > { %23097 = vmatprep.subr.mxu0 %v30761_v24 }
0x1abc   : > { %v14543_v3 = vpop.permute.xlu0 %14542 }
0x1abd   : > { %23090 = vmatmul.mubr.msk.f32.vlgmr.msra.gmra.mrb[180].mxu0 %vm2189_vm9, %v28123_v54 }
0x1abe   : > { %23098 = vmatpush3.xpose.msk.msra.mxu0 %vm2189_vm9, %v28129_v19  ;;  %23099 = vmatprep.mubr.msk.f32.mxu0 %vm24312_vm14, %v30761_v24 }
0x1abf   : > { %23107 = vmatprep.subr.mxu0 %v30761_v24 }
0x1ac0   : > { %v14795_v5 = vpop.permute.xlu0 %14794 }
0x1ac1   : > { %23100 = vmatmul.mubr.msk.f32.vlgmr.msra.gmra.mrb[182].mxu0 %vm2189_vm9, %v14231_v63 }
0x1ac2   : > { %23108 = vmatpush3.xpose.msk.msra.mxu0 %vm2189_vm9, %v14389_v6  ;;  %23109 = vmatprep.mubr.msk.f32.mxu0 %vm24312_vm14, %v30761_v24 }
0x1ac3   : > { %23117 = vmatprep.subr.mxu0 %v30761_v24 }
0x1ac5   : > { %23110 = vmatmul.mubr.msk.f32.vlgmr.msra.gmra.mrb[184].mxu0 %vm2189_vm9, %v14387_v29 }
0x1ac6   : > { %23118 = vmatpush3.xpose.msk.msra.mxu0 %vm2189_vm9, %v14545_v57  ;;  %23119 = vmatprep.mubr.msk.f32.mxu0 %vm24312_vm14, %v30761_v24 }
0x1ac7   : > { %23127 = vmatprep.subr.mxu0 %v30761_v24 }
0x1ac9   : > { %23120 = vmatmul.mubr.msk.f32.vlgmr.msra.gmra.mrb[186].mxu0 %vm2189_vm9, %v14543_v3 }
0x1aca   : > { %23128 = vmatpush3.msk.msra.mxu0 %vm3108_vm15, %v14795_v5  ;;  %23129 = vmatprep.mubr.msk.f32.mxu0 %vm24312_vm14, %v30761_v24 }
0x1acb   : > { %23137 = vmatprep.subr.mxu0 %v30761_v24 }
0x1af0   : > { %v13441_v44 = vpop.xlane.xlu1 %13440 }
0x1af1   : > { %24021 = vrcp.f32 %v13441_v44 }
0x1af4   : > { %v14467_v54 = vpop.permute.xlu1 %14466 }
0x1af8   : > { %v14465_v32 = vpop.permute.xlu1 %14464 }
0x1afb   : > { %v24022_v19 = vpop.eup %24021 }
0x1afc   : > { %v13457_v21 = vmul.f32 %v24022_v19, %v28132_v9  ;;  %v14623_v61 = vpop.permute.xlu1 %14622 }
0x1afe   : > { %23085 = vmatmul.mubr.msk.f32.vlgmr.msra.gmra.mrb[178].mxu1 %vm3104_vm8, %v13457_v21 }
0x1aff   : > { %23093 = vmatpush3.xpose.msk.msra.mxu1 %vm2189_vm9, %v28119_v49  ;;  %23094 = vmatprep.mubr.msk.f32.mxu1 %vm24312_vm14, %v30761_v24 }
0x1b00   : > { %23102 = vmatprep.subr.mxu1 %v30761_v24  ;;  %v14621_v49 = vpop.permute.xlu1 %14620 }
0x1b02   : > { %23095 = vmatmul.mubr.msk.f32.vlgmr.msra.gmra.mrb[180].mxu1 %vm2189_vm9, %v28127_v25 }
0x1b03   : > { %23103 = vmatpush3.xpose.msk.msra.mxu1 %vm2189_vm9, %v28166_v4  ;;  %23104 = vmatprep.mubr.msk.f32.mxu1 %vm24312_vm14, %v30761_v24 }
0x1b04   : > { %23112 = vmatprep.subr.mxu1 %v30761_v24  ;;  %v14872_v25 = vpop.permute.xlu1 %14871 }
0x1b06   : > { %23105 = vmatmul.mubr.msk.f32.vlgmr.msra.gmra.mrb[182].mxu1 %vm2189_vm9, %v14309_v33 }
0x1b07   : > { %23113 = vmatpush3.xpose.msk.msra.mxu1 %vm2189_vm9, %v14467_v54  ;;  %23114 = vmatprep.mubr.msk.f32.mxu1 %vm24312_vm14, %v30761_v24 }
0x1b08   : > { %23122 = vmatprep.subr.mxu1 %v30761_v24 }
0x1b0a   : > { %23115 = vmatmul.mubr.msk.f32.vlgmr.msra.gmra.mrb[184].mxu1 %vm2189_vm9, %v14465_v32 }
0x1b0b   : > { %23123 = vmatpush3.xpose.msk.msra.mxu1 %vm2189_vm9, %v14623_v61  ;;  %23124 = vmatprep.mubr.msk.f32.mxu1 %vm24312_vm14, %v30761_v24 }
0x1b0c   : > { %23132 = vmatprep.subr.mxu1 %v30761_v24 }
0x1b0e   : > { %23125 = vmatmul.mubr.msk.f32.vlgmr.msra.gmra.mrb[186].mxu1 %vm2189_vm9, %v14621_v49 }
0x1b0f   : > { %23133 = vmatpush3.msk.msra.mxu1 %vm3108_vm15, %v14872_v25  ;;  %23134 = vmatprep.mubr.msk.f32.mxu1 %vm24312_vm14, %v30761_v24 }
0x1b10   : > { %23142 = vmatprep.subr.mxu1 %v30761_v24 }
0x1b38   : > { %v28254_v9 = vpop.f32.mrb[172].mxu0 }
0x1b39   : > { %v23051_v51 = vpop.f32.mrb[173].mxu0 }
0x1b3c   : > { %v28256_v15 = vpop.f32.mrb[174].mxu0 }
0x1b3d   : > { %v23061_v42 = vpop.f32.mrb[175].mxu0 }
0x1b7c   : > { %v28258_v1 = vpop.f32.mrb[172].mxu1 }
0x1b7d   : > { %v23056_v23 = vpop.f32.mrb[173].mxu1 }
0x1b80   : > { %v28260_v4 = vpop.f32.mrb[174].mxu1 }
0x1b81   : > { %v23066_v34 = vpop.f32.mrb[175].mxu1 }
0x1b84   : > { %v28262_v41 = vpop.f32.mrb[176].mxu1 }
0x1b85   : > { %v28264_v56 = vpop.f32.mrb[176].mxu0  ;;  %v23076_v47 = vpop.f32.mrb[177].mxu1 }
0x1b86   : > { %v23071_v45 = vpop.f32.mrb[177].mxu0 }
0x1b89   : > { %v28266_v22 = vpop.f32.mrb[178].mxu0 }
0x1b8a   : > { %v23081_v35 = vpop.f32.mrb[179].mxu0 }
0x1b90   : > { %v14148_v17 = vpop.f32.mrb[180].mxu0 }
0x1b91   : > { %v14698_v36 = vmul.f32 0.35355338, %v14148_v17  ;;  %v23091_v63 = vpop.f32.mrb[181].mxu0 }
0x1b93   : > { %v14706_v2 = vsel %vm3013_vm0, %v14698_v36, -inf }
0x1b94   : > { %14707 = vmax.xlane.f32.xlu0 %v14706_v2  ;;  %v14304_v50 = vpop.f32.mrb[182].mxu0 }
0x1b95   : > { %v14700_v26 = vmul.f32 0.35355338, %v14304_v50  ;;  %v23101_v14 = vpop.f32.mrb[183].mxu0 }
0x1b96   : > { %v28288_v14 = vpop.permute.xlu0 %15102 }
0x1b97   : > { %v14712_v6 = vsel %vm3013_vm0, %v14700_v26, -inf }
0x1b98   : > { %14713 = vmax.xlane.f32.xlu0 %v14712_v6  ;;  %v14460_v58 = vpop.f32.mrb[184].mxu0 }
0x1b99   : > { %v23111_v62 = vpop.f32.mrb[185].mxu0  ;;  %v14702_v49 = vmul.f32 0.35355338, %v14460_v58 }
0x1b9a   : > { %v28290_v6 = vpop.permute.xlu0 %15256 }
0x1b9b   : > { %v14718_v45 = vsel %vm3013_vm0, %v14702_v49, -inf }
0x1b9c   : > { %v14616_v29 = vpop.f32.mrb[186].mxu0 }
0x1b9d   : > { %v23121_v57 = vpop.f32.mrb[187].mxu0  ;;  %v28274_v34 = vmul.f32 0.35355338, %v14616_v29 }
0x1b9f   : > { %v14724_v63 = vsel %vm3013_vm0, %v28274_v34, -inf }
0x1bd1   : > { %v28270_v3 = vpop.f32.mrb[178].mxu1 }
0x1bd2   : > { %v23086_v5 = vpop.f32.mrb[179].mxu1 }
0x1bd5   : > { %v14226_v33 = vpop.f32.mrb[180].mxu1 }
0x1bd6   : > { %v14699_v44 = vmul.f32 0.35355338, %v14226_v33  ;;  %v23096_v54 = vpop.f32.mrb[181].mxu1 }
0x1bd8   : > { %v14709_v19 = vsel %vm3013_vm0, %v14699_v44, -inf }
0x1bd9   : > { %14710 = vmax.xlane.f32.xlu1 %v14709_v19  ;;  %v14382_v32 = vpop.f32.mrb[182].mxu1 }
0x1bda   : > { %v14701_v21 = vmul.f32 0.35355338, %v14382_v32  ;;  %v23106_v61 = vpop.f32.mrb[183].mxu1 }
0x1bdc   : > { %v14715_v25 = vsel %vm3013_vm0, %v14701_v21, -inf }
0x1bdd   : > { %v14538_v51 = vpop.f32.mrb[184].mxu1  ;;  %14716 = vmax.xlane.f32.xlu0 %v14715_v25  ;;  %v14949_v25 = vpop.permute.xlu1 %14948 }
0x1bde   : > { %v14703_v42 = vmul.f32 0.35355338, %v14538_v51  ;;  %v23116_v23 = vpop.f32.mrb[185].mxu1 }
0x1be0   : > { %v14721_v47 = vsel %vm3013_vm0, %v14703_v42, -inf }
0x1be1   : > { %14722 = vmax.xlane.f32.xlu1 %v14721_v47  ;;  %v14694_v35 = vpop.f32.mrb[186].mxu1  ;;  %14719 = vmax.xlane.f32.xlu0 %v14718_v45  ;;  %v28294_v51 = vpop.permute.xlu1 %15025 }
0x1be2   : > { %v23126_v17 = vpop.f32.mrb[187].mxu1  ;;  %v28284_v2 = vmul.f32 0.35355338, %v14694_v35 }
0x1be4   : > { %v14727_v50 = vsel %vm3013_vm0, %v28284_v2, -inf }
0x1be5   : > { %14725 = vmax.xlane.f32.xlu0 %v14724_v63  ;;  %v28296_v23 = vpop.permute.xlu1 %15179 }
0x1bf2   : > { %15490 = vrot.lane.b32.xlu1 %v27738_v46, %s30783_s3 }
0x1bfb   : > { %15412 = vrot.lane.b32.xlu0 %v27730_v55, %s30783_s3 }
0x1c16   : > { %14728 = vmax.xlane.f32.xlu1 %v14727_v50 }
0x1c21   : > { %v14708_v58 = vpop.xlane.xlu0 %14707 }
0x1c22   : > { %v14730_v62 = vsub.f32 %v14698_v36, %v14708_v58  ;;  %v28298_v36 = vpop.permute.xlu1 %15333 }
0x1c24   : > { %v14738_v29 = vmul.f32 1.442695, %v14730_v62 }
0x1c25   : > { %v14714_v57 = vpop.xlane.xlu0 %14713 }
0x1c26   : > { %24023 = vpow2.f32 %v14738_v29  ;;  %v14732_v5 = vsub.f32 %v14700_v26, %v14714_v57 }
0x1c28   : > { %v14742_v33 = vmul.f32 1.442695, %v14732_v5 }
0x1c2a   : > { %24025 = vpow2.f32 %v14742_v33 }
0x1c30   : > { %v24024_v54 = vpop.eup %24023 }
0x1c31   : > { %v14754_v19 = vsel %vm3013_vm0, %v24024_v54, 0.0 }
0x1c32   : > { %14755 = vadd.xlane.f32.xlu0 %v14754_v19 }
0x1c34   : > { %v24026_v32 = vpop.eup %24025 }
0x1c35   : > { %v14760_v61 = vsel %vm3013_vm0, %v24026_v32, 0.0 }
0x1c36   : > { %14761 = vadd.xlane.f32.xlu0 %v14760_v61 }
0x1c66   : > { %v14711_v47 = vpop.xlane.xlu1 %14710 }
0x1c67   : > { %v14731_v45 = vsub.f32 %v14699_v44, %v14711_v47 }
0x1c69   : > { %v14740_v26 = vmul.f32 1.442695, %v14731_v45 }
0x1c6a   : > { %v14717_v35 = vpop.xlane.xlu0 %14716 }
0x1c6b   : > { %24027 = vpow2.f32 %v14740_v26  ;;  %v14733_v17 = vsub.f32 %v14701_v21, %v14717_v35 }
0x1c6d   : > { %v14744_v63 = vmul.f32 1.442695, %v14733_v17 }
0x1c6e   : > { %v14720_v50 = vpop.xlane.xlu0 %14719 }
0x1c6f   : > { %24029 = vpow2.f32 %v14744_v63  ;;  %v14734_v58 = vsub.f32 %v14702_v49, %v14720_v50  ;;  %v14723_v49 = vpop.xlane.xlu1 %14722 }
0x1c70   : > { %v14735_v19 = vsub.f32 %v14703_v42, %v14723_v49 }
0x1c71   : > { %v14746_v62 = vmul.f32 1.442695, %v14734_v58 }
0x1c72   : > { %v14726_v61 = vpop.xlane.xlu0 %14725  ;;  %v14748_v47 = vmul.f32 1.442695, %v14735_v19 }
0x1c73   : > { %24031 = vpow2.f32 %v14746_v62  ;;  %v14736_v45 = vsub.f32 %v28274_v34, %v14726_v61  ;;  %v28329_v62 = vpop.permute.xlu1 %15490 }
0x1c74   : > { %24033 = vpow2.f32 %v14748_v47 }
0x1c75   : > { %v28300_v29 = vpop.eup %24027  ;;  %v14750_v26 = vmul.f32 1.442695, %v14736_v45 }
0x1c76   : > { %v14757_v57 = vsel %vm3013_vm0, %v28300_v29, 0.0  ;;  %v28325_v42 = vpop.permute.xlu0 %15412 }
0x1c77   : > { %14758 = vadd.xlane.f32.xlu1 %v14757_v57  ;;  %24035 = vpow2.f32 %v14750_v26 }
0x1c79   : > { %v28304_v5 = vpop.eup %24029 }
0x1c7a   : > { %v14763_v44 = vsel %vm3013_vm0, %v28304_v5, 0.0 }
0x1c7b   : > { %14764 = vadd.xlane.f32.xlu1 %v14763_v44 }
0x1c7d   : > { %v28308_v33 = vpop.eup %24031 }
0x1c7e   : > { %v14766_v21 = vsel %vm3013_vm0, %v28308_v33, 0.0  ;;  %v28317_v35 = vpop.eup %24033 }
0x1c7f   : > { %14767 = vadd.xlane.f32.xlu0 %v14766_v21  ;;  %v14769_v17 = vsel %vm3013_vm0, %v28317_v35, 0.0 }
0x1c81   : > { %v28321_v63 = vpop.eup %24035 }
0x1c82   : > { %v14772_v50 = vsel %vm3013_vm0, %v28321_v63, 0.0 }
0x1c8c   : > { %15488 = vrot.lane.b32.xlu1 %v27738_v46, %s30784_s1 }
0x1c95   : > { %15410 = vrot.lane.b32.xlu0 %v27730_v55, %s30784_s1 }
0x1ca3   : > { %v14729_v21 = vpop.xlane.xlu1 %14728 }
0x1ca4   : > { %v14737_v19 = vsub.f32 %v28284_v2, %v14729_v21 }
0x1cb0   : > { %14770 = vadd.xlane.f32.xlu1 %v14769_v17 }
0x1cb4   : > { %14773 = vadd.xlane.f32.xlu0 %v14772_v50 }
0x1cbf   : > { %v14756_v58 = vpop.xlane.xlu0 %14755 }
0x1cc0   : > { %24037 = vrcp.f32 %v14756_v58 }
0x1cc1   : > { %15646 = vrot.lane.b32.xlu1 %v27746_v11, %s30783_s3 }
0x1cc3   : > { %v14762_v34 = vpop.xlane.xlu0 %14761 }
0x1cc4   : > { %24039 = vrcp.f32 %v14762_v34 }
0x1cca   : > { %v24038_v57 = vpop.eup %24037  ;;  %15568 = vrot.lane.b32.xlu0 %v27728_v30, %s30783_s3 }
0x1ccb   : > { %v14786_v44 = vmul.f32 %v24038_v57, %v24024_v54  ;;  %v14752_v54 = vmul.f32 1.442695, %v14737_v19 }
0x1ccd   : > { %23130 = vmatmul.mubr.msk.f32.vlgmr.msra.gmra.mrb[188].mxu0 %vm3104_vm8, %v14786_v44  ;;  %24041 = vpow2.f32 %v14752_v54 }
0x1cce   : > { %v24040_v49 = vpop.eup %24039  ;;  %23138 = vmatpush3.msk.msra.mxu0 %vm3108_vm15, %v14949_v25  ;;  %23139 = vmatprep.mubr.msk.f32.mxu0 %vm24312_vm14, %v30761_v24 }
0x1ccf   : > { %v14788_v61 = vmul.f32 %v24040_v49, %v24026_v32  ;;  %15566 = vrot.lane.b32.xlu0 %v27728_v30, %s30784_s1  ;;  %23147 = vmatprep.subr.mxu0 %v30761_v24 }
0x1cd1   : > { %23140 = vmatmul.mubr.msk.f32.vlgmr.msra.gmra.mrb[190].mxu0 %vm3104_vm8, %v14788_v61 }
0x1cd2   : > { %23148 = vmatpush3.msk.msra.mxu0 %vm3108_vm15, %v28288_v14  ;;  %23149 = vmatprep.mubr.msk.f32.mxu0 %vm24312_vm14, %v30761_v24 }
0x1cd3   : > { %15724 = vrot.lane.b32.xlu0 %v27742_v43, %s30783_s3  ;;  %23157 = vmatprep.subr.mxu0 %v30761_v24 }
0x1cd7   : > { %15722 = vrot.lane.b32.xlu0 %v27742_v43, %s30784_s1  ;;  %v28355_v2 = vpop.eup %24041 }
0x1cd8   : > { %v14775_v14 = vsel %vm3013_vm0, %v28355_v2, 0.0 }
0x1cdb   : > { %15880 = vrot.lane.b32.xlu0 %v27756_v37, %s30783_s3 }
0x1cdf   : > { %15878 = vrot.lane.b32.xlu0 %v27756_v37, %s30784_s1 }
0x1ce5   : > { %14776 = vadd.xlane.f32.xlu1 %v14775_v14 }
0x1cf6   : > { %15644 = vrot.lane.b32.xlu1 %v27746_v11, %s30784_s1 }
0x1cfa   : > { %15802 = vrot.lane.b32.xlu1 %v27754_v7, %s30783_s3 }
0x1cfe   : > { %15800 = vrot.lane.b32.xlu1 %v27754_v7, %s30784_s1 }
0x1d02   : > { %15958 = vrot.lane.b32.xlu1 %v27764_v48, %s30783_s3 }
0x1d04   : > { %v14759_v32 = vpop.xlane.xlu1 %14758 }
0x1d05   : > { %24043 = vrcp.f32 %v14759_v32 }
0x1d06   : > { %15956 = vrot.lane.b32.xlu1 %v27764_v48, %s30784_s1 }
0x1d08   : > { %v14765_v25 = vpop.xlane.xlu1 %14764 }
0x1d09   : > { %24045 = vrcp.f32 %v14765_v25 }
0x1d0c   : > { %v14768_v47 = vpop.xlane.xlu0 %14767 }
0x1d0d   : > { %24047 = vrcp.f32 %v14768_v47 }
0x1d0f   : > { %v24044_v45 = vpop.eup %24043 }
0x1d10   : > { %v14787_v26 = vmul.f32 %v24044_v45, %v28300_v29  ;;  %v15411_v58 = vpop.permute.xlu0 %15410 }
0x1d12   : > { %23135 = vmatmul.mubr.msk.f32.vlgmr.msra.gmra.mrb[188].mxu1 %vm3104_vm8, %v14787_v26 }
0x1d13   : > { %v24046_v17 = vpop.eup %24045  ;;  %23143 = vmatpush3.msk.msra.mxu1 %vm3108_vm15, %v28294_v51  ;;  %23144 = vmatprep.mubr.msk.f32.mxu1 %vm24312_vm14, %v30761_v24 }
0x1d14   : > { %v14789_v50 = vmul.f32 %v24046_v17, %v28304_v5  ;;  %23152 = vmatprep.subr.mxu1 %v30761_v24  ;;  %v15489_v5 = vpop.permute.xlu1 %15488 }
0x1d16   : > { %23145 = vmatmul.mubr.msk.f32.vlgmr.msra.gmra.mrb[190].mxu1 %vm3104_vm8, %v14789_v50 }
0x1d17   : > { %23153 = vmatpush3.msk.msra.mxu1 %vm3108_vm15, %v28296_v23  ;;  %23154 = vmatprep.mubr.msk.f32.mxu1 %vm24312_vm14, %v30761_v24  ;;  %v24048_v29 = vpop.eup %24047 }
0x1d18   : > { %23162 = vmatprep.subr.mxu1 %v30761_v24  ;;  %v14790_v51 = vmul.f32 %v24048_v29, %v28308_v33 }
0x1d1a   : > { %23150 = vmatmul.mubr.msk.f32.vlgmr.msra.gmra.mrb[192].mxu0 %vm3104_vm8, %v14790_v51 }
0x1d1b   : > { %23158 = vmatpush3.msk.msra.mxu0 %vm3108_vm15, %v28290_v6  ;;  %23159 = vmatprep.mubr.msk.f32.mxu0 %vm24312_vm14, %v30761_v24 }
0x1d1c   : > { %23167 = vmatprep.subr.mxu0 %v30761_v24 }
0x1d3d   : > { %v14771_v23 = vpop.xlane.xlu1 %14770 }
0x1d3e   : > { %24049 = vrcp.f32 %v14771_v23 }
0x1d41   : > { %v14774_v34 = vpop.xlane.xlu0 %14773 }
0x1d42   : > { %24051 = vrcp.f32 %v14774_v34 }
0x1d45   : > { %v15569_v57 = vpop.permute.xlu0 %15568 }
0x1d48   : > { %v24050_v44 = vpop.eup %24049 }
0x1d49   : > { %v14791_v33 = vmul.f32 %v24050_v44, %v28317_v35  ;;  %v15567_v21 = vpop.permute.xlu0 %15566 }
0x1d4b   : > { %23155 = vmatmul.mubr.msk.f32.vlgmr.msra.gmra.mrb[192].mxu1 %vm3104_vm8, %v14791_v33 }
0x1d4c   : > { %23163 = vmatpush3.msk.msra.mxu1 %vm3108_vm15, %v28298_v36  ;;  %23164 = vmatprep.mubr.msk.f32.mxu1 %vm24312_vm14, %v30761_v24  ;;  %v24052_v6 = vpop.eup %24051 }
0x1d4d   : > { %23172 = vmatprep.subr.mxu1 %v30761_v24  ;;  %v14792_v49 = vmul.f32 %v24052_v6, %v28321_v63  ;;  %v15725_v19 = vpop.permute.xlu0 %15724 }
0x1d4f   : > { %23160 = vmatmul.mubr.msk.f32.vlgmr.msra.gmra.mrb[194].mxu0 %vm3104_vm8, %v14792_v49 }
0x1d50   : > { %23168 = vmatpush3.xpose.msk.msra.mxu0 %vm2189_vm9, %v28325_v42  ;;  %23169 = vmatprep.mubr.msk.f32.mxu0 %vm24312_vm14, %v30761_v24  ;;  %v15647_v42 = vpop.permute.xlu1 %15646 }
0x1d51   : > { %23177 = vmatprep.subr.mxu0 %v30761_v24  ;;  %v15723_v36 = vpop.permute.xlu0 %15722 }
0x1d53   : > { %23170 = vmatmul.mubr.msk.f32.vlgmr.msra.gmra.mrb[196].mxu0 %vm2189_vm9, %v15411_v58 }
0x1d54   : > { %23178 = vmatpush3.xpose.msk.msra.mxu0 %vm2189_vm9, %v15569_v57  ;;  %23179 = vmatprep.mubr.msk.f32.mxu0 %vm24312_vm14, %v30761_v24 }
0x1d55   : > { %23187 = vmatprep.subr.mxu0 %v30761_v24  ;;  %v15881_v35 = vpop.permute.xlu0 %15880 }
0x1d57   : > { %23180 = vmatmul.mubr.msk.f32.vlgmr.msra.gmra.mrb[198].mxu0 %vm2189_vm9, %v15567_v21 }
0x1d58   : > { %23188 = vmatpush3.xpose.msk.msra.mxu0 %vm2189_vm9, %v15725_v19  ;;  %23189 = vmatprep.mubr.msk.f32.mxu0 %vm24312_vm14, %v30761_v24 }
0x1d59   : > { %23197 = vmatprep.subr.mxu0 %v30761_v24  ;;  %v15879_v63 = vpop.permute.xlu0 %15878 }
0x1d5b   : > { %23190 = vmatmul.mubr.msk.f32.vlgmr.msra.gmra.mrb[200].mxu0 %vm2189_vm9, %v15723_v36 }
0x1d5c   : > { %23198 = vmatpush3.xpose.msk.msra.mxu0 %vm2189_vm9, %v15881_v35  ;;  %23199 = vmatprep.mubr.msk.f32.mxu0 %vm24312_vm14, %v30761_v24 }
0x1d5d   : > { %23207 = vmatprep.subr.mxu0 %v30761_v24 }
0x1d5f   : > { %23200 = vmatmul.mubr.msk.f32.vlgmr.msra.gmra.mrb[202].mxu0 %vm2189_vm9, %v15879_v63 }
0x1d60   : > { %23209 = vmatprep.mubr.msk.f32.mxu0 %vm24312_vm14, %v30761_v24 }
0x1d72   : > { %v14777_v61 = vpop.xlane.xlu1 %14776 }
0x1d73   : > { %24053 = vrcp.f32 %v14777_v61 }
0x1d76   : > { %v15645_v54 = vpop.permute.xlu1 %15644 }
0x1d7a   : > { %v15803_v32 = vpop.permute.xlu1 %15802 }
0x1d7d   : > { %v24054_v14 = vpop.eup %24053 }
0x1d7e   : > { %v14793_v25 = vmul.f32 %v24054_v14, %v28355_v2  ;;  %v15801_v47 = vpop.permute.xlu1 %15800 }
0x1d80   : > { %23165 = vmatmul.mubr.msk.f32.vlgmr.msra.gmra.mrb[194].mxu1 %vm3104_vm8, %v14793_v25 }
0x1d81   : > { %23173 = vmatpush3.xpose.msk.msra.mxu1 %vm2189_vm9, %v28329_v62  ;;  %23174 = vmatprep.mubr.msk.f32.mxu1 %vm24312_vm14, %v30761_v24 }
0x1d82   : > { %23182 = vmatprep.subr.mxu1 %v30761_v24  ;;  %v15959_v2 = vpop.permute.xlu1 %15958 }
0x1d84   : > { %23175 = vmatmul.mubr.msk.f32.vlgmr.msra.gmra.mrb[196].mxu1 %vm2189_vm9, %v15489_v5 }
0x1d85   : > { %23183 = vmatpush3.xpose.msk.msra.mxu1 %vm2189_vm9, %v15647_v42  ;;  %23184 = vmatprep.mubr.msk.f32.mxu1 %vm24312_vm14, %v30761_v24 }
0x1d86   : > { %23192 = vmatprep.subr.mxu1 %v30761_v24  ;;  %v15957_v62 = vpop.permute.xlu1 %15956 }
0x1d88   : > { %23185 = vmatmul.mubr.msk.f32.vlgmr.msra.gmra.mrb[198].mxu1 %vm2189_vm9, %v15645_v54 }
0x1d89   : > { %23193 = vmatpush3.xpose.msk.msra.mxu1 %vm2189_vm9, %v15803_v32  ;;  %23194 = vmatprep.mubr.msk.f32.mxu1 %vm24312_vm14, %v30761_v24 }
0x1d8a   : > { %23202 = vmatprep.subr.mxu1 %v30761_v24 }
0x1d8c   : > { %23195 = vmatmul.mubr.msk.f32.vlgmr.msra.gmra.mrb[200].mxu1 %vm2189_vm9, %v15801_v47 }
0x1d8d   : > { %23203 = vmatpush3.xpose.msk.msra.mxu1 %vm2189_vm9, %v15959_v2  ;;  %23204 = vmatprep.mubr.msk.f32.mxu1 %vm24312_vm14, %v30761_v24 }
0x1d8e   : > { %23212 = vmatprep.subr.mxu1 %v30761_v24 }
0x1d90   : > { %23205 = vmatmul.mubr.msk.f32.vlgmr.msra.gmra.mrb[202].mxu1 %vm2189_vm9, %v15957_v62 }
0x1d91   : > { %23214 = vmatprep.mubr.msk.f32.mxu1 %vm24312_vm14, %v30761_v24 }
0x1da0   : > { %v28447_v45 = vpop.f32.mrb[188].mxu0 }
0x1da1   : > { %v23131_v26 = vpop.f32.mrb[189].mxu0 }
0x1da4   : > { %v28449_v17 = vpop.f32.mrb[190].mxu0 }
0x1da5   : > { %v23141_v50 = vpop.f32.mrb[191].mxu0 }
0x1de5   : > { %v28451_v29 = vpop.f32.mrb[188].mxu1 }
0x1de6   : > { %v23136_v51 = vpop.f32.mrb[189].mxu1 }
0x1de9   : > { %v28453_v5 = vpop.f32.mrb[190].mxu1 }
0x1dea   : > { %v23146_v23 = vpop.f32.mrb[191].mxu1 }
0x1ded   : > { %v28455_v58 = vpop.f32.mrb[192].mxu0 }
0x1dee   : > { %v23151_v34 = vpop.f32.mrb[193].mxu0 }
0x1e1e   : > { %v28457_v57 = vpop.f32.mrb[192].mxu1 }
0x1e1f   : > { %v23156_v44 = vpop.f32.mrb[193].mxu1 }
0x1e22   : > { %v28459_v33 = vpop.f32.mrb[194].mxu0 }
0x1e23   : > { %v23161_v21 = vpop.f32.mrb[195].mxu0 }
0x1e26   : > { %v15484_v6 = vpop.f32.mrb[196].mxu0 }
0x1e27   : > { %v16034_v49 = vmul.f32 0.35355338, %v15484_v6  ;;  %v23171_v19 = vpop.f32.mrb[197].mxu0 }
0x1e29   : > { %v16042_v36 = vsel %vm3013_vm0, %v16034_v49, -inf }
0x1e2a   : > { %16043 = vmax.xlane.f32.xlu0 %v16042_v36  ;;  %v15640_v35 = vpop.f32.mrb[198].mxu0 }
0x1e2b   : > { %v16036_v63 = vmul.f32 0.35355338, %v15640_v35  ;;  %v23181_v42 = vpop.f32.mrb[199].mxu0 }
0x1e2d   : > { %v16048_v61 = vsel %vm3013_vm0, %v16036_v63, -inf }
0x1e2e   : > { %16049 = vmax.xlane.f32.xlu0 %v16048_v61  ;;  %v15796_v54 = vpop.f32.mrb[200].mxu0 }
0x1e2f   : > { %v23191_v14 = vpop.f32.mrb[201].mxu0  ;;  %v16038_v21 = vmul.f32 0.35355338, %v15796_v54 }
0x1e31   : > { %v16054_v14 = vsel %vm3013_vm0, %v16038_v21, -inf }
0x1e32   : > { %v15952_v32 = vpop.f32.mrb[202].mxu0 }
0x1e33   : > { %v23201_v25 = vpop.f32.mrb[203].mxu0  ;;  %v28472_v42 = vmul.f32 0.35355338, %v15952_v32 }
0x1e35   : > { %v16060_v54 = vsel %vm3013_vm0, %v28472_v42, -inf }
0x1e53   : > { %v28463_v47 = vpop.f32.mrb[194].mxu1 }
0x1e54   : > { %v23166_v2 = vpop.f32.mrb[195].mxu1 }
0x1e57   : > { %v15562_v62 = vpop.f32.mrb[196].mxu1 }
0x1e58   : > { %v16035_v26 = vmul.f32 0.35355338, %v15562_v62  ;;  %v23176_v50 = vpop.f32.mrb[197].mxu1 }
0x1e5a   : > { %v16045_v51 = vsel %vm3013_vm0, %v16035_v26, -inf }
0x1e5b   : > { %16046 = vmax.xlane.f32.xlu1 %v16045_v51  ;;  %v15718_v23 = vpop.f32.mrb[198].mxu1 }
0x1e5c   : > { %v28466_v34 = vmul.f32 0.35355338, %v15718_v23  ;;  %v23186_v44 = vpop.f32.mrb[199].mxu1 }
0x1e5e   : > { %v16051_v6 = vsel %vm3013_vm0, %v28466_v34, -inf }
0x1e5f   : > { %v15874_v19 = vpop.f32.mrb[200].mxu1  ;;  %16052 = vmax.xlane.f32.xlu0 %v16051_v6 }
0x1e60   : > { %v28470_v36 = vmul.f32 0.35355338, %v15874_v19  ;;  %v23196_v35 = vpop.f32.mrb[201].mxu1 }
0x1e62   : > { %v16057_v61 = vsel %vm3013_vm0, %v28470_v36, -inf }
0x1e63   : > { %16058 = vmax.xlane.f32.xlu1 %v16057_v61  ;;  %v16030_v25 = vpop.f32.mrb[202].mxu1  ;;  %16055 = vmax.xlane.f32.xlu0 %v16054_v14 }
0x1e64   : > { %v23206_v2 = vpop.f32.mrb[203].mxu1  ;;  %v16041_v32 = vmul.f32 0.35355338, %v16030_v25 }
0x1e66   : > { %v16063_v62 = vsel %vm3013_vm0, %v16041_v32, -inf }
0x1e67   : > { %16061 = vmax.xlane.f32.xlu0 %v16060_v54 }
0x1e74   : > { %16207 = vrot.lane.b32.xlu1 %v27738_v46, %s30785_s0 }
0x1e7d   : > { %16130 = vrot.lane.b32.xlu0 %v27730_v55, %s30785_s0 }
0x1e98   : > { %16064 = vmax.xlane.f32.xlu1 %v16063_v62 }
0x1eb7   : > { %v16044_v50 = vpop.xlane.xlu0 %16043 }
0x1eb8   : > { %v16066_v51 = vsub.f32 %v16034_v49, %v16044_v50 }
0x1eba   : > { %v16074_v23 = vmul.f32 1.442695, %v16066_v51 }
0x1ebb   : > { %v16050_v44 = vpop.xlane.xlu0 %16049 }
0x1ebc   : > { %24055 = vpow2.f32 %v16074_v23  ;;  %v16068_v6 = vsub.f32 %v16036_v63, %v16050_v44 }
0x1ebe   : > { %v16078_v19 = vmul.f32 1.442695, %v16068_v6 }
0x1ec0   : > { %24057 = vpow2.f32 %v16078_v19 }
0x1ec6   : > { %v24056_v35 = vpop.eup %24055 }
0x1ec7   : > { %v16090_v61 = vsel %vm3013_vm0, %v24056_v35, 0.0 }
0x1ec8   : > { %16091 = vadd.xlane.f32.xlu0 %v16090_v61 }
0x1eca   : > { %v28485_v46 = vpop.eup %24057 }
0x1ecb   : > { %v16096_v55 = vsel %vm3013_vm0, %v28485_v46, 0.0 }
0x1ecc   : > { %16097 = vadd.xlane.f32.xlu0 %v16096_v55 }
0x1ee2   : > { %16284 = vrot.lane.b32.xlu0 %v27728_v30, %s30785_s0 }
0x1ee8   : > { %v16047_v49 = vpop.xlane.xlu1 %16046 }
0x1ee9   : > { %v16067_v14 = vsub.f32 %v16035_v26, %v16047_v49 }
0x1eeb   : > { %v16076_v25 = vmul.f32 1.442695, %v16067_v14 }
0x1eec   : > { %v16053_v2 = vpop.xlane.xlu0 %16052 }
0x1eed   : > { %24059 = vpow2.f32 %v16076_v25  ;;  %v16069_v19 = vsub.f32 %v28466_v34, %v16053_v2 }
0x1eef   : > { %v16080_v61 = vmul.f32 1.442695, %v16069_v19 }
0x1ef0   : > { %v16059_v63 = vpop.xlane.xlu1 %16058  ;;  %v16056_v54 = vpop.xlane.xlu0 %16055 }
0x1ef1   : > { %v16070_v62 = vsub.f32 %v16038_v21, %v16056_v54 }
0x1ef3   : > { %v16082_v50 = vmul.f32 1.442695, %v16070_v62 }
0x1ef4   : > { %v16208_v51 = vpop.permute.xlu1 %16207  ;;  %v16062_v23 = vpop.xlane.xlu0 %16061 }
0x1ef5   : > { %23213 = vmatpush3.msk.msra.mxu1 %vm3108_vm15, %v16208_v51  ;;  %24061 = vpow2.f32 %v16082_v50 }
0x1ef6   : > { %23222 = vmatprep.subr.mxu1 %v30761_v24  ;;  %24063 = vpow2.f32 %v16080_v61 }
0x1ef7   : > { %v28493_v44 = vpop.eup %24059 }
0x1ef8   : > { %v16131_v6 = vpop.permute.xlu0 %16130  ;;  %v16093_v30 = vsel %vm3013_vm0, %v28493_v44, 0.0 }
0x1ef9   : > { %16094 = vadd.xlane.f32.xlu1 %v16093_v30  ;;  %23208 = vmatpush3.msk.msra.mxu0 %vm3108_vm15, %v16131_v6 }
0x1efa   : > { %23217 = vmatprep.subr.mxu0 %v30761_v24 }
0x1eff   : > { %v28499_v26 = vpop.eup %24061 }
0x1f00   : > { %v16102_v21 = vsel %vm3013_vm0, %v28499_v26, 0.0  ;;  %v28508_v25 = vpop.eup %24063 }
0x1f01   : > { %16103 = vadd.xlane.f32.xlu0 %v16102_v21  ;;  %v16099_v54 = vsel %vm3013_vm0, %v28508_v25, 0.0 }
0x1f0a   : > { %16361 = vrot.lane.b32.xlu1 %v27746_v11, %s30785_s0 }
0x1f0e   : > { %16438 = vrot.lane.b32.xlu1 %v27742_v43, %s30785_s0  ;;  %v16071_v43 = vsub.f32 %v28470_v36, %v16059_v63 }
0x1f10   : > { %v16084_v34 = vmul.f32 1.442695, %v16071_v43 }
0x1f25   : > { %v16065_v55 = vpop.xlane.xlu1 %16064 }
0x1f26   : > { %v16073_v49 = vsub.f32 %v16041_v32, %v16065_v55  ;;  %v16072_v32 = vsub.f32 %v28472_v42, %v16062_v23 }
0x1f28   : > { %v16088_v14 = vmul.f32 1.442695, %v16073_v49 }
0x1f2a   : > { %24065 = vpow2.f32 %v16088_v14 }
0x1f32   : > { %16100 = vadd.xlane.f32.xlu1 %v16099_v54 }
0x1f34   : > { %v28512_v62 = vpop.eup %24065 }
0x1f35   : > { %v16111_v11 = vsel %vm3013_vm0, %v28512_v62, 0.0 }
0x1f36   : > { %16112 = vadd.xlane.f32.xlu0 %v16111_v11 }
0x1f43   : > { %16515 = vrot.lane.b32.xlu1 %v27754_v7, %s30785_s0  ;;  %v16086_v7 = vmul.f32 1.442695, %v16072_v32 }
0x1f4c   : > { %16592 = vrot.lane.b32.xlu0 %v27756_v37, %s30785_s0 }
0x1f50   : > { %16754 = vrot.lane.b32.xlu0 %v28254_v9, %s30786_s30 }
0x1f54   : > { %16758 = vrot.lane.b32.xlu0 %v28256_v15, %s30786_s30 }
0x1f55   : > { %v16092_v2 = vpop.xlane.xlu0 %16091 }
0x1f56   : > { %24067 = vrcp.f32 %v16092_v2 }
0x1f57   : > { %24069 = vpow2.f32 %v16084_v34 }
0x1f58   : > { %16786 = vrot.lane.b32.xlu0 %v28447_v45, %s30787_s23 }
0x1f59   : > { %v16098_v50 = vpop.xlane.xlu0 %16097 }
0x1f5a   : > { %24071 = vrcp.f32 %v16098_v50 }
0x1f5b   : > { %24073 = vpow2.f32 %v16086_v7 }
0x1f5c   : > { %16790 = vrot.lane.b32.xlu0 %v28449_v17, %s30787_s23 }
0x1f5d   : > { %v16285_v15 = vpop.permute.xlu0 %16284 }
0x1f60   : > { %v24068_v37 = vpop.eup %24067 }
0x1f61   : > { %v16122_v9 = vmul.f32 %v24068_v37, %v24056_v35  ;;  %v24070_v36 = vpop.eup %24069 }
0x1f62   : > { %v16105_v63 = vsel %vm3013_vm0, %v24070_v36, 0.0 }
0x1f63   : > { %23210 = vmatmul.mubr.msk.f32.vlgmr.msra.gmra.mrb[204].mxu0 %vm3104_vm8, %v16122_v9  ;;  %v30788_v9 = vmov 0  }
0x1f64   : > { %v24072_v42 = vpop.eup %24071  ;;  %23218 = vmatpush3.msk.msra.mxu0 %vm3108_vm15, %v16285_v15  ;;  %23219 = vmatprep.mubr.msk.f32.mxu0 %vm24312_vm14, %v30761_v24 }
0x1f65   : > { %v16124_v45 = vmul.f32 %v24072_v42, %v28485_v46  ;;  %23227 = vmatprep.subr.mxu0 %v30761_v24  ;;  %v24074_v17 = vpop.eup %24073 }
0x1f66   : > { %v16108_v35 = vsel %vm3013_vm0, %v24074_v17, 0.0 }
0x1f67   : > { %16106 = vadd.xlane.f32.xlu1 %v16105_v63  ;;  %23220 = vmatmul.mubr.msk.f32.vlgmr.msra.gmra.mrb[206].mxu0 %vm3104_vm8, %v16124_v45 }
0x1f68   : > { %23229 = vmatprep.mubr.msk.f32.mxu0 %vm24312_vm14, %v30761_v24 }
0x1f6b   : > { %16109 = vadd.xlane.f32.xlu1 %v16108_v35 }
0x1f7c   : > { %16669 = vrot.lane.b32.xlu1 %v27764_v48, %s30785_s0  ;;  %s707_s0 = sand.u32 1, %s24297_s28  }
0x1f7d   : > { %s20660_s29 = scalar_lea.sflag [#allocation3], %s707_s0 }
0x1f80   : > { %16756 = vrot.lane.b32.xlu1 %v28258_v1, %s30786_s30 }
0x1f84   : > { %16760 = vrot.lane.b32.xlu1 %v28260_v4, %s30786_s30 }
0x1f86   : > { %v16095_v46 = vpop.xlane.xlu1 %16094 }
0x1f87   : > { %24075 = vrcp.f32 %v16095_v46 }
0x1f88   : > { %16788 = vrot.lane.b32.xlu1 %v28451_v29, %s30787_s23 }
0x1f8a   : > { %v16362_v51 = vpop.permute.xlu1 %16361 }
0x1f8c   : > { %16792 = vrot.lane.b32.xlu1 %v28453_v5, %s30787_s23 }
0x1f8e   : > { %v16439_v23 = vpop.permute.xlu1 %16438  ;;  %v16104_v6 = vpop.xlane.xlu0 %16103 }
0x1f8f   : > { %23228 = vmatpush3.msk.msra.mxu0 %vm3108_vm15, %v16439_v23  ;;  %24077 = vrcp.f32 %v16104_v6 }
0x1f90   : > { %23237 = vmatprep.subr.mxu0 %v30761_v24 }
0x1f91   : > { %v24076_v48 = vpop.eup %24075 }
0x1f92   : > { %v16123_v1 = vmul.f32 %v24076_v48, %v28493_v44 }
0x1f94   : > { %23215 = vmatmul.mubr.msk.f32.vlgmr.msra.gmra.mrb[204].mxu1 %vm3104_vm8, %v16123_v1 }
0x1f95   : > { %23223 = vmatpush3.msk.msra.mxu1 %vm3108_vm15, %v16362_v51  ;;  %23224 = vmatprep.mubr.msk.f32.mxu1 %vm24312_vm14, %v30761_v24 }
0x1f96   : > { %23232 = vmatprep.subr.mxu1 %v30761_v24 }
0x1f99   : > { %v24078_v4 = vpop.eup %24077 }
0x1f9a   : > { %v16126_v29 = vmul.f32 %v24078_v4, %v28499_v26 }
0x1f9c   : > { %23230 = vmatmul.mubr.msk.f32.vlgmr.msra.gmra.mrb[208].mxu0 %vm3104_vm8, %v16126_v29 }
0x1f9d   : > { %23239 = vmatprep.mubr.msk.f32.mxu0 %vm24312_vm14, %v30761_v24 }
0x1fbf   : > { %v16101_v5 = vpop.xlane.xlu1 %16100 }
0x1fc0   : > { %24079 = vrcp.f32 %v16101_v5 }
0x1fc3   : > { %v16113_v44 = vpop.xlane.xlu0 %16112  ;;  %v16516_v55 = vpop.permute.xlu1 %16515 }
0x1fc7   : > { %v16593_v30 = vpop.permute.xlu0 %16592 }
0x1fc8   : > { %23238 = vmatpush3.msk.msra.mxu0 %vm3108_vm15, %v16593_v30 }
0x1fca   : > { %v24080_v21 = vpop.eup %24079 }
0x1fcb   : > { %v16125_v19 = vmul.f32 %v24080_v21, %v28508_v25  ;;  %v28565_v61 = vpop.permute.xlu0 %16754 }
0x1fcd   : > { %23225 = vmatmul.mubr.msk.f32.vlgmr.msra.gmra.mrb[206].mxu1 %vm3104_vm8, %v16125_v19 }
0x1fce   : > { %23233 = vmatpush3.msk.msra.mxu1 %vm3108_vm15, %v16516_v55  ;;  %23234 = vmatprep.mubr.msk.f32.mxu1 %vm24312_vm14, %v30761_v24 }
0x1fcf   : > { %v16759_v26 = vpop.permute.xlu0 %16758  ;;  %23242 = vmatprep.subr.mxu1 %v30761_v24 }
0x1fd0   : > { %v28574_v49 = vsel %vm2189_vm9, %v28012_v53, %v16759_v26 }
0x1fd3   : > { %v16787_v23 = vpop.permute.xlu0 %16786 }
0x1fd7   : > { %v16791_v48 = vpop.permute.xlu0 %16790 }
0x1ff4   : > { %v16107_v14 = vpop.xlane.xlu1 %16106 }
0x1ff5   : > { %24081 = vrcp.f32 %v16107_v14  ;;  %v16852_v14 = vsel %vm2198_vm10, %v28574_v49, %v16791_v48 }
0x1ff6   : > { %24083 = vrcp.f32 %v16113_v44 }
0x1ff8   : > { %v16110_v25 = vpop.xlane.xlu1 %16109 }
0x1ff9   : > { %24085 = vrcp.f32 %v16110_v25 }
0x1ffc   : > { %v16670_v54 = vpop.permute.xlu1 %16669 }
0x1fff   : > { %v24082_v11 = vpop.eup %24081 }
0x2000   : > { %v16127_v43 = vmul.f32 %v24082_v11, %v24070_v36  ;;  %v16757_v34 = vpop.permute.xlu1 %16756  ;;  %v24084_v32 = vpop.eup %24083 }
0x2001   : > { %v16129_v53 = vmul.f32 %v24084_v32, %v28512_v62  ;;  %v21270_v62 = vld [vmem:[%s30454_s10 + $0x28] sm:$0xff] }
0x2002   : > { %23235 = vmatmul.mubr.msk.f32.vlgmr.msra.gmra.mrb[208].mxu1 %vm3104_vm8, %v16127_v43 }
0x2003   : > { %v24086_v2 = vpop.eup %24085  ;;  %23243 = vmatpush3.msk.msra.mxu1 %vm3108_vm15, %v16670_v54  ;;  %23244 = vmatprep.mubr.msk.f32.mxu1 %vm24312_vm14, %v30761_v24 }
0x2004   : > { %v16128_v7 = vmul.f32 %v24086_v2, %v24074_v17  ;;  %v16761_v50 = vpop.permute.xlu1 %16760  ;;  %v21272_v17 = vld [vmem:[%s30454_s10 + $0x38] sm:$0xff] }
0x2005   : > { %v28583_v37 = vsel %vm2189_vm9, %v28014_v27, %v16761_v50  ;;  %v21269_v27 = vld [vmem:[%s30454_s10 + $0x20] sm:$0xff] }
0x2006   : > { %23240 = vmatmul.mubr.msk.f32.vlgmr.msra.gmra.mrb[210].mxu0 %vm3104_vm8, %v16128_v7  ;;  %23245 = vmatmul.mubr.msk.f32.vlgmr.msra.gmra.mrb[210].mxu1 %vm3104_vm8, %v16129_v53  ;;  %v23285_v45 = vpack.c.bf16 %v21270_v62, %v21269_v27 }
0x2007   : > { %17606 = vmatprep.mubr.bf16.mxu1 %v30788_v9 }
0x2008   : > { %23286 = vmatprep.subr.bf16.mxu0 %v23285_v45  ;;  %v16789_v6 = vpop.permute.xlu1 %16788 }
0x2009   : > { %23288 = vmatpush3.bf16.msra.mxu0 %v23285_v45 }
0x200c   : > { %v16793_v4 = vpop.permute.xlu1 %16792 }
0x200d   : > { %v16853_v25 = vsel %vm2198_vm10, %v28583_v37, %v16793_v4 }
0x2036   : > { %v16203_v36 = vpop.f32.mrb[204].mxu0 }
0x2037   : > { %16818 = vrot.lane.b32.xlu0 %v16203_v36, %s30645_s27  ;;  %v23211_v15 = vpop.f32.mrb[205].mxu0 }
0x203a   : > { %v16357_v42 = vpop.f32.mrb[206].mxu0 }
0x203b   : > { %16822 = vrot.lane.b32.xlu0 %v16357_v42, %s30645_s27  ;;  %v23221_v24 = vpop.f32.mrb[207].mxu0 }
0x203f   : > { %16762 = vrot.lane.b32.xlu0 %v28264_v56, %s30786_s30 }
0x2043   : > { %16766 = vrot.lane.b32.xlu0 %v28266_v22, %s30786_s30 }
0x2047   : > { %16794 = vrot.lane.b32.xlu0 %v28455_v58, %s30787_s23 }
0x204b   : > { %16798 = vrot.lane.b32.xlu0 %v28459_v33, %s30787_s23  ;;  %v21271_v33 = vld [vmem:[%s30454_s10 + $0x30] sm:$0xff] }
0x204c   : > { %v23289_v35 = vpack.c.bf16 %v21272_v17, %v21271_v33 }
0x204e   : > { %23290 = vmatprep.subr.bf16.mxu0 %v23289_v35 }
0x204f   : > { %23292 = vmatpush3.bf16.msra.mxu0 %v23289_v35 }
0x2067   : > { %v16280_v63 = vpop.f32.mrb[204].mxu1 }
0x2068   : > { %v23216_v56 = vpop.f32.mrb[205].mxu1  ;;  %16820 = vrot.lane.b32.xlu1 %v16280_v63, %s30645_s27 }
0x206f   : > { %v16511_v22 = vpop.f32.mrb[208].mxu0 }
0x2070   : > { %16826 = vrot.lane.b32.xlu0 %v16511_v22, %s30645_s27  ;;  %v23231_v58 = vpop.f32.mrb[209].mxu0 }
0x20a0   : > { %v16434_v46 = vpop.f32.mrb[206].mxu1 }
0x20a1   : > { %v23226_v51 = vpop.f32.mrb[207].mxu1  ;;  %16824 = vrot.lane.b32.xlu1 %v16434_v46, %s30645_s27 }
0x20a5   : > { %16764 = vrot.lane.b32.xlu1 %v28262_v41, %s30786_s30  ;;  %v16842_v41 = vsel %vm2189_vm9, %v28008_v20, %v28565_v61 }
0x20a9   : > { %16768 = vrot.lane.b32.xlu1 %v28270_v3, %s30786_s30  ;;  %v16819_v5 = vpop.permute.xlu0 %16818  ;;  %v16843_v3 = vsel %vm2189_vm9, %v28010_v18, %v16757_v34 }
0x20aa   : > { %v16851_v30 = vsel %vm2198_vm10, %v16843_v3, %v16789_v6 }
0x20ad   : > { %16796 = vrot.lane.b32.xlu1 %v28457_v57, %s30787_s23  ;;  %v16823_v18 = vpop.permute.xlu0 %16822 }
0x20ae   : > { %v16860_v11 = vsel %vm2207_vm11, %v16852_v14, %v16823_v18 }
0x20b1   : > { %16800 = vrot.lane.b32.xlu1 %v28463_v47, %s30787_s23  ;;  %v16850_v47 = vsel %vm2198_vm10, %v16842_v41, %v16787_v23  ;;  %v16763_v32 = vpop.permute.xlu0 %16762  ;;  %s23295_s23 = smul.u32 768, %s24464_s4  ;;  %s24327_s4 = smov [#allocation2]  }
0x20b2   : > { %v16858_v55 = vsel %vm2207_vm11, %v16850_v47, %v16819_v5  ;;  %v16846_v37 = vsel %vm2189_vm9, %v28018_v8, %v16763_v32  ;;  %s24247_s1 = sshll.u32 %s24327_s4, 4  ;;  %s24248_s1 = int_to_ptr.vmem [resolvable:$false] %s24247_s1 }
0x20b3   : > { %s30400_s26 = scalar_lea.hbm %s30466_s22, %s23295_s23 }
0x20b5   : > { %v16767_v53 = vpop.permute.xlu0 %16766 }
0x20b6   : > { %v16848_v58 = vsel %vm2189_vm9, %v28020_v28, %v16767_v53  ;;  %v21274_v28 = vld [vmem:[%s30455_s11 + $0x1] ss:$0 sm:$0xff] }
0x20b9   : > { %v16795_v50 = vpop.permute.xlu0 %16794 }
0x20ba   : > { %v16854_v27 = vsel %vm2198_vm10, %v16846_v37, %v16795_v50 }
0x20bd   : > { %v16799_v15 = vpop.permute.xlu0 %16798 }
0x20be   : > { %v16856_v8 = vsel %vm2198_vm10, %v16848_v58, %v16799_v15 }
0x20d5   : > { %v16588_v1 = vpop.f32.mrb[208].mxu1 }
0x20d6   : > { %v23236_v29 = vpop.f32.mrb[209].mxu1  ;;  %16828 = vrot.lane.b32.xlu1 %v16588_v1, %s30645_s27 }
0x20d9   : > { %v16665_v57 = vpop.f32.mrb[210].mxu0  ;;  %v16742_v44 = vpop.f32.mrb[210].mxu1 }
0x20da   : > { %v16821_v21 = vpop.permute.xlu1 %16820  ;;  %16832 = vrot.lane.b32.xlu1 %v16742_v44, %s30645_s27  ;;  %v23246_v19 = vpop.f32.mrb[211].mxu1  ;;  %16830 = vrot.lane.b32.xlu0 %v16665_v57, %s30645_s27  ;;  %s23293_s27 = smul.u32 48, %s707_s0 }
0x20db   : > { %v16859_v26 = vsel %vm2207_vm11, %v16851_v30, %v16821_v21  ;;  %v23241_v20 = vpop.f32.mrb[211].mxu0 }
0x20dc   : > { %v16887_v61 = vcombine.low %v16858_v55, %v16859_v26  ;;  %s709_s30 = scalar_lea.vmem [#allocation2], %s23293_s27  ;;  %s24249_s27 = scalar_lea.vmem %s24248_s1, 1536 }
0x20dd   : > { %s20674_s25 = sshll.u32 %s709_s30, 4  ;;  %s30402_s25 = int_to_ptr.vmem [resolvable:$true] %s20674_s25 }
0x20de   : > { %23255 = vmatprep.mubr.msk.f32.mxu0 %vm2295_vm13, %v16887_v61  ;;  %s24243_s3 = scalar_lea.vmem %s30402_s25, 768  ;;  %p24250_p0 = scmp.lt.s32.totalorder %s30402_s25, %s24248_s1 }
0x20df   : > { %p24244_p11 = scmp.ne.s32.totalorder %s30402_s25, %s24243_s3  ;;  %p24251_p1 = scmp.lt.s32.totalorder %s24249_s27, %s24243_s3 }
0x20e1   : > { %p24245_p12 = pnand %p24244_p11, %p24481_p5  ;;  %p24252_p2 = por %p24251_p1, %p24250_p0 }
0x20e2   : > { %v16827_v49 = vpop.permute.xlu0 %16826 }
0x20e3   : > { %v16862_v63 = vsel %vm2207_vm11, %v16854_v27, %v16827_v49  ;;  %p24246_p13 = pneg %p24245_p12 }
0x20e5   : > { %p24253_p3 = pnand %p24252_p2, %p24246_p13 }
0x2113   : > { %v16825_v54 = vpop.permute.xlu1 %16824 }
0x2114   : > { %v16861_v43 = vsel %vm2207_vm11, %v16853_v25, %v16825_v54 }
0x2115   : > { %v16888_v34 = vcombine.low %v16860_v11, %v16861_v43 }
0x2117   : > { %23256 = vmatmul.mubr.msk.f32.vlgmr.msra.gmra.mrb[212].mxu0 %vm2295_vm13, %v16888_v34  ;;  %v16765_v2 = vpop.permute.xlu1 %16764 }
0x2118   : > { %v16847_v24 = vsel %vm2189_vm9, %v28016_v10, %v16765_v2 }
0x211b   : > { %v16769_v7 = vpop.permute.xlu1 %16768 }
0x211c   : > { %v16849_v33 = vsel %vm2189_vm9, %v28024_v31, %v16769_v7  ;;  %vm20319_vm9 = vcmask 257024  }
0x211f   : > { %v16797_v36 = vpop.permute.xlu1 %16796 }
0x2120   : > { %v16855_v62 = vsel %vm2198_vm10, %v16847_v24, %v16797_v36 }
0x2123   : > { %v16801_v42 = vpop.permute.xlu1 %16800 }
0x2124   : > { %v16857_v10 = vsel %vm2198_vm10, %v16849_v33, %v16801_v42 }
0x2148   : > { %v16829_v45 = vpop.permute.xlu1 %16828 }
0x2149   : > { %v16863_v56 = vsel %vm2207_vm11, %v16855_v62, %v16829_v45 }
0x214a   : > { %v16889_v22 = vcombine.low %v16862_v63, %v16863_v56  ;;  %v21283_v63 = vld [vmem:[%s30458_s14 + $0x100] sm:$0xff] }
0x214b   : > { %v21291_v56 = vld [vmem:[%s30458_s14 + $0x140] sm:$0xff] }
0x214c   : > { %v16833_v17 = vpop.permute.xlu1 %16832  ;;  %23258 = vmatprep.mubr.msk.f32.mxu0 %vm2295_vm13, %v16889_v22  ;;  %v16831_v35 = vpop.permute.xlu0 %16830  ;;  %v21284_v22 = vld [vmem:[%s30458_s14 + $0x108] sm:$0xff]  ;;  %v21317_v58 = vcombine.low %v21283_v63, %v21291_v56  ;;  %v21318_v33 = vcombine.high %v21283_v63, %v21291_v56  ;;  %v28795_v56 = vld [vmem:[%s30457_s13 + $0x1] ss:$0 sm:$0xff] }
0x214d   : > { %v16865_v46 = vsel %vm2207_vm11, %v16857_v10, %v16833_v17  ;;  %v16864_v51 = vsel %vm2207_vm11, %v16856_v8, %v16831_v35  ;;  %v21292_v8 = vld [vmem:[%s30458_s14 + $0x148] sm:$0xff]  ;;  %v21299_v10 = vld [vmem:[%s30458_s14 + $0x180] sm:$0xff] }
0x214e   : > { %v16890_v23 = vcombine.low %v16864_v51, %v16865_v46  ;;  %v21307_v17 = vld [vmem:[%s30458_s14 + $0x1c0] sm:$0xff]  ;;  %v21319_v35 = vcombine.low %v21284_v22, %v21292_v8  ;;  %v21320_v46 = vcombine.high %v21284_v22, %v21292_v8  ;;  %17574 = vmatprep.subr.bf16.mxu1 %v21318_v33 }
0x214f   : > { %v21334_v51 = vcombine.high %v21299_v10, %v21307_v17  ;;  %17575 = vmatpush1.bf16.msra.mxu1 %v21317_v58 }
0x2150   : > { %23259 = vmatmul.mubr.msk.f32.gmra.mrb[214].mxu0 %vm2295_vm13, %v16890_v23  ;;  %v21300_v23 = vld [vmem:[%s30458_s14 + $0x188] sm:$0xff]  ;;  %17627 = vmatprep.subr.bf16.mxu0 %v21320_v46 }
0x2151   : > { %17659 = vmatprep.mubr.bf16.mxu0 %v30788_v9  ;;  %17628 = vmatpush1.bf16.msra.mxu0 %v21319_v35  ;;  %v28807_v35 = vcombine.high %v28795_v56, %v28795_v56 }
0x2152   : > { %17576 = vmatprep.subr.bf16.mxu1 %v21334_v51 }
0x21ea   : > { %v23257_v31 = vpop.f32.mrb[212].mxu0 }
0x21eb   : > { %v16971_v6 = vadd.f32 %v23257_v31, %v21274_v28  ;;  %v16965_v48 = vpop.f32.mrb[213].mxu0 }
0x21ec   : > { %v16966_v1 = vadd.f32 %v21274_v28, %v16965_v48 }
0x21ed   : > { %v16989_v4 = vcombine.high %v16971_v6, %v16971_v6  ;;  %v16998_v5 = vadd.f32 %v16971_v6, %v27695_v16  ;;  %v21333_v6 = vcombine.low %v21299_v10, %v21307_v17 }
0x21ee   : > { %v16988_v29 = vcombine.high %v16966_v1, %v16966_v1  ;;  %v16996_v3 = vadd.f32 %v16966_v1, %v27687_v39 }
0x21ef   : > { %v16999_v41 = vadd.f32 %v16989_v4, %v27697_v60  ;;  %17577 = vmatpush1.bf16.msra.mxu1 %v21333_v6 }
0x21f0   : > { %v16997_v57 = vadd.f32 %v16988_v29, %v27689_v12 }
0x21f1   : > { %v17017_v44 = vcombine.low %v16998_v5, %v16999_v41 }
0x21f2   : > { %v17016_v47 = vcombine.low %v16996_v3, %v16997_v57 }
0x21f3   : > { %v17027_v30 = vsel %vm2295_vm13, %v17017_v44, 0.0 }
0x21f4   : > { %17028 = vadd.xlane.f32.xlu1 %v17027_v30  ;;  %v17024_v21 = vsel %vm2295_vm13, %v17016_v47, 0.0 }
0x21f5   : > { %17025 = vadd.xlane.f32.xlu0 %v17024_v21 }
0x2223   : > { %v23260_v19 = vpop.f32.mrb[214].mxu0 }
0x2224   : > { %v16981_v55 = vadd.f32 %v23260_v19, %v21274_v28  ;;  %v16975_v26 = vpop.f32.mrb[215].mxu0 }
0x2225   : > { %v16976_v20 = vadd.f32 %v21274_v28, %v16975_v26  ;;  %v21308_v28 = vld [vmem:[%s30458_s14 + $0x1c8] sm:$0xff] }
0x2226   : > { %v16991_v61 = vcombine.high %v16981_v55, %v16981_v55  ;;  %v28675_v18 = vadd.f32 %v16981_v55, %v27715_v40  ;;  %v21336_v31 = vcombine.high %v21300_v23, %v21308_v28  ;;  %v21335_v48 = vcombine.low %v21300_v23, %v21308_v28 }
0x2227   : > { %v16990_v16 = vcombine.high %v16976_v20, %v16976_v20  ;;  %v17000_v39 = vadd.f32 %v16976_v20, %v27709_v59 }
0x2228   : > { %v28670_v60 = vadd.f32 %v16991_v61, %v27717_v13  ;;  %17629 = vmatprep.subr.bf16.mxu0 %v21336_v31 }
0x2229   : > { %v17001_v12 = vadd.f32 %v16990_v16, %v27711_v0  ;;  %17630 = vmatpush1.bf16.msra.mxu0 %v21335_v48 }
0x222a   : > { %v17019_v54 = vcombine.low %v28675_v18, %v28670_v60 }
0x222b   : > { %v17018_v14 = vcombine.low %v17000_v39, %v17001_v12 }
0x222c   : > { %v17033_v11 = vsel %vm2295_vm13, %v17019_v54, 0.0 }
0x222d   : > { %v17030_v25 = vsel %vm2295_vm13, %v17018_v14, 0.0 }
0x222e   : > { %17031 = vadd.xlane.f32.xlu0 %v17030_v25  ;;  %v21286_v25 = vld [vmem:[%s30458_s14 + $0x118] sm:$0xff] }
0x2232   : > { %17034 = vadd.xlane.f32.xlu0 %v17033_v11 }
0x2281   : > { %v17029_v43 = vpop.xlane.xlu1 %17028 }
0x2282   : > { %v17037_v13 = vmul.f32 0.03125, %v17029_v43  ;;  %v17026_v34 = vpop.xlane.xlu0 %17025  ;;  %v21294_v43 = vld [vmem:[%s30458_s14 + $0x158] sm:$0xff] }
0x2283   : > { %v17036_v32 = vmul.f32 0.03125, %v17026_v34  ;;  %v21324_v34 = vcombine.high %v21286_v25, %v21294_v43 }
0x2284   : > { %v17064_v59 = vrot.slane %v17037_v13, %v30773_v52  ;;  %v17071_v0 = vrot.slane %v17037_v13, %v30774_v38  ;;  %v21323_v13 = vcombine.low %v21286_v25, %v21294_v43 }
0x2285   : > { %v17050_v40 = vrot.slane %v17036_v32, %v30773_v52  ;;  %v17057_v2 = vrot.slane %v17036_v32, %v30774_v38  ;;  %17733 = vmatprep.subr.bf16.mxu0 %v21324_v34  ;;  %v28766_v32 = vld [vmem:[%s30458_s14 + $0x120] sm:$0xff] }
0x2286   : > { %v28685_v53 = vsub.f32 %v16998_v5, %v17064_v59  ;;  %v28687_v7 = vsub.f32 %v16999_v41, %v17071_v0  ;;  %v28771_v59 = vld [vmem:[%s30458_s14 + $0x160] sm:$0xff]  ;;  %v28776_v0 = vld [vmem:[%s30458_s14 + $0x128] sm:$0xff] }
0x2287   : > { %v28689_v50 = vsub.f32 %v16996_v3, %v17050_v40  ;;  %v28691_v36 = vsub.f32 %v16997_v57, %v17057_v2  ;;  %v21325_v40 = vcombine.low %v28766_v32, %v28771_v59  ;;  %v28783_v2 = vld [vmem:[%s30458_s14 + $0x168] sm:$0xff] }
0x2288   : > { %v17118_v15 = vmul.f32 %v28685_v53, %v28685_v53  ;;  %v17119_v42 = vmul.f32 %v28687_v7, %v28687_v7 }
0x2289   : > { %v17116_v49 = vmul.f32 %v28689_v50, %v28689_v50  ;;  %v17117_v37 = vmul.f32 %v28691_v36, %v28691_v36 }
0x228a   : > { %v17133_v24 = vcombine.low %v17118_v15, %v17119_v42  ;;  %v21327_v15 = vcombine.low %v28776_v0, %v28783_v2 }
0x228b   : > { %v17132_v27 = vcombine.low %v17116_v49, %v17117_v37 }
0x228c   : > { %v17143_v62 = vsel %vm2295_vm13, %v17133_v24, 0.0 }
0x228d   : > { %17144 = vadd.xlane.f32.xlu1 %v17143_v62  ;;  %v17140_v45 = vsel %vm2295_vm13, %v17132_v27, 0.0 }
0x228e   : > { %17141 = vadd.xlane.f32.xlu0 %v17140_v45  ;;  %v28790_v45 = vld [vmem:[%s30456_s12 + $0x1] ss:$0 sm:$0xff] }
0x228f   : > { %v28799_v58 = vcombine.high %v28790_v45, %v28790_v45 }
0x22bb   : > { %v17032_v1 = vpop.xlane.xlu0 %17031 }
0x22bc   : > { %v17038_v4 = vmul.f32 0.03125, %v17032_v1 }
0x22be   : > { %v17078_v29 = vrot.slane %v17038_v4, %v30773_v52  ;;  %v17085_v5 = vrot.slane %v17038_v4, %v30774_v38 }
0x22bf   : > { %v17035_v41 = vpop.xlane.xlu0 %17034 }
0x22c0   : > { %v28729_v3 = vsub.f32 %v17000_v39, %v17078_v29  ;;  %v28731_v57 = vsub.f32 %v17001_v12, %v17085_v5  ;;  %v17039_v44 = vmul.f32 0.03125, %v17035_v41  ;;  %v21309_v41 = vld [vmem:[%s30458_s14 + $0x1d0] sm:$0xff] }
0x22c2   : > { %v17092_v47 = vrot.slane %v17039_v44, %v30773_v52  ;;  %v17099_v30 = vrot.slane %v17039_v44, %v30774_v38  ;;  %v17120_v21 = vmul.f32 %v28729_v3, %v28729_v3  ;;  %v17121_v19 = vmul.f32 %v28731_v57, %v28731_v57  ;;  %v21302_v44 = vld [vmem:[%s30458_s14 + $0x198] sm:$0xff] }
0x22c4   : > { %v28740_v55 = vsub.f32 %v28675_v18, %v17092_v47  ;;  %v28743_v26 = vsub.f32 %v28670_v60, %v17099_v30  ;;  %v17134_v20 = vcombine.low %v17120_v21, %v17121_v19  ;;  %v21285_v18 = vld [vmem:[%s30458_s14 + $0x110] sm:$0xff]  ;;  %v21310_v47 = vld [vmem:[%s30458_s14 + $0x1d8] sm:$0xff] }
0x22c5   : > { %v21293_v60 = vld [vmem:[%s30458_s14 + $0x150] sm:$0xff]  ;;  %v21340_v19 = vcombine.high %v21302_v44, %v21310_v47 }
0x22c6   : > { %v17146_v61 = vsel %vm2295_vm13, %v17134_v20, 0.0  ;;  %v17122_v16 = vmul.f32 %v28740_v55, %v28740_v55  ;;  %v17123_v39 = vmul.f32 %v28743_v26, %v28743_v26  ;;  %v21321_v54 = vcombine.low %v21285_v18, %v21293_v60 }
0x22c7   : > { %17147 = vadd.xlane.f32.xlu0 %v17146_v61  ;;  %v21322_v11 = vcombine.high %v21285_v18, %v21293_v60  ;;  %v21339_v61 = vcombine.low %v21302_v44, %v21310_v47 }
0x22c8   : > { %v17135_v12 = vcombine.low %v17122_v16, %v17123_v39  ;;  %v21326_v16 = vcombine.high %v28766_v32, %v28771_v59  ;;  %v21328_v39 = vcombine.high %v28776_v0, %v28783_v2  ;;  %v21305_v32 = vld [vmem:[%s30458_s14 + $0x1b0] sm:$0xff]  ;;  %v21306_v0 = vld [vmem:[%s30458_s14 + $0x1b8] sm:$0xff] }
0x22c9   : > { %17680 = vmatprep.subr.bf16.mxu1 %v21322_v11  ;;  %v21313_v59 = vld [vmem:[%s30458_s14 + $0x1f0] sm:$0xff] }
0x22ca   : > { %v17149_v14 = vsel %vm2295_vm13, %v17135_v12, 0.0  ;;  %v21345_v47 = vcombine.low %v21305_v32, %v21313_v59 }
0x22cb   : > { %17150 = vadd.xlane.f32.xlu1 %v17149_v14 }
0x231a   : > { %v17145_v42 = vpop.xlane.xlu1 %17144 }
0x231b   : > { %v17153_v49 = vmul.f32 0.03125, %v17145_v42  ;;  %v17142_v37 = vpop.xlane.xlu0 %17141 }
0x231c   : > { %v17152_v24 = vmul.f32 0.03125, %v17142_v37 }
0x231d   : > { %v17157_v27 = vadd.f32 1e-05, %v17153_v49 }
0x231e   : > { %v17156_v62 = vadd.f32 1e-05, %v17152_v24 }
0x231f   : > { %24087 = vrsqrt.f32 %v17157_v27 }
0x2320   : > { %24089 = vrsqrt.f32 %v17156_v62 }
0x2329   : > { %v24088_v63 = vpop.eup %24087 }
0x232a   : > { %v24090_v22 = vpop.eup %24089  ;;  %v17188_v33 = vrot.slane %v24088_v63, %v30773_v52  ;;  %v17195_v8 = vrot.slane %v24088_v63, %v30774_v38 }
0x232b   : > { %v17174_v10 = vrot.slane %v24090_v22, %v30773_v52  ;;  %v17181_v17 = vrot.slane %v24090_v22, %v30774_v38 }
0x232c   : > { %v17234_v46 = vmul.f32 %v17188_v33, %v28685_v53  ;;  %v17235_v51 = vmul.f32 %v17195_v8, %v28687_v7 }
0x232d   : > { %v17232_v23 = vmul.f32 %v17174_v10, %v28689_v50  ;;  %v17233_v28 = vmul.f32 %v17181_v17, %v28691_v36  ;;  %v21301_v36 = vld [vmem:[%s30458_s14 + $0x190] sm:$0xff] }
0x232e   : > { %v17250_v31 = vmul.f32 %v28790_v45, %v17234_v46  ;;  %v17251_v6 = vmul.f32 %v28799_v58, %v17235_v51  ;;  %v21338_v21 = vcombine.high %v21301_v36, %v21309_v41  ;;  %v21337_v20 = vcombine.low %v21301_v36, %v21309_v41 }
0x232f   : > { %v17248_v48 = vmul.f32 %v28790_v45, %v17232_v23  ;;  %v17249_v1 = vmul.f32 %v28799_v58, %v17233_v28  ;;  %v21289_v28 = vld [vmem:[%s30458_s14 + $0x130] sm:$0xff]  ;;  %v21346_v41 = vcombine.high %v21305_v32, %v21313_v59 }
0x2330   : > { %v28818_v4 = vadd.f32 %v28795_v56, %v17250_v31  ;;  %v28821_v29 = vadd.f32 %v28807_v35, %v17251_v6  ;;  %v21297_v31 = vld [vmem:[%s30458_s14 + $0x170] sm:$0xff]  ;;  %v21290_v6 = vld [vmem:[%s30458_s14 + $0x138] sm:$0xff] }
0x2331   : > { %v28824_v53 = vadd.f32 %v28795_v56, %v17248_v48  ;;  %v28827_v7 = vadd.f32 %v28807_v35, %v17249_v1  ;;  %v21298_v48 = vld [vmem:[%s30458_s14 + $0x178] sm:$0xff]  ;;  %v21330_v36 = vcombine.high %v21289_v28, %v21297_v31  ;;  %v21329_v2 = vcombine.low %v21289_v28, %v21297_v31  ;;  %v30797_v28 = vld [vmem:[#allocation11_spill] sm:$0xff] }
0x2332   : > { %30789 = vst [vmem:[#allocation37_spill] sm:$0xff] %v28818_v4  ;;  %30790 = vst [vmem:[#allocation39_spill] sm:$0xff] %v28821_v29  ;;  %v17281_v50 = vcombine.low %v28818_v4, %v28821_v29 }
0x2333   : > { %30791 = vst [vmem:[#allocation38_spill] sm:$0xff] %v28824_v53  ;;  %30792 = vst [vmem:[#allocation40_spill] sm:$0xff] %v28827_v7  ;;  %v17280_v5 = vcombine.low %v28824_v53, %v28827_v7 }
0x2335   : > { %v28845_v30 = vpack.c.bf16 %v17281_v50, %v17280_v5  ;;  %v21332_v5 = vcombine.high %v21290_v6, %v21298_v48 }
0x2337   : > { %21349 = vmatmul.mubr.msk.bf16.vlgmr.msra.gmra.mrb[212].mxu1 %vm2295_vm13, %v28845_v30  ;;  %21351 = vmatmul.mubr.msk.bf16.vlgmr.msra.gmra.mrb[216].mxu0 %vm2295_vm13, %v28845_v30 }
0x2338   : > { %17681 = vmatpush1.bf16.msra.mxu1 %v21321_v54  ;;  %17616 = vmatprep.mubr.bf16.mxu1 %v30788_v9 }
0x2339   : > { %17669 = vmatprep.mubr.bf16.mxu0 %v30788_v9  ;;  %17734 = vmatpush1.bf16.msra.mxu0 %v21323_v13 }
0x233a   : > { %17682 = vmatprep.subr.bf16.mxu1 %v21338_v21  ;;  %17735 = vmatprep.subr.bf16.mxu0 %v21340_v19  ;;  %v23541_v19 = vld [vmem:[%s30460_s16 + $0x440] sm:$0xff]  }
0x233c   : > { %17683 = vmatpush1.bf16.msra.mxu1 %v21337_v20  ;;  %v23542_v20 = vld [vmem:[%s30460_s16 + $0x4c0] sm:$0xff]  }
0x233d   : > { %17736 = vmatpush1.bf16.msra.mxu0 %v21339_v61  ;;  %17786 = vmatprep.subr.bf16.mxu1 %v21326_v16  ;;  %v23543_v61 = vld [vmem:[%s30460_s16 + $0x400] sm:$0xff]   ;;  %v23545_v16 = vld [vmem:[%s30460_s16 + $0x448] sm:$0xff]  }
0x233e   : > { %17839 = vmatprep.subr.bf16.mxu0 %v21328_v39  ;;  %v23546_v39 = vld [vmem:[%s30460_s16 + $0x4c8] sm:$0xff]  }
0x2354   : > { %v17148_v12 = vpop.xlane.xlu0 %17147 }
0x2355   : > { %v17154_v14 = vmul.f32 0.03125, %v17148_v12  ;;  %v23547_v12 = vld [vmem:[%s30460_s16 + $0x408] sm:$0xff]  }
0x2357   : > { %v17158_v18 = vadd.f32 1e-05, %v17154_v14  ;;  %v23548_v14 = vld [vmem:[%s30460_s16 + $0x488] sm:$0xff]  }
0x2358   : > { %v17151_v60 = vpop.xlane.xlu1 %17150 }
0x2359   : > { %24091 = vrsqrt.f32 %v17158_v18  ;;  %v17155_v25 = vmul.f32 0.03125, %v17151_v60  ;;  %v23549_v18 = vld [vmem:[%s30460_s16 + $0x450] sm:$0xff]  }
0x235a   : > { %v23550_v60 = vld [vmem:[%s30460_s16 + $0x4d0] sm:$0xff]  }
0x235b   : > { %v17159_v54 = vadd.f32 1e-05, %v17155_v25  ;;  %v23551_v25 = vld [vmem:[%s30460_s16 + $0x410] sm:$0xff]  }
0x235d   : > { %24093 = vrsqrt.f32 %v17159_v54  ;;  %v23552_v54 = vld [vmem:[%s30460_s16 + $0x490] sm:$0xff]  }
0x2363   : > { %v24092_v11 = vpop.eup %24091 }
0x2364   : > { %v17202_v43 = vrot.slane %v24092_v11, %v30773_v52  ;;  %v17209_v13 = vrot.slane %v24092_v11, %v30774_v38  ;;  %v23553_v11 = vld [vmem:[%s30460_s16 + $0x458] sm:$0xff]  }
0x2366   : > { %v17236_v34 = vmul.f32 %v17202_v43, %v28729_v3  ;;  %v17237_v42 = vmul.f32 %v17209_v13, %v28731_v57  ;;  %v23554_v43 = vld [vmem:[%s30460_s16 + $0x4d8] sm:$0xff]  }
0x2367   : > { %v24094_v49 = vpop.eup %24093  ;;  %v23555_v13 = vld [vmem:[%s30460_s16 + $0x418] sm:$0xff]  }
0x2368   : > { %v17252_v37 = vmul.f32 %v28790_v45, %v17236_v34  ;;  %v17253_v24 = vmul.f32 %v28799_v58, %v17237_v42  ;;  %v17216_v27 = vrot.slane %v24094_v49, %v30773_v52  ;;  %v17223_v62 = vrot.slane %v24094_v49, %v30774_v38  ;;  %v23556_v34 = vld [vmem:[%s30460_s16 + $0x498] sm:$0xff]   ;;  %v23557_v42 = vld [vmem:[%s30460_s16 + $0x460] sm:$0xff]  }
0x2369   : > { %v23558_v49 = vld [vmem:[%s30460_s16 + $0x4e0] sm:$0xff]  }
0x236a   : > { %v17238_v63 = vmul.f32 %v17216_v27, %v28740_v55  ;;  %v17239_v22 = vmul.f32 %v17223_v62, %v28743_v26  ;;  %v28868_v33 = vadd.f32 %v28795_v56, %v17252_v37  ;;  %v28871_v3 = vadd.f32 %v28807_v35, %v17253_v24  ;;  %v23559_v37 = vld [vmem:[%s30460_s16 + $0x420] sm:$0xff]   ;;  %v23561_v27 = vld [vmem:[%s30460_s16 + $0x468] sm:$0xff]  }
0x236b   : > { %v23560_v24 = vld [vmem:[%s30460_s16 + $0x4a0] sm:$0xff]   ;;  %v23562_v62 = vld [vmem:[%s30460_s16 + $0x4e8] sm:$0xff]  }
0x236c   : > { %30793 = vst [vmem:[#allocation54_spill] sm:$0xff] %v28868_v33  ;;  %30794 = vst [vmem:[#allocation56_spill] sm:$0xff] %v28871_v3  ;;  %v17254_v57 = vmul.f32 %v28790_v45, %v17238_v63  ;;  %v17255_v8 = vmul.f32 %v28799_v58, %v17239_v22  ;;  %v17282_v55 = vcombine.low %v28868_v33, %v28871_v3  ;;  %v21303_v45 = vld [vmem:[%s30458_s14 + $0x1a0] sm:$0xff]  ;;  %v21304_v58 = vld [vmem:[%s30458_s14 + $0x1a8] sm:$0xff] }
0x236d   : > { %v23563_v63 = vld [vmem:[%s30460_s16 + $0x428] sm:$0xff]  }
0x236e   : > { %v28876_v10 = vadd.f32 %v28795_v56, %v17254_v57  ;;  %v28879_v17 = vadd.f32 %v28807_v35, %v17255_v8  ;;  %v21311_v56 = vld [vmem:[%s30458_s14 + $0x1e0] sm:$0xff]  ;;  %v21312_v35 = vld [vmem:[%s30458_s14 + $0x1e8] sm:$0xff]  ;;  %v23565_v57 = vld [vmem:[%s30460_s16 + $0x470] sm:$0xff]  }
0x236f   : > { %v21342_v51 = vcombine.high %v21303_v45, %v21311_v56  ;;  %v21344_v23 = vcombine.high %v21304_v58, %v21312_v35  ;;  %v21341_v1 = vcombine.low %v21303_v45, %v21311_v56  ;;  %v21343_v50 = vcombine.low %v21304_v58, %v21312_v35  ;;  %v23564_v22 = vld [vmem:[%s30460_s16 + $0x4a8] sm:$0xff]   ;;  %v23566_v8 = vld [vmem:[%s30460_s16 + $0x4f0] sm:$0xff]   ;;  %v23570_v45 = vld [vmem:[%s30460_s16 + $0x4f8] sm:$0xff]  }
0x2370   : > { %30795 = vst [vmem:[#allocation57_spill] sm:$0xff] %v28876_v10  ;;  %30796 = vst [vmem:[#allocation60_spill] sm:$0xff] %v28879_v17  ;;  %v17283_v26 = vcombine.low %v28876_v10, %v28879_v17  ;;  %v23571_v56 = vld [vmem:[%s30460_s16 + $0x438] sm:$0xff]   ;;  %v23573_v35 = vld [vmem:[%s30460_s16 + $0x540] sm:$0xff]  }
0x2371   : > { %v23572_v58 = vld [vmem:[%s30460_s16 + $0x4b8] sm:$0xff]  }
0x2372   : > { %v28885_v46 = vpack.c.bf16 %v17283_v26, %v17282_v55  ;;  %v23567_v55 = vld [vmem:[%s30460_s16 + $0x430] sm:$0xff]  }
0x2373   : > { %v23568_v26 = vld [vmem:[%s30460_s16 + $0x4b0] sm:$0xff]  }
0x2374   : > { %21350 = vmatmul.mubr.msk.bf16.gmra.mrb[216].mxu1 %vm2295_vm13, %v28885_v46  ;;  %21352 = vmatmul.mubr.msk.bf16.gmra.mrb[220].mxu0 %vm2295_vm13, %v28885_v46 }
0x2375   : > { %17712 = vmatprep.mubr.bf16.mxu1 %v30788_v9  ;;  %17765 = vmatprep.mubr.bf16.mxu0 %v30788_v9 }
0x237c   : > { %21353 = vmatmul.mubr.msk.bf16.vlgmr.msra.gmra.mrb[220].mxu1 %vm2295_vm13, %v28845_v30  ;;  %21355 = vmatmul.mubr.msk.bf16.vlgmr.msra.gmra.mrb[224].mxu0 %vm2295_vm13, %v28845_v30 }
0x237d   : > { %17722 = vmatprep.mubr.bf16.mxu1 %v30788_v9  ;;  %17775 = vmatprep.mubr.bf16.mxu0 %v30788_v9 }
0x237e   : > { %17787 = vmatpush1.bf16.msra.mxu1 %v21325_v40  ;;  %17840 = vmatpush1.bf16.msra.mxu0 %v21327_v15  ;;  %v21314_v40 = vld [vmem:[%s30458_s14 + $0x1f8] sm:$0xff]  ;;  %v21331_v15 = vcombine.low %v21290_v6, %v21298_v48  ;;  %v30798_v6 = vld [vmem:[#allocation12_spill] sm:$0xff] }
0x237f   : > { %17788 = vmatprep.subr.bf16.mxu1 %v21342_v51  ;;  %17841 = vmatprep.subr.bf16.mxu0 %v21344_v23  ;;  %v21348_v44 = vcombine.high %v21306_v0, %v21314_v40  ;;  %v21347_v21 = vcombine.low %v21306_v0, %v21314_v40  ;;  %v23574_v51 = vld [vmem:[%s30460_s16 + $0x5c0] sm:$0xff]   ;;  %v29074_v23 = vld [vmem:[%s30459_s15 + $0x10] sm:$0xff] }
0x2380   : > { %v29078_v31 = vrot.slane %v29074_v23, %v30797_v28  ;;  %v29082_v48 = vrot.slane %v29074_v23, %v30798_v6 }
0x2382   : > { %17789 = vmatpush1.bf16.msra.mxu1 %v21341_v1  ;;  %17842 = vmatpush1.bf16.msra.mxu0 %v21343_v50  ;;  %v30799_v1 = vld [vmem:[#allocation13_spill] sm:$0xff] }
0x2383   : > { %17892 = vmatprep.subr.bf16.mxu1 %v21330_v36  ;;  %17945 = vmatprep.subr.bf16.mxu0 %v21332_v5  ;;  %v29086_v50 = vrot.slane %v29074_v23, %v30799_v1  ;;  %v30800_v36 = vld [vmem:[#allocation14_spill] sm:$0xff] }
0x2384   : > { %21354 = vmatmul.mubr.msk.bf16.gmra.mrb[224].mxu1 %vm2295_vm13, %v28885_v46  ;;  %21356 = vmatmul.mubr.msk.bf16.gmra.mrb[228].mxu0 %vm2295_vm13, %v28885_v46  ;;  %v29090_v5 = vrot.slane %v29074_v23, %v30800_v36 }
0x2385   : > { %17818 = vmatprep.mubr.bf16.mxu1 %v30788_v9  ;;  %17871 = vmatprep.mubr.bf16.mxu0 %v30788_v9 }
0x238c   : > { %21357 = vmatmul.mubr.msk.bf16.vlgmr.msra.gmra.mrb[228].mxu1 %vm2295_vm13, %v28845_v30  ;;  %21359 = vmatmul.mubr.msk.bf16.vlgmr.msra.gmra.mrb[232].mxu0 %vm2295_vm13, %v28845_v30 }
0x238d   : > { %17828 = vmatprep.mubr.bf16.mxu1 %v30788_v9  ;;  %17881 = vmatprep.mubr.bf16.mxu0 %v30788_v9 }
0x238e   : > { %17893 = vmatpush1.bf16.msra.mxu1 %v21329_v2  ;;  %17946 = vmatpush1.bf16.msra.mxu0 %v21331_v15 }
0x238f   : > { %17894 = vmatprep.subr.bf16.mxu1 %v21346_v41  ;;  %17947 = vmatprep.subr.bf16.mxu0 %v21348_v44 }
0x2392   : > { %17895 = vmatpush1.bf16.msra.mxu1 %v21345_v47  ;;  %17948 = vmatpush1.bf16.msra.mxu0 %v21347_v21 }
0x2393   : > { %22341 = vmatprep.subr.bf16.mxu1 %v23541_v19  ;;  %22369 = vmatprep.subr.bf16.mxu0 %v23542_v20 }
0x2394   : > { %21358 = vmatmul.mubr.msk.bf16.gmra.mrb[232].mxu1 %vm2295_vm13, %v28885_v46  ;;  %21360 = vmatmul.mubr.msk.bf16.gmra.mrb[236].mxu0 %vm2295_vm13, %v28885_v46 }
0x2395   : > { %17924 = vmatprep.mubr.bf16.mxu1 %v30788_v9  ;;  %17977 = vmatprep.mubr.bf16.mxu0 %v30788_v9 }
0x239c   : > { %21361 = vmatmul.mubr.msk.bf16.vlgmr.msra.gmra.mrb[236].mxu1 %vm2295_vm13, %v28845_v30  ;;  %21363 = vmatmul.mubr.msk.bf16.vlgmr.msra.gmra.mrb[240].mxu0 %vm2295_vm13, %v28845_v30  ;;  %v23544_v30 = vld [vmem:[%s30460_s16 + $0x480] sm:$0xff]  }
0x239d   : > { %17934 = vmatprep.mubr.bf16.mxu1 %v30788_v9  ;;  %17987 = vmatprep.mubr.bf16.mxu0 %v30788_v9 }
0x239e   : > { %22342 = vmatpush3.bf16.msra.mxu1 %v23543_v61  ;;  %22370 = vmatpush3.bf16.msra.mxu0 %v23544_v30 }
0x239f   : > { %22343 = vmatprep.subr.bf16.mxu1 %v23545_v16  ;;  %22371 = vmatprep.subr.bf16.mxu0 %v23546_v39 }
0x23a2   : > { %22344 = vmatpush3.bf16.msra.mxu1 %v23547_v12  ;;  %22372 = vmatpush3.bf16.msra.mxu0 %v23548_v14 }
0x23a3   : > { %22345 = vmatprep.subr.bf16.mxu1 %v23549_v18  ;;  %22373 = vmatprep.subr.bf16.mxu0 %v23550_v60 }
0x23a4   : > { %21362 = vmatmul.mubr.msk.bf16.gmra.mrb[240].mxu1 %vm2295_vm13, %v28885_v46  ;;  %21364 = vmatmul.mubr.msk.bf16.gmra.mrb[244].mxu0 %vm2295_vm13, %v28885_v46  ;;  %v23569_v46 = vld [vmem:[%s30460_s16 + $0x478] sm:$0xff]  }
0x23a6   : > { %22346 = vmatpush3.bf16.msra.mxu1 %v23551_v25  ;;  %22374 = vmatpush3.bf16.msra.mxu0 %v23552_v54 }
0x23a7   : > { %22347 = vmatprep.subr.bf16.mxu1 %v23553_v11  ;;  %22375 = vmatprep.subr.bf16.mxu0 %v23554_v43 }
0x23aa   : > { %22348 = vmatpush3.bf16.msra.mxu1 %v23555_v13  ;;  %22376 = vmatpush3.bf16.msra.mxu0 %v23556_v34 }
0x23ab   : > { %22349 = vmatprep.subr.bf16.mxu1 %v23557_v42  ;;  %22377 = vmatprep.subr.bf16.mxu0 %v23558_v49 }
0x23ae   : > { %22350 = vmatpush3.bf16.msra.mxu1 %v23559_v37  ;;  %22378 = vmatpush3.bf16.msra.mxu0 %v23560_v24 }
0x23af   : > { %22351 = vmatprep.subr.bf16.mxu1 %v23561_v27  ;;  %22379 = vmatprep.subr.bf16.mxu0 %v23562_v62 }
0x23b2   : > { %22352 = vmatpush3.bf16.msra.mxu1 %v23563_v63  ;;  %22380 = vmatpush3.bf16.msra.mxu0 %v23564_v22 }
0x23b3   : > { %22353 = vmatprep.subr.bf16.mxu1 %v23565_v57  ;;  %22381 = vmatprep.subr.bf16.mxu0 %v23566_v8 }
0x23b6   : > { %22354 = vmatpush3.bf16.msra.mxu1 %v23567_v55  ;;  %22382 = vmatpush3.bf16.msra.mxu0 %v23568_v26 }
0x23b7   : > { %22355 = vmatprep.subr.bf16.mxu1 %v23569_v46  ;;  %22383 = vmatprep.subr.bf16.mxu0 %v23570_v45 }
0x23ba   : > { %22356 = vmatpush3.bf16.msra.mxu1 %v23571_v56  ;;  %22384 = vmatpush3.bf16.msra.mxu0 %v23572_v58 }
0x23bb   : > { %22397 = vmatprep.subr.bf16.mxu1 %v23573_v35  ;;  %22425 = vmatprep.subr.bf16.mxu0 %v23574_v51 }
0x240a   : > { %v17608_v32 = vpop.f32.mrb[212].mxu1  ;;  %v17661_v59 = vpop.f32.mrb[216].mxu0 }
0x240b   : > { %v29093_v0 = vadd.f32 %v17608_v32, %v29078_v31  ;;  %v29096_v40 = vadd.f32 %v17661_v59, %v29082_v48  ;;  %v17610_v2 = vpop.f32.mrb[213].mxu1  ;;  %v17663_v15 = vpop.f32.mrb[217].mxu0 }
0x240c   : > { %v29099_v41 = vadd.f32 %v17610_v2, %v29086_v50  ;;  %v29102_v44 = vadd.f32 %v17663_v15, %v29090_v5  ;;  %v17612_v47 = vpop.f32.mrb[214].mxu1  ;;  %v17665_v21 = vpop.f32.mrb[218].mxu0 }
0x240d   : > { %v17998_v19 = vmul.f32 %v29093_v0, %v29093_v0  ;;  %v18000_v20 = vmul.f32 %v29096_v40, %v29096_v40  ;;  %v29109_v61 = vadd.f32 %v17612_v47, %v29078_v31  ;;  %v29112_v30 = vadd.f32 %v17665_v21, %v29082_v48  ;;  %v17614_v16 = vpop.f32.mrb[215].mxu1  ;;  %v17667_v39 = vpop.f32.mrb[219].mxu0 }
0x240e   : > { %v17999_v12 = vmul.f32 %v29099_v41, %v29099_v41  ;;  %v18001_v14 = vmul.f32 %v29102_v44, %v29102_v44  ;;  %v29119_v18 = vadd.f32 %v17614_v16, %v29086_v50  ;;  %v29122_v60 = vadd.f32 %v17667_v39, %v29090_v5 }
0x240f   : > { %v18062_v25 = vmul.f32 %v17998_v19, %v29093_v0  ;;  %v18064_v54 = vmul.f32 %v18000_v20, %v29096_v40  ;;  %v18014_v11 = vmul.f32 %v29109_v61, %v29109_v61  ;;  %v18016_v43 = vmul.f32 %v29112_v30, %v29112_v30 }
0x2410   : > { %v18063_v13 = vmul.f32 %v17999_v12, %v29099_v41  ;;  %v18065_v34 = vmul.f32 %v18001_v14, %v29102_v44  ;;  %v18015_v42 = vmul.f32 %v29119_v18, %v29119_v18  ;;  %v18017_v49 = vmul.f32 %v29122_v60, %v29122_v60 }
0x2411   : > { %v18126_v37 = vmul.f32 0.044715, %v18062_v25  ;;  %v18128_v24 = vmul.f32 0.044715, %v18064_v54  ;;  %v18078_v27 = vmul.f32 %v18014_v11, %v29109_v61  ;;  %v18080_v62 = vmul.f32 %v18016_v43, %v29112_v30 }
0x2412   : > { %v18127_v63 = vmul.f32 0.044715, %v18063_v13  ;;  %v18129_v22 = vmul.f32 0.044715, %v18065_v34  ;;  %v18079_v57 = vmul.f32 %v18015_v42, %v29119_v18  ;;  %v18081_v8 = vmul.f32 %v18017_v49, %v29122_v60 }
0x2413   : > { %v18190_v55 = vadd.f32 %v18126_v37, %v29093_v0  ;;  %v18192_v26 = vadd.f32 %v18128_v24, %v29096_v40  ;;  %v18142_v46 = vmul.f32 0.044715, %v18078_v27  ;;  %v18144_v45 = vmul.f32 0.044715, %v18080_v62 }
0x2414   : > { %v18191_v56 = vadd.f32 %v18127_v63, %v29099_v41  ;;  %v18193_v58 = vadd.f32 %v18129_v22, %v29102_v44  ;;  %v18143_v35 = vmul.f32 0.044715, %v18079_v57  ;;  %v18145_v51 = vmul.f32 0.044715, %v18081_v8 }
0x2415   : > { %v18254_v32 = vmul.f32 0.7978846, %v18190_v55  ;;  %v18256_v59 = vmul.f32 0.7978846, %v18192_v26  ;;  %v18206_v2 = vadd.f32 %v18142_v46, %v29109_v61  ;;  %v18208_v15 = vadd.f32 %v18144_v45, %v29112_v30 }
0x2416   : > { %v18255_v47 = vmul.f32 0.7978846, %v18191_v56  ;;  %v18257_v21 = vmul.f32 0.7978846, %v18193_v58  ;;  %v18207_v19 = vadd.f32 %v18143_v35, %v29119_v18  ;;  %v18209_v20 = vadd.f32 %v18145_v51, %v29122_v60 }
0x2417   : > { %24095 = vtanh.f32 %v18254_v32  ;;  %v18270_v16 = vmul.f32 0.7978846, %v18206_v2  ;;  %v18272_v39 = vmul.f32 0.7978846, %v18208_v15 }
0x2418   : > { %24097 = vtanh.f32 %v18256_v59  ;;  %v18271_v12 = vmul.f32 0.7978846, %v18207_v19  ;;  %v18273_v14 = vmul.f32 0.7978846, %v18209_v20 }
0x2419   : > { %24099 = vtanh.f32 %v18255_v47 }
0x241a   : > { %24101 = vtanh.f32 %v18257_v21 }
0x241b   : > { %24103 = vtanh.f32 %v18270_v16 }
0x241c   : > { %24105 = vtanh.f32 %v18272_v39 }
0x241d   : > { %24107 = vtanh.f32 %v18271_v12 }
0x241e   : > { %24109 = vtanh.f32 %v18273_v14  ;;  %v23582_v14 = vld [vmem:[%s30460_s16 + $0x5d0] sm:$0xff]  }
0x2421   : > { %v24096_v25 = vpop.eup %24095 }
0x2422   : > { %v24098_v54 = vpop.eup %24097  ;;  %v18382_v11 = vadd.f32 1.0, %v24096_v25  ;;  %v23583_v25 = vld [vmem:[%s30460_s16 + $0x510] sm:$0xff]  }
0x2423   : > { %v24100_v43 = vpop.eup %24099  ;;  %v18384_v13 = vadd.f32 1.0, %v24098_v54  ;;  %v23584_v54 = vld [vmem:[%s30460_s16 + $0x590] sm:$0xff]  }
0x2424   : > { %v24102_v34 = vpop.eup %24101  ;;  %v18383_v42 = vadd.f32 1.0, %v24100_v43  ;;  %v18446_v27 = vmul.f32 0.5, %v18382_v11  ;;  %v23585_v11 = vld [vmem:[%s30460_s16 + $0x558] sm:$0xff]  }
0x2425   : > { %v24104_v49 = vpop.eup %24103  ;;  %v18385_v37 = vadd.f32 1.0, %v24102_v34  ;;  %v18448_v22 = vmul.f32 0.5, %v18384_v13  ;;  %v23586_v43 = vld [vmem:[%s30460_s16 + $0x5d8] sm:$0xff]  }
0x2426   : > { %v24106_v24 = vpop.eup %24105  ;;  %v18398_v62 = vadd.f32 1.0, %v24104_v49  ;;  %v18447_v46 = vmul.f32 0.5, %v18383_v42  ;;  %v18510_v35 = vmul.f32 %v18446_v27, %v29093_v0  ;;  %v23575_v0 = vld [vmem:[%s30460_s16 + $0x500] sm:$0xff]   ;;  %v23587_v13 = vld [vmem:[%s30460_s16 + $0x518] sm:$0xff]   ;;  %v23593_v27 = vld [vmem:[%s30460_s16 + $0x568] sm:$0xff]  }
0x2427   : > { %v24108_v63 = vpop.eup %24107  ;;  %v18400_v57 = vadd.f32 1.0, %v24106_v24  ;;  %v18449_v58 = vmul.f32 0.5, %v18385_v37  ;;  %v18512_v59 = vmul.f32 %v18448_v22, %v29096_v40  ;;  %v23576_v40 = vld [vmem:[%s30460_s16 + $0x580] sm:$0xff]   ;;  %v23588_v34 = vld [vmem:[%s30460_s16 + $0x598] sm:$0xff]  }
0x2428   : > { %v24110_v8 = vpop.eup %24109  ;;  %v18462_v55 = vmul.f32 0.5, %v18398_v62  ;;  %v18399_v26 = vadd.f32 1.0, %v24108_v63  ;;  %v18511_v21 = vmul.f32 %v18447_v46, %v29099_v41  ;;  %v23577_v41 = vld [vmem:[%s30460_s16 + $0x548] sm:$0xff]   ;;  %v23589_v42 = vld [vmem:[%s30460_s16 + $0x560] sm:$0xff]   ;;  %v21316_v22 = vld [vmem:[%s30459_s15 + $0x18] sm:$0xff] }
0x2429   : > { %v18464_v45 = vmul.f32 0.5, %v18400_v57  ;;  %v18401_v56 = vadd.f32 1.0, %v24110_v8  ;;  %v18513_v16 = vmul.f32 %v18449_v58, %v29102_v44  ;;  %v23578_v44 = vld [vmem:[%s30460_s16 + $0x5c8] sm:$0xff]   ;;  %v23590_v49 = vld [vmem:[%s30460_s16 + $0x5e0] sm:$0xff]   ;;  %v23597_v8 = vld [vmem:[%s30460_s16 + $0x570] sm:$0xff]  }
0x242a   : > { %v18526_v51 = vmul.f32 %v18462_v55, %v29109_v61  ;;  %v18463_v32 = vmul.f32 0.5, %v18399_v26  ;;  %v23591_v37 = vld [vmem:[%s30460_s16 + $0x520] sm:$0xff]   ;;  %v23594_v62 = vld [vmem:[%s30460_s16 + $0x5e8] sm:$0xff]   ;;  %v23598_v55 = vld [vmem:[%s30460_s16 + $0x5f0] sm:$0xff]  }
0x242b   : > { %v18528_v2 = vmul.f32 %v18464_v45, %v29112_v30  ;;  %v18465_v15 = vmul.f32 0.5, %v18401_v56  ;;  %v23579_v30 = vld [vmem:[%s30460_s16 + $0x508] sm:$0xff]   ;;  %v23592_v24 = vld [vmem:[%s30460_s16 + $0x5a0] sm:$0xff]   ;;  %v30801_v26 = vld [vmem:[#allocation25_spill] sm:$0xff] }
0x242c   : > { %v18574_v47 = vpack.c.bf16 %v18526_v51, %v18510_v35  ;;  %v18527_v19 = vmul.f32 %v18463_v32, %v29119_v18  ;;  %v23580_v18 = vld [vmem:[%s30460_s16 + $0x588] sm:$0xff]   ;;  %v29233_v46 = vrot.slane %v29074_v23, %v30801_v26  ;;  %v30802_v45 = vld [vmem:[#allocation26_spill] sm:$0xff]  ;;  %v30803_v58 = vld [vmem:[#allocation27_spill] sm:$0xff] }
0x242d   : > { %v18576_v20 = vpack.c.bf16 %v18528_v2, %v18512_v59  ;;  %v18529_v39 = vmul.f32 %v18465_v15, %v29122_v60  ;;  %v23581_v60 = vld [vmem:[%s30460_s16 + $0x550] sm:$0xff]   ;;  %v23595_v63 = vld [vmem:[%s30460_s16 + $0x528] sm:$0xff]   ;;  %v29237_v56 = vrot.slane %v29074_v23, %v30802_v45  ;;  %v29241_v35 = vrot.slane %v29074_v23, %v30803_v58 }
0x242e   : > { %v18575_v12 = vpack.c.bf16 %v18527_v19, %v18511_v21  ;;  %v23596_v57 = vld [vmem:[%s30460_s16 + $0x5a8] sm:$0xff]   ;;  %v29248_v59 = vrot.slane %v21316_v22, %v30797_v28  ;;  %v23599_v2 = vld [vmem:[%s30460_s16 + $0x530] sm:$0xff]   ;;  %v29254_v21 = vrot.slane %v21316_v22, %v30798_v6  ;;  %v29257_v19 = vrot.slane %v21316_v22, %v30799_v1 }
0x242f   : > { %v18577_v61 = vpack.c.bf16 %v18529_v39, %v18513_v16  ;;  %v30804_v51 = vld [vmem:[#allocation28_spill] sm:$0xff] }
0x2430   : > { %19671 = vmatprep.mubr.bf16.mxu1 %v18575_v12  ;;  %v29245_v32 = vrot.slane %v29074_v23, %v30804_v51  ;;  %v23600_v23 = vld [vmem:[%s30460_s16 + $0x5b0] sm:$0xff]  }
0x2431   : > { %19720 = vmatprep.mubr.bf16.mxu0 %v18577_v61  ;;  %19672 = vmatmul.mubr.bf16.vlgmr.msra.gmra.mrb[244].mxu1 %v18574_v47  ;;  %v23601_v61 = vld [vmem:[%s30460_s16 + $0x578] sm:$0xff]  }
0x2432   : > { %19721 = vmatmul.mubr.bf16.vlgmr.msra.gmra.mrb[248].mxu0 %v18576_v20  ;;  %22398 = vmatpush3.bf16.msra.mxu1 %v23575_v0  ;;  %v29260_v20 = vrot.slane %v21316_v22, %v30800_v36 }
0x2433   : > { %22426 = vmatpush3.bf16.msra.mxu0 %v23576_v40  ;;  %22399 = vmatprep.subr.bf16.mxu1 %v23577_v41  ;;  %v29275_v40 = vrot.slane %v21316_v22, %v30801_v26  ;;  %v29278_v41 = vrot.slane %v21316_v22, %v30802_v45 }
0x2434   : > { %22427 = vmatprep.subr.bf16.mxu0 %v23578_v44 }
0x2435   : > { %30807 = vst [vmem:[#allocation51_spill] sm:$0xff] %v29275_v40  ;;  %30808 = vst [vmem:[#allocation49_spill] sm:$0xff] %v29278_v41 }
0x2436   : > { %22400 = vmatpush3.bf16.msra.mxu1 %v23579_v30 }
0x2437   : > { %22428 = vmatpush3.bf16.msra.mxu0 %v23580_v18  ;;  %22401 = vmatprep.subr.bf16.mxu1 %v23581_v60 }
0x2438   : > { %22429 = vmatprep.subr.bf16.mxu0 %v23582_v14  ;;  %v23602_v14 = vld [vmem:[%s30460_s16 + $0x5f8] sm:$0xff]  }
0x243a   : > { %22402 = vmatpush3.bf16.msra.mxu1 %v23583_v25  ;;  %v29290_v25 = vrot.slane %v21316_v22, %v30803_v58 }
0x243b   : > { %22430 = vmatpush3.bf16.msra.mxu0 %v23584_v54  ;;  %22403 = vmatprep.subr.bf16.mxu1 %v23585_v11  ;;  %v29293_v54 = vrot.slane %v21316_v22, %v30804_v51 }
0x243c   : > { %22431 = vmatprep.subr.bf16.mxu0 %v23586_v43  ;;  %30809 = vst [vmem:[#allocation52_spill] sm:$0xff] %v29290_v25 }
0x243d   : > { %30810 = vst [vmem:[#allocation50_spill] sm:$0xff] %v29293_v54 }
0x243e   : > { %22404 = vmatpush3.bf16.msra.mxu1 %v23587_v13 }
0x243f   : > { %22432 = vmatpush3.bf16.msra.mxu0 %v23588_v34  ;;  %22405 = vmatprep.subr.bf16.mxu1 %v23589_v42 }
0x2440   : > { %22433 = vmatprep.subr.bf16.mxu0 %v23590_v49 }
0x2442   : > { %22406 = vmatpush3.bf16.msra.mxu1 %v23591_v37  ;;  %v23603_v37 = vld [vmem:[%s30460_s16 + $0x538] sm:$0xff]  }
0x2443   : > { %22434 = vmatpush3.bf16.msra.mxu0 %v23592_v24  ;;  %22407 = vmatprep.subr.bf16.mxu1 %v23593_v27 }
0x2444   : > { %22435 = vmatprep.subr.bf16.mxu0 %v23594_v62 }
0x2446   : > { %22408 = vmatpush3.bf16.msra.mxu1 %v23595_v63  ;;  %v23605_v63 = vld [vmem:[%s30460_s16 + $0x640] sm:$0xff]  }
0x2447   : > { %v17618_v15 = vpop.f32.mrb[216].mxu1  ;;  %v17671_v47 = vpop.f32.mrb[220].mxu0  ;;  %22436 = vmatpush3.bf16.msra.mxu0 %v23596_v57  ;;  %22409 = vmatprep.subr.bf16.mxu1 %v23597_v8  ;;  %v23606_v8 = vld [vmem:[%s30460_s16 + $0x6c0] sm:$0xff]  }
0x2448   : > { %v29266_v16 = vadd.f32 %v17618_v15, %v29078_v31  ;;  %v29269_v39 = vadd.f32 %v17671_v47, %v29082_v48  ;;  %v17620_v12 = vpop.f32.mrb[217].mxu1  ;;  %v17673_v0 = vpop.f32.mrb[221].mxu0  ;;  %22437 = vmatprep.subr.bf16.mxu0 %v23598_v55 }
0x2449   : > { %v29281_v44 = vadd.f32 %v17620_v12, %v29086_v50  ;;  %v29284_v30 = vadd.f32 %v17673_v0, %v29090_v5  ;;  %v17622_v18 = vpop.f32.mrb[218].mxu1  ;;  %v17675_v60 = vpop.f32.mrb[222].mxu0 }
0x244a   : > { %30805 = vst [vmem:[#allocation61_spill] sm:$0xff] %v29266_v16  ;;  %30806 = vst [vmem:[#allocation63_spill] sm:$0xff] %v29269_v39  ;;  %v18030_v11 = vmul.f32 %v29266_v16, %v29266_v16  ;;  %v18032_v43 = vmul.f32 %v29269_v39, %v29269_v39  ;;  %v29300_v13 = vadd.f32 %v17622_v18, %v29078_v31  ;;  %v17624_v42 = vpop.f32.mrb[219].mxu1  ;;  %v17677_v49 = vpop.f32.mrb[223].mxu0  ;;  %22410 = vmatpush3.bf16.msra.mxu1 %v23599_v2 }
0x244b   : > { %v29303_v34 = vadd.f32 %v17675_v60, %v29082_v48  ;;  %v18031_v24 = vmul.f32 %v29281_v44, %v29281_v44  ;;  %v18033_v27 = vmul.f32 %v29284_v30, %v29284_v30  ;;  %v29313_v62 = vadd.f32 %v17624_v42, %v29086_v50  ;;  %22438 = vmatpush3.bf16.msra.mxu0 %v23600_v23  ;;  %v23604_v48 = vld [vmem:[%s30460_s16 + $0x5b8] sm:$0xff]  }
0x244c   : > { %30811 = vst [vmem:[#allocation64_spill] sm:$0xff] %v29300_v13  ;;  %v29316_v31 = vadd.f32 %v17677_v49, %v29090_v5  ;;  %v18094_v22 = vmul.f32 %v18030_v11, %v29266_v16  ;;  %v18096_v57 = vmul.f32 %v18032_v43, %v29269_v39  ;;  %v18046_v50 = vmul.f32 %v29300_v13, %v29300_v13 }
0x244d   : > { %30812 = vst [vmem:[#allocation62_spill] sm:$0xff] %v29303_v34  ;;  %v18048_v5 = vmul.f32 %v29303_v34, %v29303_v34  ;;  %22411 = vmatprep.subr.bf16.mxu1 %v23601_v61  ;;  %v18095_v55 = vmul.f32 %v18031_v24, %v29281_v44  ;;  %v18097_v45 = vmul.f32 %v18033_v27, %v29284_v30 }
0x244e   : > { %v18047_v51 = vmul.f32 %v29313_v62, %v29313_v62  ;;  %v18049_v2 = vmul.f32 %v29316_v31, %v29316_v31  ;;  %22439 = vmatprep.subr.bf16.mxu0 %v23602_v14  ;;  %v18158_v15 = vmul.f32 0.044715, %v18094_v22  ;;  %v18160_v47 = vmul.f32 0.044715, %v18096_v57  ;;  %22412 = vmatpush3.bf16.msra.mxu1 %v23603_v37 }
0x244f   : > { %v18110_v23 = vmul.f32 %v18046_v50, %v29300_v13  ;;  %v18112_v12 = vmul.f32 %v18048_v5, %v29303_v34  ;;  %v18159_v0 = vmul.f32 0.044715, %v18095_v55  ;;  %v18161_v61 = vmul.f32 0.044715, %v18097_v45  ;;  %v17714_v11 = vpop.f32.mrb[220].mxu1  ;;  %v17767_v43 = vpop.f32.mrb[224].mxu0  ;;  %22440 = vmatpush3.bf16.msra.mxu0 %v23604_v48  ;;  %22453 = vmatprep.subr.bf16.mxu1 %v23605_v63 }
0x2450   : > { %v18111_v18 = vmul.f32 %v18047_v51, %v29313_v62  ;;  %v18113_v60 = vmul.f32 %v18049_v2, %v29316_v31  ;;  %v18222_v42 = vadd.f32 %v18158_v15, %v29266_v16  ;;  %v18224_v14 = vadd.f32 %v18160_v47, %v29269_v39  ;;  %v17716_v27 = vpop.f32.mrb[221].mxu1  ;;  %v17769_v22 = vpop.f32.mrb[225].mxu0  ;;  %22481 = vmatprep.subr.bf16.mxu0 %v23606_v8 }
0x2451   : > { %v18174_v49 = vmul.f32 0.044715, %v18110_v23  ;;  %v18176_v24 = vmul.f32 0.044715, %v18112_v12  ;;  %v18223_v37 = vadd.f32 %v18159_v0, %v29281_v44  ;;  %v18225_v57 = vadd.f32 %v18161_v61, %v29284_v30  ;;  %v17718_v55 = vpop.f32.mrb[222].mxu1  ;;  %v17771_v45 = vpop.f32.mrb[226].mxu0 }
0x2452   : > { %v18175_v50 = vmul.f32 0.044715, %v18111_v18  ;;  %v18177_v5 = vmul.f32 0.044715, %v18113_v60  ;;  %v18286_v51 = vmul.f32 0.7978846, %v18222_v42  ;;  %v29352_v60 = vadd.f32 %v17714_v11, %v29233_v46 }
0x2453   : > { %v18288_v48 = vmul.f32 0.7978846, %v18224_v14  ;;  %v18238_v63 = vadd.f32 %v18174_v49, %v29300_v13  ;;  %v18240_v2 = vadd.f32 %v18176_v24, %v29303_v34  ;;  %v17720_v15 = vpop.f32.mrb[223].mxu1  ;;  %v17773_v47 = vpop.f32.mrb[227].mxu0  ;;  %v18287_v23 = vmul.f32 0.7978846, %v18223_v37 }
0x2454   : > { %v18289_v12 = vmul.f32 0.7978846, %v18225_v57  ;;  %v18239_v8 = vadd.f32 %v18175_v50, %v29313_v62  ;;  %v18241_v0 = vadd.f32 %v18177_v5, %v29316_v31  ;;  %24111 = vtanh.f32 %v18286_v51 }
0x2455   : > { %v18302_v61 = vmul.f32 0.7978846, %v18238_v63  ;;  %v18304_v18 = vmul.f32 0.7978846, %v18240_v2  ;;  %24113 = vtanh.f32 %v18288_v48  ;;  %v29355_v49 = vadd.f32 %v17767_v43, %v29237_v56 }
0x2456   : > { %v18303_v42 = vmul.f32 0.7978846, %v18239_v8  ;;  %v18305_v14 = vmul.f32 0.7978846, %v18241_v0  ;;  %24115 = vtanh.f32 %v18287_v23  ;;  %v18002_v24 = vmul.f32 %v29352_v60, %v29352_v60 }
0x2457   : > { %v29360_v37 = vadd.f32 %v17716_v27, %v29241_v35  ;;  %v29363_v57 = vadd.f32 %v17769_v22, %v29245_v32  ;;  %24117 = vtanh.f32 %v18289_v12  ;;  %v18004_v11 = vmul.f32 %v29355_v49, %v29355_v49  ;;  %v17724_v5 = vpop.f32.mrb[224].mxu1  ;;  %v17777_v51 = vpop.f32.mrb[228].mxu0 }
0x2458   : > { %v29368_v50 = vadd.f32 %v17718_v55, %v29233_v46  ;;  %v29371_v43 = vadd.f32 %v17771_v45, %v29237_v56  ;;  %24119 = vtanh.f32 %v18302_v61  ;;  %v18066_v48 = vmul.f32 %v18002_v24, %v29352_v60  ;;  %v17726_v63 = vpop.f32.mrb[225].mxu1  ;;  %v17779_v2 = vpop.f32.mrb[229].mxu0 }
0x2459   : > { %30813 = vst [vmem:[#allocation65_spill] sm:$0xff] %v29360_v37  ;;  %30814 = vst [vmem:[#allocation55_spill] sm:$0xff] %v29363_v57  ;;  %v18003_v27 = vmul.f32 %v29360_v37, %v29360_v37  ;;  %v18005_v22 = vmul.f32 %v29363_v57, %v29363_v57  ;;  %24121 = vtanh.f32 %v18304_v18  ;;  %v18068_v55 = vmul.f32 %v18004_v11, %v29355_v49  ;;  %v29383_v12 = vpop.f32.mrb[226].mxu1  ;;  %v29385_v8 = vpop.f32.mrb[230].mxu0 }
0x245a   : > { %v18018_v45 = vmul.f32 %v29368_v50, %v29368_v50  ;;  %v18020_v23 = vmul.f32 %v29371_v43, %v29371_v43  ;;  %24123 = vtanh.f32 %v18303_v42  ;;  %v18130_v0 = vmul.f32 0.044715, %v18066_v48  ;;  %v29389_v58 = vpop.f32.mrb[227].mxu1  ;;  %v29391_v18 = vpop.f32.mrb[231].mxu0 }
0x245b   : > { %v18067_v61 = vmul.f32 %v18003_v27, %v29360_v37  ;;  %v18069_v24 = vmul.f32 %v18005_v22, %v29363_v57  ;;  %24125 = vtanh.f32 %v18305_v14  ;;  %v18132_v11 = vmul.f32 0.044715, %v18068_v55 }
0x245c   : > { %v18082_v26 = vmul.f32 %v18018_v45, %v29368_v50  ;;  %v18084_v36 = vmul.f32 %v18020_v23, %v29371_v43  ;;  %v18194_v1 = vadd.f32 %v18130_v0, %v29352_v60  ;;  %v29397_v42 = vadd.f32 %v17720_v15, %v29241_v35 }
0x245d   : > { %v18131_v6 = vmul.f32 0.044715, %v18067_v61  ;;  %v18133_v28 = vmul.f32 0.044715, %v18069_v24  ;;  %v18196_v48 = vadd.f32 %v18132_v11, %v29355_v49  ;;  %v29401_v38 = vadd.f32 %v17773_v47, %v29245_v32 }
0x245e   : > { %30815 = vst [vmem:[#allocation43_spill] sm:$0xff] %v29397_v42  ;;  %v18146_v27 = vmul.f32 0.044715, %v18082_v26  ;;  %v18148_v22 = vmul.f32 0.044715, %v18084_v36  ;;  %v29403_v14 = vpop.eup %24111  ;;  %v18019_v0 = vmul.f32 %v29397_v42, %v29397_v42  ;;  %v29471_v9 = vadd.f32 %v29383_v12, %v29233_v46 }
0x245f   : > { %30816 = vst [vmem:[#allocation47_spill] sm:$0xff] %v29401_v38  ;;  %v18258_v55 = vmul.f32 0.7978846, %v18194_v1  ;;  %v18195_v45 = vadd.f32 %v18131_v6, %v29360_v37  ;;  %v18197_v23 = vadd.f32 %v18133_v28, %v29363_v57  ;;  %v29409_v61 = vpop.eup %24113  ;;  %v18260_v15 = vmul.f32 0.7978846, %v18196_v48  ;;  %v29415_v47 = vpop.f32.mrb[228].mxu1 }
0x2460   : > { %30817 = vst [vmem:[#allocation44_spill] sm:$0xff] %v29409_v61  ;;  %v18210_v24 = vadd.f32 %v18146_v27, %v29368_v50  ;;  %v18212_v36 = vadd.f32 %v18148_v22, %v29371_v43  ;;  %v18021_v26 = vmul.f32 %v29401_v38, %v29401_v38  ;;  %v29417_v1 = vpop.f32.mrb[232].mxu0  ;;  %v29419_v6 = vpop.eup %24115  ;;  %v18083_v52 = vmul.f32 %v18019_v0, %v29397_v42 }
0x2461   : > { %24127 = vtanh.f32 %v18258_v55  ;;  %v18259_v28 = vmul.f32 0.7978846, %v18195_v45  ;;  %v18261_v11 = vmul.f32 0.7978846, %v18197_v23  ;;  %v29422_v17 = vpop.f32.mrb[229].mxu1  ;;  %v29424_v48 = vpop.f32.mrb[233].mxu0  ;;  %v29436_v23 = vadd.f32 %v17724_v5, %v29233_v46 }
0x2462   : > { %v29426_v27 = vpop.eup %24117  ;;  %24129 = vtanh.f32 %v18260_v15  ;;  %v18274_v22 = vmul.f32 0.7978846, %v18210_v24  ;;  %v18276_v10 = vmul.f32 0.7978846, %v18212_v36  ;;  %v18085_v3 = vmul.f32 %v18021_v26, %v29401_v38  ;;  %v29429_v33 = vpop.f32.mrb[230].mxu1 }
0x2463   : > { %v29431_v29 = vpop.f32.mrb[234].mxu0  ;;  %v29433_v55 = vpop.eup %24119  ;;  %24131 = vtanh.f32 %v18259_v28  ;;  %v18147_v45 = vmul.f32 0.044715, %v18083_v52  ;;  %v29439_v0 = vadd.f32 %v17777_v51, %v29237_v56  ;;  %v29448_v26 = vadd.f32 %v17726_v63, %v29241_v35 }
0x2464   : > { %v29441_v4 = vpop.f32.mrb[231].mxu1  ;;  %v29443_v15 = vpop.f32.mrb[235].mxu0  ;;  %24133 = vtanh.f32 %v18261_v11  ;;  %v18149_v36 = vmul.f32 0.044715, %v18085_v3  ;;  %v29451_v28 = vadd.f32 %v17779_v2, %v29245_v32  ;;  %v18034_v51 = vmul.f32 %v29436_v23, %v29436_v23 }
0x2465   : > { %v29445_v24 = vpop.eup %24121  ;;  %30819 = vst [vmem:[#allocation48_spill] sm:$0xff] %v29448_v26  ;;  %24135 = vtanh.f32 %v18274_v22  ;;  %v18211_v5 = vadd.f32 %v18147_v45, %v29397_v42  ;;  %v18036_v7 = vmul.f32 %v29439_v0, %v29439_v0  ;;  %v18035_v63 = vmul.f32 %v29448_v26, %v29448_v26 }
0x2466   : > { %30818 = vst [vmem:[#allocation58_spill] sm:$0xff] %v29445_v24  ;;  %30820 = vst [vmem:[#allocation41_spill] sm:$0xff] %v29451_v28  ;;  %v29453_v52 = vpop.eup %24123  ;;  %24137 = vtanh.f32 %v18276_v10  ;;  %v18213_v3 = vadd.f32 %v18149_v36, %v29401_v38  ;;  %v18037_v2 = vmul.f32 %v29451_v28, %v29451_v28  ;;  %v18098_v22 = vmul.f32 %v18034_v51, %v29436_v23 }
0x2467   : > { %v29460_v53 = vpop.eup %24125  ;;  %v18275_v11 = vmul.f32 0.7978846, %v18211_v5  ;;  %v18100_v45 = vmul.f32 %v18036_v7, %v29439_v0  ;;  %v18099_v10 = vmul.f32 %v18035_v63, %v29448_v26  ;;  %v29477_v38 = vadd.f32 %v29385_v8, %v29237_v56  ;;  %v29479_v42 = vpop.f32.mrb[232].mxu1 }
0x2468   : > { %v18277_v57 = vmul.f32 0.7978846, %v18213_v3  ;;  %v18101_v36 = vmul.f32 %v18037_v2, %v29451_v28  ;;  %v29481_v5 = vpop.f32.mrb[236].mxu0  ;;  %v18162_v51 = vmul.f32 0.044715, %v18098_v22  ;;  %v18050_v46 = vmul.f32 %v29471_v9, %v29471_v9  ;;  %v29485_v12 = vpop.f32.mrb[233].mxu1 }
0x2469   : > { %24139 = vtanh.f32 %v18275_v11  ;;  %v18164_v7 = vmul.f32 0.044715, %v18100_v45  ;;  %v29487_v3 = vpop.f32.mrb[237].mxu0  ;;  %v18163_v63 = vmul.f32 0.044715, %v18099_v10  ;;  %v18052_v56 = vmul.f32 %v29477_v38, %v29477_v38  ;;  %v29491_v8 = vpop.f32.mrb[234].mxu1 }
0x246a   : > { %24141 = vtanh.f32 %v18277_v57  ;;  %v18165_v2 = vmul.f32 0.044715, %v18101_v36  ;;  %v29493_v37 = vpop.f32.mrb[238].mxu0  ;;  %v18226_v22 = vadd.f32 %v18162_v51, %v29436_v23  ;;  %v18114_v34 = vmul.f32 %v18050_v46, %v29471_v9  ;;  %v29502_v57 = vpop.f32.mrb[235].mxu1 }
0x246b   : > { %v24128_v11 = vpop.eup %24127  ;;  %v18228_v45 = vadd.f32 %v18164_v7, %v29439_v0  ;;  %v29500_v54 = vadd.f32 %v29389_v58, %v29241_v35  ;;  %v29504_v10 = vpop.f32.mrb[239].mxu0  ;;  %v18227_v25 = vadd.f32 %v18163_v63, %v29448_v26  ;;  %v18116_v51 = vmul.f32 %v18052_v56, %v29477_v38 }
0x246c   : > { %v24130_v36 = vpop.eup %24129  ;;  %v18386_v39 = vadd.f32 1.0, %v24128_v11  ;;  %v18229_v13 = vadd.f32 %v18165_v2, %v29451_v28  ;;  %v18290_v46 = vmul.f32 0.7978846, %v18226_v22  ;;  %v29517_v63 = vadd.f32 %v29391_v18, %v29245_v32 }
0x246d   : > { %30821 = vst [vmem:[#allocation45_spill] sm:$0xff] %v29500_v54  ;;  %v29509_v41 = vpop.eup %24131  ;;  %v18388_v7 = vadd.f32 1.0, %v24130_v36  ;;  %v18292_v16 = vmul.f32 0.7978846, %v18228_v45  ;;  %v18051_v58 = vmul.f32 %v29500_v54, %v29500_v54  ;;  %v18291_v24 = vmul.f32 0.7978846, %v18227_v25 }
0x246e   : > { %v29513_v35 = vpop.eup %24133  ;;  %v18450_v40 = vmul.f32 0.5, %v18386_v39  ;;  %v18293_v61 = vmul.f32 0.7978846, %v18229_v13  ;;  %30823 = vst [vmem:[#allocation46_spill] sm:$0xff] %v29517_v63  ;;  %24143 = vtanh.f32 %v18290_v46  ;;  %v18178_v56 = vmul.f32 0.044715, %v18114_v34 }
0x246f   : > { %30822 = vst [vmem:[#allocation42_spill] sm:$0xff] %v29513_v35  ;;  %v24136_v2 = vpop.eup %24135  ;;  %v18452_v11 = vmul.f32 0.5, %v18388_v7  ;;  %v18180_v28 = vmul.f32 0.044715, %v18116_v51  ;;  %24145 = vtanh.f32 %v18292_v16  ;;  %v18115_v26 = vmul.f32 %v18051_v58, %v29500_v54  ;;  %v29523_v39 = vpop.f32.mrb[236].mxu1 }
0x2470   : > { %v24138_v36 = vpop.eup %24137  ;;  %v29520_v22 = vmul.f32 %v18450_v40, %v29352_v60  ;;  %v18402_v45 = vadd.f32 1.0, %v24136_v2  ;;  %v29525_v25 = vpop.f32.mrb[240].mxu0  ;;  %24147 = vtanh.f32 %v18291_v24  ;;  %v18242_v34 = vadd.f32 %v18178_v56, %v29471_v9 }
0x2471   : > { %v29528_v32 = vmul.f32 %v18452_v11, %v29355_v49  ;;  %v18404_v13 = vadd.f32 1.0, %v24138_v36  ;;  %v29531_v18 = vpop.f32.mrb[237].mxu1  ;;  %v29533_v51 = vpop.f32.mrb[241].mxu0  ;;  %24149 = vtanh.f32 %v18293_v61  ;;  %v18244_v16 = vadd.f32 %v18180_v28, %v29477_v38 }
0x2472   : > { %30824 = vst [vmem:[#allocation59_spill] sm:$0xff] %v29520_v22  ;;  %v18466_v40 = vmul.f32 0.5, %v18402_v45  ;;  %v18179_v60 = vmul.f32 0.044715, %v18115_v26  ;;  %v29536_v7 = vpop.f32.mrb[238].mxu1  ;;  %v29538_v46 = vpop.f32.mrb[242].mxu0  ;;  %v18053_v24 = vmul.f32 %v29517_v63, %v29517_v63  ;;  %v29546_v11 = vadd.f32 %v29415_v47, %v29248_v59 }
0x2473   : > { %30825 = vst [vmem:[#allocation53_spill] sm:$0xff] %v29528_v32  ;;  %v29540_v58 = vpop.eup %24139  ;;  %v18468_v49 = vmul.f32 0.5, %v18404_v13  ;;  %v18306_v2 = vmul.f32 0.7978846, %v18242_v34  ;;  %v29548_v56 = vpop.f32.mrb[239].mxu1  ;;  %v29560_v13 = vadd.f32 %v29417_v1, %v29254_v21 }
0x2474   : > { %30826 = vst [vmem:[#allocation66_spill] sm:$0xff] %v29540_v58  ;;  %v29550_v61 = vpop.f32.mrb[243].mxu0  ;;  %v29552_v26 = vpop.eup %24141  ;;  %v29555_v28 = vmul.f32 %v18466_v40, %v29368_v50  ;;  %v18308_v36 = vmul.f32 0.7978846, %v18244_v16  ;;  %v18243_v45 = vadd.f32 %v18179_v60, %v29500_v54  ;;  %v18117_v47 = vmul.f32 %v18053_v24, %v29517_v63 }
0x2475   : > { %30827 = vst [vmem:[#allocation67_spill] sm:$0xff] %v29552_v26  ;;  %v29563_v34 = vmul.f32 %v18468_v49, %v29371_v43  ;;  %24151 = vtanh.f32 %v18306_v2  ;;  %v18006_v35 = vmul.f32 %v29546_v11, %v29546_v11  ;;  %v18008_v16 = vmul.f32 %v29560_v13, %v29560_v13 }
0x2476   : > { %30828 = vst [vmem:[#allocation31_spill] sm:$0xff] %v29555_v28  ;;  %24153 = vtanh.f32 %v18308_v36  ;;  %v18307_v40 = vmul.f32 0.7978846, %v18243_v45  ;;  %v18181_v60 = vmul.f32 0.044715, %v18117_v47  ;;  %v29577_v49 = vadd.f32 %v29422_v17, %v29257_v19 }
0x2477   : > { %30829 = vst [vmem:[#allocation32_spill] sm:$0xff] %v29563_v34  ;;  %v18070_v43 = vmul.f32 %v18006_v35, %v29546_v11  ;;  %v18072_v2 = vmul.f32 %v18008_v16, %v29560_v13  ;;  %v29582_v24 = vadd.f32 %v29424_v48, %v29260_v20  ;;  %v29586_v36 = vadd.f32 %v29429_v33, %v29248_v59  ;;  %v29588_v45 = vpop.f32.mrb[240].mxu1  ;;  %v29590_v47 = vpop.f32.mrb[244].mxu0 }
0x2478   : > { %24155 = vtanh.f32 %v18307_v40  ;;  %30830 = vst [vmem:[#allocation69_spill] sm:$0xff] %v29588_v45  ;;  %30831 = vst [vmem:[#allocation68_spill] sm:$0xff] %v29590_v47  ;;  %v24144_v35 = vpop.eup %24143  ;;  %v18245_v1 = vadd.f32 %v18181_v60, %v29517_v63  ;;  %v18007_v40 = vmul.f32 %v29577_v49, %v29577_v49  ;;  %v29597_v16 = vadd.f32 %v29431_v29, %v29254_v21  ;;  %v29599_v48 = vpop.f32.mrb[241].mxu1 }
0x2479   : > { %v18134_v17 = vmul.f32 0.044715, %v18070_v43  ;;  %30832 = vst [vmem:[#allocation29_spill] sm:$0xff] %v29599_v48  ;;  %v29601_v50 = vpop.f32.mrb[245].mxu0  ;;  %v24146_v33 = vpop.eup %24145  ;;  %v18418_v54 = vadd.f32 1.0, %v24144_v35  ;;  %v18009_v34 = vmul.f32 %v29582_v24, %v29582_v24  ;;  %v18022_v60 = vmul.f32 %v29586_v36, %v29586_v36 }
0x247a   : > { %30833 = vst [vmem:[#allocation35_spill] sm:$0xff] %v29601_v50  ;;  %v18136_v32 = vmul.f32 0.044715, %v18072_v2  ;;  %v29607_v43 = vpop.f32.mrb[242].mxu1  ;;  %v29609_v63 = vpop.f32.mrb[246].mxu0  ;;  %v18420_v29 = vadd.f32 1.0, %v24146_v33  ;;  %v18071_v50 = vmul.f32 %v18007_v40, %v29577_v49 }
0x247b   : > { %30834 = vst [vmem:[#allocation34_spill] sm:$0xff] %v29607_v43  ;;  %30835 = vst [vmem:[#allocation30_spill] sm:$0xff] %v29609_v63  ;;  %v29611_v22 = vpop.eup %24147  ;;  %v18309_v28 = vmul.f32 0.7978846, %v18245_v1  ;;  %v18198_v48 = vadd.f32 %v18134_v17, %v29546_v11  ;;  %v29615_v35 = vpop.f32.mrb[243].mxu1  ;;  %v18482_v45 = vmul.f32 0.5, %v18418_v54  ;;  %v18073_v43 = vmul.f32 %v18009_v34, %v29582_v24 }
0x247c   : > { %30836 = vst [vmem:[#allocation36_spill] sm:$0xff] %v29611_v22  ;;  %30837 = vst [vmem:[#allocation33_spill] sm:$0xff] %v29615_v35  ;;  %v29617_v2 = vpop.f32.mrb[247].mxu0  ;;  %v29619_v47 = vpop.eup %24149  ;;  %v18200_v26 = vadd.f32 %v18136_v32, %v29560_v13  ;;  %v18086_v63 = vmul.f32 %v18022_v60, %v29586_v36  ;;  %v18484_v22 = vmul.f32 0.5, %v18420_v29  ;;  %v18135_v33 = vmul.f32 0.044715, %v18071_v50 }
0x247d   : > { %30838 = vst [vmem:[#allocation19_spill] sm:$0xff] %v29617_v2  ;;  %30839 = vst [vmem:[#allocation20_spill] sm:$0xff] %v29619_v47  ;;  %24157 = vtanh.f32 %v18309_v28  ;;  %v18262_v1 = vmul.f32 0.7978846, %v18198_v48  ;;  %v29625_v17 = vmul.f32 %v18482_v45, %v29436_v23  ;;  %v18137_v35 = vmul.f32 0.044715, %v18073_v43 }
0x247e   : > { %v18264_v40 = vmul.f32 0.7978846, %v18200_v26  ;;  %v18150_v58 = vmul.f32 0.044715, %v18086_v63  ;;  %v29628_v47 = vmul.f32 %v18484_v22, %v29439_v0  ;;  %v18199_v54 = vadd.f32 %v18135_v33, %v29577_v49 }
0x247f   : > { %v24152_v2 = vpop.eup %24151  ;;  %24159 = vtanh.f32 %v18262_v1  ;;  %v18024_v32 = vmul.f32 %v29597_v16, %v29597_v16  ;;  %v18201_v50 = vadd.f32 %v18137_v35, %v29582_v24  ;;  %v29638_v0 = vadd.f32 %v29441_v4, %v29257_v19 }
0x2480   : > { %v24154_v34 = vpop.eup %24153  ;;  %v18434_v28 = vadd.f32 1.0, %v24152_v2  ;;  %24161 = vtanh.f32 %v18264_v40  ;;  %v18214_v23 = vadd.f32 %v18150_v58, %v29586_v36  ;;  %v18263_v45 = vmul.f32 0.7978846, %v18199_v54 }
0x2481   : > { %v18436_v26 = vadd.f32 1.0, %v24154_v34  ;;  %v18088_v63 = vmul.f32 %v18024_v32, %v29597_v16  ;;  %v18265_v60 = vmul.f32 0.7978846, %v18201_v50  ;;  %v29644_v29 = vadd.f32 %v29443_v15, %v29260_v20 }
0x2482   : > { %v29640_v22 = vpop.eup %24155  ;;  %v18498_v48 = vmul.f32 0.5, %v18434_v28  ;;  %v18278_v43 = vmul.f32 0.7978846, %v18214_v23  ;;  %24163 = vtanh.f32 %v18263_v45  ;;  %v18023_v2 = vmul.f32 %v29638_v0, %v29638_v0 }
0x2483   : > { %v18500_v35 = vmul.f32 0.5, %v18436_v26  ;;  %v18152_v58 = vmul.f32 0.044715, %v18088_v63  ;;  %24165 = vtanh.f32 %v18265_v60  ;;  %v18025_v4 = vmul.f32 %v29644_v29, %v29644_v29 }
0x2484   : > { %v29649_v1 = vmul.f32 %v18498_v48, %v29471_v9  ;;  %v29655_v33 = vadd.f32 %v29479_v42, %v29248_v59  ;;  %24167 = vtanh.f32 %v18278_v43  ;;  %v18087_v54 = vmul.f32 %v18023_v2, %v29638_v0 }
0x2485   : > { %v29658_v15 = vmul.f32 %v18500_v35, %v29477_v38  ;;  %v18216_v40 = vadd.f32 %v18152_v58, %v29597_v16  ;;  %v18089_v32 = vmul.f32 %v18025_v4, %v29644_v29  ;;  %v29669_v42 = vadd.f32 %v29481_v5, %v29254_v21 }
0x2486   : > { %v18038_v34 = vmul.f32 %v29655_v33, %v29655_v33  ;;  %v18151_v23 = vmul.f32 0.044715, %v18087_v54  ;;  %v29677_v26 = vadd.f32 %v29485_v12, %v29257_v19  ;;  %v29684_v5 = vadd.f32 %v29487_v3, %v29260_v20 }
0x2487   : > { %v29671_v28 = vpop.eup %24157  ;;  %v18280_v50 = vmul.f32 0.7978846, %v18216_v40  ;;  %v18153_v45 = vmul.f32 0.044715, %v18089_v32  ;;  %v18040_v48 = vmul.f32 %v29669_v42, %v29669_v42  ;;  %v29691_v12 = vadd.f32 %v29491_v8, %v29248_v59 }
0x2488   : > { %v18102_v63 = vmul.f32 %v18038_v34, %v29655_v33  ;;  %v18215_v43 = vadd.f32 %v18151_v23, %v29638_v0  ;;  %v18039_v35 = vmul.f32 %v29677_v26, %v29677_v26 }
0x2489   : > { %v24160_v60 = vpop.eup %24159  ;;  %24169 = vtanh.f32 %v18280_v50  ;;  %v18217_v4 = vadd.f32 %v18153_v45, %v29644_v29  ;;  %v18104_v54 = vmul.f32 %v18040_v48, %v29669_v42  ;;  %v18041_v50 = vmul.f32 %v29684_v5, %v29684_v5 }
0x248a   : > { %v24162_v58 = vpop.eup %24161  ;;  %v18390_v2 = vadd.f32 1.0, %v24160_v60  ;;  %v18166_v40 = vmul.f32 0.044715, %v18102_v63  ;;  %v18279_v32 = vmul.f32 0.7978846, %v18215_v43  ;;  %v18103_v34 = vmul.f32 %v18039_v35, %v29677_v26 }
0x248b   : > { %v18392_v3 = vadd.f32 1.0, %v24162_v58  ;;  %v18281_v38 = vmul.f32 0.7978846, %v18217_v4  ;;  %v18168_v59 = vmul.f32 0.044715, %v18104_v54  ;;  %v18105_v63 = vmul.f32 %v18041_v50, %v29684_v5 }
0x248c   : > { %v18454_v23 = vmul.f32 0.5, %v18390_v2  ;;  %v18230_v9 = vadd.f32 %v18166_v40, %v29655_v33  ;;  %v29699_v8 = vpop.eup %24163  ;;  %24171 = vtanh.f32 %v18279_v32  ;;  %v18167_v45 = vmul.f32 0.044715, %v18103_v34 }
0x248d   : > { %v18456_v60 = vmul.f32 0.5, %v18392_v3  ;;  %v29702_v48 = vpop.eup %24165  ;;  %24173 = vtanh.f32 %v18281_v38  ;;  %v18232_v58 = vadd.f32 %v18168_v59, %v29669_v42  ;;  %v18169_v54 = vmul.f32 0.044715, %v18105_v63 }
0x248e   : > { %v29705_v43 = vmul.f32 %v18454_v23, %v29546_v11  ;;  %v18294_v35 = vmul.f32 0.7978846, %v18230_v9  ;;  %v24168_v2 = vpop.eup %24167  ;;  %v18231_v40 = vadd.f32 %v18167_v45, %v29677_v26  ;;  %v18054_v3 = vmul.f32 %v29691_v12, %v29691_v12 }
0x248f   : > { %v29709_v4 = vmul.f32 %v18456_v60, %v29560_v13  ;;  %v18406_v32 = vadd.f32 1.0, %v24168_v2  ;;  %v18296_v34 = vmul.f32 0.7978846, %v18232_v58  ;;  %v29716_v11 = vadd.f32 %v29493_v37, %v29254_v21 }
0x2490   : > { %24175 = vtanh.f32 %v18294_v35  ;;  %v18295_v9 = vmul.f32 0.7978846, %v18231_v40  ;;  %v18233_v38 = vadd.f32 %v18169_v54, %v29684_v5  ;;  %v18118_v50 = vmul.f32 %v18054_v3, %v29691_v12 }
0x2491   : > { %v29722_v13 = vadd.f32 %v29502_v57, %v29257_v19  ;;  %v18470_v23 = vmul.f32 0.5, %v18406_v32  ;;  %24177 = vtanh.f32 %v18296_v34  ;;  %v18056_v59 = vmul.f32 %v29716_v11, %v29716_v11 }
0x2492   : > { %v29728_v60 = vadd.f32 %v29504_v10, %v29260_v20  ;;  %24179 = vtanh.f32 %v18295_v9  ;;  %v18297_v37 = vmul.f32 0.7978846, %v18233_v38  ;;  %v18182_v45 = vmul.f32 0.044715, %v18118_v50 }
0x2493   : > { %v24170_v21 = vpop.eup %24169  ;;  %v18055_v63 = vmul.f32 %v29722_v13, %v29722_v13  ;;  %v29733_v35 = vmul.f32 %v18470_v23, %v29586_v36  ;;  %v18120_v57 = vmul.f32 %v18056_v59, %v29716_v11  ;;  %v18415_v2 = vadd.f32 1.0, %v29419_v6 }
0x2494   : > { %v18408_v19 = vadd.f32 1.0, %v24170_v21  ;;  %v18057_v58 = vmul.f32 %v29728_v60, %v29728_v60  ;;  %24181 = vtanh.f32 %v18297_v37  ;;  %v18246_v20 = vadd.f32 %v18182_v45, %v29691_v12 }
0x2495   : > { %v18119_v10 = vmul.f32 %v18055_v63, %v29722_v13  ;;  %v18184_v3 = vmul.f32 0.044715, %v18120_v57  ;;  %v18431_v38 = vadd.f32 1.0, %v29453_v52  ;;  %v18479_v50 = vmul.f32 0.5, %v18415_v2 }
0x2496   : > { %v18472_v54 = vmul.f32 0.5, %v18408_v19  ;;  %v18121_v36 = vmul.f32 %v18057_v58, %v29728_v60  ;;  %v29744_v32 = vpop.eup %24171  ;;  %v18310_v34 = vmul.f32 0.7978846, %v18246_v20  ;;  %v18417_v37 = vadd.f32 1.0, %v29426_v27 }
0x2497   : > { %v18183_v9 = vmul.f32 0.044715, %v18119_v10  ;;  %v29747_v23 = vpop.eup %24173  ;;  %v18248_v6 = vadd.f32 %v18184_v3, %v29716_v11  ;;  %v18495_v63 = vmul.f32 0.5, %v18431_v38  ;;  %v18543_v19 = vmul.f32 %v18479_v50, %v29281_v44 }
0x2498   : > { %v29750_v59 = vmul.f32 %v18472_v54, %v29597_v16  ;;  %v18185_v21 = vmul.f32 0.044715, %v18121_v36  ;;  %24183 = vtanh.f32 %v18310_v34  ;;  %v18433_v16 = vadd.f32 1.0, %v29460_v53 }
0x2499   : > { %v18247_v45 = vadd.f32 %v18183_v9, %v29722_v13  ;;  %v18312_v58 = vmul.f32 0.7978846, %v18248_v6  ;;  %v18559_v54 = vmul.f32 %v18495_v63, %v29313_v62  ;;  %v18481_v27 = vmul.f32 0.5, %v18417_v37 }
0x249a   : > { %v24176_v57 = vpop.eup %24175  ;;  %v18249_v20 = vadd.f32 %v18185_v21, %v29728_v60  ;;  %v18497_v34 = vmul.f32 0.5, %v18433_v16  ;;  %v18414_v44 = vadd.f32 1.0, %v29403_v14  ;;  %v18430_v62 = vadd.f32 1.0, %v29433_v55  ;;  %v30845_v55 = vld [vmem:[#allocation61_spill] sm:$0xff] }
0x249b   : > { %v18422_v10 = vadd.f32 1.0, %v24176_v57  ;;  %v18311_v2 = vmul.f32 0.7978846, %v18247_v45  ;;  %v24178_v3 = vpop.eup %24177  ;;  %24185 = vtanh.f32 %v18312_v58  ;;  %v18591_v6 = vpack.c.bf16 %v18559_v54, %v18543_v19  ;;  %v30841_v57 = vld [vmem:[#allocation44_spill] sm:$0xff]  ;;  %v30842_v19 = vld [vmem:[#allocation58_spill] sm:$0xff] }
0x249c   : > { %v18313_v36 = vmul.f32 0.7978846, %v18249_v20  ;;  %v29762_v9 = vpop.eup %24179  ;;  %v18424_v50 = vadd.f32 1.0, %v24178_v3  ;;  %v18545_v53 = vmul.f32 %v18481_v27, %v29284_v30  ;;  %v18561_v21 = vmul.f32 %v18497_v34, %v29316_v31  ;;  %v30846_v27 = vld [vmem:[#allocation49_spill] sm:$0xff] }
0x249d   : > { %v18486_v38 = vmul.f32 0.5, %v18422_v10  ;;  %24187 = vtanh.f32 %v18311_v2  ;;  %19679 = vmatprep.mubr.bf16.mxu1 %v18591_v6  ;;  %v18478_v14 = vmul.f32 0.5, %v18414_v44  ;;  %v18416_v58 = vadd.f32 1.0, %v30841_v57  ;;  %v30843_v2 = vld [vmem:[#allocation51_spill] sm:$0xff] }
0x249e   : > { %24189 = vtanh.f32 %v18313_v36  ;;  %v29767_v37 = vpop.eup %24181  ;;  %v18488_v63 = vmul.f32 0.5, %v18424_v50  ;;  %v18593_v20 = vpack.c.bf16 %v18561_v21, %v18545_v53  ;;  %v18494_v16 = vmul.f32 0.5, %v18430_v62  ;;  %v30847_v36 = vld [vmem:[#allocation64_spill] sm:$0xff]  ;;  %v30849_v6 = vld [vmem:[#allocation63_spill] sm:$0xff]  ;;  %v30850_v62 = vld [vmem:[#allocation50_spill] sm:$0xff] }
0x249f   : > { %v29770_v45 = vmul.f32 %v18486_v38, %v29655_v33  ;;  %v18432_v10 = vadd.f32 1.0, %v30842_v19  ;;  %v29776_v30 = vadd.f32 %v29523_v39, %v30843_v2  ;;  %v18542_v54 = vmul.f32 %v18478_v14, %v30845_v55  ;;  %v30848_v50 = vld [vmem:[#allocation52_spill] sm:$0xff] }
0x24a0   : > { %v29779_v31 = vmul.f32 %v18488_v63, %v29669_v42  ;;  %v18480_v33 = vmul.f32 0.5, %v18416_v58  ;;  %v29784_v3 = vadd.f32 %v29525_v25, %v30846_v27  ;;  %19728 = vmatprep.mubr.bf16.mxu0 %v18593_v20  ;;  %v18558_v34 = vmul.f32 %v18494_v16, %v30847_v36  ;;  %v30851_v58 = vld [vmem:[#allocation62_spill] sm:$0xff] }
0x24a1   : > { %30840 = vst [vmem:[#allocation17_spill] sm:$0xff] %v29770_v45  ;;  %v18496_v44 = vmul.f32 0.5, %v18432_v10  ;;  %v18010_v38 = vmul.f32 %v29776_v30, %v29776_v30  ;;  %v29791_v39 = vadd.f32 %v29531_v18, %v30848_v50  ;;  %v29798_v25 = vadd.f32 %v29533_v51, %v30850_v62  ;;  %v30867_v45 = vld [vmem:[#allocation59_spill] sm:$0xff] }
0x24a2   : > { %30844 = vst [vmem:[#allocation18_spill] sm:$0xff] %v29779_v31  ;;  %v24184_v42 = vpop.eup %24183  ;;  %v18544_v53 = vmul.f32 %v18480_v33, %v30849_v6  ;;  %v18012_v21 = vmul.f32 %v29784_v3, %v29784_v3  ;;  %v29802_v63 = vadd.f32 %v29536_v7, %v30843_v2  ;;  %v18590_v57 = vpack.c.bf16 %v18558_v34, %v18542_v54 }
0x24a3   : > { %v18438_v14 = vadd.f32 1.0, %v24184_v42  ;;  %v18560_v20 = vmul.f32 %v18496_v44, %v30851_v58  ;;  %v18074_v18 = vmul.f32 %v18010_v38, %v29776_v30  ;;  %v18011_v19 = vmul.f32 %v29791_v39, %v29791_v39 }
0x24a4   : > { %v18076_v16 = vmul.f32 %v18012_v21, %v29784_v3  ;;  %v18013_v10 = vmul.f32 %v29798_v25, %v29798_v25  ;;  %v18026_v51 = vmul.f32 %v29802_v63, %v29802_v63  ;;  %19680 = vmatmul.mubr.bf16.gmra.mrb[248].mxu1 %v18590_v57  ;;  %v29815_v36 = vadd.f32 %v29538_v46, %v30846_v27 }
0x24a5   : > { %v24186_v55 = vpop.eup %24185  ;;  %v18502_v7 = vmul.f32 0.5, %v18438_v14  ;;  %v18592_v33 = vpack.c.bf16 %v18560_v20, %v18544_v53  ;;  %v18138_v54 = vmul.f32 0.044715, %v18074_v18  ;;  %v18075_v42 = vmul.f32 %v18011_v19, %v29791_v39 }
0x24a6   : > { %v18440_v44 = vadd.f32 1.0, %v24186_v55  ;;  %v18140_v38 = vmul.f32 0.044715, %v18076_v16  ;;  %v18077_v6 = vmul.f32 %v18013_v10, %v29798_v25  ;;  %v18090_v14 = vmul.f32 %v18026_v51, %v29802_v63 }
0x24a7   : > { %v29817_v34 = vpop.eup %24187  ;;  %v29824_v58 = vmul.f32 %v18502_v7, %v29691_v12  ;;  %19729 = vmatmul.mubr.bf16.gmra.mrb[252].mxu0 %v18592_v33  ;;  %v18202_v53 = vadd.f32 %v18138_v54, %v29776_v30  ;;  %v18028_v46 = vmul.f32 %v29815_v36, %v29815_v36  ;;  %v18139_v18 = vmul.f32 0.044715, %v18075_v42 }
0x24a8   : > { %v29821_v21 = vpop.eup %24189  ;;  %v18504_v57 = vmul.f32 0.5, %v18440_v44  ;;  %v18204_v20 = vadd.f32 %v18140_v38, %v29784_v3  ;;  %v18141_v16 = vmul.f32 0.044715, %v18077_v6  ;;  %v18154_v55 = vmul.f32 0.044715, %v18090_v14 }
0x24a9   : > { %30852 = vst [vmem:[#allocation21_spill] sm:$0xff] %v29824_v58  ;;  %v18266_v10 = vmul.f32 0.7978846, %v18202_v53  ;;  %v18092_v12 = vmul.f32 %v18028_v46, %v29815_v36  ;;  %v18203_v51 = vadd.f32 %v18139_v18, %v29791_v39  ;;  %v29842_v42 = vadd.f32 %v29548_v56, %v30848_v50  ;;  %v30855_v18 = vld [vmem:[#allocation66_spill] sm:$0xff] }
0x24aa   : > { %v29835_v7 = vmul.f32 %v18504_v57, %v29716_v11  ;;  %v18268_v33 = vmul.f32 0.7978846, %v18204_v20  ;;  %v18205_v54 = vadd.f32 %v18141_v16, %v29798_v25  ;;  %v18218_v44 = vadd.f32 %v18154_v55, %v29802_v63 }
0x24ab   : > { %24191 = vtanh.f32 %v18266_v10  ;;  %v18156_v38 = vmul.f32 0.044715, %v18092_v12  ;;  %v18267_v53 = vmul.f32 0.7978846, %v18203_v51  ;;  %v18027_v57 = vmul.f32 %v29842_v42, %v29842_v42  ;;  %v30856_v10 = vld [vmem:[#allocation42_spill] sm:$0xff] }
0x24ac   : > { %30853 = vst [vmem:[#allocation22_spill] sm:$0xff] %v29835_v7  ;;  %24193 = vtanh.f32 %v18268_v33  ;;  %v18269_v11 = vmul.f32 0.7978846, %v18205_v54  ;;  %v18282_v14 = vmul.f32 0.7978846, %v18218_v44  ;;  %v29851_v20 = vadd.f32 %v29550_v61, %v30850_v62  ;;  %v30866_v7 = vld [vmem:[#allocation31_spill] sm:$0xff] }
0x24ad   : > { %v18220_v46 = vadd.f32 %v18156_v38, %v29815_v36  ;;  %24195 = vtanh.f32 %v18267_v53  ;;  %v18387_v56 = vadd.f32 1.0, %v29509_v41  ;;  %v18403_v16 = vadd.f32 1.0, %v30855_v18  ;;  %v30857_v38 = vld [vmem:[#allocation67_spill] sm:$0xff]  ;;  %v30858_v18 = vld [vmem:[#allocation65_spill] sm:$0xff] }
0x24ae   : > { %30854 = vst [vmem:[#allocation23_spill] sm:$0xff] %v29851_v20  ;;  %v18389_v55 = vadd.f32 1.0, %v30856_v10  ;;  %24197 = vtanh.f32 %v18269_v11  ;;  %v18091_v33 = vmul.f32 %v18027_v57, %v29842_v42  ;;  %v18029_v51 = vmul.f32 %v29851_v20, %v29851_v20  ;;  %v30859_v10 = vld [vmem:[#allocation43_spill] sm:$0xff]  ;;  %v30860_v57 = vld [vmem:[#allocation69_spill] sm:$0xff] }
0x24af   : > { %v18284_v12 = vmul.f32 0.7978846, %v18220_v46  ;;  %24199 = vtanh.f32 %v18282_v14  ;;  %v18451_v54 = vmul.f32 0.5, %v18387_v56  ;;  %v18467_v44 = vmul.f32 0.5, %v18403_v16  ;;  %v30861_v16 = vld [vmem:[#allocation55_spill] sm:$0xff] }
0x24b0   : > { %v18405_v61 = vadd.f32 1.0, %v30857_v38  ;;  %v18155_v53 = vmul.f32 0.044715, %v18091_v33  ;;  %v18093_v41 = vmul.f32 %v18029_v51, %v29851_v20  ;;  %v18453_v6 = vmul.f32 0.5, %v18389_v55  ;;  %v30863_v55 = vld [vmem:[#allocation47_spill] sm:$0xff] }
0x24b1   : > { %24201 = vtanh.f32 %v18284_v12  ;;  %v18515_v19 = vmul.f32 %v18451_v54, %v30858_v18  ;;  %v18531_v11 = vmul.f32 %v18467_v44, %v30859_v10  ;;  %v29865_v52 = vadd.f32 %v30860_v57, %v30843_v2  ;;  %v30862_v12 = vld [vmem:[#allocation68_spill] sm:$0xff]  ;;  %v23607_v54 = vld [vmem:[%s30460_s16 + $0x600] sm:$0xff]  }
0x24b2   : > { %v18469_v46 = vmul.f32 0.5, %v18405_v61  ;;  %v18219_v14 = vadd.f32 %v18155_v53, %v29842_v42  ;;  %v18157_v56 = vmul.f32 0.044715, %v18093_v41  ;;  %v18517_v40 = vmul.f32 %v18453_v6, %v30861_v16  ;;  %v30864_v61 = vld [vmem:[#allocation29_spill] sm:$0xff] }
0x24b3   : > { %v29871_v33 = vadd.f32 %v30862_v12, %v30846_v27  ;;  %v18579_v51 = vpack.c.bf16 %v18531_v11, %v18515_v19  ;;  %v18042_v44 = vmul.f32 %v29865_v52, %v29865_v52  ;;  %v29881_v53 = vadd.f32 %v30864_v61, %v30848_v50  ;;  %v23609_v19 = vld [vmem:[%s30460_s16 + $0x648] sm:$0xff]   ;;  %v30865_v11 = vld [vmem:[#allocation35_spill] sm:$0xff] }
0x24b4   : > { %v18533_v38 = vmul.f32 %v18469_v46, %v30863_v55  ;;  %v18283_v6 = vmul.f32 0.7978846, %v18219_v14  ;;  %v18221_v18 = vadd.f32 %v18157_v56, %v29851_v20  ;;  %v29891_v46 = vadd.f32 %v30865_v11, %v30850_v62  ;;  %v23608_v14 = vld [vmem:[%s30460_s16 + $0x680] sm:$0xff]  }
0x24b5   : > { %v24192_v41 = vpop.eup %24191  ;;  %v18044_v10 = vmul.f32 %v29871_v33, %v29871_v33  ;;  %19769 = vmatprep.mubr.bf16.mxu1 %v18579_v51  ;;  %v18106_v56 = vmul.f32 %v18042_v44, %v29865_v52  ;;  %v18043_v55 = vmul.f32 %v29881_v53, %v29881_v53  ;;  %v30868_v11 = vpack.c.bf16 %v30866_v7, %v30867_v45 }
0x24b6   : > { %v24194_v57 = vpop.eup %24193  ;;  %v18394_v16 = vadd.f32 1.0, %v24192_v41  ;;  %v18581_v12 = vpack.c.bf16 %v18533_v38, %v18517_v40  ;;  %24203 = vtanh.f32 %v18283_v6  ;;  %v18285_v31 = vmul.f32 0.7978846, %v18221_v18  ;;  %v23610_v40 = vld [vmem:[%s30460_s16 + $0x6c8] sm:$0xff]  }
0x24b7   : > { %v18396_v61 = vadd.f32 1.0, %v24194_v57  ;;  %19770 = vmatmul.mubr.bf16.vlgmr.msra.gmra.mrb[252].mxu1 %v30868_v11  ;;  %v18108_v51 = vmul.f32 %v18044_v10, %v29871_v33  ;;  %v29906_v38 = vpop.eup %24195  ;;  %v18170_v44 = vmul.f32 0.044715, %v18106_v56  ;;  %v23611_v6 = vld [vmem:[%s30460_s16 + $0x608] sm:$0xff]   ;;  %v18107_v18 = vmul.f32 %v18043_v55, %v29881_v53  ;;  %v30870_v11 = vld [vmem:[#allocation53_spill] sm:$0xff] }
0x24b8   : > { %v18458_v41 = vmul.f32 0.5, %v18394_v16  ;;  %19818 = vmatprep.mubr.bf16.mxu0 %v18581_v12  ;;  %22454 = vmatpush3.bf16.msra.mxu1 %v23607_v54  ;;  %v18045_v45 = vmul.f32 %v29891_v46, %v29891_v46  ;;  %v29914_v7 = vpop.eup %24197  ;;  %24205 = vtanh.f32 %v18285_v31  ;;  %v30869_v10 = vld [vmem:[#allocation32_spill] sm:$0xff]  ;;  %v30872_v16 = vld [vmem:[#allocation34_spill] sm:$0xff]  ;;  %v23613_v56 = vld [vmem:[%s30460_s16 + $0x650] sm:$0xff]  }
0x24b9   : > { %v18460_v57 = vmul.f32 0.5, %v18396_v61  ;;  %v30871_v58 = vpack.c.bf16 %v30869_v10, %v30870_v11  ;;  %22455 = vmatprep.subr.bf16.mxu1 %v23609_v19  ;;  %v18172_v54 = vmul.f32 0.044715, %v18108_v51  ;;  %v29921_v12 = vadd.f32 %v30872_v16, %v30843_v2  ;;  %v24200_v55 = vpop.eup %24199  ;;  %v30875_v16 = vld [vmem:[#allocation30_spill] sm:$0xff] }
0x24ba   : > { %v29927_v20 = vmul.f32 %v18458_v41, %v29776_v30  ;;  %v18234_v31 = vadd.f32 %v18170_v44, %v29865_v52  ;;  %v18171_v19 = vmul.f32 0.044715, %v18107_v18  ;;  %v18109_v61 = vmul.f32 %v18045_v45, %v29891_v46 }
0x24bb   : > { %19819 = vmatmul.mubr.bf16.vlgmr.msra.gmra.mrb[0].mxu0 %v30871_v58  ;;  %v23612_v58 = vld [vmem:[%s30460_s16 + $0x688] sm:$0xff]   ;;  %v24202_v2 = vpop.eup %24201  ;;  %v29935_v51 = vmul.f32 %v18460_v57, %v29784_v3  ;;  %v18410_v10 = vadd.f32 1.0, %v24200_v55  ;;  %v18236_v11 = vadd.f32 %v18172_v54, %v29871_v33  ;;  %v18058_v30 = vmul.f32 %v29921_v12, %v29921_v12  ;;  %v23615_v3 = vld [vmem:[%s30460_s16 + $0x610] sm:$0xff]  }
0x24bc   : > { %30873 = vst [vmem:[#allocation24_spill] sm:$0xff] %v29927_v20  ;;  %22482 = vmatpush3.bf16.msra.mxu0 %v23608_v14  ;;  %v23614_v14 = vld [vmem:[%s30460_s16 + $0x6d0] sm:$0xff]   ;;  %v18412_v41 = vadd.f32 1.0, %v24202_v2  ;;  %v18298_v44 = vmul.f32 0.7978846, %v18234_v31  ;;  %22456 = vmatpush3.bf16.msra.mxu1 %v23611_v6  ;;  %v18235_v18 = vadd.f32 %v18171_v19, %v29881_v53  ;;  %v29950_v55 = vadd.f32 %v30875_v16, %v30846_v27  ;;  %v23617_v6 = vld [vmem:[%s30460_s16 + $0x658] sm:$0xff]  }
0x24bd   : > { %30874 = vst [vmem:[#allocation26_spill] sm:$0xff] %v29935_v51  ;;  %22483 = vmatprep.subr.bf16.mxu0 %v23610_v40  ;;  %v18173_v45 = vmul.f32 0.044715, %v18109_v61  ;;  %v18474_v40 = vmul.f32 0.5, %v18410_v10  ;;  %v18300_v57 = vmul.f32 0.7978846, %v18236_v11  ;;  %v18122_v54 = vmul.f32 %v18058_v30, %v29921_v12  ;;  %22457 = vmatprep.subr.bf16.mxu1 %v23613_v56 }
0x24be   : > { %v18476_v31 = vmul.f32 0.5, %v18412_v41  ;;  %24207 = vtanh.f32 %v18298_v44  ;;  %v18299_v19 = vmul.f32 0.7978846, %v18235_v18  ;;  %v23616_v2 = vld [vmem:[%s30460_s16 + $0x690] sm:$0xff]   ;;  %v18060_v56 = vmul.f32 %v29950_v55, %v29950_v55  ;;  %v30879_v16 = vld [vmem:[#allocation36_spill] sm:$0xff] }
0x24bf   : > { %v18237_v61 = vadd.f32 %v18173_v45, %v29891_v46  ;;  %v29960_v10 = vmul.f32 %v18474_v40, %v29802_v63  ;;  %24209 = vtanh.f32 %v18300_v57  ;;  %v18186_v27 = vmul.f32 0.044715, %v18122_v54  ;;  %v30877_v41 = vld [vmem:[#allocation33_spill] sm:$0xff]  ;;  %v23619_v63 = vld [vmem:[%s30460_s16 + $0x618] sm:$0xff]   ;;  %v30878_v40 = vld [vmem:[#allocation19_spill] sm:$0xff] }
0x24c0   : > { %22484 = vmatpush3.bf16.msra.mxu0 %v23612_v58  ;;  %v23618_v58 = vld [vmem:[%s30460_s16 + $0x6d8] sm:$0xff]   ;;  %v29968_v11 = vmul.f32 %v18476_v31, %v29815_v36  ;;  %24211 = vtanh.f32 %v18299_v19  ;;  %v29972_v44 = vadd.f32 %v30877_v41, %v30848_v50  ;;  %22458 = vmatpush3.bf16.msra.mxu1 %v23615_v3  ;;  %v29977_v18 = vpop.eup %24203  ;;  %v18124_v36 = vmul.f32 %v18060_v56, %v29950_v55  ;;  %v23621_v50 = vld [vmem:[%s30460_s16 + $0x660] sm:$0xff]  }
0x24c1   : > { %22485 = vmatprep.subr.bf16.mxu0 %v23614_v14  ;;  %v18301_v30 = vmul.f32 0.7978846, %v18237_v61  ;;  %v18250_v45 = vadd.f32 %v18186_v27, %v29921_v12  ;;  %v29985_v57 = vadd.f32 %v30878_v40, %v30850_v62  ;;  %22459 = vmatprep.subr.bf16.mxu1 %v23617_v6  ;;  %v18419_v31 = vadd.f32 1.0, %v30879_v16  ;;  %v23620_v62 = vld [vmem:[%s30460_s16 + $0x698] sm:$0xff]   ;;  %v30880_v40 = vld [vmem:[#allocation20_spill] sm:$0xff] }
0x24c2   : > { %30876 = vst [vmem:[#allocation28_spill] sm:$0xff] %v29968_v11  ;;  %v18059_v54 = vmul.f32 %v29972_v44, %v29972_v44  ;;  %v29998_v19 = vpop.eup %24205  ;;  %v18188_v61 = vmul.f32 0.044715, %v18124_v36  ;;  %v18435_v56 = vadd.f32 1.0, %v29640_v22  ;;  %v18421_v16 = vadd.f32 1.0, %v30880_v40  ;;  %v30881_v40 = vld [vmem:[#allocation48_spill] sm:$0xff] }
0x24c3   : > { %24213 = vtanh.f32 %v18301_v30  ;;  %v18314_v6 = vmul.f32 0.7978846, %v18250_v45  ;;  %v18061_v27 = vmul.f32 %v29985_v57, %v29985_v57  ;;  %v23622_v30 = vld [vmem:[%s30460_s16 + $0x6e0] sm:$0xff]   ;;  %v18483_v41 = vmul.f32 0.5, %v18419_v31  ;;  %v30882_v11 = vld [vmem:[#allocation45_spill] sm:$0xff] }
0x24c4   : > { %22486 = vmatpush3.bf16.msra.mxu0 %v23616_v2  ;;  %v18123_v2 = vmul.f32 %v18059_v54, %v29972_v44  ;;  %v18437_v3 = vadd.f32 1.0, %v29671_v28  ;;  %22460 = vmatpush3.bf16.msra.mxu1 %v23619_v63  ;;  %v23623_v45 = vld [vmem:[%s30460_s16 + $0x620] sm:$0xff]   ;;  %v18252_v22 = vadd.f32 %v18188_v61, %v29950_v55  ;;  %v18499_v36 = vmul.f32 0.5, %v18435_v56  ;;  %v23625_v54 = vld [vmem:[%s30460_s16 + $0x668] sm:$0xff]  }
0x24c5   : > { %22487 = vmatprep.subr.bf16.mxu0 %v23618_v58  ;;  %24215 = vtanh.f32 %v18314_v6  ;;  %v18125_v58 = vmul.f32 %v18061_v27, %v29985_v57  ;;  %22461 = vmatprep.subr.bf16.mxu1 %v23621_v50  ;;  %v18547_v14 = vmul.f32 %v18483_v41, %v30881_v40  ;;  %v18485_v28 = vmul.f32 0.5, %v18421_v16  ;;  %v23624_v6 = vld [vmem:[%s30460_s16 + $0x6a0] sm:$0xff]   ;;  %v23626_v56 = vld [vmem:[%s30460_s16 + $0x6e8] sm:$0xff]   ;;  %v30884_v16 = vld [vmem:[#allocation46_spill] sm:$0xff] }
0x24c6   : > { %v18187_v31 = vmul.f32 0.044715, %v18123_v2  ;;  %v18501_v63 = vmul.f32 0.5, %v18437_v3  ;;  %v18316_v51 = vmul.f32 0.7978846, %v18252_v22  ;;  %v18563_v27 = vmul.f32 %v18499_v36, %v30882_v11  ;;  %v30883_v3 = vld [vmem:[#allocation41_spill] sm:$0xff] }
0x24c7   : > { %v18189_v61 = vmul.f32 0.044715, %v18125_v58  ;;  %v18391_v50 = vadd.f32 1.0, %v29699_v8  ;;  %v18407_v20 = vadd.f32 1.0, %v29744_v32  ;;  %v23628_v32 = vld [vmem:[%s30460_s16 + $0x6a8] sm:$0xff]  }
0x24c8   : > { %22488 = vmatpush3.bf16.msra.mxu0 %v23620_v62  ;;  %v24208_v2 = vpop.eup %24207  ;;  %v18251_v41 = vadd.f32 %v18187_v31, %v29972_v44  ;;  %v18549_v62 = vmul.f32 %v18485_v28, %v30883_v3  ;;  %v18565_v40 = vmul.f32 %v18501_v63, %v30884_v16  ;;  %22462 = vmatpush3.bf16.msra.mxu1 %v23623_v45  ;;  %24217 = vtanh.f32 %v18316_v51  ;;  %v23629_v51 = vld [vmem:[%s30460_s16 + $0x670] sm:$0xff]  }
0x24c9   : > { %22489 = vmatprep.subr.bf16.mxu0 %v23622_v30  ;;  %v24210_v22 = vpop.eup %24209  ;;  %v18426_v58 = vadd.f32 1.0, %v24208_v2  ;;  %v18253_v8 = vadd.f32 %v18189_v61, %v29985_v57  ;;  %v18595_v11 = vpack.c.bf16 %v18563_v27, %v18547_v14  ;;  %22463 = vmatprep.subr.bf16.mxu1 %v23625_v54  ;;  %v23627_v30 = vld [vmem:[%s30460_s16 + $0x628] sm:$0xff]   ;;  %v18455_v63 = vmul.f32 0.5, %v18391_v50  ;;  %v23630_v27 = vld [vmem:[%s30460_s16 + $0x6f0] sm:$0xff]  }
0x24ca   : > { %v30034_v36 = vpop.eup %24211  ;;  %v18428_v31 = vadd.f32 1.0, %v24210_v22  ;;  %v18315_v28 = vmul.f32 0.7978846, %v18251_v41  ;;  %v18597_v3 = vpack.c.bf16 %v18565_v40, %v18549_v62  ;;  %v18471_v54 = vmul.f32 0.5, %v18407_v20  ;;  %v23631_v16 = vld [vmem:[%s30460_s16 + $0x630] sm:$0xff]   ;;  %v23634_v22 = vld [vmem:[%s30460_s16 + $0x6f8] sm:$0xff]  }
0x24cb   : > { %v18490_v14 = vmul.f32 0.5, %v18426_v58  ;;  %v18317_v45 = vmul.f32 0.7978846, %v18253_v8  ;;  %19777 = vmatprep.mubr.bf16.mxu1 %v18595_v11  ;;  %v18393_v61 = vadd.f32 1.0, %v29702_v48  ;;  %v30885_v2 = vpack.c.bf16 %v29649_v1, %v29625_v17 }
0x24cc   : > { %22490 = vmatpush3.bf16.msra.mxu0 %v23624_v6  ;;  %v30048_v50 = vmul.f32 0.5, %v18428_v31  ;;  %24219 = vtanh.f32 %v18315_v28  ;;  %19826 = vmatprep.mubr.bf16.mxu0 %v18597_v3  ;;  %v18409_v41 = vadd.f32 1.0, %v29747_v23  ;;  %v30886_v48 = vpack.c.bf16 %v29658_v15, %v29628_v47  ;;  %v23632_v47 = vld [vmem:[%s30460_s16 + $0x6b0] sm:$0xff]  }
0x24cd   : > { %22491 = vmatprep.subr.bf16.mxu0 %v23626_v56  ;;  %v30046_v6 = vpop.eup %24213  ;;  %19778 = vmatmul.mubr.bf16.gmra.mrb[0].mxu1 %v30885_v2  ;;  %24221 = vtanh.f32 %v18317_v45  ;;  %v18519_v20 = vmul.f32 %v18455_v63, %v29577_v49  ;;  %v18535_v56 = vmul.f32 %v18471_v54, %v29638_v0  ;;  %v18457_v62 = vmul.f32 0.5, %v18393_v61  ;;  %v23633_v49 = vld [vmem:[%s30460_s16 + $0x678] sm:$0xff]  }
0x24ce   : > { %19827 = vmatmul.mubr.bf16.gmra.mrb[8].mxu0 %v30886_v48  ;;  %22464 = vmatpush3.bf16.msra.mxu1 %v23627_v30  ;;  %v30063_v17 = vmul.f32 %v18490_v14, %v29865_v52  ;;  %v18473_v1 = vmul.f32 0.5, %v18409_v41  ;;  %v18423_v0 = vadd.f32 1.0, %v29762_v9  ;;  %v18439_v15 = vadd.f32 1.0, %v29817_v34 }
0x24cf   : > { %22465 = vmatprep.subr.bf16.mxu1 %v23629_v51  ;;  %v24216_v23 = vpop.eup %24215  ;;  %v18583_v40 = vpack.c.bf16 %v18535_v56, %v18519_v20  ;;  %v18521_v52 = vmul.f32 %v18457_v62, %v29582_v24  ;;  %v18425_v58 = vadd.f32 1.0, %v29767_v37  ;;  %v18441_v8 = vadd.f32 1.0, %v29821_v21  ;;  %v23635_v24 = vld [vmem:[%s30460_s16 + $0x638] sm:$0xff]   ;;  %v23637_v21 = vld [vmem:[%s30460_s16 + $0x740] sm:$0xff]  }
0x24d0   : > { %22492 = vmatpush3.bf16.msra.mxu0 %v23628_v32  ;;  %v18442_v11 = vadd.f32 1.0, %v24216_v23  ;;  %v18537_v30 = vmul.f32 %v18473_v1, %v29644_v29  ;;  %v18487_v31 = vmul.f32 0.5, %v18423_v0  ;;  %v18503_v9 = vmul.f32 0.5, %v18439_v15  ;;  %v23636_v29 = vld [vmem:[%s30460_s16 + $0x6b8] sm:$0xff]  }
0x24d1   : > { %22493 = vmatprep.subr.bf16.mxu0 %v23630_v27  ;;  %19867 = vmatprep.mubr.bf16.mxu1 %v18583_v40  ;;  %v18489_v34 = vmul.f32 0.5, %v18425_v58  ;;  %v18505_v28 = vmul.f32 0.5, %v18441_v8  ;;  %v18395_v3 = vadd.f32 1.0, %v29906_v38  ;;  %v18411_v63 = vadd.f32 1.0, %v29977_v18  ;;  %v23638_v38 = vld [vmem:[%s30460_s16 + $0x7c0] sm:$0xff]  }
0x24d2   : > { %22466 = vmatpush3.bf16.msra.mxu1 %v23631_v16  ;;  %v18506_v37 = vmul.f32 0.5, %v18442_v11  ;;  %v18585_v32 = vpack.c.bf16 %v18537_v30, %v18521_v52  ;;  %v18551_v51 = vmul.f32 %v18487_v31, %v29677_v26  ;;  %v18567_v14 = vmul.f32 %v18503_v9, %v29722_v13  ;;  %v24218_v45 = vpop.eup %24217  ;;  %v23642_v52 = vld [vmem:[%s30460_s16 + $0x7c8] sm:$0xff]  }
0x24d3   : > { %22467 = vmatprep.subr.bf16.mxu1 %v23633_v49  ;;  %v18553_v18 = vmul.f32 %v18489_v34, %v29684_v5  ;;  %v18569_v54 = vmul.f32 %v18505_v28, %v29728_v60  ;;  %v18459_v61 = vmul.f32 0.5, %v18395_v3  ;;  %v18475_v27 = vmul.f32 0.5, %v18411_v63  ;;  %v23647_v63 = vld [vmem:[%s30460_s16 + $0x710] sm:$0xff]  }
0x24d4   : > { %22494 = vmatpush3.bf16.msra.mxu0 %v23632_v47  ;;  %v30099_v2 = vmul.f32 %v18506_v37, %v29921_v12  ;;  %v18444_v41 = vadd.f32 1.0, %v24218_v45  ;;  %19916 = vmatprep.mubr.bf16.mxu0 %v18585_v32  ;;  %v18599_v26 = vpack.c.bf16 %v18567_v14, %v18551_v51  ;;  %v18397_v13 = vadd.f32 1.0, %v29914_v7  ;;  %v23639_v12 = vld [vmem:[%s30460_s16 + $0x700] sm:$0xff]   ;;  %v30891_v32 = vld [vmem:[#allocation17_spill] sm:$0xff]  ;;  %v30894_v51 = vld [vmem:[#allocation18_spill] sm:$0xff] }
0x24d5   : > { %22495 = vmatprep.subr.bf16.mxu0 %v23634_v22  ;;  %v18601_v48 = vpack.c.bf16 %v18569_v54, %v18553_v18  ;;  %v18523_v20 = vmul.f32 %v18459_v61, %v29791_v39  ;;  %v18539_v56 = vmul.f32 %v18475_v27, %v29842_v42  ;;  %v18413_v5 = vadd.f32 1.0, %v29998_v19  ;;  %v23640_v39 = vld [vmem:[%s30460_s16 + $0x780] sm:$0xff]   ;;  %v23641_v42 = vld [vmem:[%s30460_s16 + $0x748] sm:$0xff]   ;;  %v23651_v45 = vld [vmem:[%s30460_s16 + $0x718] sm:$0xff]  }
0x24d6   : > { %22468 = vmatpush3.bf16.msra.mxu1 %v23635_v24  ;;  %v24220_v62 = vpop.eup %24219  ;;  %v18602_v60 = vpack.c.bf16 %v30099_v2, %v30063_v17  ;;  %v18508_v16 = vmul.f32 0.5, %v18444_v41  ;;  %v18461_v7 = vmul.f32 0.5, %v18397_v13  ;;  %v18427_v1 = vadd.f32 1.0, %v30034_v36  ;;  %v23646_v24 = vld [vmem:[%s30460_s16 + $0x7d0] sm:$0xff]   ;;  %v23653_v18 = vld [vmem:[%s30460_s16 + $0x760] sm:$0xff]   ;;  %v23657_v41 = vld [vmem:[%s30460_s16 + $0x768] sm:$0xff]  }
0x24d7   : > { %22509 = vmatprep.subr.bf16.mxu1 %v23637_v21  ;;  %v24222_v47 = vpop.eup %24221  ;;  %v18587_v19 = vpack.c.bf16 %v18539_v56, %v18523_v20  ;;  %v18477_v49 = vmul.f32 0.5, %v18413_v5  ;;  %v18443_v0 = vadd.f32 1.0, %v24220_v62  ;;  %v18429_v15 = vadd.f32 1.0, %v30046_v6  ;;  %v30893_v21 = vld [vmem:[#allocation22_spill] sm:$0xff]  ;;  %v23654_v54 = vld [vmem:[%s30460_s16 + $0x7e0] sm:$0xff]   ;;  %v23659_v13 = vld [vmem:[%s30460_s16 + $0x728] sm:$0xff]  }
0x24d8   : > { %22496 = vmatpush3.bf16.msra.mxu0 %v23636_v29  ;;  %v30120_v23 = vmul.f32 %v30048_v50, %v29871_v33  ;;  %v30123_v36 = vmul.f32 %v18508_v16, %v29950_v55  ;;  %v30887_v40 = vpack.c.bf16 %v29733_v35, %v29705_v43  ;;  %v18491_v22 = vmul.f32 0.5, %v18427_v1  ;;  %v30889_v50 = vld [vmem:[#allocation23_spill] sm:$0xff]  ;;  %v23643_v35 = vld [vmem:[%s30460_s16 + $0x708] sm:$0xff]   ;;  %v23650_v29 = vld [vmem:[%s30460_s16 + $0x7d8] sm:$0xff]  }
0x24d9   : > { %22537 = vmatprep.subr.bf16.mxu0 %v23638_v38  ;;  %v18445_v58 = vadd.f32 1.0, %v24222_v47  ;;  %v30888_v6 = vpack.c.bf16 %v29750_v59, %v29709_v4  ;;  %v18525_v33 = vmul.f32 %v18461_v7, %v29798_v25  ;;  %v18541_v55 = vmul.f32 %v18477_v49, %v30889_v50  ;;  %v23644_v4 = vld [vmem:[%s30460_s16 + $0x788] sm:$0xff]   ;;  %v23645_v59 = vld [vmem:[%s30460_s16 + $0x750] sm:$0xff]   ;;  %v23652_v38 = vld [vmem:[%s30460_s16 + $0x798] sm:$0xff]  }
0x24da   : > { %19868 = vmatmul.mubr.bf16.vlgmr.msra.gmra.mrb[8].mxu1 %v30887_v40  ;;  %v18507_v8 = vmul.f32 0.5, %v18443_v0  ;;  %v18493_v11 = vmul.f32 0.5, %v18429_v15  ;;  %v18604_v43 = vpack.c.bf16 %v30123_v36, %v30120_v23  ;;  %v18555_v31 = vmul.f32 %v18491_v22, %v29881_v53  ;;  %v23648_v53 = vld [vmem:[%s30460_s16 + $0x790] sm:$0xff]   ;;  %v23655_v61 = vld [vmem:[%s30460_s16 + $0x720] sm:$0xff]   ;;  %v23665_v16 = vld [vmem:[%s30460_s16 + $0x778] sm:$0xff]  }
0x24db   : > { %19917 = vmatmul.mubr.bf16.vlgmr.msra.gmra.mrb[12].mxu0 %v30888_v6  ;;  %19875 = vmatprep.mubr.bf16.mxu1 %v18599_v26  ;;  %v18509_v30 = vmul.f32 0.5, %v18445_v58  ;;  %v18589_v25 = vpack.c.bf16 %v18541_v55, %v18525_v33  ;;  %v30895_v14 = vpack.c.bf16 %v30893_v21, %v30894_v51  ;;  %v23656_v27 = vld [vmem:[%s30460_s16 + $0x7a0] sm:$0xff]   ;;  %v23658_v26 = vld [vmem:[%s30460_s16 + $0x7e8] sm:$0xff]   ;;  %v23661_v20 = vld [vmem:[%s30460_s16 + $0x770] sm:$0xff]   ;;  %v30901_v0 = vmov 0  }
0x24dc   : > { %19924 = vmatprep.mubr.bf16.mxu0 %v18601_v48  ;;  %22510 = vmatpush3.bf16.msra.mxu1 %v23639_v12  ;;  %v18571_v9 = vmul.f32 %v18507_v8, %v29972_v44  ;;  %v18557_v34 = vmul.f32 %v18493_v11, %v29891_v46  ;;  %v23649_v44 = vld [vmem:[%s30460_s16 + $0x758] sm:$0xff]   ;;  %v30890_v46 = vld [vmem:[#allocation21_spill] sm:$0xff]  ;;  %v23660_v48 = vld [vmem:[%s30460_s16 + $0x7a8] sm:$0xff]  }
0x24dd   : > { %22538 = vmatpush3.bf16.msra.mxu0 %v23640_v39  ;;  %22511 = vmatprep.subr.bf16.mxu1 %v23641_v42  ;;  %v18573_v28 = vmul.f32 %v18509_v30, %v29985_v57  ;;  %v30892_v57 = vpack.c.bf16 %v30890_v46, %v30891_v32  ;;  %v23662_v56 = vld [vmem:[%s30460_s16 + $0x7f0] sm:$0xff]   ;;  %v23666_v12 = vld [vmem:[%s30460_s16 + $0x7f8] sm:$0xff]   ;;  %v30896_v47 = vld [vmem:[#allocation24_spill] sm:$0xff] }
0x24de   : > { %22539 = vmatprep.subr.bf16.mxu0 %v23642_v52  ;;  %v18603_v3 = vpack.c.bf16 %v18571_v9, %v18555_v31  ;;  %v23663_v5 = vld [vmem:[%s30460_s16 + $0x730] sm:$0xff]   ;;  %v23667_v7 = vld [vmem:[%s30460_s16 + $0x738] sm:$0xff]   ;;  %v30897_v39 = vpack.c.bf16 %v29960_v10, %v30896_v47  ;;  %v30898_v42 = vld [vmem:[#allocation28_spill] sm:$0xff] }
0x24df   : > { %v18605_v37 = vpack.c.bf16 %v18573_v28, %v18557_v34  ;;  %v23664_v62 = vld [vmem:[%s30460_s16 + $0x7b0] sm:$0xff]   ;;  %v23668_v1 = vld [vmem:[%s30460_s16 + $0x7b8] sm:$0xff]   ;;  %v21622_v40 = vld [vmem:[%s30461_s17 + $0x1] ss:$0 sm:$0xff] }
0x24e0   : > { %22512 = vmatpush3.bf16.msra.mxu1 %v23643_v35 }
0x24e1   : > { %22540 = vmatpush3.bf16.msra.mxu0 %v23644_v4  ;;  %22513 = vmatprep.subr.bf16.mxu1 %v23645_v59 }
0x24e2   : > { %19876 = vmatmul.mubr.bf16.gmra.mrb[12].mxu1 %v30892_v57  ;;  %22541 = vmatprep.subr.bf16.mxu0 %v23646_v24 }
0x24e3   : > { %19925 = vmatmul.mubr.bf16.gmra.mrb[4].mxu0 %v30895_v14  ;;  %19965 = vmatprep.mubr.bf16.mxu1 %v18587_v19  ;;  %v30899_v19 = vld [vmem:[#allocation26_spill] sm:$0xff] }
0x24e4   : > { %22514 = vmatpush3.bf16.msra.mxu1 %v23647_v63  ;;  %20014 = vmatprep.mubr.bf16.mxu0 %v18589_v25  ;;  %v30900_v49 = vpack.c.bf16 %v30898_v42, %v30899_v19 }
0x24e5   : > { %22542 = vmatpush3.bf16.msra.mxu0 %v23648_v53  ;;  %22515 = vmatprep.subr.bf16.mxu1 %v23649_v44 }
0x24e6   : > { %22543 = vmatprep.subr.bf16.mxu0 %v23650_v29 }
0x24e8   : > { %22516 = vmatpush3.bf16.msra.mxu1 %v23651_v45 }
0x24e9   : > { %22544 = vmatpush3.bf16.msra.mxu0 %v23652_v38  ;;  %22517 = vmatprep.subr.bf16.mxu1 %v23653_v18 }
0x24ea   : > { %22545 = vmatprep.subr.bf16.mxu0 %v23654_v54 }
0x24ec   : > { %22518 = vmatpush3.bf16.msra.mxu1 %v23655_v61 }
0x24ed   : > { %22546 = vmatpush3.bf16.msra.mxu0 %v23656_v27  ;;  %22519 = vmatprep.subr.bf16.mxu1 %v23657_v41 }
0x24ee   : > { %22547 = vmatprep.subr.bf16.mxu0 %v23658_v26 }
0x24f0   : > { %22520 = vmatpush3.bf16.msra.mxu1 %v23659_v13 }
0x24f1   : > { %22548 = vmatpush3.bf16.msra.mxu0 %v23660_v48  ;;  %22521 = vmatprep.subr.bf16.mxu1 %v23661_v20 }
0x24f2   : > { %22549 = vmatprep.subr.bf16.mxu0 %v23662_v56 }
0x24f4   : > { %22522 = vmatpush3.bf16.msra.mxu1 %v23663_v5 }
0x24f5   : > { %22550 = vmatpush3.bf16.msra.mxu0 %v23664_v62  ;;  %22523 = vmatprep.subr.bf16.mxu1 %v23665_v16 }
0x24f6   : > { %22551 = vmatprep.subr.bf16.mxu0 %v23666_v12 }
0x24f8   : > { %22524 = vmatpush3.bf16.msra.mxu1 %v23667_v7 }
0x24f9   : > { %22552 = vmatpush3.bf16.msra.mxu0 %v23668_v1 }
0x24fb   : > { %19966 = vmatmul.mubr.bf16.vlgmr.msra.gmra.mrb[4].mxu1 %v30897_v39 }
0x24fc   : > { %20015 = vmatmul.mubr.bf16.vlgmr.msra.gmra.mrb[16].mxu0 %v30900_v49  ;;  %19973 = vmatprep.mubr.bf16.mxu1 %v18603_v3 }
0x24fd   : > { %20022 = vmatprep.mubr.bf16.mxu0 %v18605_v37 }
0x2503   : > { %19974 = vmatmul.mubr.bf16.gmra.mrb[16].mxu1 %v18602_v60 }
0x2504   : > { %20023 = vmatmul.mubr.bf16.gmra.mrb[20].mxu0 %v18604_v43  ;;  %20556 = vmatprep.mubr.bf16.mxu1 %v30901_v0  ;;  %v22357_v10 = vpop.f32.mrb[244].mxu1 }
0x2505   : > { %20597 = vmatprep.mubr.bf16.mxu0 %v30901_v0  ;;  %v22385_v15 = vpop.f32.mrb[248].mxu0  ;;  %v22358_v52 = vpop.f32.mrb[245].mxu1 }
0x2506   : > { %v22359_v22 = vadd.f32 %v22358_v52, %v22357_v10  ;;  %v22386_v58 = vpop.f32.mrb[249].mxu0  ;;  %v22360_v6 = vpop.f32.mrb[246].mxu1 }
0x2507   : > { %v22387_v17 = vadd.f32 %v22386_v58, %v22385_v15  ;;  %v22388_v2 = vpop.f32.mrb[250].mxu0  ;;  %v22361_v60 = vpop.f32.mrb[247].mxu1 }
0x2508   : > { %v19674_v33 = vadd.f32 %v22359_v22, %v21622_v40  ;;  %v22362_v23 = vadd.f32 %v22361_v60, %v22360_v6  ;;  %v22389_v36 = vpop.f32.mrb[251].mxu0 }
0x2509   : > { %v22390_v50 = vadd.f32 %v22389_v36, %v22388_v2 }
0x250a   : > { %v19723_v55 = vadd.f32 %v22387_v17, %v19674_v33  ;;  %v19677_v8 = vadd.f32 %v22362_v23, %v21622_v40 }
0x250c   : > { %v19726_v11 = vadd.f32 %v22390_v50, %v19677_v8 }
0x2577   : > { %v22363_v43 = vpop.f32.mrb[248].mxu1 }
0x2578   : > { %v22364_v35 = vpop.f32.mrb[249].mxu1 }
0x2579   : > { %v22365_v4 = vadd.f32 %v22364_v35, %v22363_v43  ;;  %v22366_v59 = vpop.f32.mrb[250].mxu1 }
0x257a   : > { %v22391_v30 = vpop.f32.mrb[252].mxu0  ;;  %v22367_v31 = vpop.f32.mrb[251].mxu1 }
0x257b   : > { %v22392_v25 = vpop.f32.mrb[253].mxu0  ;;  %v19682_v9 = vadd.f32 %v22365_v4, %v21622_v40  ;;  %v22368_v28 = vadd.f32 %v22367_v31, %v22366_v59 }
0x257c   : > { %v22393_v24 = vadd.f32 %v22392_v25, %v22391_v30  ;;  %v22394_v34 = vpop.f32.mrb[254].mxu0 }
0x257d   : > { %v22395_v3 = vpop.f32.mrb[255].mxu0  ;;  %v19685_v37 = vadd.f32 %v22368_v28, %v21622_v40 }
0x257e   : > { %v19731_v63 = vadd.f32 %v22393_v24, %v19682_v9  ;;  %v22396_v53 = vadd.f32 %v22395_v3, %v22394_v34 }
0x2580   : > { %v19734_v44 = vadd.f32 %v22396_v53, %v19685_v37 }
0x258a   : > { %v22413_v46 = vpop.f32.mrb[252].mxu1 }
0x258b   : > { %v22414_v32 = vpop.f32.mrb[253].mxu1 }
0x258c   : > { %v22415_v29 = vadd.f32 %v22414_v32, %v22413_v46  ;;  %v22416_v21 = vpop.f32.mrb[254].mxu1 }
0x258d   : > { %v22417_v14 = vpop.f32.mrb[255].mxu1 }
0x258e   : > { %v22441_v57 = vpop.f32.mrb[0].mxu0  ;;  %v19772_v45 = vadd.f32 %v22415_v29, %v19723_v55  ;;  %v22418_v54 = vadd.f32 %v22417_v14, %v22416_v21 }
0x258f   : > { %v22442_v51 = vpop.f32.mrb[1].mxu0 }
0x2590   : > { %v22443_v38 = vadd.f32 %v22442_v51, %v22441_v57  ;;  %v22444_v18 = vpop.f32.mrb[2].mxu0  ;;  %v19775_v41 = vadd.f32 %v22418_v54, %v19726_v11 }
0x2591   : > { %v22445_v61 = vpop.f32.mrb[3].mxu0 }
0x2592   : > { %v19821_v27 = vadd.f32 %v22443_v38, %v19772_v45  ;;  %v22446_v26 = vadd.f32 %v22445_v61, %v22444_v18 }
0x2594   : > { %v19824_v13 = vadd.f32 %v22446_v26, %v19775_v41 }
0x25a0   : > { %v22419_v48 = vpop.f32.mrb[0].mxu1 }
0x25a1   : > { %v22447_v20 = vpop.f32.mrb[8].mxu0  ;;  %v22420_v56 = vpop.f32.mrb[1].mxu1 }
0x25a2   : > { %v22421_v5 = vadd.f32 %v22420_v56, %v22419_v48  ;;  %v22448_v62 = vpop.f32.mrb[9].mxu0  ;;  %v22422_v16 = vpop.f32.mrb[2].mxu1 }
0x25a3   : > { %v22449_v12 = vadd.f32 %v22448_v62, %v22447_v20  ;;  %v22450_v7 = vpop.f32.mrb[10].mxu0  ;;  %v22423_v1 = vpop.f32.mrb[3].mxu1 }
0x25a4   : > { %v19780_v47 = vadd.f32 %v22421_v5, %v19731_v63  ;;  %v22424_v39 = vadd.f32 %v22423_v1, %v22422_v16  ;;  %v22451_v42 = vpop.f32.mrb[11].mxu0  ;;  %v30902_v16 = vld [vmem:[#allocation38_spill] sm:$0xff] }
0x25a5   : > { %v22452_v19 = vadd.f32 %v22451_v42, %v22450_v7  ;;  %v30903_v42 = vld [vmem:[#allocation40_spill] sm:$0xff] }
0x25a6   : > { %v19829_v49 = vadd.f32 %v22449_v12, %v19780_v47  ;;  %v19783_v10 = vadd.f32 %v22424_v39, %v19734_v44 }
0x25a8   : > { %v19832_v15 = vadd.f32 %v22452_v19, %v19783_v10 }
0x25ad   : > { %v22469_v40 = vpop.f32.mrb[8].mxu1 }
0x25ae   : > { %v22497_v52 = vpop.f32.mrb[12].mxu0  ;;  %v22470_v22 = vpop.f32.mrb[9].mxu1 }
0x25af   : > { %v22471_v58 = vadd.f32 %v22470_v22, %v22469_v40  ;;  %v22498_v6 = vpop.f32.mrb[13].mxu0  ;;  %v22472_v17 = vpop.f32.mrb[10].mxu1 }
0x25b0   : > { %v22499_v2 = vadd.f32 %v22498_v6, %v22497_v52  ;;  %v22500_v60 = vpop.f32.mrb[14].mxu0  ;;  %v22473_v33 = vpop.f32.mrb[11].mxu1 }
0x25b1   : > { %v19870_v23 = vadd.f32 %v22471_v58, %v19821_v27  ;;  %v22474_v36 = vadd.f32 %v22473_v33, %v22472_v17  ;;  %v22501_v50 = vpop.f32.mrb[15].mxu0 }
0x25b2   : > { %v22502_v55 = vadd.f32 %v22501_v50, %v22500_v60 }
0x25b3   : > { %v19919_v8 = vadd.f32 %v22499_v2, %v19870_v23  ;;  %v19873_v11 = vadd.f32 %v22474_v36, %v19824_v13  ;;  %v30905_v2 = vld [vmem:[#allocation39_spill] sm:$0xff] }
0x25b5   : > { %v19922_v43 = vadd.f32 %v22502_v55, %v19873_v11  ;;  %v22475_v35 = vpop.f32.mrb[12].mxu1 }
0x25b6   : > { %v22503_v30 = vpop.f32.mrb[4].mxu0  ;;  %v22476_v4 = vpop.f32.mrb[13].mxu1 }
0x25b7   : > { %v22477_v59 = vadd.f32 %v22476_v4, %v22475_v35  ;;  %v22504_v25 = vpop.f32.mrb[5].mxu0  ;;  %v22478_v31 = vpop.f32.mrb[14].mxu1  ;;  %v30906_v35 = vld [vmem:[#allocation54_spill] sm:$0xff] }
0x25b8   : > { %v22505_v9 = vadd.f32 %v22504_v25, %v22503_v30  ;;  %v22506_v24 = vpop.f32.mrb[6].mxu0  ;;  %v22479_v34 = vpop.f32.mrb[15].mxu1 }
0x25b9   : > { %v19878_v28 = vadd.f32 %v22477_v59, %v19829_v49  ;;  %v22480_v3 = vadd.f32 %v22479_v34, %v22478_v31  ;;  %v22507_v63 = vpop.f32.mrb[7].mxu0  ;;  %v30904_v49 = vld [vmem:[#allocation37_spill] sm:$0xff]  ;;  %v30907_v59 = vld [vmem:[#allocation56_spill] sm:$0xff] }
0x25ba   : > { %v22508_v37 = vadd.f32 %v22507_v63, %v22506_v24  ;;  %v30908_v31 = vld [vmem:[#allocation57_spill] sm:$0xff]  ;;  %v30909_v34 = vld [vmem:[#allocation60_spill] sm:$0xff] }
0x25bb   : > { %v19927_v53 = vadd.f32 %v22505_v9, %v19878_v28  ;;  %v19881_v44 = vadd.f32 %v22480_v3, %v19832_v15 }
0x25bd   : > { %v19930_v46 = vadd.f32 %v22508_v37, %v19881_v44 }
0x25ce   : > { %v22525_v32 = vpop.f32.mrb[4].mxu1 }
0x25cf   : > { %v22553_v57 = vpop.f32.mrb[16].mxu0  ;;  %v22526_v29 = vpop.f32.mrb[5].mxu1 }
0x25d0   : > { %v22527_v21 = vadd.f32 %v22526_v29, %v22525_v32  ;;  %v22554_v51 = vpop.f32.mrb[17].mxu0  ;;  %v22528_v14 = vpop.f32.mrb[6].mxu1  ;;  %v30910_v32 = vld [vmem:[#allocation15_spill] sm:$0xff]  ;;  %v30911_v29 = vld [vmem:[#allocation16_spill] sm:$0xff] }
0x25d1   : > { %v22555_v45 = vadd.f32 %v22554_v51, %v22553_v57  ;;  %v22556_v38 = vpop.f32.mrb[18].mxu0  ;;  %v22529_v18 = vpop.f32.mrb[7].mxu1 }
0x25d2   : > { %v19968_v54 = vadd.f32 %v22527_v21, %v19919_v8  ;;  %v22530_v61 = vadd.f32 %v22529_v18, %v22528_v14  ;;  %v22557_v27 = vpop.f32.mrb[19].mxu0 }
0x25d3   : > { %v22558_v41 = vadd.f32 %v22557_v27, %v22556_v38 }
0x25d4   : > { %v20017_v26 = vadd.f32 %v22555_v45, %v19968_v54  ;;  %v19971_v13 = vadd.f32 %v22530_v61, %v19922_v43 }
0x25d6   : > { %v20035_v48 = vcombine.high %v20017_v26, %v20017_v26  ;;  %v20020_v20 = vadd.f32 %v22558_v41, %v19971_v13  ;;  %v22531_v56 = vpop.f32.mrb[16].mxu1  ;;  %v20043_v12 = vadd.f32 %v20017_v26, %v30902_v16 }
0x25d7   : > { %v22559_v5 = vpop.f32.mrb[20].mxu0  ;;  %v22532_v62 = vpop.f32.mrb[17].mxu1 }
0x25d8   : > { %v20036_v7 = vcombine.high %v20020_v20, %v20020_v20  ;;  %v22533_v1 = vadd.f32 %v22532_v62, %v22531_v56  ;;  %v22560_v47 = vpop.f32.mrb[21].mxu0  ;;  %v22534_v39 = vpop.f32.mrb[18].mxu1  ;;  %v20044_v19 = vadd.f32 %v20035_v48, %v30903_v42  ;;  %v20045_v10 = vadd.f32 %v20020_v20, %v30904_v49 }
0x25d9   : > { %v22561_v15 = vadd.f32 %v22560_v47, %v22559_v5  ;;  %v22562_v40 = vpop.f32.mrb[22].mxu0  ;;  %v22535_v52 = vpop.f32.mrb[19].mxu1 }
0x25da   : > { %v19976_v22 = vadd.f32 %v22533_v1, %v19927_v53  ;;  %v22536_v58 = vadd.f32 %v22535_v52, %v22534_v39  ;;  %v22563_v6 = vpop.f32.mrb[23].mxu0  ;;  %v20063_v17 = vcombine.low %v20043_v12, %v20044_v19  ;;  %v20046_v60 = vadd.f32 %v20036_v7, %v30905_v2 }
0x25db   : > { %v22564_v33 = vadd.f32 %v22563_v6, %v22562_v40 }
0x25dc   : > { %v20025_v23 = vadd.f32 %v22561_v15, %v19976_v22  ;;  %v19979_v36 = vadd.f32 %v22536_v58, %v19930_v46  ;;  %v20071_v50 = vsel %vm2295_vm13, %v20063_v17, 0.0  ;;  %v20064_v55 = vcombine.low %v20045_v10, %v20046_v60 }
0x25dd   : > { %20072 = vadd.xlane.f32.xlu0 %v20071_v50  ;;  %v23674_v50 = vld [vmem:[%s30464_s20 + $0xc] ss:$24 sps:$4 sm:$0xff]  }
0x25de   : > { %v20037_v8 = vcombine.high %v20025_v23, %v20025_v23  ;;  %v20028_v11 = vadd.f32 %v22564_v33, %v19979_v36  ;;  %v20074_v43 = vsel %vm2295_vm13, %v20064_v55, 0.0  ;;  %v20047_v30 = vadd.f32 %v20025_v23, %v30906_v35  ;;  %v23669_v33 = vld [vmem:[%s30464_s20] ss:$24 sps:$4 sm:$0xff]   ;;  %v23671_v23 = vld [vmem:[%s30464_s20 + $0x4] ss:$24 sps:$4 sm:$0xff]   ;;  %20565 = vmatprep.subr.bf16.mxu0 %v23674_v50 }
0x25df   : > { %20075 = vadd.xlane.f32.xlu1 %v20074_v43  ;;  %v23672_v36 = vld [vmem:[%s30464_s20 + $0x8] ss:$24 sps:$4 sm:$0xff]   ;;  %v23677_v55 = vld [vmem:[%s30464_s20 + $0x34] ss:$24 sps:$4 sm:$0xff]   ;;  %20524 = vmatprep.subr.bf16.mxu1 %v23671_v23  ;;  %v23678_v43 = vld [vmem:[%s30464_s20 + $0x38] ss:$24 sps:$4 sm:$0xff]  }
0x25e0   : > { %v20038_v4 = vcombine.high %v20028_v11, %v20028_v11  ;;  %v20048_v25 = vadd.f32 %v20037_v8, %v30907_v59  ;;  %v20049_v9 = vadd.f32 %v20028_v11, %v30908_v31  ;;  %v23680_v8 = vld [vmem:[%s30464_s20 + $0x3c] ss:$24 sps:$4 sm:$0xff]   ;;  %20525 = vmatpush1.bf16.msra.mxu1 %v23669_v33  ;;  %v23675_v11 = vld [vmem:[%s30464_s20 + $0x30] ss:$24 sps:$4 sm:$0xff]   ;;  %20566 = vmatpush1.bf16.msra.mxu0 %v23672_v36 }
0x25e1   : > { %20526 = vmatprep.subr.bf16.mxu1 %v23677_v55  ;;  %v23683_v35 = vld [vmem:[%s30464_s20 + $0x14] ss:$24 sps:$4 sm:$0xff]   ;;  %20567 = vmatprep.subr.bf16.mxu0 %v23680_v8 }
0x25e2   : > { %v20065_v24 = vcombine.low %v20047_v30, %v20048_v25  ;;  %v20050_v28 = vadd.f32 %v20038_v4, %v30909_v34 }
0x25e4   : > { %v20077_v3 = vsel %vm2295_vm13, %v20065_v24, 0.0  ;;  %v20066_v63 = vcombine.low %v20049_v9, %v20050_v28  ;;  %20527 = vmatpush1.bf16.msra.mxu1 %v23675_v11  ;;  %20568 = vmatpush1.bf16.msra.mxu0 %v23678_v43 }
0x25e5   : > { %20078 = vadd.xlane.f32.xlu0 %v20077_v3  ;;  %20606 = vmatprep.subr.bf16.mxu1 %v23683_v35 }
0x25e6   : > { %v20080_v37 = vsel %vm2295_vm13, %v20066_v63, 0.0 }
0x25e7   : > { %20081 = vadd.xlane.f32.xlu1 %v20080_v37  ;;  %v21753_v37 = vld [vmem:[%s30462_s18 + $0x1] ss:$0 sm:$0xff] }
0x266a   : > { %v20073_v53 = vpop.xlane.xlu0 %20072 }
0x266b   : > { %v20083_v44 = vmul.f32 0.03125, %v20073_v53 }
0x266c   : > { %v20076_v46 = vpop.xlane.xlu1 %20075 }
0x266d   : > { %v20097_v57 = vrot.slane %v20083_v44, %v30910_v32  ;;  %v20104_v21 = vrot.slane %v20083_v44, %v30911_v29  ;;  %v20084_v51 = vmul.f32 0.03125, %v20076_v46  ;;  %v30332_v46 = vld [vmem:[%s30463_s19 + $0x1] ss:$0 sm:$0xff] }
0x266f   : > { %v30257_v14 = vsub.f32 %v20043_v12, %v20097_v57  ;;  %v30259_v45 = vsub.f32 %v20044_v19, %v20104_v21  ;;  %v20111_v38 = vrot.slane %v20084_v51, %v30910_v32  ;;  %v20118_v18 = vrot.slane %v20084_v51, %v30911_v29 }
0x2670   : > { %v20293_v57 = vcombine.high %v21753_v37, %v21753_v37 }
0x2671   : > { %v30263_v54 = vsub.f32 %v20045_v10, %v20111_v38  ;;  %v30265_v61 = vsub.f32 %v20046_v60, %v20118_v18  ;;  %v20163_v27 = vmul.f32 %v30257_v14, %v30257_v14  ;;  %v20164_v41 = vmul.f32 %v30259_v45, %v30259_v45 }
0x2672   : > { %v20079_v26 = vpop.xlane.xlu0 %20078  ;;  %v20309_v18 = vcombine.high %v30332_v46, %v30332_v46 }
0x2673   : > { %v20085_v13 = vmul.f32 0.03125, %v20079_v26  ;;  %v20179_v48 = vcombine.low %v20163_v27, %v20164_v41  ;;  %v20165_v20 = vmul.f32 %v30263_v54, %v30263_v54  ;;  %v20166_v56 = vmul.f32 %v30265_v61, %v30265_v61 }
0x2674   : > { %v20082_v5 = vpop.xlane.xlu1 %20081 }
0x2675   : > { %v20125_v62 = vrot.slane %v20085_v13, %v30910_v32  ;;  %v20132_v16 = vrot.slane %v20085_v13, %v30911_v29  ;;  %v20086_v12 = vmul.f32 0.03125, %v20082_v5  ;;  %v20187_v7 = vsel %vm2295_vm13, %v20179_v48, 0.0 }
0x2676   : > { %20188 = vadd.xlane.f32.xlu0 %v20187_v7  ;;  %v20180_v1 = vcombine.low %v20165_v20, %v20166_v56 }
0x2677   : > { %v30278_v47 = vsub.f32 %v20047_v30, %v20125_v62  ;;  %v30280_v39 = vsub.f32 %v20048_v25, %v20132_v16  ;;  %v20139_v42 = vrot.slane %v20086_v12, %v30910_v32  ;;  %v20146_v19 = vrot.slane %v20086_v12, %v30911_v29 }
0x2678   : > { %v20190_v49 = vsel %vm2295_vm13, %v20180_v1, 0.0 }
0x2679   : > { %v30285_v10 = vsub.f32 %v20049_v9, %v20139_v42  ;;  %v30287_v15 = vsub.f32 %v20050_v28, %v20146_v19  ;;  %20191 = vadd.xlane.f32.xlu1 %v20190_v49  ;;  %v20167_v40 = vmul.f32 %v30278_v47, %v30278_v47  ;;  %v20168_v52 = vmul.f32 %v30280_v39, %v30280_v39 }
0x267b   : > { %v20181_v22 = vcombine.low %v20167_v40, %v20168_v52  ;;  %v20169_v58 = vmul.f32 %v30285_v10, %v30285_v10  ;;  %v20170_v6 = vmul.f32 %v30287_v15, %v30287_v15 }
0x267d   : > { %v20193_v17 = vsel %vm2295_vm13, %v20181_v22, 0.0  ;;  %v20182_v2 = vcombine.low %v20169_v58, %v20170_v6 }
0x267e   : > { %20194 = vadd.xlane.f32.xlu0 %v20193_v17 }
0x267f   : > { %v20196_v60 = vsel %vm2295_vm13, %v20182_v2, 0.0 }
0x2680   : > { %20197 = vadd.xlane.f32.xlu1 %v20196_v60 }
0x2703   : > { %v20189_v30 = vpop.xlane.xlu0 %20188 }
0x2704   : > { %v20199_v4 = vmul.f32 0.03125, %v20189_v30 }
0x2706   : > { %v20203_v59 = vadd.f32 1e-05, %v20199_v4  ;;  %v20192_v25 = vpop.xlane.xlu1 %20191 }
0x2707   : > { %v20200_v31 = vmul.f32 0.03125, %v20192_v25 }
0x2708   : > { %24223 = vrsqrt.f32 %v20203_v59 }
0x2709   : > { %v20204_v9 = vadd.f32 1e-05, %v20200_v31 }
0x270b   : > { %24225 = vrsqrt.f32 %v20204_v9  ;;  %v20195_v24 = vpop.xlane.xlu0 %20194 }
0x270c   : > { %v20201_v34 = vmul.f32 0.03125, %v20195_v24 }
0x270d   : > { %v20198_v28 = vpop.xlane.xlu1 %20197 }
0x270e   : > { %v20205_v3 = vadd.f32 1e-05, %v20201_v34  ;;  %v20202_v63 = vmul.f32 0.03125, %v20198_v28 }
0x2710   : > { %24227 = vrsqrt.f32 %v20205_v3  ;;  %v20206_v53 = vadd.f32 1e-05, %v20202_v63 }
0x2712   : > { %v24224_v44 = vpop.eup %24223  ;;  %24229 = vrsqrt.f32 %v20206_v53 }
0x2713   : > { %v20221_v21 = vrot.slane %v24224_v44, %v30910_v32  ;;  %v20228_v51 = vrot.slane %v24224_v44, %v30911_v29 }
0x2715   : > { %v24226_v38 = vpop.eup %24225  ;;  %v20279_v27 = vmul.f32 %v20221_v21, %v30257_v14  ;;  %v20280_v41 = vmul.f32 %v20228_v51, %v30259_v45 }
0x2716   : > { %v20235_v26 = vrot.slane %v24226_v38, %v30910_v32  ;;  %v20242_v13 = vrot.slane %v24226_v38, %v30911_v29 }
0x2717   : > { %v20295_v48 = vmul.f32 %v21753_v37, %v20279_v27  ;;  %v20296_v20 = vmul.f32 %v20293_v57, %v20280_v41 }
0x2718   : > { %v20281_v56 = vmul.f32 %v20235_v26, %v30263_v54  ;;  %v20282_v5 = vmul.f32 %v20242_v13, %v30265_v61 }
0x2719   : > { %v20311_v62 = vadd.f32 %v30332_v46, %v20295_v48  ;;  %v20312_v16 = vadd.f32 %v20309_v18, %v20296_v20 }
0x271a   : > { %v24228_v12 = vpop.eup %24227  ;;  %v20297_v7 = vmul.f32 %v21753_v37, %v20281_v56  ;;  %v20298_v1 = vmul.f32 %v20293_v57, %v20282_v5 }
0x271b   : > { %v20320_v14 = vsel %vm20319_vm9, %v20311_v62, 0.0  ;;  %v20327_v45 = vsel %vm20319_vm9, %v20312_v16, 0.0  ;;  %v20249_v42 = vrot.slane %v24228_v12, %v30910_v32  ;;  %v20256_v19 = vrot.slane %v24228_v12, %v30911_v29 }
0x271c   : > { %v24230_v49 = vpop.eup %24229  ;;  %v20321_v40 = vrot.slane %v20320_v14, 4  ;;  %v20328_v52 = vrot.slane %v20327_v45, 4  ;;  %v20313_v54 = vadd.f32 %v30332_v46, %v20297_v7  ;;  %v20314_v61 = vadd.f32 %v20309_v18, %v20298_v1 }
0x271d   : > { %v20283_v22 = vmul.f32 %v20249_v42, %v30278_v47  ;;  %v20284_v58 = vmul.f32 %v20256_v19, %v30280_v39  ;;  %v20263_v6 = vrot.slane %v24230_v49, %v30910_v32  ;;  %v20270_v17 = vrot.slane %v24230_v49, %v30911_v29 }
0x271e   : > { %v20322_v2 = vadd.f32 %v20321_v40, %v20320_v14  ;;  %v20329_v60 = vadd.f32 %v20328_v52, %v20327_v45  ;;  %v20334_v33 = vsel %vm20319_vm9, %v20313_v54, 0.0  ;;  %v20341_v23 = vsel %vm20319_vm9, %v20314_v61, 0.0 }
0x271f   : > { %v20335_v36 = vrot.slane %v20334_v33, 4  ;;  %v20342_v50 = vrot.slane %v20341_v23, 4  ;;  %v20299_v55 = vmul.f32 %v21753_v37, %v20283_v22  ;;  %v20300_v8 = vmul.f32 %v20293_v57, %v20284_v58 }
0x2720   : > { %v20323_v11 = vrot.slane %v20322_v2, 2  ;;  %v20330_v43 = vrot.slane %v20329_v60, 2  ;;  %v20285_v47 = vmul.f32 %v20263_v6, %v30285_v10  ;;  %v20286_v39 = vmul.f32 %v20270_v17, %v30287_v15 }
0x2721   : > { %v20336_v35 = vadd.f32 %v20335_v36, %v20334_v33  ;;  %v20343_v32 = vadd.f32 %v20342_v50, %v20341_v23  ;;  %v20315_v29 = vadd.f32 %v30332_v46, %v20299_v55  ;;  %v20316_v30 = vadd.f32 %v20309_v18, %v20300_v8 }
0x2722   : > { %v20324_v4 = vadd.f32 %v20323_v11, %v20322_v2  ;;  %v20331_v59 = vadd.f32 %v20330_v43, %v20329_v60  ;;  %v20301_v25 = vmul.f32 %v21753_v37, %v20285_v47  ;;  %v20302_v31 = vmul.f32 %v20293_v57, %v20286_v39 }
0x2723   : > { %v20337_v9 = vrot.slane %v20336_v35, 2  ;;  %v20344_v24 = vrot.slane %v20343_v32, 2  ;;  %v20348_v34 = vsel %vm20319_vm9, %v20315_v29, 0.0  ;;  %v20355_v28 = vsel %vm20319_vm9, %v20316_v30, 0.0 }
0x2724   : > { %v20325_v3 = vrot.slane %v20324_v4, 1  ;;  %v20332_v63 = vrot.slane %v20331_v59, 1  ;;  %v20349_v10 = vrot.slane %v20348_v34, 4  ;;  %v20356_v53 = vrot.slane %v20355_v28, 4 }
0x2725   : > { %v20338_v15 = vadd.f32 %v20337_v9, %v20336_v35  ;;  %v20345_v44 = vadd.f32 %v20344_v24, %v20343_v32  ;;  %v20317_v21 = vadd.f32 %v30332_v46, %v20301_v25  ;;  %v20318_v51 = vadd.f32 %v20309_v18, %v20302_v31 }
0x2726   : > { %v20326_v38 = vadd.f32 %v20325_v3, %v20324_v4  ;;  %v20333_v27 = vadd.f32 %v20332_v63, %v20331_v59  ;;  %v20350_v41 = vadd.f32 %v20349_v10, %v20348_v34  ;;  %v20357_v37 = vadd.f32 %v20356_v53, %v20355_v28 }
0x2727   : > { %v20339_v57 = vrot.slane %v20338_v15, 1  ;;  %v20346_v26 = vrot.slane %v20345_v44, 1  ;;  %v20362_v13 = vsel %vm20319_vm9, %v20317_v21, 0.0  ;;  %v20369_v48 = vsel %vm20319_vm9, %v20318_v51, 0.0  ;;  %v23681_v21 = vld [vmem:[%s30464_s20 + $0x10] ss:$24 sps:$4 sm:$0xff]  }
0x2728   : > { %v20377_v20 = vmul.f32 0.25, %v20326_v38  ;;  %v20378_v56 = vmul.f32 0.25, %v20333_v27  ;;  %v20351_v5 = vrot.slane %v20350_v41, 2  ;;  %v20358_v62 = vrot.slane %v20357_v37, 2  ;;  %v23686_v38 = vld [vmem:[%s30464_s20 + $0x44] ss:$24 sps:$4 sm:$0xff]  }
0x2729   : > { %v20340_v16 = vadd.f32 %v20339_v57, %v20338_v15  ;;  %v20347_v12 = vadd.f32 %v20346_v26, %v20345_v44  ;;  %v20363_v7 = vrot.slane %v20362_v13, 4  ;;  %v20370_v1 = vrot.slane %v20369_v48, 4  ;;  %v23684_v27 = vld [vmem:[%s30464_s20 + $0x40] ss:$24 sps:$4 sm:$0xff]   ;;  %v30913_v26 = vld [vmem:[#allocation12_spill] sm:$0xff] }
0x272a   : > { %v20385_v46 = vpack.c.bf16 %v20377_v20, %v20377_v20  ;;  %v20386_v18 = vpack.c.bf16 %v20378_v56, %v20378_v56  ;;  %v20352_v14 = vadd.f32 %v20351_v5, %v20350_v41  ;;  %v20359_v45 = vadd.f32 %v20358_v62, %v20357_v37  ;;  %v20405_v41 = vld [vmem:[%s30465_s21] sm:$0x3f]  ;;  %v30915_v56 = vld [vmem:[#allocation14_spill] sm:$0xff] }
0x272b   : > { %v20379_v42 = vmul.f32 0.25, %v20340_v16  ;;  %v20380_v19 = vmul.f32 0.25, %v20347_v12  ;;  %v20364_v49 = vadd.f32 %v20363_v7, %v20362_v13  ;;  %v20371_v40 = vadd.f32 %v20370_v1, %v20369_v48  ;;  %v30912_v37 = vld [vmem:[#allocation11_spill] sm:$0xff]  ;;  %v30914_v48 = vld [vmem:[#allocation13_spill] sm:$0xff] }
0x272c   : > { %v20445_v52 = vunpack.c.l.b16 %v20385_v46  ;;  %v20446_v54 = vunpack.c.l.b16 %v20386_v18  ;;  %v20353_v61 = vrot.slane %v20352_v14, 1  ;;  %v20360_v22 = vrot.slane %v20359_v45, 1 }
0x272d   : > { %v20387_v58 = vpack.c.bf16 %v20379_v42, %v20379_v42  ;;  %v20388_v6 = vpack.c.bf16 %v20380_v19, %v20380_v19  ;;  %v20365_v17 = vrot.slane %v20364_v49, 2  ;;  %v20372_v2 = vrot.slane %v20371_v40, 2 }
0x272e   : > { %v20354_v60 = vadd.f32 %v20353_v61, %v20352_v14  ;;  %v20361_v33 = vadd.f32 %v20360_v22, %v20359_v45  ;;  %v20453_v23 = vsel %vm1117_vm1, %v20446_v54, %v20445_v52  ;;  %v20410_v57 = vrot.slane %v20405_v41, %v30912_v37  ;;  %v30917_v52 = vld [vmem:[#allocation27_spill] sm:$0xff] }
0x272f   : > { %v20447_v36 = vunpack.c.l.b16 %v20387_v58  ;;  %v20366_v50 = vadd.f32 %v20365_v17, %v20364_v49  ;;  %v20373_v55 = vadd.f32 %v20372_v2, %v20371_v40  ;;  %v20448_v43 = vunpack.c.l.b16 %v20388_v6  ;;  %v30916_v49 = vld [vmem:[#allocation25_spill] sm:$0xff] }
0x2730   : > { %v20381_v8 = vmul.f32 0.25, %v20354_v60  ;;  %v20382_v11 = vmul.f32 0.25, %v20361_v33  ;;  %v20418_v13 = vrot.slane %v20405_v41, %v30913_v26  ;;  %v20414_v20 = vrot.slane %v20405_v41, %v30914_v48 }
0x2731   : > { %v20367_v47 = vrot.slane %v20366_v50, 1  ;;  %v20374_v39 = vrot.slane %v20373_v55, 1  ;;  %v20454_v35 = vsel %vm1119_vm2, %v20447_v36, %v20453_v23  ;;  %v20422_v5 = vrot.slane %v20405_v41, %v30915_v56 }
0x2732   : > { %v20389_v32 = vpack.c.bf16 %v20381_v8, %v20381_v8  ;;  %v20390_v29 = vpack.c.bf16 %v20382_v11, %v20382_v11  ;;  %v20455_v31 = vsel %vm1121_vm3, %v20448_v43, %v20454_v35  ;;  %v20426_v40 = vrot.slane %v20405_v41, %v30916_v49 }
0x2733   : > { %v20368_v30 = vadd.f32 %v20367_v47, %v20366_v50  ;;  %v20375_v4 = vadd.f32 %v20374_v39, %v20373_v55  ;;  %v20430_v54 = vrot.slane %v20405_v41, %v30917_v52 }
0x2734   : > { %v20449_v59 = vunpack.c.l.b16 %v20389_v32  ;;  %v20450_v25 = vunpack.c.l.b16 %v20390_v29 }
0x2735   : > { %v20383_v9 = vmul.f32 0.25, %v20368_v30  ;;  %v20384_v24 = vmul.f32 0.25, %v20375_v4 }
0x2736   : > { %v20456_v34 = vsel %vm1123_vm4, %v20449_v59, %v20455_v31 }
0x2737   : > { %v20391_v28 = vpack.c.bf16 %v20383_v9, %v20383_v9  ;;  %v20392_v3 = vpack.c.bf16 %v20384_v24, %v20384_v24  ;;  %v20457_v63 = vsel %vm1125_vm5, %v20450_v25, %v20456_v34 }
0x2739   : > { %v20451_v10 = vunpack.c.l.b16 %v20391_v28  ;;  %v20452_v53 = vunpack.c.l.b16 %v20392_v3 }
0x273b   : > { %v20458_v15 = vsel %vm1127_vm6, %v20451_v10, %v20457_v63 }
0x273c   : > { %v20459_v44 = vsel %vm1129_vm7, %v20452_v53, %v20458_v15 }
0x273d   : > { %v20460_v51 = vpack.c.b16 %v20459_v44, %v20459_v44 }
0x273f   : > { %21767 = vmatmul.mubr.msk.bf16.vlgmr.msra.gmra.mrb[20].mxu1 %vm2295_vm13, %v20460_v51  ;;  %21768 = vmatmul.mubr.msk.bf16.vlgmr.msra.gmra.mrb[24].mxu0 %vm2295_vm13, %v20460_v51 }
0x2740   : > { %20607 = vmatpush1.bf16.msra.mxu1 %v23681_v21  ;;  %20638 = vmatprep.mubr.bf16.mxu1 %v30901_v0 }
0x2741   : > { %20608 = vmatprep.subr.bf16.mxu1 %v23686_v38 }
0x2744   : > { %20609 = vmatpush1.bf16.msra.mxu1 %v23684_v27 }
0x2747   : > { %21769 = vmatmul.mubr.msk.bf16.vlgmr.msra.gmra.mrb[24].mxu1 %vm2295_vm13, %v20460_v51 }
0x2812   : > { %v20558_v62 = vpop.f32.mrb[20].mxu1  ;;  %v20599_v16 = vpop.f32.mrb[24].mxu0 }
0x2813   : > { %v20559_v0 = vadd.f32 %v20558_v62, %v20410_v57  ;;  %v20600_v12 = vadd.f32 %v20599_v16, %v20418_v13  ;;  %v20560_v7 = vpop.f32.mrb[21].mxu1  ;;  %v20601_v1 = vpop.f32.mrb[25].mxu0 }
0x2814   : > { %v20561_v46 = vadd.f32 %v20560_v7, %v20414_v20  ;;  %v20602_v18 = vadd.f32 %v20601_v1, %v20422_v5  ;;  %v20562_v14 = vpop.f32.mrb[22].mxu1  ;;  %v20603_v45 = vpop.f32.mrb[26].mxu0 }
0x2815   : > { %24231 = vtanh.f32 %v20559_v0  ;;  %v20563_v42 = vpop.f32.mrb[23].mxu1  ;;  %v20604_v19 = vpop.f32.mrb[27].mxu0 }
0x2816   : > { %24233 = vtanh.f32 %v20600_v12 }
0x2817   : > { %24235 = vtanh.f32 %v20561_v46 }
0x2818   : > { %24237 = vtanh.f32 %v20602_v18 }
0x281a   : > { %v20640_v61 = vpop.f32.mrb[24].mxu1 }
0x281b   : > { %v20641_v22 = vadd.f32 %v20640_v61, %v20426_v40  ;;  %v20642_v58 = vpop.f32.mrb[25].mxu1 }
0x281c   : > { %v20643_v6 = vadd.f32 %v20642_v58, %v20430_v54  ;;  %v20644_v17 = vpop.f32.mrb[26].mxu1 }
0x281d   : > { %24239 = vtanh.f32 %v20641_v22  ;;  %v20645_v2 = vpop.f32.mrb[27].mxu1 }
0x281e   : > { %24241 = vtanh.f32 %v20643_v6 }
0x281f   : > { %v24232_v60 = vpop.eup %24231 }
0x2820   : > { %v24234_v33 = vpop.eup %24233  ;;  %20653 = vst [vmem:[%s709_s30] sm:$0xff] %v24232_v60 }
0x2821   : > { %v24236_v23 = vpop.eup %24235  ;;  %20655 = vst [vmem:[%s709_s30 + $0x10] sm:$0xff] %v24234_v33 }
0x2822   : > { %v24238_v36 = vpop.eup %24237  ;;  %20654 = vst [vmem:[%s709_s30 + $0x8] sm:$0xff] %v24236_v23 }
0x2823   : > { %20656 = vst [vmem:[%s709_s30 + $0x18] sm:$0xff] %v24238_v36 }
0x2827   : > { %v24240_v50 = vpop.eup %24239 }
0x2828   : > { %v24242_v55 = vpop.eup %24241  ;;  %20657 = vst [vmem:[%s709_s30 + $0x20] sm:$0xff] %v24240_v50 }
0x2829   : > { %20658 = vst [vmem:[%s709_s30 + $0x28] sm:$0xff] %v24242_v55 }
0x282a   : > { %24256 = shalt.err (!%p24253_p3)
}
0x282b   : > { %s24257_s0 = scalar_lea.hbm %s30400_s26, 768  ;;  %s24261_s24 = scalar_lea.hbm %s30466_s22, 1536 }
0x282c   : > { %p24258_p4 = scmp.ne.s32.totalorder %s30400_s26, %s24257_s0  ;;  %p24262_p9 = scmp.lt.u32.totalorder %s30400_s26, %s30466_s22 }
0x282d   : > { %p24263_p10 = scmp.lt.u32.totalorder %s24261_s24, %s24257_s0  ;;  %p24265_p12 = scmp.lt.u32.totalorder %s24257_s0, %s30400_s26 }
0x282e   : > { %p24259_p7 = pnand %p24258_p4, %p24481_p5 }
0x282f   : > { %p24264_p11 = por %p24263_p10, %p24262_p9 }
0x2830   : > { %p24260_p8 = pneg %p24259_p7 }
0x2831   : > { %p24266_p13 = por %p24265_p12, %p24264_p11 }
0x2833   : > { %p24267_p0 = pnand %p24266_p13, %p24260_p8 }
0x2835   : > { %24270 = shalt.err (!%p24267_p0)
}
0x2836   : > { %23296 = dma.vmem_to_hbm [thread:$0]  (%p24481_p5), %s30402_s25, 768, %s30400_s26, %s20660_s29  }
0x2837 PF: > { %s30918_s3 = sld [smem:[#allocation7_spill]]  ;;  %s30919_s1 = sld [smem:[#allocation5_spill]] }
0x283d   : > { %p23302_p1 = scmp.ge.s32.totalorder %s30918_s3, 2  ;;  %s20686_s30 = sand.u32 1, %s30919_s1  }
0x283e   : > { %s20687_s23 = scalar_lea.sflag [#allocation3], %s20686_s30 }
0x283f   : > { %p23299_p2 = pnand %p23302_p1, %p24485_p6 }
0x2841   : > { %24288 = dma.done.wait (!%p23299_p2), %s20687_s23, 768  }
0x2842   : > { %24290 = vsyncadd (!%p23299_p2), %s20687_s23, 4294966528  ;;  %s30921_s30 = sld [smem:[#allocation8_spill]]  ;;  %s30922_s0 = sld [smem:[#allocation6_spill]] }
0x2843   : > { %s30923_s29 = sld [smem:[#allocation9_spill]]  ;;  %s30924_s3 = smov %s24297_s28 }
0x2848   : > { %p32_p3 = scmp.ge.s32.totalorder %s30921_s30, 4   ;;  %s30925_s28 = smov %s30922_s0 }
0x284a   :  { %34 = sbr.rel (!%p32_p3) target bundleno = 11 (0xb), region = 161 }
0x2851   :  { %20692 = vsyncpa [#allocation3], 1 }
0x2852   :  { %20694 = vsyncpa [#allocation3 + $0x1], 1 }

</bundles_post_ra>
